<compile_context>
chip_gen: v7x
topology: tpu7x:2x2x1
jax: 0.10.0
libtpu: 0.0.40
codegen_flags: <defaults>
</compile_context>

<pallas_src>
import math

import numpy as np
import jax
import jax.numpy as jnp
from jax.experimental import pallas as pl
from jax.experimental.pallas import tpu as pltpu


# ----------------------------------------------------------------------------
# Generation-aware VMEM limit.
# ----------------------------------------------------------------------------
def _vmem_limit_bytes():
    cap = None
    try:
        info = pltpu.get_tpu_info()
        cap = int(getattr(info, "vmem_capacity_bytes", 0)) or None
    except Exception:
        cap = None
    if cap is None:
        return 32 * 1024 * 1024                      # conservative fallback
    # ~75% of physical, capped (96 MiB on v5e/v6e, 48 MiB on v7x).
    return int(max(32 * 1024 * 1024, min(int(cap * 0.75), 100 * 1024 * 1024)))


def _pick_th(H, W, C, cout, vmem_limit):
    """Largest divisor of H whose double-buffered in+out blocks fit budget."""
    budget = max(vmem_limit // 4, 1 << 20)
    for th in range(H, 0, -1):
        if H % th:
            continue
        if 2 * th * W * (C + cout) * 4 <= budget:
            return th
    return 1


# ----------------------------------------------------------------------------
# Trace-time helpers used inside kernels.
# ----------------------------------------------------------------------------
def _nearest_upsample_matrix(out_h, out_w, in_h, in_w):
    """One-hot (out_h*out_w, in_h*in_w) selection matrix for nearest upsample
    (PyTorch semantics: src = floor(dst * in / out))."""
    ri = (np.arange(out_h) * in_h) // out_h
    cj = (np.arange(out_w) * in_w) // out_w
    src = (ri[:, None] * in_w + cj[None, :]).reshape(-1)
    U = np.zeros((out_h * out_w, in_h * in_w), np.float32)
    U[np.arange(out_h * out_w), src] = 1.0
    return jnp.asarray(U)


def _conv3x3_taps(pad_ref, w_ref, H, W, ci, mxu_dtype):
    """3x3 conv via 9 per-tap dots into one f32 accumulator.

    pad_ref: (H+2, W+2, ci) zero-bordered scratch; w_ref: (9*ci, ci)."""
    acc = None
    t = 0
    for ki in range(3):
        for kj in range(3):
            tap = pad_ref[ki:ki + H, kj:kj + W, :].reshape(H * W, ci)
            wt = w_ref[t * ci:(t + 1) * ci, :]
            d = jnp.dot(tap.astype(mxu_dtype), wt,
                        preferred_element_type=jnp.float32)
            acc = d if acc is None else acc + d
            t += 1
    return acc                                        # (H*W, ci) f32


# ----------------------------------------------------------------------------
# Pallas kernel 1: fused conv1_1 + conv1_2 (1x1 conv, folded BN, ReLU).
# Single combined output (B, H, W, 2*ci); tiled over H strips.
# ----------------------------------------------------------------------------
def _conv1_fused(x, p11, p12, *, mxu_dtype, vmem_limit):
    w1, s1, b1 = p11
    w2, s2, b2 = p12
    B, H, W, C = x.shape
    ci = w1.shape[-1]
    wcat = jnp.concatenate([w1.reshape(C, ci), w2.reshape(C, ci)],
                           axis=-1).astype(mxu_dtype)              # (C, 2ci)
    scat = jnp.concatenate([s1, s2]).reshape(1, 2 * ci)
    bcat = jnp.concatenate([b1, b2]).reshape(1, 2 * ci)
    th = _pick_th(H, W, C, 2 * ci, vmem_limit)
    nh = H // th

    def kernel(x_ref, w_ref, s_ref, b_ref, o_ref):
        xm = x_ref[0].reshape(th * W, C).astype(mxu_dtype)
        y = jnp.dot(xm, w_ref[...], preferred_element_type=jnp.float32)
        y = jnp.maximum(y * s_ref[...] + b_ref[...], 0.0)
        o_ref[...] = y.reshape(1, th, W, 2 * ci).astype(o_ref.dtype)

    return pl.pallas_call(
        kernel,
        out_shape=jax.ShapeDtypeStruct((B, H, W, 2 * ci), mxu_dtype),
        grid=(B, nh),
        in_specs=[
            pl.BlockSpec((1, th, W, C), lambda b, h: (b, h, 0, 0)),
            pl.BlockSpec((C, 2 * ci), lambda b, h: (0, 0)),
            pl.BlockSpec((1, 2 * ci), lambda b, h: (0, 0)),
            pl.BlockSpec((1, 2 * ci), lambda b, h: (0, 0)),
        ],
        out_specs=pl.BlockSpec((1, th, W, 2 * ci), lambda b, h: (b, h, 0, 0)),
        compiler_params=pltpu.CompilerParams(
            dimension_semantics=("parallel", "parallel"),
            vmem_limit_bytes=vmem_limit),
    )(x, wcat, scat, bcat)


# ----------------------------------------------------------------------------
# Pallas kernel 2: fully fused
#   branch A:  conv2_0(x1) + up(conv2_1(pool1)) + up(conv2_2(pool2)) -> ReLU
#              -> conv2_5 (+BN+ReLU)
#   branch B:  broadcast(conv2_3(pool3)) + broadcast(conv2_4(pool4)) -> ReLU
#              -> conv2_6 (+BN+ReLU)
#   head:      conv3 (1x1, K=2*ci) + BN + residual add + final ReLU.
# x1b / x2b never leave VMEM; 3x3 convs are per-tap dots on a shared
# zero-bordered scratch (border zeroed once at grid step 0).
# ----------------------------------------------------------------------------
def _fused_branches_conv3(x12, s2, s3, s4, s5, x, params, *,
                          mxu_dtype, vmem_limit):
    B, H, W, two_ci = x12.shape
    ci = two_ci // 2
    C = x.shape[-1]
    q0 = s2.shape[1]
    q1 = s3.shape[1]

    w20, sc20, bi20 = params["conv2_0"]
    w25, sc25, bi25 = params["conv2_5"]
    w26, sc26, bi26 = params["conv2_6"]
    w3, sc3, bi3 = params["conv3"]

    w20f = w20.reshape(9 * ci, ci).astype(mxu_dtype)
    w25f = w25.reshape(9 * ci, ci).astype(mxu_dtype)
    w26f = w26.reshape(9 * ci, ci).astype(mxu_dtype)
    w3f = w3.reshape(2 * ci, C).astype(mxu_dtype)
    sb20 = jnp.stack([sc20, bi20], axis=0)            # (2, ci)
    sb25 = jnp.stack([sc25, bi25], axis=0)
    sb26 = jnp.stack([sc26, bi26], axis=0)
    sb3 = jnp.stack([sc3, bi3], axis=0)               # (2, C)
    U2 = _nearest_upsample_matrix(H, W, q0, q0).astype(mxu_dtype)
    U3 = _nearest_upsample_matrix(H, W, q1, q1).astype(mxu_dtype)

    def kernel(x12_ref, s2_ref, s3_ref, s4_ref, s5_ref, x_ref,
               u2_ref, u3_ref, w20_ref, w25_ref, w26_ref, w3_ref,
               sb20_ref, sb25_ref, sb26_ref, sb3_ref,
               o_ref, pad_ref):
        # Scratch persists across grid steps; only the 1-px border must be 0.
        @pl.when(pl.program_id(0) == 0)
        def _():
            pad_ref[...] = jnp.zeros(pad_ref.shape, pad_ref.dtype)

        # ---------------- branch A ----------------
        x1v = x12_ref[0][:, :, :ci]                              # (H, W, ci)
        pad_ref[1:1 + H, 1:1 + W, :] = x1v.astype(pad_ref.dtype)
        a = _conv3x3_taps(pad_ref, w20_ref, H, W, ci, mxu_dtype)
        a = a * sb20_ref[0:1, :] + sb20_ref[1:2, :]
        up2 = jnp.dot(u2_ref[...],
                      s2_ref[0].reshape(q0 * q0, ci).astype(mxu_dtype),
                      preferred_element_type=jnp.float32)
        up3 = jnp.dot(u3_ref[...],
                      s3_ref[0].reshape(q1 * q1, ci).astype(mxu_dtype),
                      preferred_element_type=jnp.float32)
        merged = jnp.maximum(a + up2 + up3, 0.0)                 # (H*W, ci)
        pad_ref[1:1 + H, 1:1 + W, :] = merged.reshape(H, W, ci).astype(
            pad_ref.dtype)
        x1b = _conv3x3_taps(pad_ref, w25_ref, H, W, ci, mxu_dtype)
        x1b = jnp.maximum(x1b * sb25_ref[0:1, :] + sb25_ref[1:2, :], 0.0)

        # ---------------- branch B ----------------
        mb = jnp.maximum(s4_ref[0].astype(jnp.float32) +
                         s5_ref[0].astype(jnp.float32), 0.0)     # (H, W, ci)
        pad_ref[1:1 + H, 1:1 + W, :] = mb.astype(pad_ref.dtype)
        x2b = _conv3x3_taps(pad_ref, w26_ref, H, W, ci, mxu_dtype)
        x2b = jnp.maximum(x2b * sb26_ref[0:1, :] + sb26_ref[1:2, :], 0.0)

        # ------------- conv3 + residual ------------
        cat = jnp.concatenate([x1b, x2b], axis=-1).astype(mxu_dtype)
        y = jnp.dot(cat, w3_ref[...], preferred_element_type=jnp.float32)
        y = y * sb3_ref[0:1, :] + sb3_ref[1:2, :]
        res = x_ref[0].reshape(H * W, C).astype(jnp.float32)
        o_ref[...] = jnp.maximum(res + y, 0.0).reshape(1, H, W, C).astype(
            o_ref.dtype)

    return pl.pallas_call(
        kernel,
        out_shape=jax.ShapeDtypeStruct((B, H, W, C), x.dtype),
        grid=(B,),
        in_specs=[
            pl.BlockSpec((1, H, W, 2 * ci), lambda b: (b, 0, 0, 0)),
            pl.BlockSpec((1, q0, q0, ci), lambda b: (b, 0, 0, 0)),
            pl.BlockSpec((1, q1, q1, ci), lambda b: (b, 0, 0, 0)),
            pl.BlockSpec((1, 1, W, ci), lambda b: (b, 0, 0, 0)),
            pl.BlockSpec((1, H, 1, ci), lambda b: (b, 0, 0, 0)),
            pl.BlockSpec((1, H, W, C), lambda b: (b, 0, 0, 0)),
            pl.BlockSpec((H * W, q0 * q0), lambda b: (0, 0)),
            pl.BlockSpec((H * W, q1 * q1), lambda b: (0, 0)),
            pl.BlockSpec((9 * ci, ci), lambda b: (0, 0)),
            pl.BlockSpec((9 * ci, ci), lambda b: (0, 0)),
            pl.BlockSpec((9 * ci, ci), lambda b: (0, 0)),
            pl.BlockSpec((2 * ci, C), lambda b: (0, 0)),
            pl.BlockSpec((2, ci), lambda b: (0, 0)),
            pl.BlockSpec((2, ci), lambda b: (0, 0)),
            pl.BlockSpec((2, ci), lambda b: (0, 0)),
            pl.BlockSpec((2, C), lambda b: (0, 0)),
        ],
        out_specs=pl.BlockSpec((1, H, W, C), lambda b: (b, 0, 0, 0)),
        scratch_shapes=[pltpu.VMEM((H + 2, W + 2, ci), jnp.float32)],
        compiler_params=pltpu.CompilerParams(
            dimension_semantics=("arbitrary",),   # scratch border carries over
            vmem_limit_bytes=vmem_limit),
    )(x12, s2, s3, s4, s5, x, U2, U3, w20f, w25f, w26f, w3f,
      sb20, sb25, sb26, sb3)


# ----------------------------------------------------------------------------
# Plain-XLA glue: adaptive pooling + the four tiny pooled-branch convs
# (per review: per-pallas_call overhead would dwarf their compute).
# ----------------------------------------------------------------------------
def _conv_bn_xla(x, params, *, pad=(0, 0), relu=False):
    w, scale, bias = params
    y = jax.lax.conv_general_dilated(
        x.astype(jnp.float32), w, window_strides=(1, 1),
        padding=((pad[0], pad[0]), (pad[1], pad[1])),
        dimension_numbers=("NHWC", "HWIO", "NHWC"))
    y = y * scale + bias
    if relu:
        y = jnp.maximum(y, 0.0)
    return y


def _adaptive_avg_pool(x, out_h, out_w):
    """AdaptiveAvgPool2d (NHWC), PyTorch bin semantics."""
    B, H, W, C = x.shape
    if H % out_h == 0 and W % out_w == 0:
        return x.reshape(B, out_h, H // out_h, out_w, W // out_w, C).mean(
            axis=(2, 4))
    rows = []
    for i in range(out_h):
        h0 = (i * H) // out_h
        h1 = -(-((i + 1) * H) // out_h)
        cols = []
        for j in range(out_w):
            w0 = (j * W) // out_w
            w1 = -(-((j + 1) * W) // out_w)
            cols.append(jnp.mean(x[:, h0:h1, w0:w1, :], axis=(1, 2)))
        rows.append(jnp.stack(cols, axis=1))
    return jnp.stack(rows, axis=1)


def _upsample_nearest(x, h, w):
    """F.interpolate(..., mode='nearest') semantics (reference only)."""
    B, H0, W0, C = x.shape
    ri = (jnp.arange(h) * H0) // h
    ci = (jnp.arange(w) * W0) // w
    return x[:, ri][:, :, ci]


# ----------------------------------------------------------------------------
# Parameter construction (deterministic, folded BN in eval mode).
# ----------------------------------------------------------------------------
def _make_conv_bn_params(key, kh, kw, cin, cout):
    k1, k2, k3, k4, k5 = jax.random.split(key, 5)
    w = jax.random.normal(k1, (kh, kw, cin, cout), jnp.float32) * (
        1.0 / math.sqrt(kh * kw * cin))
    gamma = 1.0 + 0.1 * jax.random.normal(k2, (cout,), jnp.float32)
    beta = 0.1 * jax.random.normal(k3, (cout,), jnp.float32)
    mean = 0.1 * jax.random.normal(k4, (cout,), jnp.float32)
    var = jax.random.uniform(k5, (cout,), jnp.float32, 0.5, 1.5)
    scale = gamma / jnp.sqrt(var + 1e-5)
    bias = beta - mean * scale
    return (w, scale, bias)


def make_strip_pooling_params(key, in_channels):
    ci = in_channels // 4
    names_shapes = {
        "conv1_1": (1, 1, in_channels, ci),
        "conv1_2": (1, 1, in_channels, ci),
        "conv2_0": (3, 3, ci, ci),
        "conv2_1": (3, 3, ci, ci),
        "conv2_2": (3, 3, ci, ci),
        "conv2_3": (1, 3, ci, ci),
        "conv2_4": (3, 1, ci, ci),
        "conv2_5": (3, 3, ci, ci),
        "conv2_6": (3, 3, ci, ci),
        "conv3": (1, 1, 2 * ci, in_channels),
    }
    keys = jax.random.split(key, len(names_shapes))
    return {name: _make_conv_bn_params(k, *shape)
            for k, (name, shape) in zip(keys, names_shapes.items())}


# ----------------------------------------------------------------------------
# Forward pass.
# ----------------------------------------------------------------------------
def strip_pooling_forward(x, params, pool_size, *, mxu_dtype=jnp.float32):
    B, H, W, C = x.shape
    ci = C // 4
    vmem_limit = _vmem_limit_bytes()

    # conv1_1 + conv1_2 fused, single combined output (single read of x).
    x12 = _conv1_fused(x, params["conv1_1"], params["conv1_2"],
                       mxu_dtype=mxu_dtype, vmem_limit=vmem_limit)
    # Pool inputs in f32 (avoid bf16 mean accumulation / conv dtype mismatch).
    x1f = x12[..., :ci].astype(jnp.float32)
    x2f = x12[..., ci:].astype(jnp.float32)

    # Tiny pooled-branch convs: plain XLA.
    s2 = _conv_bn_xla(_adaptive_avg_pool(x1f, pool_size[0], pool_size[0]),
                      params["conv2_1"], pad=(1, 1))
    s3 = _conv_bn_xla(_adaptive_avg_pool(x1f, pool_size[1], pool_size[1]),
                      params["conv2_2"], pad=(1, 1))
    s4 = _conv_bn_xla(jnp.mean(x2f, axis=1, keepdims=True),   # pool3 (1,None)
                      params["conv2_3"], pad=(0, 1))
    s5 = _conv_bn_xla(jnp.mean(x2f, axis=2, keepdims=True),   # pool4 (None,1)
                      params["conv2_4"], pad=(1, 0))

    # Everything else fused in one kernel; x1b/x2b never reach HBM.
    return _fused_branches_conv3(x12, s2, s3, s4, s5, x, params,
                                 mxu_dtype=mxu_dtype, vmem_limit=vmem_limit)


# ----------------------------------------------------------------------------
# Pure-JAX reference (correctness check only).
# ----------------------------------------------------------------------------
def strip_pooling_ref(x, params, pool_size):
    B, H, W, C = x.shape
    x1 = _conv_bn_xla(x, params["conv1_1"], relu=True)
    x2 = _conv_bn_xla(x, params["conv1_2"], relu=True)
    x2_1 = _conv_bn_xla(x1, params["conv2_0"], pad=(1, 1))
    x2_2 = _upsample_nearest(
        _conv_bn_xla(_adaptive_avg_pool(x1, pool_size[0], pool_size[0]),
                     params["conv2_1"], pad=(1, 1)), H, W)
    x2_3 = _upsample_nearest(
        _conv_bn_xla(_adaptive_avg_pool(x1, pool_size[1], pool_size[1]),
                     params["conv2_2"], pad=(1, 1)), H, W)
    x2_4 = _upsample_nearest(
        _conv_bn_xla(jnp.mean(x2, axis=1, keepdims=True),
                     params["conv2_3"], pad=(0, 1)), H, W)
    x2_5 = _upsample_nearest(
        _conv_bn_xla(jnp.mean(x2, axis=2, keepdims=True),
                     params["conv2_4"], pad=(1, 0)), H, W)
    x1b = _conv_bn_xla(jnp.maximum(x2_1 + x2_2 + x2_3, 0.0),
                       params["conv2_5"], pad=(1, 1), relu=True)
    x2b = _conv_bn_xla(jnp.maximum(x2_5 + x2_4, 0.0),
                       params["conv2_6"], pad=(1, 1), relu=True)
    out = _conv_bn_xla(jnp.concatenate([x1b, x2b], axis=-1), params["conv3"])
    return jnp.maximum(x + out, 0.0)


if __name__ == "__main__":
    B, C, H, W = 2, 16, 16, 16          # in_channels=16 -> inter_channels=4
    pool_size = (2, 4)

    key = jax.random.PRNGKey(0)
    kx, kp = jax.random.split(key)
    x = jax.random.normal(kx, (B, H, W, C), jnp.float32)   # NHWC
    params = make_strip_pooling_params(kp, C)

    y_ref = jax.block_until_ready(strip_pooling_ref(x, params, pool_size))

    # f32 MXU path (tight check).
    fwd_f32 = jax.jit(lambda xx: strip_pooling_forward(xx, params, pool_size))
    y = jax.block_until_ready(fwd_f32(x))
    assert y.shape == (B, H, W, C)
    err = float(jnp.max(jnp.abs(y - y_ref)))
    assert jnp.allclose(y, y_ref, atol=2e-3, rtol=2e-3), err

    # bf16 MXU operands with f32 accumulate (loose check vs f32 reference).
    fwd_bf16 = jax.jit(lambda xx: strip_pooling_forward(
        xx, params, pool_size, mxu_dtype=jnp.bfloat16))
    y_bf16 = jax.block_until_ready(fwd_bf16(x)).astype(jnp.float32)
    err_bf16 = float(jnp.max(jnp.abs(y_bf16 - y_ref)))
    assert jnp.allclose(y_bf16, y_ref, atol=2e-1, rtol=2e-1), err_bf16

    print("KERNEL_OK")
</pallas_src>

<mosaic_0001>
module attributes {stable_mosaic.version = 11 : i64} {
  func.func @kernel(%arg0: i32, %arg1: i32, %arg2: memref<1x16x16x16xf32, #tpu.memory_space<vmem>>, %arg3: memref<16x8xf32, #tpu.memory_space<vmem>>, %arg4: memref<1x8xf32, #tpu.memory_space<vmem>>, %arg5: memref<1x8xf32, #tpu.memory_space<vmem>>, %arg6: memref<1x16x16x8xf32, #tpu.memory_space<vmem>>) attributes {dimension_semantics = [#tpu.dimension_semantics<parallel>, #tpu.dimension_semantics<parallel>], iteration_bounds = array<i64: 2, 1>, scalar_prefetch = 0 : i64, scratch_operands = 0 : i64, tpu.core_type = #tpu.core_type<tc>, window_params = [{transform_indices = @transform_0, window_bounds = array<i64: 1, 16, 16, 16>}, {pipeline_mode = #tpu.pipeline_mode<synchronous>, transform_indices = @transform_1, window_bounds = array<i64: 16, 8>}, {pipeline_mode = #tpu.pipeline_mode<synchronous>, transform_indices = @transform_2, window_bounds = array<i64: 1, 8>}, {pipeline_mode = #tpu.pipeline_mode<synchronous>, transform_indices = @transform_3, window_bounds = array<i64: 1, 8>}, {transform_indices = @transform_4, window_bounds = array<i64: 1, 16, 16, 8>}]} {
    %c0 = arith.constant 0 : index
    %c0_0 = arith.constant 0 : index
    %c0_1 = arith.constant 0 : index
    %c0_2 = arith.constant 0 : index
    %0 = vector.load %arg2[%c0, %c0_0, %c0_1, %c0_2] : memref<1x16x16x16xf32, #tpu.memory_space<vmem>>, vector<1x16x16x16xf32>
    %1 = vector.shape_cast %0 : vector<1x16x16x16xf32> to vector<16x16x16xf32>
    %2 = vector.shape_cast %1 : vector<16x16x16xf32> to vector<256x16xf32>
    %c0_3 = arith.constant 0 : index
    %c0_4 = arith.constant 0 : index
    %3 = vector.load %arg3[%c0_3, %c0_4] : memref<16x8xf32, #tpu.memory_space<vmem>>, vector<16x8xf32>
    %cst = arith.constant dense<0.000000e+00> : vector<256x8xf32>
    %4 = tpu.matmul %2, %3, %cst {dimension_numbers = #tpu.dot_dimension_numbers<[1], [0], [0], [1], [0, 0, 1, 1], [], []>} : vector<256x16xf32>, vector<16x8xf32>, vector<256x8xf32> -> vector<256x8xf32>
    %c0_5 = arith.constant 0 : index
    %c0_6 = arith.constant 0 : index
    %5 = vector.load %arg4[%c0_5, %c0_6] : memref<1x8xf32, #tpu.memory_space<vmem>>, vector<1x8xf32>
    %6 = vector.broadcast %5 : vector<1x8xf32> to vector<256x8xf32>
    %7 = arith.mulf %4, %6 : vector<256x8xf32>
    %c0_7 = arith.constant 0 : index
    %c0_8 = arith.constant 0 : index
    %8 = vector.load %arg5[%c0_7, %c0_8] : memref<1x8xf32, #tpu.memory_space<vmem>>, vector<1x8xf32>
    %9 = vector.broadcast %8 : vector<1x8xf32> to vector<256x8xf32>
    %10 = arith.addf %7, %9 : vector<256x8xf32>
    %cst_9 = arith.constant 0.000000e+00 : f32
    %11 = vector.broadcast %cst_9 : f32 to vector<256x8xf32>
    %12 = arith.maximumf %10, %11 : vector<256x8xf32>
    %13 = vector.shape_cast %12 : vector<256x8xf32> to vector<1x16x16x8xf32>
    %c0_10 = arith.constant 0 : index
    %c0_11 = arith.constant 0 : index
    %c0_12 = arith.constant 0 : index
    %c0_13 = arith.constant 0 : index
    %14 = vector.load %arg6[%c0_10, %c0_11, %c0_12, %c0_13] : memref<1x16x16x8xf32, #tpu.memory_space<vmem>>, vector<1x16x16x8xf32>
    tpu.vector_store %arg6[%c0_10, %c0_11, %c0_12, %c0_13], %13 {strides = array<i32>} : memref<1x16x16x8xf32, #tpu.memory_space<vmem>>, vector<1x16x16x8xf32>,
    return
  }
  func.func @transform_0(%arg0: i32, %arg1: i32) -> (i32, i32, i32, i32) {
    %c0_i32 = arith.constant 0 : i32
    %c0_i32_0 = arith.constant 0 : i32
    %c0_i32_1 = arith.constant 0 : i32
    return %arg0, %arg1, %c0_i32, %c0_i32_0 : i32, i32, i32, i32
  }
  func.func @transform_1(%arg0: i32, %arg1: i32) -> (i32, i32) {
    %c0_i32 = arith.constant 0 : i32
    %c0_i32_0 = arith.constant 0 : i32
    %c0_i32_1 = arith.constant 0 : i32
    return %c0_i32, %c0_i32_0 : i32, i32
  }
  func.func @transform_2(%arg0: i32, %arg1: i32) -> (i32, i32) {
    %c0_i32 = arith.constant 0 : i32
    %c0_i32_0 = arith.constant 0 : i32
    %c0_i32_1 = arith.constant 0 : i32
    return %c0_i32, %c0_i32_0 : i32, i32
  }
  func.func @transform_3(%arg0: i32, %arg1: i32) -> (i32, i32) {
    %c0_i32 = arith.constant 0 : i32
    %c0_i32_0 = arith.constant 0 : i32
    %c0_i32_1 = arith.constant 0 : i32
    return %c0_i32, %c0_i32_0 : i32, i32
  }
  func.func @transform_4(%arg0: i32, %arg1: i32) -> (i32, i32, i32, i32) {
    %c0_i32 = arith.constant 0 : i32
    %c0_i32_0 = arith.constant 0 : i32
    %c0_i32_1 = arith.constant 0 : i32
    return %arg0, %arg1, %c0_i32, %c0_i32_0 : i32, i32, i32, i32
  }
}

module attributes {stable_mosaic.version = 11 : i64} {
  func.func @kernel(%arg0: i32, %arg1: memref<1x16x16x8xf32, #tpu.memory_space<vmem>>, %arg2: memref<1x2x2x4xf32, #tpu.memory_space<vmem>>, %arg3: memref<1x4x4x4xf32, #tpu.memory_space<vmem>>, %arg4: memref<1x1x16x4xf32, #tpu.memory_space<vmem>>, %arg5: memref<1x16x1x4xf32, #tpu.memory_space<vmem>>, %arg6: memref<1x16x16x16xf32, #tpu.memory_space<vmem>>, %arg7: memref<256x4xf32, #tpu.memory_space<vmem>>, %arg8: memref<256x16xf32, #tpu.memory_space<vmem>>, %arg9: memref<36x4xf32, #tpu.memory_space<vmem>>, %arg10: memref<36x4xf32, #tpu.memory_space<vmem>>, %arg11: memref<36x4xf32, #tpu.memory_space<vmem>>, %arg12: memref<8x16xf32, #tpu.memory_space<vmem>>, %arg13: memref<2x4xf32, #tpu.memory_space<vmem>>, %arg14: memref<2x4xf32, #tpu.memory_space<vmem>>, %arg15: memref<2x4xf32, #tpu.memory_space<vmem>>, %arg16: memref<2x16xf32, #tpu.memory_space<vmem>>, %arg17: memref<1x16x16x16xf32, #tpu.memory_space<vmem>>, %arg18: memref<18x18x4xf32, #tpu.memory_space<vmem>>) attributes {dimension_semantics = [#tpu.dimension_semantics<arbitrary>], iteration_bounds = array<i64: 2>, scalar_prefetch = 0 : i64, scratch_operands = 1 : i64, tpu.core_type = #tpu.core_type<tc>, window_params = [{transform_indices = @transform_0, window_bounds = array<i64: 1, 16, 16, 8>}, {transform_indices = @transform_1, window_bounds = array<i64: 1, 2, 2, 4>}, {transform_indices = @transform_2, window_bounds = array<i64: 1, 4, 4, 4>}, {transform_indices = @transform_3, window_bounds = array<i64: 1, 1, 16, 4>}, {transform_indices = @transform_4, window_bounds = array<i64: 1, 16, 1, 4>}, {transform_indices = @transform_5, window_bounds = array<i64: 1, 16, 16, 16>}, {pipeline_mode = #tpu.pipeline_mode<synchronous>, transform_indices = @transform_6, window_bounds = array<i64: 256, 4>}, {pipeline_mode = #tpu.pipeline_mode<synchronous>, transform_indices = @transform_7, window_bounds = array<i64: 256, 16>}, {pipeline_mode = #tpu.pipeline_mode<synchronous>, transform_indices = @transform_8, window_bounds = array<i64: 36, 4>}, {pipeline_mode = #tpu.pipeline_mode<synchronous>, transform_indices = @transform_9, window_bounds = array<i64: 36, 4>}, {pipeline_mode = #tpu.pipeline_mode<synchronous>, transform_indices = @transform_10, window_bounds = array<i64: 36, 4>}, {pipeline_mode = #tpu.pipeline_mode<synchronous>, transform_indices = @transform_11, window_bounds = array<i64: 8, 16>}, {pipeline_mode = #tpu.pipeline_mode<synchronous>, transform_indices = @transform_12, window_bounds = array<i64: 2, 4>}, {pipeline_mode = #tpu.pipeline_mode<synchronous>, transform_indices = @transform_13, window_bounds = array<i64: 2, 4>}, {pipeline_mode = #tpu.pipeline_mode<synchronous>, transform_indices = @transform_14, window_bounds = array<i64: 2, 4>}, {pipeline_mode = #tpu.pipeline_mode<synchronous>, transform_indices = @transform_15, window_bounds = array<i64: 2, 16>}, {transform_indices = @transform_16, window_bounds = array<i64: 1, 16, 16, 16>}]} {
    %c0_i32 = arith.constant 0 : i32
    %0 = arith.cmpi eq, %arg0, %c0_i32 : i32
    %1 = arith.extui %0 : i1 to i32
    %c0_i32_0 = arith.constant 0 : i32
    %2 = arith.cmpi ne, %1, %c0_i32_0 : i32
    scf.if %2 {
      %cst_218 = arith.constant 0.000000e+00 : f32
      %204 = vector.broadcast %cst_218 : f32 to vector<18x18x4xf32>
      %c0_219 = arith.constant 0 : index
      %c0_220 = arith.constant 0 : index
      %c0_221 = arith.constant 0 : index
      %205 = vector.load %arg18[%c0_219, %c0_220, %c0_221] : memref<18x18x4xf32, #tpu.memory_space<vmem>>, vector<18x18x4xf32>
      tpu.vector_store %arg18[%c0_219, %c0_220, %c0_221], %204 {strides = array<i32>} : memref<18x18x4xf32, #tpu.memory_space<vmem>>, vector<18x18x4xf32>,
    } else {
    }
    %c0 = arith.constant 0 : index
    %c0_1 = arith.constant 0 : index
    %c0_2 = arith.constant 0 : index
    %c0_3 = arith.constant 0 : index
    %3 = vector.load %arg1[%c0, %c0_1, %c0_2, %c0_3] : memref<1x16x16x8xf32, #tpu.memory_space<vmem>>, vector<1x16x16x8xf32>
    %4 = vector.shape_cast %3 : vector<1x16x16x8xf32> to vector<16x16x8xf32>
    %5 = vector.extract_strided_slice %4 {offsets = [0, 0, 0], sizes = [16, 16, 4], strides = [1, 1, 1]} : vector<16x16x8xf32> to vector<16x16x4xf32>
    %c1 = arith.constant 1 : index
    %c1_4 = arith.constant 1 : index
    %c0_5 = arith.constant 0 : index
    %6 = vector.load %arg18[%c1, %c1_4, %c0_5] : memref<18x18x4xf32, #tpu.memory_space<vmem>>, vector<16x16x4xf32>
    tpu.vector_store %arg18[%c1, %c1_4, %c0_5], %5 {strides = array<i32>} : memref<18x18x4xf32, #tpu.memory_space<vmem>>, vector<16x16x4xf32>,
    %c0_6 = arith.constant 0 : index
    %c0_7 = arith.constant 0 : index
    %c0_8 = arith.constant 0 : index
    %7 = vector.load %arg18[%c0_6, %c0_7, %c0_8] : memref<18x18x4xf32, #tpu.memory_space<vmem>>, vector<16x16x4xf32>
    %8 = vector.shape_cast %7 : vector<16x16x4xf32> to vector<256x4xf32>
    %c0_9 = arith.constant 0 : index
    %c0_10 = arith.constant 0 : index
    %9 = vector.load %arg9[%c0_9, %c0_10] : memref<36x4xf32, #tpu.memory_space<vmem>>, vector<4x4xf32>
    %cst = arith.constant dense<0.000000e+00> : vector<256x4xf32>
    %10 = tpu.matmul %8, %9, %cst {dimension_numbers = #tpu.dot_dimension_numbers<[1], [0], [0], [1], [0, 0, 1, 1], [], []>} : vector<256x4xf32>, vector<4x4xf32>, vector<256x4xf32> -> vector<256x4xf32>
    %c0_11 = arith.constant 0 : index
    %c1_12 = arith.constant 1 : index
    %c0_13 = arith.constant 0 : index
    %11 = vector.load %arg18[%c0_11, %c1_12, %c0_13] : memref<18x18x4xf32, #tpu.memory_space<vmem>>, vector<16x16x4xf32>
    %12 = vector.shape_cast %11 : vector<16x16x4xf32> to vector<256x4xf32>
    %c4 = arith.constant 4 : index
    %c0_14 = arith.constant 0 : index
    %13 = vector.load %arg9[%c4, %c0_14] : memref<36x4xf32, #tpu.memory_space<vmem>>, vector<4x4xf32>
    %cst_15 = arith.constant dense<0.000000e+00> : vector<256x4xf32>
    %14 = tpu.matmul %12, %13, %cst_15 {dimension_numbers = #tpu.dot_dimension_numbers<[1], [0], [0], [1], [0, 0, 1, 1], [], []>} : vector<256x4xf32>, vector<4x4xf32>, vector<256x4xf32> -> vector<256x4xf32>
    %15 = arith.addf %10, %14 : vector<256x4xf32>
    %c0_16 = arith.constant 0 : index
    %c2 = arith.constant 2 : index
    %c0_17 = arith.constant 0 : index
    %16 = vector.load %arg18[%c0_16, %c2, %c0_17] : memref<18x18x4xf32, #tpu.memory_space<vmem>>, vector<16x16x4xf32>
    %17 = vector.shape_cast %16 : vector<16x16x4xf32> to vector<256x4xf32>
    %c8 = arith.constant 8 : index
    %c0_18 = arith.constant 0 : index
    %18 = vector.load %arg9[%c8, %c0_18] : memref<36x4xf32, #tpu.memory_space<vmem>>, vector<4x4xf32>
    %cst_19 = arith.constant dense<0.000000e+00> : vector<256x4xf32>
    %19 = tpu.matmul %17, %18, %cst_19 {dimension_numbers = #tpu.dot_dimension_numbers<[1], [0], [0], [1], [0, 0, 1, 1], [], []>} : vector<256x4xf32>, vector<4x4xf32>, vector<256x4xf32> -> vector<256x4xf32>
    %20 = arith.addf %15, %19 : vector<256x4xf32>
    %c1_20 = arith.constant 1 : index
    %c0_21 = arith.constant 0 : index
    %c0_22 = arith.constant 0 : index
    %21 = vector.load %arg18[%c1_20, %c0_21, %c0_22] : memref<18x18x4xf32, #tpu.memory_space<vmem>>, vector<16x16x4xf32>
    %22 = vector.shape_cast %21 : vector<16x16x4xf32> to vector<256x4xf32>
    %c12 = arith.constant 12 : index
    %c0_23 = arith.constant 0 : index
    %23 = vector.load %arg9[%c12, %c0_23] : memref<36x4xf32, #tpu.memory_space<vmem>>, vector<4x4xf32>
    %cst_24 = arith.constant dense<0.000000e+00> : vector<256x4xf32>
    %24 = tpu.matmul %22, %23, %cst_24 {dimension_numbers = #tpu.dot_dimension_numbers<[1], [0], [0], [1], [0, 0, 1, 1], [], []>} : vector<256x4xf32>, vector<4x4xf32>, vector<256x4xf32> -> vector<256x4xf32>
    %25 = arith.addf %20, %24 : vector<256x4xf32>
    %c1_25 = arith.constant 1 : index
    %c1_26 = arith.constant 1 : index
    %c0_27 = arith.constant 0 : index
    %26 = vector.load %arg18[%c1_25, %c1_26, %c0_27] : memref<18x18x4xf32, #tpu.memory_space<vmem>>, vector<16x16x4xf32>
    %27 = vector.shape_cast %26 : vector<16x16x4xf32> to vector<256x4xf32>
    %c16 = arith.constant 16 : index
    %c0_28 = arith.constant 0 : index
    %28 = vector.load %arg9[%c16, %c0_28] : memref<36x4xf32, #tpu.memory_space<vmem>>, vector<4x4xf32>
    %cst_29 = arith.constant dense<0.000000e+00> : vector<256x4xf32>
    %29 = tpu.matmul %27, %28, %cst_29 {dimension_numbers = #tpu.dot_dimension_numbers<[1], [0], [0], [1], [0, 0, 1, 1], [], []>} : vector<256x4xf32>, vector<4x4xf32>, vector<256x4xf32> -> vector<256x4xf32>
    %30 = arith.addf %25, %29 : vector<256x4xf32>
    %c1_30 = arith.constant 1 : index
    %c2_31 = arith.constant 2 : index
    %c0_32 = arith.constant 0 : index
    %31 = vector.load %arg18[%c1_30, %c2_31, %c0_32] : memref<18x18x4xf32, #tpu.memory_space<vmem>>, vector<16x16x4xf32>
    %32 = vector.shape_cast %31 : vector<16x16x4xf32> to vector<256x4xf32>
    %c20 = arith.constant 20 : index
    %c0_33 = arith.constant 0 : index
    %33 = vector.load %arg9[%c20, %c0_33] : memref<36x4xf32, #tpu.memory_space<vmem>>, vector<4x4xf32>
    %cst_34 = arith.constant dense<0.000000e+00> : vector<256x4xf32>
    %34 = tpu.matmul %32, %33, %cst_34 {dimension_numbers = #tpu.dot_dimension_numbers<[1], [0], [0], [1], [0, 0, 1, 1], [], []>} : vector<256x4xf32>, vector<4x4xf32>, vector<256x4xf32> -> vector<256x4xf32>
    %35 = arith.addf %30, %34 : vector<256x4xf32>
    %c2_35 = arith.constant 2 : index
    %c0_36 = arith.constant 0 : index
    %c0_37 = arith.constant 0 : index
    %36 = vector.load %arg18[%c2_35, %c0_36, %c0_37] : memref<18x18x4xf32, #tpu.memory_space<vmem>>, vector<16x16x4xf32>
    %37 = vector.shape_cast %36 : vector<16x16x4xf32> to vector<256x4xf32>
    %c24 = arith.constant 24 : index
    %c0_38 = arith.constant 0 : index
    %38 = vector.load %arg9[%c24, %c0_38] : memref<36x4xf32, #tpu.memory_space<vmem>>, vector<4x4xf32>
    %cst_39 = arith.constant dense<0.000000e+00> : vector<256x4xf32>
    %39 = tpu.matmul %37, %38, %cst_39 {dimension_numbers = #tpu.dot_dimension_numbers<[1], [0], [0], [1], [0, 0, 1, 1], [], []>} : vector<256x4xf32>, vector<4x4xf32>, vector<256x4xf32> -> vector<256x4xf32>
    %40 = arith.addf %35, %39 : vector<256x4xf32>
    %c2_40 = arith.constant 2 : index
    %c1_41 = arith.constant 1 : index
    %c0_42 = arith.constant 0 : index
    %41 = vector.load %arg18[%c2_40, %c1_41, %c0_42] : memref<18x18x4xf32, #tpu.memory_space<vmem>>, vector<16x16x4xf32>
    %42 = vector.shape_cast %41 : vector<16x16x4xf32> to vector<256x4xf32>
    %c28 = arith.constant 28 : index
    %c0_43 = arith.constant 0 : index
    %43 = vector.load %arg9[%c28, %c0_43] : memref<36x4xf32, #tpu.memory_space<vmem>>, vector<4x4xf32>
    %cst_44 = arith.constant dense<0.000000e+00> : vector<256x4xf32>
    %44 = tpu.matmul %42, %43, %cst_44 {dimension_numbers = #tpu.dot_dimension_numbers<[1], [0], [0], [1], [0, 0, 1, 1], [], []>} : vector<256x4xf32>, vector<4x4xf32>, vector<256x4xf32> -> vector<256x4xf32>
    %45 = arith.addf %40, %44 : vector<256x4xf32>
    %c2_45 = arith.constant 2 : index
    %c2_46 = arith.constant 2 : index
    %c0_47 = arith.constant 0 : index
    %46 = vector.load %arg18[%c2_45, %c2_46, %c0_47] : memref<18x18x4xf32, #tpu.memory_space<vmem>>, vector<16x16x4xf32>
    %47 = vector.shape_cast %46 : vector<16x16x4xf32> to vector<256x4xf32>
    %c32 = arith.constant 32 : index
    %c0_48 = arith.constant 0 : index
    %48 = vector.load %arg9[%c32, %c0_48] : memref<36x4xf32, #tpu.memory_space<vmem>>, vector<4x4xf32>
    %cst_49 = arith.constant dense<0.000000e+00> : vector<256x4xf32>
    %49 = tpu.matmul %47, %48, %cst_49 {dimension_numbers = #tpu.dot_dimension_numbers<[1], [0], [0], [1], [0, 0, 1, 1], [], []>} : vector<256x4xf32>, vector<4x4xf32>, vector<256x4xf32> -> vector<256x4xf32>
    %50 = arith.addf %45, %49 : vector<256x4xf32>
    %c0_50 = arith.constant 0 : index
    %c0_51 = arith.constant 0 : index
    %51 = vector.load %arg13[%c0_50, %c0_51] : memref<2x4xf32, #tpu.memory_space<vmem>>, vector<1x4xf32>
    %52 = vector.broadcast %51 : vector<1x4xf32> to vector<256x4xf32>
    %53 = arith.mulf %50, %52 : vector<256x4xf32>
    %c1_52 = arith.constant 1 : index
    %c0_53 = arith.constant 0 : index
    %54 = vector.load %arg13[%c1_52, %c0_53] : memref<2x4xf32, #tpu.memory_space<vmem>>, vector<1x4xf32>
    %55 = vector.broadcast %54 : vector<1x4xf32> to vector<256x4xf32>
    %56 = arith.addf %53, %55 : vector<256x4xf32>
    %c0_54 = arith.constant 0 : index
    %c0_55 = arith.constant 0 : index
    %57 = vector.load %arg7[%c0_54, %c0_55] : memref<256x4xf32, #tpu.memory_space<vmem>>, vector<256x4xf32>
    %c0_56 = arith.constant 0 : index
    %c0_57 = arith.constant 0 : index
    %c0_58 = arith.constant 0 : index
    %c0_59 = arith.constant 0 : index
    %58 = vector.load %arg2[%c0_56, %c0_57, %c0_58, %c0_59] : memref<1x2x2x4xf32, #tpu.memory_space<vmem>>, vector<1x2x2x4xf32>
    %59 = vector.shape_cast %58 : vector<1x2x2x4xf32> to vector<2x2x4xf32>
    %60 = vector.shape_cast %59 : vector<2x2x4xf32> to vector<4x4xf32>
    %cst_60 = arith.constant dense<0.000000e+00> : vector<256x4xf32>
    %61 = tpu.matmul %57, %60, %cst_60 {dimension_numbers = #tpu.dot_dimension_numbers<[1], [0], [0], [1], [0, 0, 1, 1], [], []>} : vector<256x4xf32>, vector<4x4xf32>, vector<256x4xf32> -> vector<256x4xf32>
    %c0_61 = arith.constant 0 : index
    %c0_62 = arith.constant 0 : index
    %62 = vector.load %arg8[%c0_61, %c0_62] : memref<256x16xf32, #tpu.memory_space<vmem>>, vector<256x16xf32>
    %c0_63 = arith.constant 0 : index
    %c0_64 = arith.constant 0 : index
    %c0_65 = arith.constant 0 : index
    %c0_66 = arith.constant 0 : index
    %63 = vector.load %arg3[%c0_63, %c0_64, %c0_65, %c0_66] : memref<1x4x4x4xf32, #tpu.memory_space<vmem>>, vector<1x4x4x4xf32>
    %64 = vector.shape_cast %63 : vector<1x4x4x4xf32> to vector<4x4x4xf32>
    %65 = vector.shape_cast %64 : vector<4x4x4xf32> to vector<16x4xf32>
    %cst_67 = arith.constant dense<0.000000e+00> : vector<256x4xf32>
    %66 = tpu.matmul %62, %65, %cst_67 {dimension_numbers = #tpu.dot_dimension_numbers<[1], [0], [0], [1], [0, 0, 1, 1], [], []>} : vector<256x16xf32>, vector<16x4xf32>, vector<256x4xf32> -> vector<256x4xf32>
    %67 = arith.addf %56, %61 : vector<256x4xf32>
    %68 = arith.addf %67, %66 : vector<256x4xf32>
    %cst_68 = arith.constant 0.000000e+00 : f32
    %69 = vector.broadcast %cst_68 : f32 to vector<256x4xf32>
    %70 = arith.maximumf %68, %69 : vector<256x4xf32>
    %71 = vector.shape_cast %70 : vector<256x4xf32> to vector<16x16x4xf32>
    %c1_69 = arith.constant 1 : index
    %c1_70 = arith.constant 1 : index
    %c0_71 = arith.constant 0 : index
    %72 = vector.load %arg18[%c1_69, %c1_70, %c0_71] : memref<18x18x4xf32, #tpu.memory_space<vmem>>, vector<16x16x4xf32>
    tpu.vector_store %arg18[%c1_69, %c1_70, %c0_71], %71 {strides = array<i32>} : memref<18x18x4xf32, #tpu.memory_space<vmem>>, vector<16x16x4xf32>,
    %c0_72 = arith.constant 0 : index
    %c0_73 = arith.constant 0 : index
    %c0_74 = arith.constant 0 : index
    %73 = vector.load %arg18[%c0_72, %c0_73, %c0_74] : memref<18x18x4xf32, #tpu.memory_space<vmem>>, vector<16x16x4xf32>
    %74 = vector.shape_cast %73 : vector<16x16x4xf32> to vector<256x4xf32>
    %c0_75 = arith.constant 0 : index
    %c0_76 = arith.constant 0 : index
    %75 = vector.load %arg10[%c0_75, %c0_76] : memref<36x4xf32, #tpu.memory_space<vmem>>, vector<4x4xf32>
    %cst_77 = arith.constant dense<0.000000e+00> : vector<256x4xf32>
    %76 = tpu.matmul %74, %75, %cst_77 {dimension_numbers = #tpu.dot_dimension_numbers<[1], [0], [0], [1], [0, 0, 1, 1], [], []>} : vector<256x4xf32>, vector<4x4xf32>, vector<256x4xf32> -> vector<256x4xf32>
    %c0_78 = arith.constant 0 : index
    %c1_79 = arith.constant 1 : index
    %c0_80 = arith.constant 0 : index
    %77 = vector.load %arg18[%c0_78, %c1_79, %c0_80] : memref<18x18x4xf32, #tpu.memory_space<vmem>>, vector<16x16x4xf32>
    %78 = vector.shape_cast %77 : vector<16x16x4xf32> to vector<256x4xf32>
    %c4_81 = arith.constant 4 : index
    %c0_82 = arith.constant 0 : index
    %79 = vector.load %arg10[%c4_81, %c0_82] : memref<36x4xf32, #tpu.memory_space<vmem>>, vector<4x4xf32>
    %cst_83 = arith.constant dense<0.000000e+00> : vector<256x4xf32>
    %80 = tpu.matmul %78, %79, %cst_83 {dimension_numbers = #tpu.dot_dimension_numbers<[1], [0], [0], [1], [0, 0, 1, 1], [], []>} : vector<256x4xf32>, vector<4x4xf32>, vector<256x4xf32> -> vector<256x4xf32>
    %81 = arith.addf %76, %80 : vector<256x4xf32>
    %c0_84 = arith.constant 0 : index
    %c2_85 = arith.constant 2 : index
    %c0_86 = arith.constant 0 : index
    %82 = vector.load %arg18[%c0_84, %c2_85, %c0_86] : memref<18x18x4xf32, #tpu.memory_space<vmem>>, vector<16x16x4xf32>
    %83 = vector.shape_cast %82 : vector<16x16x4xf32> to vector<256x4xf32>
    %c8_87 = arith.constant 8 : index
    %c0_88 = arith.constant 0 : index
    %84 = vector.load %arg10[%c8_87, %c0_88] : memref<36x4xf32, #tpu.memory_space<vmem>>, vector<4x4xf32>
    %cst_89 = arith.constant dense<0.000000e+00> : vector<256x4xf32>
    %85 = tpu.matmul %83, %84, %cst_89 {dimension_numbers = #tpu.dot_dimension_numbers<[1], [0], [0], [1], [0, 0, 1, 1], [], []>} : vector<256x4xf32>, vector<4x4xf32>, vector<256x4xf32> -> vector<256x4xf32>
    %86 = arith.addf %81, %85 : vector<256x4xf32>
    %c1_90 = arith.constant 1 : index
    %c0_91 = arith.constant 0 : index
    %c0_92 = arith.constant 0 : index
    %87 = vector.load %arg18[%c1_90, %c0_91, %c0_92] : memref<18x18x4xf32, #tpu.memory_space<vmem>>, vector<16x16x4xf32>
    %88 = vector.shape_cast %87 : vector<16x16x4xf32> to vector<256x4xf32>
    %c12_93 = arith.constant 12 : index
    %c0_94 = arith.constant 0 : index
    %89 = vector.load %arg10[%c12_93, %c0_94] : memref<36x4xf32, #tpu.memory_space<vmem>>, vector<4x4xf32>
    %cst_95 = arith.constant dense<0.000000e+00> : vector<256x4xf32>
    %90 = tpu.matmul %88, %89, %cst_95 {dimension_numbers = #tpu.dot_dimension_numbers<[1], [0], [0], [1], [0, 0, 1, 1], [], []>} : vector<256x4xf32>, vector<4x4xf32>, vector<256x4xf32> -> vector<256x4xf32>
    %91 = arith.addf %86, %90 : vector<256x4xf32>
    %c1_96 = arith.constant 1 : index
    %c1_97 = arith.constant 1 : index
    %c0_98 = arith.constant 0 : index
    %92 = vector.load %arg18[%c1_96, %c1_97, %c0_98] : memref<18x18x4xf32, #tpu.memory_space<vmem>>, vector<16x16x4xf32>
    %93 = vector.shape_cast %92 : vector<16x16x4xf32> to vector<256x4xf32>
    %c16_99 = arith.constant 16 : index
    %c0_100 = arith.constant 0 : index
    %94 = vector.load %arg10[%c16_99, %c0_100] : memref<36x4xf32, #tpu.memory_space<vmem>>, vector<4x4xf32>
    %cst_101 = arith.constant dense<0.000000e+00> : vector<256x4xf32>
    %95 = tpu.matmul %93, %94, %cst_101 {dimension_numbers = #tpu.dot_dimension_numbers<[1], [0], [0], [1], [0, 0, 1, 1], [], []>} : vector<256x4xf32>, vector<4x4xf32>, vector<256x4xf32> -> vector<256x4xf32>
    %96 = arith.addf %91, %95 : vector<256x4xf32>
    %c1_102 = arith.constant 1 : index
    %c2_103 = arith.constant 2 : index
    %c0_104 = arith.constant 0 : index
    %97 = vector.load %arg18[%c1_102, %c2_103, %c0_104] : memref<18x18x4xf32, #tpu.memory_space<vmem>>, vector<16x16x4xf32>
    %98 = vector.shape_cast %97 : vector<16x16x4xf32> to vector<256x4xf32>
    %c20_105 = arith.constant 20 : index
    %c0_106 = arith.constant 0 : index
    %99 = vector.load %arg10[%c20_105, %c0_106] : memref<36x4xf32, #tpu.memory_space<vmem>>, vector<4x4xf32>
    %cst_107 = arith.constant dense<0.000000e+00> : vector<256x4xf32>
    %100 = tpu.matmul %98, %99, %cst_107 {dimension_numbers = #tpu.dot_dimension_numbers<[1], [0], [0], [1], [0, 0, 1, 1], [], []>} : vector<256x4xf32>, vector<4x4xf32>, vector<256x4xf32> -> vector<256x4xf32>
    %101 = arith.addf %96, %100 : vector<256x4xf32>
    %c2_108 = arith.constant 2 : index
    %c0_109 = arith.constant 0 : index
    %c0_110 = arith.constant 0 : index
    %102 = vector.load %arg18[%c2_108, %c0_109, %c0_110] : memref<18x18x4xf32, #tpu.memory_space<vmem>>, vector<16x16x4xf32>
    %103 = vector.shape_cast %102 : vector<16x16x4xf32> to vector<256x4xf32>
    %c24_111 = arith.constant 24 : index
    %c0_112 = arith.constant 0 : index
    %104 = vector.load %arg10[%c24_111, %c0_112] : memref<36x4xf32, #tpu.memory_space<vmem>>, vector<4x4xf32>
    %cst_113 = arith.constant dense<0.000000e+00> : vector<256x4xf32>
    %105 = tpu.matmul %103, %104, %cst_113 {dimension_numbers = #tpu.dot_dimension_numbers<[1], [0], [0], [1], [0, 0, 1, 1], [], []>} : vector<256x4xf32>, vector<4x4xf32>, vector<256x4xf32> -> vector<256x4xf32>
    %106 = arith.addf %101, %105 : vector<256x4xf32>
    %c2_114 = arith.constant 2 : index
    %c1_115 = arith.constant 1 : index
    %c0_116 = arith.constant 0 : index
    %107 = vector.load %arg18[%c2_114, %c1_115, %c0_116] : memref<18x18x4xf32, #tpu.memory_space<vmem>>, vector<16x16x4xf32>
    %108 = vector.shape_cast %107 : vector<16x16x4xf32> to vector<256x4xf32>
    %c28_117 = arith.constant 28 : index
    %c0_118 = arith.constant 0 : index
    %109 = vector.load %arg10[%c28_117, %c0_118] : memref<36x4xf32, #tpu.memory_space<vmem>>, vector<4x4xf32>
    %cst_119 = arith.constant dense<0.000000e+00> : vector<256x4xf32>
    %110 = tpu.matmul %108, %109, %cst_119 {dimension_numbers = #tpu.dot_dimension_numbers<[1], [0], [0], [1], [0, 0, 1, 1], [], []>} : vector<256x4xf32>, vector<4x4xf32>, vector<256x4xf32> -> vector<256x4xf32>
    %111 = arith.addf %106, %110 : vector<256x4xf32>
    %c2_120 = arith.constant 2 : index
    %c2_121 = arith.constant 2 : index
    %c0_122 = arith.constant 0 : index
    %112 = vector.load %arg18[%c2_120, %c2_121, %c0_122] : memref<18x18x4xf32, #tpu.memory_space<vmem>>, vector<16x16x4xf32>
    %113 = vector.shape_cast %112 : vector<16x16x4xf32> to vector<256x4xf32>
    %c32_123 = arith.constant 32 : index
    %c0_124 = arith.constant 0 : index
    %114 = vector.load %arg10[%c32_123, %c0_124] : memref<36x4xf32, #tpu.memory_space<vmem>>, vector<4x4xf32>
    %cst_125 = arith.constant dense<0.000000e+00> : vector<256x4xf32>
    %115 = tpu.matmul %113, %114, %cst_125 {dimension_numbers = #tpu.dot_dimension_numbers<[1], [0], [0], [1], [0, 0, 1, 1], [], []>} : vector<256x4xf32>, vector<4x4xf32>, vector<256x4xf32> -> vector<256x4xf32>
    %116 = arith.addf %111, %115 : vector<256x4xf32>
    %c0_126 = arith.constant 0 : index
    %c0_127 = arith.constant 0 : index
    %117 = vector.load %arg14[%c0_126, %c0_127] : memref<2x4xf32, #tpu.memory_space<vmem>>, vector<1x4xf32>
    %118 = vector.broadcast %117 : vector<1x4xf32> to vector<256x4xf32>
    %119 = arith.mulf %116, %118 : vector<256x4xf32>
    %c1_128 = arith.constant 1 : index
    %c0_129 = arith.constant 0 : index
    %120 = vector.load %arg14[%c1_128, %c0_129] : memref<2x4xf32, #tpu.memory_space<vmem>>, vector<1x4xf32>
    %121 = vector.broadcast %120 : vector<1x4xf32> to vector<256x4xf32>
    %122 = arith.addf %119, %121 : vector<256x4xf32>
    %cst_130 = arith.constant 0.000000e+00 : f32
    %123 = vector.broadcast %cst_130 : f32 to vector<256x4xf32>
    %124 = arith.maximumf %122, %123 : vector<256x4xf32>
    %c0_131 = arith.constant 0 : index
    %c0_132 = arith.constant 0 : index
    %c0_133 = arith.constant 0 : index
    %c0_134 = arith.constant 0 : index
    %125 = vector.load %arg4[%c0_131, %c0_132, %c0_133, %c0_134] : memref<1x1x16x4xf32, #tpu.memory_space<vmem>>, vector<1x1x16x4xf32>
    %126 = vector.shape_cast %125 : vector<1x1x16x4xf32> to vector<1x16x4xf32>
    %c0_135 = arith.constant 0 : index
    %c0_136 = arith.constant 0 : index
    %c0_137 = arith.constant 0 : index
    %c0_138 = arith.constant 0 : index
    %127 = vector.load %arg5[%c0_135, %c0_136, %c0_137, %c0_138] : memref<1x16x1x4xf32, #tpu.memory_space<vmem>>, vector<1x16x1x4xf32>
    %128 = vector.shape_cast %127 : vector<1x16x1x4xf32> to vector<16x1x4xf32>
    %129 = vector.broadcast %126 : vector<1x16x4xf32> to vector<16x16x4xf32>
    %130 = vector.broadcast %128 : vector<16x1x4xf32> to vector<16x16x4xf32>
    %131 = arith.addf %129, %130 : vector<16x16x4xf32>
    %cst_139 = arith.constant 0.000000e+00 : f32
    %132 = vector.broadcast %cst_139 : f32 to vector<16x16x4xf32>
    %133 = arith.maximumf %131, %132 : vector<16x16x4xf32>
    %c1_140 = arith.constant 1 : index
    %c1_141 = arith.constant 1 : index
    %c0_142 = arith.constant 0 : index
    %134 = vector.load %arg18[%c1_140, %c1_141, %c0_142] : memref<18x18x4xf32, #tpu.memory_space<vmem>>, vector<16x16x4xf32>
    tpu.vector_store %arg18[%c1_140, %c1_141, %c0_142], %133 {strides = array<i32>} : memref<18x18x4xf32, #tpu.memory_space<vmem>>, vector<16x16x4xf32>,
    %c0_143 = arith.constant 0 : index
    %c0_144 = arith.constant 0 : index
    %c0_145 = arith.constant 0 : index
    %135 = vector.load %arg18[%c0_143, %c0_144, %c0_145] : memref<18x18x4xf32, #tpu.memory_space<vmem>>, vector<16x16x4xf32>
    %136 = vector.shape_cast %135 : vector<16x16x4xf32> to vector<256x4xf32>
    %c0_146 = arith.constant 0 : index
    %c0_147 = arith.constant 0 : index
    %137 = vector.load %arg11[%c0_146, %c0_147] : memref<36x4xf32, #tpu.memory_space<vmem>>, vector<4x4xf32>
    %cst_148 = arith.constant dense<0.000000e+00> : vector<256x4xf32>
    %138 = tpu.matmul %136, %137, %cst_148 {dimension_numbers = #tpu.dot_dimension_numbers<[1], [0], [0], [1], [0, 0, 1, 1], [], []>} : vector<256x4xf32>, vector<4x4xf32>, vector<256x4xf32> -> vector<256x4xf32>
    %c0_149 = arith.constant 0 : index
    %c1_150 = arith.constant 1 : index
    %c0_151 = arith.constant 0 : index
    %139 = vector.load %arg18[%c0_149, %c1_150, %c0_151] : memref<18x18x4xf32, #tpu.memory_space<vmem>>, vector<16x16x4xf32>
    %140 = vector.shape_cast %139 : vector<16x16x4xf32> to vector<256x4xf32>
    %c4_152 = arith.constant 4 : index
    %c0_153 = arith.constant 0 : index
    %141 = vector.load %arg11[%c4_152, %c0_153] : memref<36x4xf32, #tpu.memory_space<vmem>>, vector<4x4xf32>
    %cst_154 = arith.constant dense<0.000000e+00> : vector<256x4xf32>
    %142 = tpu.matmul %140, %141, %cst_154 {dimension_numbers = #tpu.dot_dimension_numbers<[1], [0], [0], [1], [0, 0, 1, 1], [], []>} : vector<256x4xf32>, vector<4x4xf32>, vector<256x4xf32> -> vector<256x4xf32>
    %143 = arith.addf %138, %142 : vector<256x4xf32>
    %c0_155 = arith.constant 0 : index
    %c2_156 = arith.constant 2 : index
    %c0_157 = arith.constant 0 : index
    %144 = vector.load %arg18[%c0_155, %c2_156, %c0_157] : memref<18x18x4xf32, #tpu.memory_space<vmem>>, vector<16x16x4xf32>
    %145 = vector.shape_cast %144 : vector<16x16x4xf32> to vector<256x4xf32>
    %c8_158 = arith.constant 8 : index
    %c0_159 = arith.constant 0 : index
    %146 = vector.load %arg11[%c8_158, %c0_159] : memref<36x4xf32, #tpu.memory_space<vmem>>, vector<4x4xf32>
    %cst_160 = arith.constant dense<0.000000e+00> : vector<256x4xf32>
    %147 = tpu.matmul %145, %146, %cst_160 {dimension_numbers = #tpu.dot_dimension_numbers<[1], [0], [0], [1], [0, 0, 1, 1], [], []>} : vector<256x4xf32>, vector<4x4xf32>, vector<256x4xf32> -> vector<256x4xf32>
    %148 = arith.addf %143, %147 : vector<256x4xf32>
    %c1_161 = arith.constant 1 : index
    %c0_162 = arith.constant 0 : index
    %c0_163 = arith.constant 0 : index
    %149 = vector.load %arg18[%c1_161, %c0_162, %c0_163] : memref<18x18x4xf32, #tpu.memory_space<vmem>>, vector<16x16x4xf32>
    %150 = vector.shape_cast %149 : vector<16x16x4xf32> to vector<256x4xf32>
    %c12_164 = arith.constant 12 : index
    %c0_165 = arith.constant 0 : index
    %151 = vector.load %arg11[%c12_164, %c0_165] : memref<36x4xf32, #tpu.memory_space<vmem>>, vector<4x4xf32>
    %cst_166 = arith.constant dense<0.000000e+00> : vector<256x4xf32>
    %152 = tpu.matmul %150, %151, %cst_166 {dimension_numbers = #tpu.dot_dimension_numbers<[1], [0], [0], [1], [0, 0, 1, 1], [], []>} : vector<256x4xf32>, vector<4x4xf32>, vector<256x4xf32> -> vector<256x4xf32>
    %153 = arith.addf %148, %152 : vector<256x4xf32>
    %c1_167 = arith.constant 1 : index
    %c1_168 = arith.constant 1 : index
    %c0_169 = arith.constant 0 : index
    %154 = vector.load %arg18[%c1_167, %c1_168, %c0_169] : memref<18x18x4xf32, #tpu.memory_space<vmem>>, vector<16x16x4xf32>
    %155 = vector.shape_cast %154 : vector<16x16x4xf32> to vector<256x4xf32>
    %c16_170 = arith.constant 16 : index
    %c0_171 = arith.constant 0 : index
    %156 = vector.load %arg11[%c16_170, %c0_171] : memref<36x4xf32, #tpu.memory_space<vmem>>, vector<4x4xf32>
    %cst_172 = arith.constant dense<0.000000e+00> : vector<256x4xf32>
    %157 = tpu.matmul %155, %156, %cst_172 {dimension_numbers = #tpu.dot_dimension_numbers<[1], [0], [0], [1], [0, 0, 1, 1], [], []>} : vector<256x4xf32>, vector<4x4xf32>, vector<256x4xf32> -> vector<256x4xf32>
    %158 = arith.addf %153, %157 : vector<256x4xf32>
    %c1_173 = arith.constant 1 : index
    %c2_174 = arith.constant 2 : index
    %c0_175 = arith.constant 0 : index
    %159 = vector.load %arg18[%c1_173, %c2_174, %c0_175] : memref<18x18x4xf32, #tpu.memory_space<vmem>>, vector<16x16x4xf32>
    %160 = vector.shape_cast %159 : vector<16x16x4xf32> to vector<256x4xf32>
    %c20_176 = arith.constant 20 : index
    %c0_177 = arith.constant 0 : index
    %161 = vector.load %arg11[%c20_176, %c0_177] : memref<36x4xf32, #tpu.memory_space<vmem>>, vector<4x4xf32>
    %cst_178 = arith.constant dense<0.000000e+00> : vector<256x4xf32>
    %162 = tpu.matmul %160, %161, %cst_178 {dimension_numbers = #tpu.dot_dimension_numbers<[1], [0], [0], [1], [0, 0, 1, 1], [], []>} : vector<256x4xf32>, vector<4x4xf32>, vector<256x4xf32> -> vector<256x4xf32>
    %163 = arith.addf %158, %162 : vector<256x4xf32>
    %c2_179 = arith.constant 2 : index
    %c0_180 = arith.constant 0 : index
    %c0_181 = arith.constant 0 : index
    %164 = vector.load %arg18[%c2_179, %c0_180, %c0_181] : memref<18x18x4xf32, #tpu.memory_space<vmem>>, vector<16x16x4xf32>
    %165 = vector.shape_cast %164 : vector<16x16x4xf32> to vector<256x4xf32>
    %c24_182 = arith.constant 24 : index
    %c0_183 = arith.constant 0 : index
    %166 = vector.load %arg11[%c24_182, %c0_183] : memref<36x4xf32, #tpu.memory_space<vmem>>, vector<4x4xf32>
    %cst_184 = arith.constant dense<0.000000e+00> : vector<256x4xf32>
    %167 = tpu.matmul %165, %166, %cst_184 {dimension_numbers = #tpu.dot_dimension_numbers<[1], [0], [0], [1], [0, 0, 1, 1], [], []>} : vector<256x4xf32>, vector<4x4xf32>, vector<256x4xf32> -> vector<256x4xf32>
    %168 = arith.addf %163, %167 : vector<256x4xf32>
    %c2_185 = arith.constant 2 : index
    %c1_186 = arith.constant 1 : index
    %c0_187 = arith.constant 0 : index
    %169 = vector.load %arg18[%c2_185, %c1_186, %c0_187] : memref<18x18x4xf32, #tpu.memory_space<vmem>>, vector<16x16x4xf32>
    %170 = vector.shape_cast %169 : vector<16x16x4xf32> to vector<256x4xf32>
    %c28_188 = arith.constant 28 : index
    %c0_189 = arith.constant 0 : index
    %171 = vector.load %arg11[%c28_188, %c0_189] : memref<36x4xf32, #tpu.memory_space<vmem>>, vector<4x4xf32>
    %cst_190 = arith.constant dense<0.000000e+00> : vector<256x4xf32>
    %172 = tpu.matmul %170, %171, %cst_190 {dimension_numbers = #tpu.dot_dimension_numbers<[1], [0], [0], [1], [0, 0, 1, 1], [], []>} : vector<256x4xf32>, vector<4x4xf32>, vector<256x4xf32> -> vector<256x4xf32>
    %173 = arith.addf %168, %172 : vector<256x4xf32>
    %c2_191 = arith.constant 2 : index
    %c2_192 = arith.constant 2 : index
    %c0_193 = arith.constant 0 : index
    %174 = vector.load %arg18[%c2_191, %c2_192, %c0_193] : memref<18x18x4xf32, #tpu.memory_space<vmem>>, vector<16x16x4xf32>
    %175 = vector.shape_cast %174 : vector<16x16x4xf32> to vector<256x4xf32>
    %c32_194 = arith.constant 32 : index
    %c0_195 = arith.constant 0 : index
    %176 = vector.load %arg11[%c32_194, %c0_195] : memref<36x4xf32, #tpu.memory_space<vmem>>, vector<4x4xf32>
    %cst_196 = arith.constant dense<0.000000e+00> : vector<256x4xf32>
    %177 = tpu.matmul %175, %176, %cst_196 {dimension_numbers = #tpu.dot_dimension_numbers<[1], [0], [0], [1], [0, 0, 1, 1], [], []>} : vector<256x4xf32>, vector<4x4xf32>, vector<256x4xf32> -> vector<256x4xf32>
    %178 = arith.addf %173, %177 : vector<256x4xf32>
    %c0_197 = arith.constant 0 : index
    %c0_198 = arith.constant 0 : index
    %179 = vector.load %arg15[%c0_197, %c0_198] : memref<2x4xf32, #tpu.memory_space<vmem>>, vector<1x4xf32>
    %180 = vector.broadcast %179 : vector<1x4xf32> to vector<256x4xf32>
    %181 = arith.mulf %178, %180 : vector<256x4xf32>
    %c1_199 = arith.constant 1 : index
    %c0_200 = arith.constant 0 : index
    %182 = vector.load %arg15[%c1_199, %c0_200] : memref<2x4xf32, #tpu.memory_space<vmem>>, vector<1x4xf32>
    %183 = vector.broadcast %182 : vector<1x4xf32> to vector<256x4xf32>
    %184 = arith.addf %181, %183 : vector<256x4xf32>
    %cst_201 = arith.constant 0.000000e+00 : f32
    %185 = vector.broadcast %cst_201 : f32 to vector<256x4xf32>
    %186 = arith.maximumf %184, %185 : vector<256x4xf32>
    %187 = tpu.concatenate %124, %186 in 1 : vector<256x4xf32>, vector<256x4xf32> -> vector<256x8xf32>
    %c0_202 = arith.constant 0 : index
    %c0_203 = arith.constant 0 : index
    %188 = vector.load %arg12[%c0_202, %c0_203] : memref<8x16xf32, #tpu.memory_space<vmem>>, vector<8x16xf32>
    %cst_204 = arith.constant dense<0.000000e+00> : vector<256x16xf32>
    %189 = tpu.matmul %187, %188, %cst_204 {dimension_numbers = #tpu.dot_dimension_numbers<[1], [0], [0], [1], [0, 0, 1, 1], [], []>} : vector<256x8xf32>, vector<8x16xf32>, vector<256x16xf32> -> vector<256x16xf32>
    %c0_205 = arith.constant 0 : index
    %c0_206 = arith.constant 0 : index
    %190 = vector.load %arg16[%c0_205, %c0_206] : memref<2x16xf32, #tpu.memory_space<vmem>>, vector<1x16xf32>
    %191 = vector.broadcast %190 : vector<1x16xf32> to vector<256x16xf32>
    %192 = arith.mulf %189, %191 : vector<256x16xf32>
    %c1_207 = arith.constant 1 : index
    %c0_208 = arith.constant 0 : index
    %193 = vector.load %arg16[%c1_207, %c0_208] : memref<2x16xf32, #tpu.memory_space<vmem>>, vector<1x16xf32>
    %194 = vector.broadcast %193 : vector<1x16xf32> to vector<256x16xf32>
    %195 = arith.addf %192, %194 : vector<256x16xf32>
    %c0_209 = arith.constant 0 : index
    %c0_210 = arith.constant 0 : index
    %c0_211 = arith.constant 0 : index
    %c0_212 = arith.constant 0 : index
    %196 = vector.load %arg6[%c0_209, %c0_210, %c0_211, %c0_212] : memref<1x16x16x16xf32, #tpu.memory_space<vmem>>, vector<1x16x16x16xf32>
    %197 = vector.shape_cast %196 : vector<1x16x16x16xf32> to vector<16x16x16xf32>
    %198 = vector.shape_cast %197 : vector<16x16x16xf32> to vector<256x16xf32>
    %199 = arith.addf %198, %195 : vector<256x16xf32>
    %cst_213 = arith.constant 0.000000e+00 : f32
    %200 = vector.broadcast %cst_213 : f32 to vector<256x16xf32>
    %201 = arith.maximumf %199, %200 : vector<256x16xf32>
    %202 = vector.shape_cast %201 : vector<256x16xf32> to vector<1x16x16x16xf32>
    %c0_214 = arith.constant 0 : index
    %c0_215 = arith.constant 0 : index
    %c0_216 = arith.constant 0 : index
    %c0_217 = arith.constant 0 : index
    %203 = vector.load %arg17[%c0_214, %c0_215, %c0_216, %c0_217] : memref<1x16x16x16xf32, #tpu.memory_space<vmem>>, vector<1x16x16x16xf32>
    tpu.vector_store %arg17[%c0_214, %c0_215, %c0_216, %c0_217], %202 {strides = array<i32>} : memref<1x16x16x16xf32, #tpu.memory_space<vmem>>, vector<1x16x16x16xf32>,
    return
  }
  func.func @transform_0(%arg0: i32) -> (i32, i32, i32, i32) {
    %c0_i32 = arith.constant 0 : i32
    %c0_i32_0 = arith.constant 0 : i32
    %c0_i32_1 = arith.constant 0 : i32
    %c0_i32_2 = arith.constant 0 : i32
    return %arg0, %c0_i32, %c0_i32_0, %c0_i32_1 : i32, i32, i32, i32
  }
  func.func @transform_1(%arg0: i32) -> (i32, i32, i32, i32) {
    %c0_i32 = arith.constant 0 : i32
    %c0_i32_0 = arith.constant 0 : i32
    %c0_i32_1 = arith.constant 0 : i32
    %c0_i32_2 = arith.constant 0 : i32
    return %arg0, %c0_i32, %c0_i32_0, %c0_i32_1 : i32, i32, i32, i32
  }
  func.func @transform_2(%arg0: i32) -> (i32, i32, i32, i32) {
    %c0_i32 = arith.constant 0 : i32
    %c0_i32_0 = arith.constant 0 : i32
    %c0_i32_1 = arith.constant 0 : i32
    %c0_i32_2 = arith.constant 0 : i32
    return %arg0, %c0_i32, %c0_i32_0, %c0_i32_1 : i32, i32, i32, i32
  }
  func.func @transform_3(%arg0: i32) -> (i32, i32, i32, i32) {
    %c0_i32 = arith.constant 0 : i32
    %c0_i32_0 = arith.constant 0 : i32
    %c0_i32_1 = arith.constant 0 : i32
    %c0_i32_2 = arith.constant 0 : i32
    return %arg0, %c0_i32, %c0_i32_0, %c0_i32_1 : i32, i32, i32, i32
  }
  func.func @transform_4(%arg0: i32) -> (i32, i32, i32, i32) {
    %c0_i32 = arith.constant 0 : i32
    %c0_i32_0 = arith.constant 0 : i32
    %c0_i32_1 = arith.constant 0 : i32
    %c0_i32_2 = arith.constant 0 : i32
    return %arg0, %c0_i32, %c0_i32_0, %c0_i32_1 : i32, i32, i32, i32
  }
  func.func @transform_5(%arg0: i32) -> (i32, i32, i32, i32) {
    %c0_i32 = arith.constant 0 : i32
    %c0_i32_0 = arith.constant 0 : i32
    %c0_i32_1 = arith.constant 0 : i32
    %c0_i32_2 = arith.constant 0 : i32
    return %arg0, %c0_i32, %c0_i32_0, %c0_i32_1 : i32, i32, i32, i32
  }
  func.func @transform_6(%arg0: i32) -> (i32, i32) {
    %c0_i32 = arith.constant 0 : i32
    %c0_i32_0 = arith.constant 0 : i32
    %c0_i32_1 = arith.constant 0 : i32
    return %c0_i32, %c0_i32_0 : i32, i32
  }
  func.func @transform_7(%arg0: i32) -> (i32, i32) {
    %c0_i32 = arith.constant 0 : i32
    %c0_i32_0 = arith.constant 0 : i32
    %c0_i32_1 = arith.constant 0 : i32
    return %c0_i32, %c0_i32_0 : i32, i32
  }
  func.func @transform_8(%arg0: i32) -> (i32, i32) {
    %c0_i32 = arith.constant 0 : i32
    %c0_i32_0 = arith.constant 0 : i32
    %c0_i32_1 = arith.constant 0 : i32
    return %c0_i32, %c0_i32_0 : i32, i32
  }
  func.func @transform_9(%arg0: i32) -> (i32, i32) {
    %c0_i32 = arith.constant 0 : i32
    %c0_i32_0 = arith.constant 0 : i32
    %c0_i32_1 = arith.constant 0 : i32
    return %c0_i32, %c0_i32_0 : i32, i32
  }
  func.func @transform_10(%arg0: i32) -> (i32, i32) {
    %c0_i32 = arith.constant 0 : i32
    %c0_i32_0 = arith.constant 0 : i32
    %c0_i32_1 = arith.constant 0 : i32
    return %c0_i32, %c0_i32_0 : i32, i32
  }
  func.func @transform_11(%arg0: i32) -> (i32, i32) {
    %c0_i32 = arith.constant 0 : i32
    %c0_i32_0 = arith.constant 0 : i32
    %c0_i32_1 = arith.constant 0 : i32
    return %c0_i32, %c0_i32_0 : i32, i32
  }
  func.func @transform_12(%arg0: i32) -> (i32, i32) {
    %c0_i32 = arith.constant 0 : i32
    %c0_i32_0 = arith.constant 0 : i32
    %c0_i32_1 = arith.constant 0 : i32
    return %c0_i32, %c0_i32_0 : i32, i32
  }
  func.func @transform_13(%arg0: i32) -> (i32, i32) {
    %c0_i32 = arith.constant 0 : i32
    %c0_i32_0 = arith.constant 0 : i32
    %c0_i32_1 = arith.constant 0 : i32
    return %c0_i32, %c0_i32_0 : i32, i32
  }
  func.func @transform_14(%arg0: i32) -> (i32, i32) {
    %c0_i32 = arith.constant 0 : i32
    %c0_i32_0 = arith.constant 0 : i32
    %c0_i32_1 = arith.constant 0 : i32
    return %c0_i32, %c0_i32_0 : i32, i32
  }
  func.func @transform_15(%arg0: i32) -> (i32, i32) {
    %c0_i32 = arith.constant 0 : i32
    %c0_i32_0 = arith.constant 0 : i32
    %c0_i32_1 = arith.constant 0 : i32
    return %c0_i32, %c0_i32_0 : i32, i32
  }
  func.func @transform_16(%arg0: i32) -> (i32, i32, i32, i32) {
    %c0_i32 = arith.constant 0 : i32
    %c0_i32_0 = arith.constant 0 : i32
    %c0_i32_1 = arith.constant 0 : i32
    %c0_i32_2 = arith.constant 0 : i32
    return %arg0, %c0_i32, %c0_i32_0, %c0_i32_1 : i32, i32, i32, i32
  }
}

</mosaic_0001>

<bundles_post_ra>
// kernel: _lambda_.2
= control target key start
LH: loop header
LB: loop body
LE: loop exit
PB: predicated region body
PF: predicated region fallthrough
CT: control target
= control target key end

     0   :  { %9 = vsyncpa [#allocation3], 0  ;;  %s1493_s0 = inlined_call_operand.hbm [shape: f32[2,16,16,16], index: 0, kind: input, shape index: {}]   ;;  %s1494_s1 = inlined_call_operand.vmem [shape: f32[16,8], index: 1, kind: input, shape index: {}]   ;;  %s1495_s2 = inlined_call_operand.vmem [shape: f32[1,8], index: 2, kind: input, shape index: {}]   ;;  %s1496_s3 = inlined_call_operand.vmem [shape: f32[1,8], index: 3, kind: input, shape index: {}]   ;;  %s1497_s4 = inlined_call_operand.vmem [shape: f32[2,16,16,8], index: 4, kind: output, shape index: {}]  }
   0x1   :  { %11 = vsyncpa [#allocation3 + $0x1], 0  ;;  %s1157_s15 = smov 0   ;;  %s1159_s16 = smov 0  }
   0x2   :  { %s1161_s17 = smov 0   ;;  %s1163_s18 = smov 0  }
   0x3   :  { %s1165_s19 = smov 0   ;;  %s1167_s20 = smov 0  }
   0x4 LB: > { %s849_s21 = sadd.s32 4294967295, %s1127_s20   ;;  %s29_s22 = sadd.s32 1, %s1123_s19  ;;  %s1127_s20 = sphi %s1167_s20, %s17_s20   ;;  %s1123_s19 = sphi %s1165_s19, %s1505_s19   ;;  %s1119_s18 = sphi %s1163_s18, %s1504_s18   ;;  %s1115_s17 = sphi %s1161_s17, %s1503_s17   ;;  %s1111_s16 = sphi %s1159_s16, %s1502_s16   ;;  %s1107_s15 = sphi %s1157_s15, %s1501_s15  }
   0x5   : > { %p31_p0 = scmp.ge.s32.totalorder %s29_s22, 2  ;;  %s38_s23 = sadd.s32 1, %s1115_s17 }
   0x6   : > { %p45_p1 = scmp.ne.s32.totalorder %s1115_s17, %s1111_s16  ;;  %p46_p2 = scmp.eq.s32.totalorder %s1127_s20, 0 }
   0x7   : > { %s1507_s22 = smov (%p31_p0, %s29_s22), 0  ;;  %p51_p4 = scmp.ne.s32.totalorder %s1111_s16, %s1107_s15 }
   0x8   : > { %p1193_p3 = por %p46_p2, %p45_p1  ;;  %s33_s25 = ssub.s32 %s1123_s19, %s1507_s22 }
   0x9   : > { %p52_p5 = scmp.eq.s32.totalorder %s849_s21, 0  ;;  %p36_p6 = scmp.eq.s32.totalorder %s33_s25, 0 }
   0xa   : > { %p996_p8 = scmp.lt.s32.totalorder %s1127_s20, 2  ;;  %s175_s28 = sand.u32 1, %s1115_s17  }
   0xb   : > { %p1200_p7 = por %p52_p5, %p51_p4  ;;  %s896_s29 = sshll.u32 %s1123_s19, 12 }
   0xc   : > { %s1206_s27 = scalar_select %p36_p6, %s1115_s17, %s38_s23  }
   0xd   : > { %s853_s30 = sshll.u32 %s175_s28, 8  ;;  %s1213_s7 = scalar_lea.hbm %s1493_s0, %s896_s29 }
   0xe   : > { %s179_s8 = scalar_lea.vmem [#allocation2], %s853_s30  ;;  %p1217_p9 = pnand %p996_p8, %p1193_p3 }
   0xf   : > { %s189_s9 = sshll.u32 %s179_s8, 4  ;;  %s1223_s11 = scalar_lea.sflag [#allocation3], %s175_s28  ;;  %s1221_s9 = int_to_ptr.vmem [resolvable:$true] %s189_s9 }
  0x10   : > { %s1047_s12 = scalar_lea.hbm %s1213_s7, 4096  ;;  %p1049_p11 = pneg %p1217_p9 }
  0x11   : > { %p1048_p10 = scmp.ne.s32.totalorder %s1213_s7, %s1047_s12  ;;  %s1052_s15 = scalar_lea.hbm %s1493_s0, 8192 }
  0x12   : > { %p1053_p0 = scmp.lt.u32.totalorder %s1213_s7, %s1493_s0  ;;  %p1054_p1 = scmp.lt.u32.totalorder %s1052_s15, %s1047_s12 }
  0x13   : > { %p1050_p12 = pnand %p1049_p11, %p1048_p10  ;;  %p1056_p3 = scmp.lt.u32.totalorder %s1047_s12, %s1213_s7 }
  0x14   : > { %p1055_p2 = por %p1054_p1, %p1053_p0 }
  0x15   : > { %p1051_p13 = pneg %p1050_p12 }
  0x16   : > { %p1057_p4 = por %p1056_p3, %p1055_p2 }
  0x18   : > { %p1058_p5 = pnand %p1057_p4, %p1051_p13 }
  0x1a   : > { %1061 = shalt.err (!%p1058_p5)
}
  0x1b   : > { %s1062_s24 = scalar_lea.vmem %s1221_s9, 4096  ;;  %s1129_s25 = smov [#allocation2]  }
  0x1c   : > { %p1063_p6 = scmp.ne.s32.totalorder %s1221_s9, %s1062_s24  ;;  %s1067_s28 = sshll.u32 %s1129_s25, 4  ;;  %s1068_s28 = int_to_ptr.vmem [resolvable:$false] %s1067_s28 }
  0x1d   : > { %s1069_s29 = scalar_lea.vmem %s1068_s28, 8192  ;;  %p1070_p12 = scmp.lt.s32.totalorder %s1221_s9, %s1068_s28 }
  0x1e   : > { %p1065_p8 = pnand %p1063_p6, %p1049_p11  ;;  %p1071_p0 = scmp.lt.s32.totalorder %s1069_s29, %s1062_s24 }
  0x20   : > { %p1066_p10 = pneg %p1065_p8  ;;  %p1072_p1 = por %p1071_p0, %p1070_p12 }
  0x22   : > { %p1073_p2 = pnand %p1072_p1, %p1066_p10 }
  0x24   : > { %1076 = shalt.err (!%p1073_p2)
}
  0x25   : > { %s1130_s30 = smov 128   ;;  %s1131_s5 = smov 8  }
  0x26   : > { %995 = dma.hbm_to_vmem [thread:$0]  (!%p1217_p9), %s1213_s7, 4096, %s1221_s9, %s1223_s11, %s1130_s30, %s1130_s30, %s1131_s5  }
  0x27   : > { %p856_p11 = scmp.ge.s32.totalorder %s1127_s20, 1  ;;  %p197_p13 = scmp.lt.s32.totalorder %s1127_s20, 3 }
  0x29   : > { %p198_p3 = pnand %p856_p11, %p197_p13 }
  0x2a   : > { %s203_s6 = sand.u32 (!%p198_p3), 1, %s1111_s16  }
  0x2b   : > { %201 = sbr.rel (%p198_p3) target bundleno = 307 (0x133), region = 36  ;;  %s857_s8 = sshll.u32 (!%p198_p3), %s203_s6, 8 }
  0x2c   : > { %s204_s12 = scalar_lea.sflag (!%p198_p3), [#allocation3], %s203_s6  ;;  %s1254_s13 = scalar_lea.vmem (!%p198_p3), [#allocation2], %s857_s8 }
  0x32   : > { %1102 = dma.done.wait (%p1200_p7), %s204_s12, 4096  }
  0x33   : > { %1104 = vsyncadd (%p1200_p7), %s204_s12, 4294963200  ;;  %vm283_vm0 = vcmask 130048   ;;  %v281_v0 = vld [vmem:[%s1494_s1] sm:$0xff]  ;;  %v282_v1 = vld [vmem:[%s1494_s1 + $0x8] sm:$0xff]  ;;  %p239_p7 = scmp.lt.s32.totalorder %s1119_s18, 1  ;;  %vm715_vm1 = vcmask 64512  }
  0x34   : > { %v249_v2 = vld [vmem:[%s1254_s13] sm:$0xff]  ;;  %v984_v3 = vpack.c.bf16 %v282_v1, %v281_v0  ;;  %v250_v5 = vld [vmem:[%s1254_s13 + $0x8] sm:$0xff]  ;;  %v251_v7 = vld [vmem:[%s1254_s13 + $0x10] sm:$0xff] }
  0x35   : > { %936 = vmatprep.mubr.msk.f32.mxu0 %vm283_vm0, %v249_v2  ;;  %v265_v4 = vld [vmem:[%s1254_s13 + $0x80] sm:$0xff]  ;;  %v266_v6 = vld [vmem:[%s1254_s13 + $0x88] sm:$0xff]  ;;  %v267_v8 = vld [vmem:[%s1254_s13 + $0x90] sm:$0xff]  ;;  %s1509_s18 = smov (!%p239_p7, %s1119_s18), 1 }
  0x36   : > { %960 = vmatprep.mubr.msk.f32.mxu1 %vm283_vm0, %v265_v4  ;;  %985 = vmatprep.subr.bf16.mxu0 %v984_v3  ;;  %v252_v9 = vld [vmem:[%s1254_s13 + $0x18] sm:$0xff]  ;;  %v253_v11 = vld [vmem:[%s1254_s13 + $0x20] sm:$0xff]  ;;  %v254_v13 = vld [vmem:[%s1254_s13 + $0x28] sm:$0xff]  ;;  %s897_s23 = sshll.u32 %s1509_s18, 8 }
  0x37   : > { %988 = vmatprep.subr.bf16.mxu1 %v984_v3  ;;  %987 = vmatpush3.bf16.msra.mxu0 %v984_v3  ;;  %v268_v10 = vld [vmem:[%s1254_s13 + $0x98] sm:$0xff]  ;;  %v269_v12 = vld [vmem:[%s1254_s13 + $0xa0] sm:$0xff]  ;;  %v270_v14 = vld [vmem:[%s1254_s13 + $0xa8] sm:$0xff]  ;;  %s1351_s28 = scalar_lea.vmem %s1497_s4, %s897_s23 }
  0x38   : > { %989 = vmatpush3.bf16.msra.mxu1 %v984_v3  ;;  %v255_v15 = vld [vmem:[%s1254_s13 + $0x30] sm:$0xff]  ;;  %v256_v17 = vld [vmem:[%s1254_s13 + $0x38] sm:$0xff]  ;;  %v257_v19 = vld [vmem:[%s1254_s13 + $0x40] sm:$0xff] }
  0x39   : > { %v271_v16 = vld [vmem:[%s1254_s13 + $0xb0] sm:$0xff]  ;;  %v272_v18 = vld [vmem:[%s1254_s13 + $0xb8] sm:$0xff]  ;;  %v273_v20 = vld [vmem:[%s1254_s13 + $0xc0] sm:$0xff] }
  0x3a   : > { %937 = vmatmul.mubr.msk.f32.vlgmr.msra.gmra.mrb[0].mxu0 %vm283_vm0, %v250_v5  ;;  %v258_v21 = vld [vmem:[%s1254_s13 + $0x48] sm:$0xff]  ;;  %v259_v23 = vld [vmem:[%s1254_s13 + $0x50] sm:$0xff]  ;;  %v260_v25 = vld [vmem:[%s1254_s13 + $0x58] sm:$0xff] }
  0x3b   : > { %961 = vmatmul.mubr.msk.f32.vlgmr.msra.gmra.mrb[0].mxu1 %vm283_vm0, %v266_v6  ;;  %939 = vmatprep.mubr.msk.f32.mxu0 %vm283_vm0, %v251_v7  ;;  %v274_v22 = vld [vmem:[%s1254_s13 + $0xc8] sm:$0xff]  ;;  %v275_v24 = vld [vmem:[%s1254_s13 + $0xd0] sm:$0xff]  ;;  %v276_v26 = vld [vmem:[%s1254_s13 + $0xd8] sm:$0xff] }
  0x3c   : > { %963 = vmatprep.mubr.msk.f32.mxu1 %vm283_vm0, %v267_v8  ;;  %v261_v27 = vld [vmem:[%s1254_s13 + $0x60] sm:$0xff]  ;;  %v262_v29 = vld [vmem:[%s1254_s13 + $0x68] sm:$0xff]  ;;  %v263_v31 = vld [vmem:[%s1254_s13 + $0x70] sm:$0xff] }
  0x3d   : > { %v277_v28 = vld [vmem:[%s1254_s13 + $0xe0] sm:$0xff]  ;;  %v278_v30 = vld [vmem:[%s1254_s13 + $0xe8] sm:$0xff]  ;;  %v279_v32 = vld [vmem:[%s1254_s13 + $0xf0] sm:$0xff] }
  0x3e   : > { %940 = vmatmul.mubr.msk.f32.gmra.mrb[2].mxu0 %vm283_vm0, %v252_v9  ;;  %v264_v33 = vld [vmem:[%s1254_s13 + $0x78] sm:$0xff]  ;;  %v1335_v35 = vld [vmem:[%s1495_s2] ss:$0 sm:$0xff] }
  0x3f   : > { %964 = vmatmul.mubr.msk.f32.gmra.mrb[2].mxu1 %vm283_vm0, %v268_v10  ;;  %942 = vmatprep.mubr.msk.f32.mxu0 %vm283_vm0, %v253_v11  ;;  %v280_v34 = vld [vmem:[%s1254_s13 + $0xf8] sm:$0xff]  ;;  %v1340_v37 = vld [vmem:[%s1496_s3] ss:$0 sm:$0xff] }
  0x40   : > { %966 = vmatprep.mubr.msk.f32.mxu1 %vm283_vm0, %v269_v12 }
  0x42   : > { %943 = vmatmul.mubr.msk.f32.gmra.mrb[4].mxu0 %vm283_vm0, %v254_v13 }
  0x43   : > { %967 = vmatmul.mubr.msk.f32.gmra.mrb[4].mxu1 %vm283_vm0, %v270_v14  ;;  %945 = vmatprep.mubr.msk.f32.mxu0 %vm283_vm0, %v255_v15 }
  0x44   : > { %969 = vmatprep.mubr.msk.f32.mxu1 %vm283_vm0, %v271_v16 }
  0x46   : > { %946 = vmatmul.mubr.msk.f32.gmra.mrb[6].mxu0 %vm283_vm0, %v256_v17 }
  0x47   : > { %970 = vmatmul.mubr.msk.f32.gmra.mrb[6].mxu1 %vm283_vm0, %v272_v18  ;;  %948 = vmatprep.mubr.msk.f32.mxu0 %vm283_vm0, %v257_v19 }
  0x48   : > { %972 = vmatprep.mubr.msk.f32.mxu1 %vm283_vm0, %v273_v20 }
  0x4a   : > { %949 = vmatmul.mubr.msk.f32.gmra.mrb[8].mxu0 %vm283_vm0, %v258_v21 }
  0x4b   : > { %973 = vmatmul.mubr.msk.f32.gmra.mrb[8].mxu1 %vm283_vm0, %v274_v22  ;;  %951 = vmatprep.mubr.msk.f32.mxu0 %vm283_vm0, %v259_v23 }
  0x4c   : > { %975 = vmatprep.mubr.msk.f32.mxu1 %vm283_vm0, %v275_v24 }
  0x4e   : > { %952 = vmatmul.mubr.msk.f32.gmra.mrb[10].mxu0 %vm283_vm0, %v260_v25 }
  0x4f   : > { %976 = vmatmul.mubr.msk.f32.gmra.mrb[10].mxu1 %vm283_vm0, %v276_v26  ;;  %954 = vmatprep.mubr.msk.f32.mxu0 %vm283_vm0, %v261_v27 }
  0x50   : > { %978 = vmatprep.mubr.msk.f32.mxu1 %vm283_vm0, %v277_v28 }
  0x52   : > { %955 = vmatmul.mubr.msk.f32.gmra.mrb[12].mxu0 %vm283_vm0, %v262_v29 }
  0x53   : > { %979 = vmatmul.mubr.msk.f32.gmra.mrb[12].mxu1 %vm283_vm0, %v278_v30  ;;  %957 = vmatprep.mubr.msk.f32.mxu0 %vm283_vm0, %v263_v31 }
  0x54   : > { %981 = vmatprep.mubr.msk.f32.mxu1 %vm283_vm0, %v279_v32 }
  0x56   : > { %958 = vmatmul.mubr.msk.f32.gmra.mrb[14].mxu0 %vm283_vm0, %v264_v33 }
  0x57   : > { %982 = vmatmul.mubr.msk.f32.gmra.mrb[14].mxu1 %vm283_vm0, %v280_v34 }
 0x10d   : > { %v938_v36 = vpop.f32.mrb[0].mxu0 }
 0x10e   : > { %v962_v38 = vpop.f32.mrb[0].mxu1  ;;  %v613_v39 = vmul.f32 %v938_v36, %v1335_v35  ;;  %v446_v41 = vpop.f32.mrb[1].mxu0 }
 0x10f   : > { %v629_v40 = vmul.f32 %v962_v38, %v1335_v35  ;;  %v526_v42 = vpop.f32.mrb[1].mxu1  ;;  %v612_v43 = vmul.f32 %v1335_v35, %v446_v41 }
 0x110   : > { %v628_v44 = vmul.f32 %v1335_v35, %v526_v42  ;;  %v652_v45 = vadd.f32 %v1340_v37, %v613_v39 }
 0x111   : > { %v668_v46 = vadd.f32 %v1340_v37, %v629_v40  ;;  %v651_v47 = vadd.f32 %v1340_v37, %v612_v43  ;;  %v941_v49 = vpop.f32.mrb[2].mxu0 }
 0x112   : > { %v667_v48 = vadd.f32 %v1340_v37, %v628_v44  ;;  %v965_v50 = vpop.f32.mrb[2].mxu1  ;;  %v684_v51 = vmax.f32 %v652_v45, 0.0  ;;  %v615_v53 = vmul.f32 %v941_v49, %v1335_v35  ;;  %v456_v55 = vpop.f32.mrb[3].mxu0 }
 0x113   : > { %v700_v52 = vmax.f32 %v668_v46, 0.0  ;;  %v631_v54 = vmul.f32 %v965_v50, %v1335_v35  ;;  %v536_v56 = vpop.f32.mrb[3].mxu1  ;;  %v683_v57 = vmax.f32 %v651_v47, 0.0  ;;  %v614_v59 = vmul.f32 %v1335_v35, %v456_v55 }
 0x114   : > { %v699_v58 = vmax.f32 %v667_v48, 0.0  ;;  %v630_v60 = vmul.f32 %v1335_v35, %v536_v56  ;;  %717 = vst.msk [vmem:[%s1351_s28 + $0x8] sm:$0xff] %vm715_vm1, %v684_v51  ;;  %v654_v61 = vadd.f32 %v1340_v37, %v615_v53 }
 0x115   : > { %733 = vst.msk [vmem:[%s1351_s28 + $0x88] sm:$0xff] %vm715_vm1, %v700_v52  ;;  %v670_v62 = vadd.f32 %v1340_v37, %v631_v54  ;;  %716 = vst.msk [vmem:[%s1351_s28] sm:$0xff] %vm715_vm1, %v683_v57  ;;  %v653_v63 = vadd.f32 %v1340_v37, %v614_v59  ;;  %v944_v1 = vpop.f32.mrb[4].mxu0 }
 0x116   : > { %732 = vst.msk [vmem:[%s1351_s28 + $0x80] sm:$0xff] %vm715_vm1, %v699_v58  ;;  %v669_v0 = vadd.f32 %v1340_v37, %v630_v60  ;;  %v968_v2 = vpop.f32.mrb[4].mxu1  ;;  %v686_v3 = vmax.f32 %v654_v61, 0.0  ;;  %v617_v5 = vmul.f32 %v944_v1, %v1335_v35  ;;  %v466_v7 = vpop.f32.mrb[5].mxu0 }
 0x117   : > { %v702_v4 = vmax.f32 %v670_v62, 0.0  ;;  %v633_v6 = vmul.f32 %v968_v2, %v1335_v35  ;;  %v546_v8 = vpop.f32.mrb[5].mxu1  ;;  %v685_v9 = vmax.f32 %v653_v63, 0.0  ;;  %v616_v11 = vmul.f32 %v1335_v35, %v466_v7 }
 0x118   : > { %v701_v10 = vmax.f32 %v669_v0, 0.0  ;;  %v632_v12 = vmul.f32 %v1335_v35, %v546_v8  ;;  %719 = vst.msk [vmem:[%s1351_s28 + $0x18] sm:$0xff] %vm715_vm1, %v686_v3  ;;  %v656_v13 = vadd.f32 %v1340_v37, %v617_v5 }
 0x119   : > { %735 = vst.msk [vmem:[%s1351_s28 + $0x98] sm:$0xff] %vm715_vm1, %v702_v4  ;;  %v672_v14 = vadd.f32 %v1340_v37, %v633_v6  ;;  %718 = vst.msk [vmem:[%s1351_s28 + $0x10] sm:$0xff] %vm715_vm1, %v685_v9  ;;  %v655_v15 = vadd.f32 %v1340_v37, %v616_v11  ;;  %v947_v17 = vpop.f32.mrb[6].mxu0 }
 0x11a   : > { %734 = vst.msk [vmem:[%s1351_s28 + $0x90] sm:$0xff] %vm715_vm1, %v701_v10  ;;  %v671_v16 = vadd.f32 %v1340_v37, %v632_v12  ;;  %v971_v18 = vpop.f32.mrb[6].mxu1  ;;  %v688_v19 = vmax.f32 %v656_v13, 0.0  ;;  %v619_v21 = vmul.f32 %v947_v17, %v1335_v35  ;;  %v476_v23 = vpop.f32.mrb[7].mxu0 }
 0x11b   : > { %v704_v20 = vmax.f32 %v672_v14, 0.0  ;;  %v635_v22 = vmul.f32 %v971_v18, %v1335_v35  ;;  %v556_v24 = vpop.f32.mrb[7].mxu1  ;;  %v687_v25 = vmax.f32 %v655_v15, 0.0  ;;  %v618_v27 = vmul.f32 %v1335_v35, %v476_v23 }
 0x11c   : > { %v703_v26 = vmax.f32 %v671_v16, 0.0  ;;  %v634_v28 = vmul.f32 %v1335_v35, %v556_v24  ;;  %721 = vst.msk [vmem:[%s1351_s28 + $0x28] sm:$0xff] %vm715_vm1, %v688_v19  ;;  %v658_v29 = vadd.f32 %v1340_v37, %v619_v21 }
 0x11d   : > { %737 = vst.msk [vmem:[%s1351_s28 + $0xa8] sm:$0xff] %vm715_vm1, %v704_v20  ;;  %v674_v30 = vadd.f32 %v1340_v37, %v635_v22  ;;  %720 = vst.msk [vmem:[%s1351_s28 + $0x20] sm:$0xff] %vm715_vm1, %v687_v25  ;;  %v657_v31 = vadd.f32 %v1340_v37, %v618_v27  ;;  %v950_v33 = vpop.f32.mrb[8].mxu0 }
 0x11e   : > { %736 = vst.msk [vmem:[%s1351_s28 + $0xa0] sm:$0xff] %vm715_vm1, %v703_v26  ;;  %v673_v32 = vadd.f32 %v1340_v37, %v634_v28  ;;  %v974_v34 = vpop.f32.mrb[8].mxu1  ;;  %v690_v36 = vmax.f32 %v658_v29, 0.0  ;;  %v621_v39 = vmul.f32 %v950_v33, %v1335_v35  ;;  %v486_v41 = vpop.f32.mrb[9].mxu0 }
 0x11f   : > { %v706_v38 = vmax.f32 %v674_v30, 0.0  ;;  %v637_v40 = vmul.f32 %v974_v34, %v1335_v35  ;;  %v566_v42 = vpop.f32.mrb[9].mxu1  ;;  %v689_v43 = vmax.f32 %v657_v31, 0.0  ;;  %v620_v45 = vmul.f32 %v1335_v35, %v486_v41 }
 0x120   : > { %v705_v44 = vmax.f32 %v673_v32, 0.0  ;;  %v636_v46 = vmul.f32 %v1335_v35, %v566_v42  ;;  %723 = vst.msk [vmem:[%s1351_s28 + $0x38] sm:$0xff] %vm715_vm1, %v690_v36  ;;  %v660_v47 = vadd.f32 %v1340_v37, %v621_v39 }
 0x121   : > { %739 = vst.msk [vmem:[%s1351_s28 + $0xb8] sm:$0xff] %vm715_vm1, %v706_v38  ;;  %v676_v48 = vadd.f32 %v1340_v37, %v637_v40  ;;  %722 = vst.msk [vmem:[%s1351_s28 + $0x30] sm:$0xff] %vm715_vm1, %v689_v43  ;;  %v659_v49 = vadd.f32 %v1340_v37, %v620_v45  ;;  %v953_v51 = vpop.f32.mrb[10].mxu0 }
 0x122   : > { %738 = vst.msk [vmem:[%s1351_s28 + $0xb0] sm:$0xff] %vm715_vm1, %v705_v44  ;;  %v675_v50 = vadd.f32 %v1340_v37, %v636_v46  ;;  %v977_v52 = vpop.f32.mrb[10].mxu1  ;;  %v692_v53 = vmax.f32 %v660_v47, 0.0  ;;  %v623_v55 = vmul.f32 %v953_v51, %v1335_v35  ;;  %v496_v57 = vpop.f32.mrb[11].mxu0 }
 0x123   : > { %v708_v54 = vmax.f32 %v676_v48, 0.0  ;;  %v639_v56 = vmul.f32 %v977_v52, %v1335_v35  ;;  %v576_v58 = vpop.f32.mrb[11].mxu1  ;;  %v691_v59 = vmax.f32 %v659_v49, 0.0  ;;  %v622_v61 = vmul.f32 %v1335_v35, %v496_v57 }
 0x124   : > { %v707_v60 = vmax.f32 %v675_v50, 0.0  ;;  %v638_v62 = vmul.f32 %v1335_v35, %v576_v58  ;;  %725 = vst.msk [vmem:[%s1351_s28 + $0x48] sm:$0xff] %vm715_vm1, %v692_v53  ;;  %v662_v63 = vadd.f32 %v1340_v37, %v623_v55 }
 0x125   : > { %741 = vst.msk [vmem:[%s1351_s28 + $0xc8] sm:$0xff] %vm715_vm1, %v708_v54  ;;  %v678_v0 = vadd.f32 %v1340_v37, %v639_v56  ;;  %724 = vst.msk [vmem:[%s1351_s28 + $0x40] sm:$0xff] %vm715_vm1, %v691_v59  ;;  %v661_v1 = vadd.f32 %v1340_v37, %v622_v61  ;;  %v956_v3 = vpop.f32.mrb[12].mxu0 }
 0x126   : > { %740 = vst.msk [vmem:[%s1351_s28 + $0xc0] sm:$0xff] %vm715_vm1, %v707_v60  ;;  %v677_v2 = vadd.f32 %v1340_v37, %v638_v62  ;;  %v980_v4 = vpop.f32.mrb[12].mxu1  ;;  %v694_v5 = vmax.f32 %v662_v63, 0.0  ;;  %v625_v7 = vmul.f32 %v956_v3, %v1335_v35  ;;  %v506_v9 = vpop.f32.mrb[13].mxu0 }
 0x127   : > { %v710_v6 = vmax.f32 %v678_v0, 0.0  ;;  %v641_v8 = vmul.f32 %v980_v4, %v1335_v35  ;;  %v586_v10 = vpop.f32.mrb[13].mxu1  ;;  %v693_v11 = vmax.f32 %v661_v1, 0.0  ;;  %v624_v13 = vmul.f32 %v1335_v35, %v506_v9 }
 0x128   : > { %v709_v12 = vmax.f32 %v677_v2, 0.0  ;;  %v640_v14 = vmul.f32 %v1335_v35, %v586_v10  ;;  %727 = vst.msk [vmem:[%s1351_s28 + $0x58] sm:$0xff] %vm715_vm1, %v694_v5  ;;  %v664_v15 = vadd.f32 %v1340_v37, %v625_v7 }
 0x129   : > { %743 = vst.msk [vmem:[%s1351_s28 + $0xd8] sm:$0xff] %vm715_vm1, %v710_v6  ;;  %v680_v16 = vadd.f32 %v1340_v37, %v641_v8  ;;  %726 = vst.msk [vmem:[%s1351_s28 + $0x50] sm:$0xff] %vm715_vm1, %v693_v11  ;;  %v663_v17 = vadd.f32 %v1340_v37, %v624_v13  ;;  %v959_v19 = vpop.f32.mrb[14].mxu0 }
 0x12a   : > { %742 = vst.msk [vmem:[%s1351_s28 + $0xd0] sm:$0xff] %vm715_vm1, %v709_v12  ;;  %v679_v18 = vadd.f32 %v1340_v37, %v640_v14  ;;  %v983_v20 = vpop.f32.mrb[14].mxu1  ;;  %v696_v21 = vmax.f32 %v664_v15, 0.0  ;;  %v627_v23 = vmul.f32 %v959_v19, %v1335_v35  ;;  %v516_v25 = vpop.f32.mrb[15].mxu0 }
 0x12b   : > { %v712_v22 = vmax.f32 %v680_v16, 0.0  ;;  %v643_v24 = vmul.f32 %v983_v20, %v1335_v35  ;;  %v596_v26 = vpop.f32.mrb[15].mxu1  ;;  %v695_v27 = vmax.f32 %v663_v17, 0.0  ;;  %v626_v29 = vmul.f32 %v1335_v35, %v516_v25 }
 0x12c   : > { %v711_v28 = vmax.f32 %v679_v18, 0.0  ;;  %v642_v30 = vmul.f32 %v1335_v35, %v596_v26  ;;  %729 = vst.msk [vmem:[%s1351_s28 + $0x68] sm:$0xff] %vm715_vm1, %v696_v21  ;;  %v666_v31 = vadd.f32 %v1340_v37, %v627_v23 }
 0x12d   : > { %745 = vst.msk [vmem:[%s1351_s28 + $0xe8] sm:$0xff] %vm715_vm1, %v712_v22  ;;  %v682_v32 = vadd.f32 %v1340_v37, %v643_v24  ;;  %728 = vst.msk [vmem:[%s1351_s28 + $0x60] sm:$0xff] %vm715_vm1, %v695_v27  ;;  %v665_v33 = vadd.f32 %v1340_v37, %v626_v29 }
 0x12e   : > { %744 = vst.msk [vmem:[%s1351_s28 + $0xe0] sm:$0xff] %vm715_vm1, %v711_v28  ;;  %v681_v34 = vadd.f32 %v1340_v37, %v642_v30  ;;  %v698_v36 = vmax.f32 %v666_v31, 0.0 }
 0x12f   : > { %v714_v38 = vmax.f32 %v682_v32, 0.0  ;;  %v697_v35 = vmax.f32 %v665_v33, 0.0 }
 0x130   : > { %v713_v39 = vmax.f32 %v681_v34, 0.0  ;;  %731 = vst.msk [vmem:[%s1351_s28 + $0x78] sm:$0xff] %vm715_vm1, %v698_v36 }
 0x131   : > { %747 = vst.msk [vmem:[%s1351_s28 + $0xf8] sm:$0xff] %vm715_vm1, %v714_v38  ;;  %730 = vst.msk [vmem:[%s1351_s28 + $0x70] sm:$0xff] %vm715_vm1, %v697_v35 }
 0x132   : > { %746 = vst.msk [vmem:[%s1351_s28 + $0xf0] sm:$0xff] %vm715_vm1, %v713_v39 }
 0x133 PF: > { %s17_s20 = sadd.s32 1, %s1127_s20   ;;  %s1501_s15 = smov %s1111_s16 }
 0x134   : > { %p14_p9 = scmp.ge.s32.totalorder %s17_s20, 4   ;;  %s1502_s16 = smov %s1115_s17 }
 0x135   : > { %s1503_s17 = smov %s1206_s27  ;;  %s1504_s18 = smov %s1123_s19 }
 0x136   : > { %s1505_s19 = smov %s1507_s22  ;;  %16 = sbr.rel (!%p14_p9) target bundleno = 4 (0x4), region = 76 }
 0x13d   :  { %780 = vsyncpa [#allocation3], 1 }
 0x13e   :  { %782 = vsyncpa [#allocation3 + $0x1], 1 }

// kernel: _lambda_.3
= control target key start
LH: loop header
LB: loop body
LE: loop exit
PB: predicated region body
PF: predicated region fallthrough
CT: control target
= control target key end

     0   :  { %s21643_s0 = inlined_call_operand.vmem [shape: f32[2,16,16,8], index: 0, kind: input, shape index: {}]   ;;  %s21644_s1 = inlined_call_operand.vmem [shape: f32[2,2,2,4], index: 1, kind: input, shape index: {}]   ;;  %s21645_s2 = inlined_call_operand.vmem [shape: f32[2,4,4,4], index: 2, kind: input, shape index: {}]   ;;  %s21646_s3 = inlined_call_operand.vmem [shape: f32[2,1,16,4], index: 3, kind: input, shape index: {}]   ;;  %s21647_s4 = inlined_call_operand.vmem [shape: f32[2,16,1,4], index: 4, kind: input, shape index: {}]   ;;  %s21648_s5 = inlined_call_operand.vmem [shape: f32[2,16,16,16], index: 5, kind: input, shape index: {}]   ;;  %s21649_s6 = inlined_call_operand.vmem [shape: f32[256,4], index: 6, kind: input, shape index: {}]   ;;  %s21650_s7 = inlined_call_operand.vmem [shape: f32[256,16], index: 7, kind: input, shape index: {}]   ;;  %s21651_s8 = inlined_call_operand.vmem [shape: f32[36,4], index: 8, kind: input, shape index: {}]   ;;  %s21652_s9 = inlined_call_operand.vmem [shape: f32[36,4], index: 9, kind: input, shape index: {}]   ;;  %s21653_s10 = inlined_call_operand.vmem [shape: f32[36,4], index: 10, kind: input, shape index: {}]   ;;  %s21654_s11 = inlined_call_operand.vmem [shape: f32[8,16], index: 11, kind: input, shape index: {}]   ;;  %s21655_s12 = inlined_call_operand.vmem [shape: f32[2,4], index: 12, kind: input, shape index: {}]   ;;  %s21656_s13 = inlined_call_operand.vmem [shape: f32[2,4], index: 13, kind: input, shape index: {}]   ;;  %s21657_s14 = inlined_call_operand.vmem [shape: f32[2,4], index: 14, kind: input, shape index: {}]   ;;  %s21658_s15 = inlined_call_operand.vmem [shape: f32[2,16], index: 15, kind: input, shape index: {}]   ;;  %s21659_s16 = inlined_call_operand.hbm [shape: f32[2,16,16,16], index: 16, kind: output, shape index: {}]  }
   0x1   :  { %21867 = sst [smem:[#allocation121_spill]] %s21643_s0 }
   0x2   :  { %21868 = sst [smem:[#allocation122_spill]] %s21654_s11 }
   0x3   :  { %21869 = sst [smem:[#allocation123_spill]] %s21656_s13 }
   0x4   :  { %21870 = sst [smem:[#allocation124_spill]] %s21657_s14 }
   0x5   :  { %21871 = sst [smem:[#allocation125_spill]] %s21658_s15 }
   0x6   :  { %21872 = sst [smem:[#allocation126_spill]] %s21659_s16 }
   0x7   :  { %21 = vsyncpa [#allocation4], 0 }
   0x8   :  { %23 = vsyncpa [#allocation4 + $0x1], 0  ;;  %s17807_s21 = smov 0   ;;  %s17809_s22 = smov 0  }
   0x9   :  { %s17811_s23 = smov 0   ;;  %s17813_s24 = smov 0  }
   0xa LB: > { %21873 = sst [smem:[#allocation6_spill]] %s17702_s21  ;;  %s17828_s25 = sadd.s32 4294967295, %s17714_s24   ;;  %s17714_s24 = sphi %s17813_s24, %s22254_s24   ;;  %s17710_s23 = sphi %s17811_s23, %s22257_s23   ;;  %s17706_s22 = sphi %s17809_s22, %s22256_s22   ;;  %s17702_s21 = sphi %s17807_s21, %s22255_s21  }
   0xb   : > { %21874 = sst [smem:[#allocation7_spill]] %s17706_s22  ;;  %s13234_s26 = sadd.s32 4294967294, %s17714_s24  }
   0xc   : > { %21875 = sst [smem:[#allocation8_spill]] %s17710_s23  ;;  %s17832_s27 = sadd.s32 1, %s17714_s24  }
   0xd   : > { %21876 = sst [smem:[#allocation9_spill]] %s17714_s24  ;;  %s402_s28 = sadd.s32 1, %s17710_s23 }
   0xe   : > { %21877 = sst [smem:[#allocation10_spill]] %s17832_s27  ;;  %s399_s29 = ssub.s32 %s17714_s24, %s17832_s27 }
   0xf   : > { %p412_p0 = scmp.ne.s32.totalorder %s17710_s23, %s17706_s22  ;;  %p400_p1 = scmp.eq.s32.totalorder %s399_s29, 0 }
  0x10   : > { %p413_p2 = scmp.eq.s32.totalorder %s17828_s25, 1  ;;  %p418_p3 = scmp.ne.s32.totalorder %s17706_s22, %s17702_s21 }
  0x11   : > { %p419_p4 = scmp.eq.s32.totalorder %s13234_s26, 1  ;;  %p13237_p7 = scmp.ge.s32.totalorder %s17714_s24, 1 }
  0x12   : > { %s17843_s30 = scalar_select %p400_p1, %s17710_s23, %s402_s28  }
  0x13   : > { %p17845_p5 = por %p413_p2, %p412_p0  ;;  %p17849_p6 = por %p419_p4, %p418_p3 }
  0x14   : > { %21878 = sst [smem:[#allocation11_spill]] %s17843_s30  ;;  %p514_p8 = scmp.lt.s32.totalorder %s17714_s24, 3 }
  0x15   : > { %s21879_s0 = scalar_select %p17845_p5, 1, 0 }
  0x16   : > { %s21881_s17 = scalar_select %p17849_p6, 1, 0 }
  0x17   : > { %21880 = sst [smem:[#allocation12_spill]] %s21879_s0  ;;  %p515_p9 = pnand %p13237_p7, %p514_p8 }
  0x18   : > { %21882 = sst [smem:[#allocation13_spill]] %s21881_s17 }
  0x19   : > { %518 = sbr.rel (%p515_p9) target bundleno = 1800 (0x708), region = 84 }
  0x20   : > { %s21671_s18 = sand.u32 1, %s17706_s22   ;;  %p588_p10 = scmp.lt.s32.totalorder %s17828_s25, 1 }
  0x21   : > { %s13238_s19 = sshll.u32 %s21671_s18, 8  ;;  %s21883_s23 = sld [smem:[#allocation121_spill]] }
  0x22   : > { %s589_s20 = scalar_select %p588_p10, %s17828_s25, 1 }
  0x23   : > { %p13250_p11 = scmp.ne.s32.totalorder %s17828_s25, 0 }
  0x24   : > { %s14268_s26 = sshll.u32 %s589_s20, 8  ;;  %s14269_s28 = sshll.u32 %s589_s20, 2  ;;  %vm621_vm0 = vcmask (!%p13250_p11), 31744   ;;  %vm624_vm1 = vcmask (!%p13250_p11), 25600   ;;  %v17716_v0 = vmov (!%p13250_p11), 0.0  }
  0x25   : > { %s17868_s24 = scalar_lea.vmem %s21644_s1, %s14269_s28  ;;  %s14270_s16 = sshll.u32 %s589_s20, 4  ;;  %622 = vst.msk [vmem:[#allocation2] sm:$0xff] (!%p13250_p11), %vm621_vm0, %v17716_v0  ;;  %623 = vst.msk [vmem:[#allocation2 + $0x8] sm:$0xff] (!%p13250_p11), %vm621_vm0, %v17716_v0 }
  0x26   : > { %s17873_s13 = scalar_lea.vmem %s21648_s5, %s14268_s26  ;;  %s17878_s14 = scalar_lea.vmem %s21645_s2, %s14270_s16  ;;  %626 = vst.msk [vmem:[#allocation2 + $0x18] sm:$0xff] (!%p13250_p11), %vm621_vm0, %v17716_v0  ;;  %627 = vst.msk [vmem:[#allocation2 + $0x20] sm:$0xff] (!%p13250_p11), %vm621_vm0, %v17716_v0 }
  0x27   : > { %s17863_s27 = scalar_lea.vmem %s21883_s23, %s14268_s26  ;;  %s17883_s23 = scalar_lea.vmem %s21646_s3, %s14270_s16  ;;  %629 = vst.msk [vmem:[#allocation2 + $0x30] sm:$0xff] (!%p13250_p11), %vm621_vm0, %v17716_v0  ;;  %630 = vst.msk [vmem:[#allocation2 + $0x38] sm:$0xff] (!%p13250_p11), %vm621_vm0, %v17716_v0 }
  0x28   : > { %s17888_s17 = scalar_lea.vmem %s21647_s4, %s14270_s16  ;;  %s17890_s20 = scalar_lea.vmem [#allocation3], %s13238_s19  ;;  %632 = vst.msk [vmem:[#allocation2 + $0x48] sm:$0xff] (!%p13250_p11), %vm621_vm0, %v17716_v0  ;;  %633 = vst.msk [vmem:[#allocation2 + $0x50] sm:$0xff] (!%p13250_p11), %vm621_vm0, %v17716_v0 }
  0x29   : > { %620 = sbr.rel (%p13250_p11) target bundleno = 64 (0x40), region = 88  ;;  %635 = vst.msk [vmem:[#allocation2 + $0x60] sm:$0xff] (!%p13250_p11), %vm621_vm0, %v17716_v0  ;;  %636 = vst.msk [vmem:[#allocation2 + $0x68] sm:$0xff] (!%p13250_p11), %vm621_vm0, %v17716_v0 }
  0x2a   : > { %638 = vst.msk [vmem:[#allocation2 + $0x78] sm:$0xff] (!%p13250_p11), %vm621_vm0, %v17716_v0  ;;  %639 = vst.msk [vmem:[#allocation2 + $0x80] sm:$0xff] (!%p13250_p11), %vm621_vm0, %v17716_v0 }
  0x2b   : > { %641 = vst.msk [vmem:[#allocation2 + $0x90] sm:$0xff] (!%p13250_p11), %vm621_vm0, %v17716_v0  ;;  %642 = vst.msk [vmem:[#allocation2 + $0x98] sm:$0xff] (!%p13250_p11), %vm621_vm0, %v17716_v0 }
  0x2c   : > { %644 = vst.msk [vmem:[#allocation2 + $0xa8] sm:$0xff] (!%p13250_p11), %vm621_vm0, %v17716_v0  ;;  %645 = vst.msk [vmem:[#allocation2 + $0xb0] sm:$0xff] (!%p13250_p11), %vm621_vm0, %v17716_v0 }
  0x2d   : > { %647 = vst.msk [vmem:[#allocation2 + $0xc0] sm:$0xff] (!%p13250_p11), %vm621_vm0, %v17716_v0  ;;  %648 = vst.msk [vmem:[#allocation2 + $0xc8] sm:$0xff] (!%p13250_p11), %vm621_vm0, %v17716_v0 }
  0x2e   : > { %650 = vst.msk [vmem:[#allocation2 + $0xd8] sm:$0xff] (!%p13250_p11), %vm621_vm0, %v17716_v0  ;;  %651 = vst.msk [vmem:[#allocation2 + $0xe0] sm:$0xff] (!%p13250_p11), %vm621_vm0, %v17716_v0 }
  0x2f   : > { %653 = vst.msk [vmem:[#allocation2 + $0xf0] sm:$0xff] (!%p13250_p11), %vm621_vm0, %v17716_v0  ;;  %654 = vst.msk [vmem:[#allocation2 + $0xf8] sm:$0xff] (!%p13250_p11), %vm621_vm0, %v17716_v0 }
  0x30   : > { %656 = vst.msk [vmem:[#allocation2 + $0x108] sm:$0xff] %vm621_vm0, %v17716_v0  ;;  %657 = vst.msk [vmem:[#allocation2 + $0x110] sm:$0xff] %vm621_vm0, %v17716_v0 }
  0x31   : > { %659 = vst.msk [vmem:[#allocation2 + $0x120] sm:$0xff] %vm621_vm0, %v17716_v0  ;;  %660 = vst.msk [vmem:[#allocation2 + $0x128] sm:$0xff] %vm621_vm0, %v17716_v0 }
  0x32   : > { %662 = vst.msk [vmem:[#allocation2 + $0x138] sm:$0xff] %vm621_vm0, %v17716_v0  ;;  %663 = vst.msk [vmem:[#allocation2 + $0x140] sm:$0xff] %vm621_vm0, %v17716_v0 }
  0x33   : > { %665 = vst.msk [vmem:[#allocation2 + $0x150] sm:$0xff] %vm621_vm0, %v17716_v0  ;;  %666 = vst.msk [vmem:[#allocation2 + $0x158] sm:$0xff] %vm621_vm0, %v17716_v0 }
  0x34   : > { %668 = vst.msk [vmem:[#allocation2 + $0x168] sm:$0xff] %vm621_vm0, %v17716_v0  ;;  %669 = vst.msk [vmem:[#allocation2 + $0x170] sm:$0xff] %vm621_vm0, %v17716_v0 }
  0x35   : > { %671 = vst.msk [vmem:[#allocation2 + $0x180] sm:$0xff] %vm621_vm0, %v17716_v0  ;;  %672 = vst.msk [vmem:[#allocation2 + $0x188] sm:$0xff] %vm621_vm0, %v17716_v0 }
  0x36   : > { %674 = vst.msk [vmem:[#allocation2 + $0x198] sm:$0xff] %vm621_vm0, %v17716_v0  ;;  %675 = vst.msk [vmem:[#allocation2 + $0x1a0] sm:$0xff] %vm621_vm0, %v17716_v0 }
  0x37   : > { %625 = vst.msk [vmem:[#allocation2 + $0x10] sm:$0x3] %vm624_vm1, %v17716_v0  ;;  %628 = vst.msk [vmem:[#allocation2 + $0x28] sm:$0x3] %vm624_vm1, %v17716_v0 }
  0x38   : > { %631 = vst.msk [vmem:[#allocation2 + $0x40] sm:$0x3] %vm624_vm1, %v17716_v0  ;;  %634 = vst.msk [vmem:[#allocation2 + $0x58] sm:$0x3] %vm624_vm1, %v17716_v0 }
  0x39   : > { %637 = vst.msk [vmem:[#allocation2 + $0x70] sm:$0x3] %vm624_vm1, %v17716_v0  ;;  %640 = vst.msk [vmem:[#allocation2 + $0x88] sm:$0x3] %vm624_vm1, %v17716_v0 }
  0x3a   : > { %643 = vst.msk [vmem:[#allocation2 + $0xa0] sm:$0x3] %vm624_vm1, %v17716_v0  ;;  %646 = vst.msk [vmem:[#allocation2 + $0xb8] sm:$0x3] %vm624_vm1, %v17716_v0 }
  0x3b   : > { %649 = vst.msk [vmem:[#allocation2 + $0xd0] sm:$0x3] %vm624_vm1, %v17716_v0  ;;  %652 = vst.msk [vmem:[#allocation2 + $0xe8] sm:$0x3] %vm624_vm1, %v17716_v0 }
  0x3c   : > { %655 = vst.msk [vmem:[#allocation2 + $0x100] sm:$0x3] %vm624_vm1, %v17716_v0  ;;  %658 = vst.msk [vmem:[#allocation2 + $0x118] sm:$0x3] %vm624_vm1, %v17716_v0 }
  0x3d   : > { %661 = vst.msk [vmem:[#allocation2 + $0x130] sm:$0x3] %vm624_vm1, %v17716_v0  ;;  %664 = vst.msk [vmem:[#allocation2 + $0x148] sm:$0x3] %vm624_vm1, %v17716_v0 }
  0x3e   : > { %667 = vst.msk [vmem:[#allocation2 + $0x160] sm:$0x3] %vm624_vm1, %v17716_v0  ;;  %670 = vst.msk [vmem:[#allocation2 + $0x178] sm:$0x3] %vm624_vm1, %v17716_v0 }
  0x3f   : > { %673 = vst.msk [vmem:[#allocation2 + $0x190] sm:$0x3] %vm624_vm1, %v17716_v0  ;;  %676 = vst.msk [vmem:[#allocation2 + $0x1a8] sm:$0x3] %vm624_vm1, %v17716_v0 }
  0x40 PF: > { %v808_v1 = vld [vmem:[%s21651_s8 + $0x4] sm:$0xf]  ;;  %vm905_vm2 = vcmask 1043456   ;;  %vm710_vm3 = vcmask 31744   ;;  %v777_v3 = vld [vmem:[#allocation2 + $0x9] sm:$0xff]  ;;  %v680_v9 = vld [vmem:[%s17863_s27 + $0x18] sm:$0xff] }
  0x41   : > { %v776_v2 = vld [vmem:[#allocation2 + $0x1] sm:$0xff]  ;;  %15265 = vmatprep.subr.msk.mxu1 %vm905_vm2, %v808_v1  ;;  %v1879_v4 = vld [vmem:[%s21651_s8 + $0xc] sm:$0xf]  ;;  %v2268_v6 = vld [vmem:[%s21651_s8 + $0x10] sm:$0xf]  ;;  %714 = vst.msk [vmem:[#allocation2 + $0x39] sm:$0xff] %vm710_vm3, %v680_v9 }
  0x42   : > { %15267 = vmatprep.mubr.msk.f32.mxu1 %vm710_vm3, %v776_v2  ;;  %v677_v5 = vld [vmem:[%s17863_s27] sm:$0xff]  ;;  %15266 = vmatpush3.msk.msra.mxu1 %vm905_vm2, %v808_v1  ;;  %v678_v7 = vld [vmem:[%s17863_s27 + $0x8] sm:$0xff]  ;;  %v679_v8 = vld [vmem:[%s17863_s27 + $0x10] sm:$0xff]  ;;  %vm4667_vm4 = vcmask 130048   ;;  %s22241_s19 = sld [smem:[#allocation122_spill]]  ;;  %s22242_s30 = sld [smem:[#allocation124_spill]] }
  0x43   : > { %15415 = vmatprep.subr.msk.mxu0 %vm905_vm2, %v1879_v4  ;;  %711 = vst.msk [vmem:[#allocation2 + $0x19] sm:$0xff] %vm710_vm3, %v677_v5  ;;  %15268 = vmatmul.mubr.msk.f32.vlgmr.msra.gmra.mrb[0].mxu1 %vm710_vm3, %v777_v3  ;;  %712 = vst.msk [vmem:[#allocation2 + $0x21] sm:$0xff] %vm710_vm3, %v678_v7  ;;  %v681_v10 = vld [vmem:[%s17863_s27 + $0x20] sm:$0xff]  ;;  %v682_v11 = vld [vmem:[%s17863_s27 + $0x28] sm:$0xff]  ;;  %s17718_s21 = smov 4   ;;  %s22243_s15 = sld [smem:[#allocation123_spill]] }
  0x44   : > { %15416 = vmatpush3.msk.msra.mxu0 %vm905_vm2, %v1879_v4  ;;  %713 = vst.msk [vmem:[#allocation2 + $0x31] sm:$0xff] %vm710_vm3, %v679_v8  ;;  %v683_v12 = vld [vmem:[%s17863_s27 + $0x30] sm:$0xff]  ;;  %715 = vst.msk [vmem:[#allocation2 + $0x49] sm:$0xff] %vm710_vm3, %v681_v10  ;;  %v684_v13 = vld [vmem:[%s17863_s27 + $0x38] sm:$0xff]  ;;  %vm12574_vm5 = vcmask 64512   ;;  %s22244_s22 = sld [smem:[#allocation125_spill]] }
  0x45   : > { %15465 = vmatprep.subr.msk.mxu0 %vm905_vm2, %v2268_v6  ;;  %716 = vst.msk [vmem:[#allocation2 + $0x51] sm:$0xff] %vm710_vm3, %v682_v11  ;;  %717 = vst.msk [vmem:[#allocation2 + $0x61] sm:$0xff] %vm710_vm3, %v683_v12  ;;  %v685_v14 = vld [vmem:[%s17863_s27 + $0x40] sm:$0xff]  ;;  %v686_v15 = vld [vmem:[%s17863_s27 + $0x48] sm:$0xff]  ;;  %s22246_s26 = sld [smem:[#allocation7_spill]]  ;;  %s14273_s29 = sshll.u32 %s17828_s25, 12 }
  0x46   : > { %718 = vst.msk [vmem:[#allocation2 + $0x69] sm:$0xff] %vm710_vm3, %v684_v13  ;;  %719 = vst.msk [vmem:[#allocation2 + $0x79] sm:$0xff] %vm710_vm3, %v685_v14  ;;  %v687_v16 = vld [vmem:[%s17863_s27 + $0x50] sm:$0xff]  ;;  %v688_v17 = vld [vmem:[%s17863_s27 + $0x58] sm:$0xff] }
  0x47   : > { %720 = vst.msk [vmem:[#allocation2 + $0x81] sm:$0xff] %vm710_vm3, %v686_v15  ;;  %v689_v18 = vld [vmem:[%s17863_s27 + $0x60] sm:$0xff]  ;;  %721 = vst.msk [vmem:[#allocation2 + $0x91] sm:$0xff] %vm710_vm3, %v687_v16  ;;  %v690_v19 = vld [vmem:[%s17863_s27 + $0x68] sm:$0xff] }
  0x48   : > { %722 = vst.msk [vmem:[#allocation2 + $0x99] sm:$0xff] %vm710_vm3, %v688_v17  ;;  %723 = vst.msk [vmem:[#allocation2 + $0xa9] sm:$0xff] %vm710_vm3, %v689_v18  ;;  %v691_v20 = vld [vmem:[%s17863_s27 + $0x70] sm:$0xff]  ;;  %v692_v21 = vld [vmem:[%s17863_s27 + $0x78] sm:$0xff] }
  0x49   : > { %724 = vst.msk [vmem:[#allocation2 + $0xb1] sm:$0xff] %vm710_vm3, %v690_v19  ;;  %725 = vst.msk [vmem:[#allocation2 + $0xc1] sm:$0xff] %vm710_vm3, %v691_v20  ;;  %v693_v22 = vld [vmem:[%s17863_s27 + $0x80] sm:$0xff]  ;;  %v694_v23 = vld [vmem:[%s17863_s27 + $0x88] sm:$0xff] }
  0x4a   : > { %726 = vst.msk [vmem:[#allocation2 + $0xc9] sm:$0xff] %vm710_vm3, %v692_v21  ;;  %v695_v24 = vld [vmem:[%s17863_s27 + $0x90] sm:$0xff]  ;;  %727 = vst.msk [vmem:[#allocation2 + $0xd9] sm:$0xff] %vm710_vm3, %v693_v22  ;;  %v696_v25 = vld [vmem:[%s17863_s27 + $0x98] sm:$0xff]  ;;  %s22245_s0 = smov %s22244_s22 }
  0x4b   : > { %728 = vst.msk [vmem:[#allocation2 + $0xe1] sm:$0xff] %vm710_vm3, %v694_v23  ;;  %729 = vst.msk [vmem:[#allocation2 + $0xf1] sm:$0xff] %vm710_vm3, %v695_v24  ;;  %v697_v26 = vld [vmem:[%s17863_s27 + $0xa0] sm:$0xff]  ;;  %v698_v27 = vld [vmem:[%s17863_s27 + $0xa8] sm:$0xff] }
  0x4c   : > { %v18004_v28 = vld [vmem:[#allocation2 + $0x19] sm:$0xff]  ;;  %730 = vst.msk [vmem:[#allocation2 + $0xf9] sm:$0xff] %vm710_vm3, %v696_v25  ;;  %731 = vst.msk [vmem:[#allocation2 + $0x109] sm:$0xff] %vm710_vm3, %v697_v26  ;;  %v699_v30 = vld [vmem:[%s17863_s27 + $0xb0] sm:$0xff] }
  0x4d   : > { %v18006_v29 = vld [vmem:[#allocation2 + $0x18] sm:$0xff]  ;;  %732 = vst.msk [vmem:[#allocation2 + $0x111] sm:$0xff] %vm710_vm3, %v698_v27  ;;  %15270 = vmatprep.mubr.msk.f32.mxu1 %vm710_vm3, %v18004_v28  ;;  %v18016_v31 = vld [vmem:[#allocation2 + $0x21] sm:$0xff]  ;;  %733 = vst.msk [vmem:[#allocation2 + $0x121] sm:$0xff] %vm710_vm3, %v699_v30 }
  0x4e   : > { %15417 = vmatprep.mubr.msk.f32.mxu0 %vm710_vm3, %v18006_v29  ;;  %v18018_v32 = vld [vmem:[#allocation2 + $0x20] sm:$0xff]  ;;  %v18020_v33 = vld [vmem:[#allocation2 + $0x31] sm:$0xff]  ;;  %15271 = vmatmul.mubr.msk.f32.gmra.mrb[2].mxu1 %vm710_vm3, %v18016_v31  ;;  %v18038_v37 = vld [vmem:[#allocation2 + $0x49] sm:$0xff] }
  0x4f   : > { %15418 = vmatmul.mubr.msk.f32.vlgmr.msra.gmra.mrb[0].mxu0 %vm710_vm3, %v18018_v32  ;;  %v18027_v34 = vld [vmem:[#allocation2 + $0x30] sm:$0xff]  ;;  %15273 = vmatprep.mubr.msk.f32.mxu1 %vm710_vm3, %v18020_v33  ;;  %v18032_v35 = vld [vmem:[#allocation2 + $0x39] sm:$0xff]  ;;  %v18040_v38 = vld [vmem:[#allocation2 + $0x48] sm:$0xff] }
  0x50   : > { %15466 = vmatpush3.msk.msra.mxu0 %vm905_vm2, %v2268_v6  ;;  %v18034_v36 = vld [vmem:[#allocation2 + $0x38] sm:$0xff]  ;;  %15420 = vmatprep.mubr.msk.f32.mxu0 %vm710_vm3, %v18027_v34  ;;  %v18052_v40 = vld [vmem:[#allocation2 + $0x50] sm:$0xff]  ;;  %v18054_v41 = vld [vmem:[#allocation2 + $0x61] sm:$0xff] }
  0x51   : > { %v18050_v39 = vld [vmem:[#allocation2 + $0x51] sm:$0xff]  ;;  %v18056_v42 = vld [vmem:[#allocation2 + $0x60] sm:$0xff]  ;;  %v18066_v43 = vld [vmem:[#allocation2 + $0x69] sm:$0xff] }
  0x52   : > { %15274 = vmatmul.mubr.msk.f32.gmra.mrb[4].mxu1 %vm710_vm3, %v18032_v35  ;;  %v18068_v44 = vld [vmem:[#allocation2 + $0x68] sm:$0xff]  ;;  %v18070_v45 = vld [vmem:[#allocation2 + $0x79] sm:$0xff]  ;;  %v18086_v49 = vld [vmem:[#allocation2 + $0x91] sm:$0xff] }
  0x53   : > { %15421 = vmatmul.mubr.msk.f32.gmra.mrb[2].mxu0 %vm710_vm3, %v18034_v36  ;;  %15276 = vmatprep.mubr.msk.f32.mxu1 %vm710_vm3, %v18038_v37  ;;  %v18072_v46 = vld [vmem:[#allocation2 + $0x78] sm:$0xff]  ;;  %v18078_v47 = vld [vmem:[#allocation2 + $0x81] sm:$0xff]  ;;  %v18088_v50 = vld [vmem:[#allocation2 + $0x90] sm:$0xff] }
  0x54   : > { %15423 = vmatprep.mubr.msk.f32.mxu0 %vm710_vm3, %v18040_v38  ;;  %v18080_v48 = vld [vmem:[#allocation2 + $0x80] sm:$0xff]  ;;  %v700_v51 = vld [vmem:[%s17863_s27 + $0xb8] sm:$0xff]  ;;  %v702_v53 = vld [vmem:[%s17863_s27 + $0xc8] sm:$0xff] }
  0x55   : > { %734 = vst.msk [vmem:[#allocation2 + $0x129] sm:$0xff] %vm710_vm3, %v700_v51  ;;  %v701_v52 = vld [vmem:[%s17863_s27 + $0xc0] sm:$0xff]  ;;  %v703_v54 = vld [vmem:[%s17863_s27 + $0xd0] sm:$0xff]  ;;  %736 = vst.msk [vmem:[#allocation2 + $0x141] sm:$0xff] %vm710_vm3, %v702_v53 }
  0x56   : > { %15277 = vmatmul.mubr.msk.f32.gmra.mrb[6].mxu1 %vm710_vm3, %v18050_v39  ;;  %735 = vst.msk [vmem:[#allocation2 + $0x139] sm:$0xff] %vm710_vm3, %v701_v52  ;;  %737 = vst.msk [vmem:[#allocation2 + $0x151] sm:$0xff] %vm710_vm3, %v703_v54  ;;  %v704_v55 = vld [vmem:[%s17863_s27 + $0xd8] sm:$0xff]  ;;  %v705_v56 = vld [vmem:[%s17863_s27 + $0xe0] sm:$0xff] }
  0x57   : > { %15424 = vmatmul.mubr.msk.f32.gmra.mrb[4].mxu0 %vm710_vm3, %v18052_v40  ;;  %15279 = vmatprep.mubr.msk.f32.mxu1 %vm710_vm3, %v18054_v41  ;;  %v706_v57 = vld [vmem:[%s17863_s27 + $0xe8] sm:$0xff]  ;;  %v18105_v58 = vld [vmem:[#allocation2 + $0x99] sm:$0xff]  ;;  %738 = vst.msk [vmem:[#allocation2 + $0x159] sm:$0xff] %vm710_vm3, %v704_v55  ;;  %739 = vst.msk [vmem:[#allocation2 + $0x169] sm:$0xff] %vm710_vm3, %v705_v56 }
  0x58   : > { %15426 = vmatprep.mubr.msk.f32.mxu0 %vm710_vm3, %v18056_v42  ;;  %740 = vst.msk [vmem:[#allocation2 + $0x171] sm:$0xff] %vm710_vm3, %v706_v57  ;;  %v775_v59 = vld [vmem:[%s21651_s8] sm:$0xf]  ;;  %v707_v60 = vld [vmem:[%s17863_s27 + $0xf0] sm:$0xff]  ;;  %v18118_v61 = vld [vmem:[#allocation2 + $0x98] sm:$0xff] }
  0x59   : > { %741 = vst.msk [vmem:[#allocation2 + $0x181] sm:$0xff] %vm710_vm3, %v707_v60  ;;  %v708_v62 = vld [vmem:[%s17863_s27 + $0xf8] sm:$0xff]  ;;  %v18125_v63 = vld [vmem:[%s21651_s8 + $0x14] sm:$0xf]  ;;  %v18127_v0 = vld [vmem:[#allocation2 + $0xa9] sm:$0xff]  ;;  %15315 = vmatprep.subr.msk.mxu1 %vm905_vm2, %v775_v59  ;;  %s13112_s27 = sshll.u32 %s17890_s20, 4  ;;  %s21594_s27 = int_to_ptr.vmem [resolvable:$true] %s13112_s27 }
  0x5a   : > { %15280 = vmatmul.mubr.msk.f32.gmra.mrb[8].mxu1 %vm710_vm3, %v18066_v43  ;;  %v18129_v1 = vld [vmem:[#allocation2 + $0xa8] sm:$0xff]  ;;  %742 = vst.msk [vmem:[#allocation2 + $0x189] sm:$0xff] %vm710_vm3, %v708_v62  ;;  %15515 = vmatprep.subr.msk.mxu0 %vm905_vm2, %v18125_v63  ;;  %v18149_v3 = vld [vmem:[#allocation2 + $0xb1] sm:$0xff]  ;;  %v18155_v6 = vld [vmem:[#allocation2 + $0xc0] sm:$0xff] }
  0x5b   : > { %15427 = vmatmul.mubr.msk.f32.gmra.mrb[6].mxu0 %vm710_vm3, %v18068_v44  ;;  %15282 = vmatprep.mubr.msk.f32.mxu1 %vm710_vm3, %v18070_v45  ;;  %v18139_v2 = vld [vmem:[%s21651_s8 + $0x8] sm:$0xf]  ;;  %v18151_v4 = vld [vmem:[#allocation2 + $0xb0] sm:$0xff]  ;;  %v18171_v9 = vld [vmem:[#allocation2 + $0xd9] sm:$0xff] }
  0x5c   : > { %15429 = vmatprep.mubr.msk.f32.mxu0 %vm710_vm3, %v18072_v46  ;;  %15316 = vmatpush3.msk.msra.mxu1 %vm905_vm2, %v775_v59  ;;  %v18153_v5 = vld [vmem:[#allocation2 + $0xc1] sm:$0xff]  ;;  %v18167_v7 = vld [vmem:[#allocation2 + $0xc9] sm:$0xff]  ;;  %v18173_v10 = vld [vmem:[#allocation2 + $0xd8] sm:$0xff] }
  0x5d   : > { %15365 = vmatprep.subr.msk.mxu1 %vm905_vm2, %v18139_v2  ;;  %v18169_v8 = vld [vmem:[#allocation2 + $0xc8] sm:$0xff]  ;;  %v18185_v12 = vld [vmem:[#allocation2 + $0xe0] sm:$0xff]  ;;  %v18187_v13 = vld [vmem:[#allocation2 + $0xf1] sm:$0xff] }
  0x5e   : > { %15283 = vmatmul.mubr.msk.f32.gmra.mrb[10].mxu1 %vm710_vm3, %v18078_v47  ;;  %v18183_v11 = vld [vmem:[#allocation2 + $0xe1] sm:$0xff]  ;;  %v18189_v14 = vld [vmem:[#allocation2 + $0xf0] sm:$0xff]  ;;  %v18199_v15 = vld [vmem:[#allocation2 + $0xf9] sm:$0xff] }
  0x5f   : > { %15430 = vmatmul.mubr.msk.f32.gmra.mrb[8].mxu0 %vm710_vm3, %v18080_v48  ;;  %15285 = vmatprep.mubr.msk.f32.mxu1 %vm710_vm3, %v18086_v49  ;;  %v18201_v16 = vld [vmem:[#allocation2 + $0xf8] sm:$0xff]  ;;  %v18203_v17 = vld [vmem:[#allocation2 + $0x109] sm:$0xff]  ;;  %v18219_v21 = vld [vmem:[#allocation2 + $0x121] sm:$0xff] }
  0x60   : > { %15432 = vmatprep.mubr.msk.f32.mxu0 %vm710_vm3, %v18088_v50  ;;  %v18205_v18 = vld [vmem:[#allocation2 + $0x108] sm:$0xff]  ;;  %v18215_v19 = vld [vmem:[#allocation2 + $0x111] sm:$0xff]  ;;  %v18221_v22 = vld [vmem:[#allocation2 + $0x120] sm:$0xff] }
  0x61   : > { %v18217_v20 = vld [vmem:[#allocation2 + $0x110] sm:$0xff]  ;;  %v18233_v24 = vld [vmem:[#allocation2 + $0x128] sm:$0xff]  ;;  %v18235_v25 = vld [vmem:[#allocation2 + $0x139] sm:$0xff] }
  0x62   : > { %15286 = vmatmul.mubr.msk.f32.gmra.mrb[12].mxu1 %vm710_vm3, %v18105_v58  ;;  %v18231_v23 = vld [vmem:[#allocation2 + $0x129] sm:$0xff]  ;;  %v18237_v26 = vld [vmem:[#allocation2 + $0x138] sm:$0xff]  ;;  %v18247_v27 = vld [vmem:[#allocation2 + $0x141] sm:$0xff] }
  0x63   : > { %15433 = vmatmul.mubr.msk.f32.gmra.mrb[10].mxu0 %vm710_vm3, %v18118_v61  ;;  %15288 = vmatprep.mubr.msk.f32.mxu1 %vm710_vm3, %v18127_v0  ;;  %v18249_v30 = vld [vmem:[#allocation2 + $0x140] sm:$0xff]  ;;  %v18251_v51 = vld [vmem:[#allocation2 + $0x151] sm:$0xff]  ;;  %v18267_v55 = vld [vmem:[#allocation2 + $0x169] sm:$0xff] }
  0x64   : > { %15435 = vmatprep.mubr.msk.f32.mxu0 %vm710_vm3, %v18129_v1  ;;  %21884 = vst [vmem:[#allocation14_spill] sm:$0xff] %v18251_v51  ;;  %v18253_v52 = vld [vmem:[#allocation2 + $0x150] sm:$0xff]  ;;  %v18263_v53 = vld [vmem:[#allocation2 + $0x159] sm:$0xff]  ;;  %21887 = vst [vmem:[#allocation17_spill] sm:$0xff] %v18267_v55 }
  0x65   : > { %21885 = vst [vmem:[#allocation15_spill] sm:$0xff] %v18263_v53  ;;  %v18265_v54 = vld [vmem:[#allocation2 + $0x158] sm:$0xff]  ;;  %v18269_v56 = vld [vmem:[#allocation2 + $0x168] sm:$0xff]  ;;  %v18281_v59 = vld [vmem:[#allocation2 + $0x170] sm:$0xff] }
  0x66   : > { %15289 = vmatmul.mubr.msk.f32.gmra.mrb[14].mxu1 %vm710_vm3, %v18149_v3  ;;  %21886 = vst [vmem:[#allocation16_spill] sm:$0xff] %v18265_v54  ;;  %21888 = vst [vmem:[#allocation18_spill] sm:$0xff] %v18269_v56  ;;  %v18279_v57 = vld [vmem:[#allocation2 + $0x171] sm:$0xff]  ;;  %v743_v60 = vld [vmem:[#allocation2] sm:$0xff] }
  0x67   : > { %15436 = vmatmul.mubr.msk.f32.gmra.mrb[12].mxu0 %vm710_vm3, %v18151_v4  ;;  %15291 = vmatprep.mubr.msk.f32.mxu1 %vm710_vm3, %v18153_v5  ;;  %21889 = vst [vmem:[#allocation19_spill] sm:$0xff] %v18279_v57  ;;  %21890 = vst [vmem:[#allocation20_spill] sm:$0xff] %v18281_v59  ;;  %v18283_v62 = vld [vmem:[#allocation2 + $0x180] sm:$0xff] }
  0x68   : > { %15438 = vmatprep.mubr.msk.f32.mxu0 %vm710_vm3, %v18155_v6  ;;  %21891 = vst [vmem:[#allocation21_spill] sm:$0xff] %v18283_v62 }
  0x6a   : > { %15292 = vmatmul.mubr.msk.f32.gmra.mrb[16].mxu1 %vm710_vm3, %v18167_v7 }
  0x6b   : > { %15439 = vmatmul.mubr.msk.f32.gmra.mrb[14].mxu0 %vm710_vm3, %v18169_v8  ;;  %15294 = vmatprep.mubr.msk.f32.mxu1 %vm710_vm3, %v18171_v9 }
  0x6c   : > { %15441 = vmatprep.mubr.msk.f32.mxu0 %vm710_vm3, %v18173_v10 }
  0x6e   : > { %15295 = vmatmul.mubr.msk.f32.gmra.mrb[18].mxu1 %vm710_vm3, %v18183_v11 }
  0x6f   : > { %15442 = vmatmul.mubr.msk.f32.gmra.mrb[16].mxu0 %vm710_vm3, %v18185_v12  ;;  %15297 = vmatprep.mubr.msk.f32.mxu1 %vm710_vm3, %v18187_v13 }
  0x70   : > { %15444 = vmatprep.mubr.msk.f32.mxu0 %vm710_vm3, %v18189_v14 }
  0x72   : > { %15298 = vmatmul.mubr.msk.f32.gmra.mrb[20].mxu1 %vm710_vm3, %v18199_v15 }
  0x73   : > { %15445 = vmatmul.mubr.msk.f32.gmra.mrb[18].mxu0 %vm710_vm3, %v18201_v16  ;;  %15300 = vmatprep.mubr.msk.f32.mxu1 %vm710_vm3, %v18203_v17 }
  0x74   : > { %15447 = vmatprep.mubr.msk.f32.mxu0 %vm710_vm3, %v18205_v18 }
  0x76   : > { %15301 = vmatmul.mubr.msk.f32.gmra.mrb[22].mxu1 %vm710_vm3, %v18215_v19 }
  0x77   : > { %15448 = vmatmul.mubr.msk.f32.gmra.mrb[20].mxu0 %vm710_vm3, %v18217_v20  ;;  %15303 = vmatprep.mubr.msk.f32.mxu1 %vm710_vm3, %v18219_v21 }
  0x78   : > { %15450 = vmatprep.mubr.msk.f32.mxu0 %vm710_vm3, %v18221_v22 }
  0x7a   : > { %15304 = vmatmul.mubr.msk.f32.gmra.mrb[24].mxu1 %vm710_vm3, %v18231_v23 }
  0x7b   : > { %15451 = vmatmul.mubr.msk.f32.gmra.mrb[22].mxu0 %vm710_vm3, %v18233_v24  ;;  %15306 = vmatprep.mubr.msk.f32.mxu1 %vm710_vm3, %v18235_v25 }
  0x7c   : > { %15453 = vmatprep.mubr.msk.f32.mxu0 %vm710_vm3, %v18237_v26 }
  0x7e   : > { %15307 = vmatmul.mubr.msk.f32.gmra.mrb[26].mxu1 %vm710_vm3, %v18247_v27 }
  0x7f   : > { %15454 = vmatmul.mubr.msk.f32.gmra.mrb[24].mxu0 %vm710_vm3, %v18249_v30  ;;  %15309 = vmatprep.mubr.msk.f32.mxu1 %vm710_vm3, %v18251_v51  ;;  %v4296_v51 = vlaneseq }
  0x80   : > { %15456 = vmatprep.mubr.msk.f32.mxu0 %vm710_vm3, %v18253_v52 }
  0x82   : > { %15310 = vmatmul.mubr.msk.f32.gmra.mrb[28].mxu1 %vm710_vm3, %v18263_v53  ;;  %v17717_v53 = vmov 1983009808  }
  0x83   : > { %15457 = vmatmul.mubr.msk.f32.gmra.mrb[26].mxu0 %vm710_vm3, %v18265_v54  ;;  %15312 = vmatprep.mubr.msk.f32.mxu1 %vm710_vm3, %v18267_v55  ;;  %v744_v55 = vld [vmem:[#allocation2 + $0x8] sm:$0xff]  ;;  %v4294_v54 = vunpack.c.l.s4 %v17717_v53  ;;  %v18308_v53 = vld [vmem:[%s21651_s8 + $0x18] sm:$0xf] }
  0x84   : > { %15459 = vmatprep.mubr.msk.f32.mxu0 %vm710_vm3, %v18269_v56  ;;  %v18292_v56 = vld [vmem:[#allocation2 + $0x188] sm:$0xff] }
  0x85   : > { %21892 = vst [vmem:[#allocation22_spill] sm:$0xff] %v18292_v56 }
  0x86   : > { %15313 = vmatmul.mubr.msk.f32.gmra.mrb[30].mxu1 %vm710_vm3, %v18279_v57  ;;  %v4297_v57 = vshrl.u32 %v4296_v51, 7  ;;  %v18532_v51 = vld [vmem:[#allocation2 + $0xc2] sm:$0xff] }
  0x87   : > { %15460 = vmatmul.mubr.msk.f32.gmra.mrb[28].mxu0 %vm710_vm3, %v18281_v59  ;;  %15317 = vmatprep.mubr.msk.f32.mxu1 %vm710_vm3, %v743_v60  ;;  %v4295_v60 = vunpack.c.0.s8 %v4294_v54  ;;  %v4289_v59 = vld [vmem:[%s17868_s24 + $0x2] sm:$0x3]  ;;  %v18542_v54 = vld [vmem:[#allocation2 + $0xca] sm:$0xff] }
  0x88   : > { %15462 = vmatprep.mubr.msk.f32.mxu0 %vm710_vm3, %v18283_v62  ;;  %v4288_v62 = vld [vmem:[%s17868_s24] sm:$0x3]  ;;  %s22248_s24 = sld [smem:[#allocation126_spill]] }
  0x8a   : > { %15318 = vmatmul.mubr.msk.f32.vlgmr.msra.gmra.mrb[0].mxu1 %vm710_vm3, %v744_v55  ;;  %v4292_v55 = vcombine.low %v4288_v62, %v4289_v59  ;;  %v18556_v59 = vld [vmem:[#allocation2 + $0xf2] sm:$0xff]  ;;  %v18566_v62 = vld [vmem:[#allocation2 + $0xfa] sm:$0xff] }
  0x8b   : > { %15463 = vmatmul.mubr.msk.f32.gmra.mrb[30].mxu0 %vm710_vm3, %v18292_v56  ;;  %15320 = vmatprep.mubr.msk.f32.mxu1 %vm710_vm3, %v18006_v29  ;;  %v4298_v56 = vsub.s32 %v4295_v60, %v4297_v57  ;;  %v21893_v29 = vld [vmem:[#allocation14_spill] sm:$0xff]  ;;  %v18554_v57 = vld [vmem:[#allocation2 + $0xe2] sm:$0xff] }
  0x8c   : > { %15467 = vmatprep.mubr.msk.f32.mxu0 %vm710_vm3, %v18004_v28  ;;  %15366 = vmatpush3.msk.msra.mxu1 %vm905_vm2, %v18139_v2  ;;  %v17648_v2 = vld [vmem:[%s17878_s14 + $0x8] sm:$0xff]  }
  0x8d   : > { %v18318_v28 = vrot.slane %v4292_v55, %v4298_v56  ;;  %v18544_v56 = vld [vmem:[#allocation2 + $0xda] sm:$0xff]  ;;  %v18568_v60 = vld [vmem:[#allocation2 + $0x10a] sm:$0xff]  ;;  %v18580_v55 = vld [vmem:[#allocation2 + $0x122] sm:$0xff] }
  0x8e   : > { %15321 = vmatmul.mubr.msk.f32.gmra.mrb[2].mxu1 %vm710_vm3, %v18018_v32  ;;  %v21895_v32 = vld [vmem:[#allocation15_spill] sm:$0xff]  ;;  %s21592_s16 = scalar_lea.hbm %s22248_s24, %s14273_s29 }
  0x8f   : > { %15468 = vmatmul.mubr.msk.f32.vlgmr.msra.gmra.mrb[0].mxu0 %vm710_vm3, %v18016_v31  ;;  %15323 = vmatprep.mubr.msk.f32.mxu1 %vm710_vm3, %v18027_v34  ;;  %v21894_v31 = vld [vmem:[#allocation16_spill] sm:$0xff] }
  0x90   : > { %15516 = vmatpush3.msk.msra.mxu0 %vm905_vm2, %v18125_v63  ;;  %15470 = vmatprep.mubr.msk.f32.mxu0 %vm710_vm3, %v18020_v33  ;;  %v21896_v33 = vld [vmem:[#allocation18_spill] sm:$0xff]  ;;  %v17647_v63 = vld [vmem:[%s17878_s14] sm:$0xff]   ;;  %s22249_s14 = smov %s22248_s24 }
  0x91   : > { %15565 = vmatprep.subr.msk.mxu0 %vm905_vm2, %v18308_v53  ;;  %15715 = vmatprep.subr.msk.mxu1 %vm905_vm2, %v18318_v28 }
  0x92   : > { %15324 = vmatmul.mubr.msk.f32.gmra.mrb[4].mxu1 %vm710_vm3, %v18034_v36 }
  0x93   : > { %15471 = vmatmul.mubr.msk.f32.gmra.mrb[2].mxu0 %vm710_vm3, %v18032_v35  ;;  %15326 = vmatprep.mubr.msk.f32.mxu1 %vm710_vm3, %v18040_v38  ;;  %v21897_v35 = vld [vmem:[#allocation17_spill] sm:$0xff] }
  0x94   : > { %15473 = vmatprep.mubr.msk.f32.mxu0 %vm710_vm3, %v18038_v37  ;;  %v1458_v37 = vld [vmem:[#allocation2 + $0x2] sm:$0xff] }
  0x96   : > { %15327 = vmatmul.mubr.msk.f32.gmra.mrb[6].mxu1 %vm710_vm3, %v18052_v40 }
  0x97   : > { %15474 = vmatmul.mubr.msk.f32.gmra.mrb[4].mxu0 %vm710_vm3, %v18050_v39  ;;  %15329 = vmatprep.mubr.msk.f32.mxu1 %vm710_vm3, %v18056_v42  ;;  %v18430_v39 = vld [vmem:[#allocation2 + $0x181] sm:$0xff] }
  0x98   : > { %15476 = vmatprep.mubr.msk.f32.mxu0 %vm710_vm3, %v18054_v41  ;;  %v21898_v41 = vld [vmem:[#allocation20_spill] sm:$0xff] }
  0x9a   : > { %15330 = vmatmul.mubr.msk.f32.gmra.mrb[8].mxu1 %vm710_vm3, %v18068_v44 }
  0x9b   : > { %15477 = vmatmul.mubr.msk.f32.gmra.mrb[6].mxu0 %vm710_vm3, %v18066_v43  ;;  %15332 = vmatprep.mubr.msk.f32.mxu1 %vm710_vm3, %v18072_v46  ;;  %v21899_v43 = vld [vmem:[#allocation19_spill] sm:$0xff] }
  0x9c   : > { %15479 = vmatprep.mubr.msk.f32.mxu0 %vm710_vm3, %v18070_v45  ;;  %v1459_v45 = vld [vmem:[#allocation2 + $0xa] sm:$0xff] }
  0x9e   : > { %15333 = vmatmul.mubr.msk.f32.gmra.mrb[10].mxu1 %vm710_vm3, %v18080_v48 }
  0x9f   : > { %15480 = vmatmul.mubr.msk.f32.gmra.mrb[8].mxu0 %vm710_vm3, %v18078_v47  ;;  %15335 = vmatprep.mubr.msk.f32.mxu1 %vm710_vm3, %v18088_v50  ;;  %v18439_v47 = vld [vmem:[#allocation2 + $0x189] sm:$0xff] }
  0xa0   : > { %15482 = vmatprep.mubr.msk.f32.mxu0 %vm710_vm3, %v18086_v49  ;;  %v1460_v49 = vld [vmem:[#allocation2 + $0x1a] sm:$0xff] }
  0xa2   : > { %15336 = vmatmul.mubr.msk.f32.gmra.mrb[12].mxu1 %vm710_vm3, %v18118_v61 }
  0xa3   : > { %15483 = vmatmul.mubr.msk.f32.gmra.mrb[10].mxu0 %vm710_vm3, %v18105_v58  ;;  %15338 = vmatprep.mubr.msk.f32.mxu1 %vm710_vm3, %v18129_v1  ;;  %v1461_v58 = vld [vmem:[#allocation2 + $0x22] sm:$0xff] }
  0xa4   : > { %15485 = vmatprep.mubr.msk.f32.mxu0 %vm710_vm3, %v18127_v0  ;;  %v18447_v0 = vld [vmem:[#allocation2 + $0x32] sm:$0xff] }
  0xa6   : > { %15339 = vmatmul.mubr.msk.f32.gmra.mrb[14].mxu1 %vm710_vm3, %v18151_v4 }
  0xa7   : > { %15486 = vmatmul.mubr.msk.f32.gmra.mrb[12].mxu0 %vm710_vm3, %v18149_v3  ;;  %15341 = vmatprep.mubr.msk.f32.mxu1 %vm710_vm3, %v18155_v6  ;;  %v18455_v3 = vld [vmem:[%s21651_s8 + $0x1c] sm:$0xf] }
  0xa8   : > { %15488 = vmatprep.mubr.msk.f32.mxu0 %vm710_vm3, %v18153_v5  ;;  %v18459_v5 = vpack.c.bf16 %v17648_v2, %v17647_v63  ;;  %v18639_v63 = vld [vmem:[#allocation2 + $0x18a] sm:$0xff] }
  0xa9   : > { %21902 = vst [vmem:[#allocation15_spill] sm:$0xff] %v18639_v63  ;;  %v4257_v2 = vld [vmem:[%s21649_s6 + $0x8] sm:$0xff] }
  0xaa   : > { %15342 = vmatmul.mubr.msk.f32.gmra.mrb[16].mxu1 %vm710_vm3, %v18169_v8 }
  0xab   : > { %15489 = vmatmul.mubr.msk.f32.gmra.mrb[14].mxu0 %vm710_vm3, %v18167_v7  ;;  %15344 = vmatprep.mubr.msk.f32.mxu1 %vm710_vm3, %v18173_v10  ;;  %v18465_v7 = vld [vmem:[#allocation2 + $0x3a] sm:$0xff] }
  0xac   : > { %15491 = vmatprep.mubr.msk.f32.mxu0 %vm710_vm3, %v18171_v9  ;;  %v18469_v9 = vld [vmem:[#allocation2 + $0x4a] sm:$0xff] }
  0xae   : > { %15345 = vmatmul.mubr.msk.f32.gmra.mrb[18].mxu1 %vm710_vm3, %v18185_v12 }
  0xaf   : > { %15492 = vmatmul.mubr.msk.f32.gmra.mrb[16].mxu0 %vm710_vm3, %v18183_v11  ;;  %15347 = vmatprep.mubr.msk.f32.mxu1 %vm710_vm3, %v18189_v14  ;;  %v18482_v11 = vld [vmem:[#allocation2 + $0x52] sm:$0xff] }
  0xb0   : > { %15494 = vmatprep.mubr.msk.f32.mxu0 %vm710_vm3, %v18187_v13  ;;  %v18484_v13 = vld [vmem:[#allocation2 + $0x62] sm:$0xff] }
  0xb2   : > { %15348 = vmatmul.mubr.msk.f32.gmra.mrb[20].mxu1 %vm710_vm3, %v18201_v16 }
  0xb3   : > { %15495 = vmatmul.mubr.msk.f32.gmra.mrb[18].mxu0 %vm710_vm3, %v18199_v15  ;;  %15350 = vmatprep.mubr.msk.f32.mxu1 %vm710_vm3, %v18205_v18  ;;  %v18494_v15 = vld [vmem:[#allocation2 + $0x6a] sm:$0xff] }
  0xb4   : > { %15497 = vmatprep.mubr.msk.f32.mxu0 %vm710_vm3, %v18203_v17  ;;  %v18496_v17 = vld [vmem:[#allocation2 + $0x7a] sm:$0xff] }
  0xb6   : > { %15351 = vmatmul.mubr.msk.f32.gmra.mrb[22].mxu1 %vm710_vm3, %v18217_v20 }
  0xb7   : > { %15498 = vmatmul.mubr.msk.f32.gmra.mrb[20].mxu0 %vm710_vm3, %v18215_v19  ;;  %15353 = vmatprep.mubr.msk.f32.mxu1 %vm710_vm3, %v18221_v22  ;;  %v18506_v19 = vld [vmem:[#allocation2 + $0x82] sm:$0xff] }
  0xb8   : > { %15500 = vmatprep.mubr.msk.f32.mxu0 %vm710_vm3, %v18219_v21  ;;  %v18508_v21 = vld [vmem:[#allocation2 + $0x92] sm:$0xff] }
  0xba   : > { %15354 = vmatmul.mubr.msk.f32.gmra.mrb[24].mxu1 %vm710_vm3, %v18233_v24 }
  0xbb   : > { %15501 = vmatmul.mubr.msk.f32.gmra.mrb[22].mxu0 %vm710_vm3, %v18231_v23  ;;  %15356 = vmatprep.mubr.msk.f32.mxu1 %vm710_vm3, %v18237_v26  ;;  %v18518_v23 = vld [vmem:[#allocation2 + $0x9a] sm:$0xff] }
  0xbc   : > { %15503 = vmatprep.mubr.msk.f32.mxu0 %vm710_vm3, %v18235_v25  ;;  %v18520_v25 = vld [vmem:[#allocation2 + $0xaa] sm:$0xff] }
  0xbe   : > { %15357 = vmatmul.mubr.msk.f32.gmra.mrb[26].mxu1 %vm710_vm3, %v18249_v30 }
  0xbf   : > { %15504 = vmatmul.mubr.msk.f32.gmra.mrb[24].mxu0 %vm710_vm3, %v18247_v27  ;;  %15359 = vmatprep.mubr.msk.f32.mxu1 %vm710_vm3, %v18253_v52  ;;  %v18530_v27 = vld [vmem:[#allocation2 + $0xb2] sm:$0xff] }
  0xc0   : > { %15506 = vmatprep.mubr.msk.f32.mxu0 %vm710_vm3, %v21893_v29  ;;  %v18592_v29 = vld [vmem:[#allocation2 + $0x13a] sm:$0xff] }
  0xc2   : > { %15360 = vmatmul.mubr.msk.f32.gmra.mrb[28].mxu1 %vm710_vm3, %v21894_v31 }
  0xc3   : > { %15507 = vmatmul.mubr.msk.f32.gmra.mrb[26].mxu0 %vm710_vm3, %v21895_v32  ;;  %15362 = vmatprep.mubr.msk.f32.mxu1 %vm710_vm3, %v21896_v33  ;;  %v18602_v32 = vld [vmem:[#allocation2 + $0x142] sm:$0xff] }
  0xc4   : > { %15509 = vmatprep.mubr.msk.f32.mxu0 %vm710_vm3, %v21897_v35  ;;  %v18604_v35 = vld [vmem:[#allocation2 + $0x152] sm:$0xff] }
  0xc6   : > { %15363 = vmatmul.mubr.msk.f32.gmra.mrb[30].mxu1 %vm710_vm3, %v21898_v41 }
  0xc7   : > { %15510 = vmatmul.mubr.msk.f32.gmra.mrb[28].mxu0 %vm710_vm3, %v21899_v43  ;;  %15367 = vmatprep.mubr.msk.f32.mxu1 %vm710_vm3, %v1458_v37  ;;  %v18614_v37 = vld [vmem:[#allocation2 + $0x15a] sm:$0xff]  ;;  %v18616_v43 = vld [vmem:[#allocation2 + $0x16a] sm:$0xff] }
  0xc8   : > { %15512 = vmatprep.mubr.msk.f32.mxu0 %vm710_vm3, %v18430_v39  ;;  %21900 = vst [vmem:[#allocation14_spill] sm:$0xff] %v18616_v43 }
  0xca   : > { %15368 = vmatmul.mubr.msk.f32.vlgmr.msra.gmra.mrb[0].mxu1 %vm710_vm3, %v1459_v45  ;;  %v18626_v45 = vld [vmem:[#allocation2 + $0x172] sm:$0xff] }
  0xcb   : > { %15513 = vmatmul.mubr.msk.f32.gmra.mrb[30].mxu0 %vm710_vm3, %v18439_v47  ;;  %15370 = vmatprep.mubr.msk.f32.mxu1 %vm710_vm3, %v1460_v49 }
  0xcc   : > { %15517 = vmatprep.mubr.msk.f32.mxu0 %vm710_vm3, %v1460_v49  ;;  %15716 = vmatpush3.msk.msra.mxu1 %vm905_vm2, %v18318_v28  ;;  %v18590_v28 = vld [vmem:[#allocation2 + $0x12a] sm:$0xff]  ;;  %v18628_v49 = vld [vmem:[#allocation2 + $0x182] sm:$0xff] }
  0xcd   : > { %16768 = vmatprep.subr.bf16.mxu1 %v18459_v5  ;;  %21901 = vst [vmem:[#allocation16_spill] sm:$0xff] %v18628_v49 }
  0xce   : > { %15371 = vmatmul.mubr.msk.f32.gmra.mrb[2].mxu1 %vm710_vm3, %v1461_v58 }
  0xcf   : > { %15518 = vmatmul.mubr.msk.f32.vlgmr.msra.gmra.mrb[0].mxu0 %vm710_vm3, %v1461_v58  ;;  %15373 = vmatprep.mubr.msk.f32.mxu1 %vm710_vm3, %v18447_v0  ;;  %v4256_v58 = vld [vmem:[%s21649_s6] sm:$0xff] }
  0xd0   : > { %15566 = vmatpush3.msk.msra.mxu0 %vm905_vm2, %v18308_v53  ;;  %15520 = vmatprep.mubr.msk.f32.mxu0 %vm710_vm3, %v18447_v0  ;;  %v18578_v53 = vld [vmem:[#allocation2 + $0x112] sm:$0xff] }
  0xd1   : > { %15615 = vmatprep.subr.msk.mxu0 %vm905_vm2, %v18455_v3 }
  0xd2   : > { %15374 = vmatmul.mubr.msk.f32.gmra.mrb[4].mxu1 %vm710_vm3, %v18465_v7 }
  0xd3   : > { %15521 = vmatmul.mubr.msk.f32.gmra.mrb[2].mxu0 %vm710_vm3, %v18465_v7  ;;  %15376 = vmatprep.mubr.msk.f32.mxu1 %vm710_vm3, %v18469_v9 }
  0xd4   : > { %15523 = vmatprep.mubr.msk.f32.mxu0 %vm710_vm3, %v18469_v9 }
  0xd6   : > { %15377 = vmatmul.mubr.msk.f32.gmra.mrb[6].mxu1 %vm710_vm3, %v18482_v11 }
  0xd7   : > { %15524 = vmatmul.mubr.msk.f32.gmra.mrb[4].mxu0 %vm710_vm3, %v18482_v11  ;;  %15379 = vmatprep.mubr.msk.f32.mxu1 %vm710_vm3, %v18484_v13 }
  0xd8   : > { %15526 = vmatprep.mubr.msk.f32.mxu0 %vm710_vm3, %v18484_v13 }
  0xda   : > { %15380 = vmatmul.mubr.msk.f32.gmra.mrb[8].mxu1 %vm710_vm3, %v18494_v15 }
  0xdb   : > { %15527 = vmatmul.mubr.msk.f32.gmra.mrb[6].mxu0 %vm710_vm3, %v18494_v15  ;;  %15382 = vmatprep.mubr.msk.f32.mxu1 %vm710_vm3, %v18496_v17 }
  0xdc   : > { %15529 = vmatprep.mubr.msk.f32.mxu0 %vm710_vm3, %v18496_v17 }
  0xde   : > { %15383 = vmatmul.mubr.msk.f32.gmra.mrb[10].mxu1 %vm710_vm3, %v18506_v19 }
  0xdf   : > { %15530 = vmatmul.mubr.msk.f32.gmra.mrb[8].mxu0 %vm710_vm3, %v18506_v19  ;;  %15385 = vmatprep.mubr.msk.f32.mxu1 %vm710_vm3, %v18508_v21 }
  0xe0   : > { %15532 = vmatprep.mubr.msk.f32.mxu0 %vm710_vm3, %v18508_v21 }
  0xe2   : > { %15386 = vmatmul.mubr.msk.f32.gmra.mrb[12].mxu1 %vm710_vm3, %v18518_v23 }
  0xe3   : > { %15533 = vmatmul.mubr.msk.f32.gmra.mrb[10].mxu0 %vm710_vm3, %v18518_v23  ;;  %15388 = vmatprep.mubr.msk.f32.mxu1 %vm710_vm3, %v18520_v25 }
  0xe4   : > { %15535 = vmatprep.mubr.msk.f32.mxu0 %vm710_vm3, %v18520_v25 }
  0xe6   : > { %15389 = vmatmul.mubr.msk.f32.gmra.mrb[14].mxu1 %vm710_vm3, %v18530_v27 }
  0xe7   : > { %15536 = vmatmul.mubr.msk.f32.gmra.mrb[12].mxu0 %vm710_vm3, %v18530_v27  ;;  %15391 = vmatprep.mubr.msk.f32.mxu1 %vm710_vm3, %v18532_v51 }
  0xe8   : > { %15538 = vmatprep.mubr.msk.f32.mxu0 %vm710_vm3, %v18532_v51 }
  0xea   : > { %15392 = vmatmul.mubr.msk.f32.gmra.mrb[16].mxu1 %vm710_vm3, %v18542_v54 }
  0xeb   : > { %15539 = vmatmul.mubr.msk.f32.gmra.mrb[14].mxu0 %vm710_vm3, %v18542_v54  ;;  %15394 = vmatprep.mubr.msk.f32.mxu1 %vm710_vm3, %v18544_v56 }
  0xec   : > { %15541 = vmatprep.mubr.msk.f32.mxu0 %vm710_vm3, %v18544_v56 }
  0xee   : > { %15395 = vmatmul.mubr.msk.f32.gmra.mrb[18].mxu1 %vm710_vm3, %v18554_v57 }
  0xef   : > { %15542 = vmatmul.mubr.msk.f32.gmra.mrb[16].mxu0 %vm710_vm3, %v18554_v57  ;;  %15397 = vmatprep.mubr.msk.f32.mxu1 %vm710_vm3, %v18556_v59 }
  0xf0   : > { %15544 = vmatprep.mubr.msk.f32.mxu0 %vm710_vm3, %v18556_v59 }
  0xf2   : > { %15398 = vmatmul.mubr.msk.f32.gmra.mrb[20].mxu1 %vm710_vm3, %v18566_v62 }
  0xf3   : > { %15545 = vmatmul.mubr.msk.f32.gmra.mrb[18].mxu0 %vm710_vm3, %v18566_v62  ;;  %15400 = vmatprep.mubr.msk.f32.mxu1 %vm710_vm3, %v18568_v60 }
  0xf4   : > { %15547 = vmatprep.mubr.msk.f32.mxu0 %vm710_vm3, %v18568_v60 }
  0xf6   : > { %15401 = vmatmul.mubr.msk.f32.gmra.mrb[22].mxu1 %vm710_vm3, %v18578_v53 }
  0xf7   : > { %15548 = vmatmul.mubr.msk.f32.gmra.mrb[20].mxu0 %vm710_vm3, %v18578_v53  ;;  %15403 = vmatprep.mubr.msk.f32.mxu1 %vm710_vm3, %v18580_v55 }
  0xf8   : > { %15550 = vmatprep.mubr.msk.f32.mxu0 %vm710_vm3, %v18580_v55 }
  0xfa   : > { %15404 = vmatmul.mubr.msk.f32.gmra.mrb[24].mxu1 %vm710_vm3, %v18590_v28 }
  0xfb   : > { %15551 = vmatmul.mubr.msk.f32.gmra.mrb[22].mxu0 %vm710_vm3, %v18590_v28  ;;  %15406 = vmatprep.mubr.msk.f32.mxu1 %vm710_vm3, %v18592_v29 }
  0xfc   : > { %15553 = vmatprep.mubr.msk.f32.mxu0 %vm710_vm3, %v18592_v29 }
  0xfe   : > { %15407 = vmatmul.mubr.msk.f32.gmra.mrb[26].mxu1 %vm710_vm3, %v18602_v32 }
  0xff   : > { %15554 = vmatmul.mubr.msk.f32.gmra.mrb[24].mxu0 %vm710_vm3, %v18602_v32  ;;  %15409 = vmatprep.mubr.msk.f32.mxu1 %vm710_vm3, %v18604_v35 }
 0x100   : > { %15556 = vmatprep.mubr.msk.f32.mxu0 %vm710_vm3, %v18604_v35 }
 0x102   : > { %15410 = vmatmul.mubr.msk.f32.gmra.mrb[28].mxu1 %vm710_vm3, %v18614_v37 }
 0x103   : > { %15557 = vmatmul.mubr.msk.f32.gmra.mrb[26].mxu0 %vm710_vm3, %v18614_v37  ;;  %15412 = vmatprep.mubr.msk.f32.mxu1 %vm710_vm3, %v18616_v43 }
 0x104   : > { %15559 = vmatprep.mubr.msk.f32.mxu0 %vm710_vm3, %v18616_v43  ;;  %v4258_v43 = vld [vmem:[%s21649_s6 + $0x10] sm:$0xff] }
 0x106   : > { %15413 = vmatmul.mubr.msk.f32.gmra.mrb[30].mxu1 %vm710_vm3, %v18626_v45 }
 0x107   : > { %15560 = vmatmul.mubr.msk.f32.gmra.mrb[28].mxu0 %vm710_vm3, %v18626_v45  ;;  %15717 = vmatprep.mubr.msk.f32.mxu1 %vm710_vm3, %v4256_v58  ;;  %v4259_v58 = vld [vmem:[%s21649_s6 + $0x18] sm:$0xff] }
 0x108   : > { %15562 = vmatprep.mubr.msk.f32.mxu0 %vm710_vm3, %v18628_v49  ;;  %v4260_v49 = vld [vmem:[%s21649_s6 + $0x20] sm:$0xff] }
 0x10a   : > { %15718 = vmatmul.mubr.msk.f32.vlgmr.msra.gmra.mrb[32].mxu1 %vm710_vm3, %v4257_v2  ;;  %v4624_v2 = vld [vmem:[%s21650_s7 + $0x8] sm:$0xff] }
 0x10b   : > { %15563 = vmatmul.mubr.msk.f32.gmra.mrb[30].mxu0 %vm710_vm3, %v18639_v63  ;;  %15720 = vmatprep.mubr.msk.f32.mxu1 %vm710_vm3, %v4258_v43  ;;  %v18664_v63 = vld [vmem:[%s21651_s8 + $0x20] sm:$0xf] }
 0x10c   : > { %15567 = vmatprep.mubr.msk.f32.mxu0 %vm710_vm3, %v18027_v34  ;;  %16770 = vmatpush3.bf16.msra.mxu1 %v18459_v5  ;;  %v4261_v34 = vld [vmem:[%s21649_s6 + $0x28] sm:$0xff]  ;;  %v4262_v5 = vld [vmem:[%s21649_s6 + $0x30] sm:$0xff]  ;;  %v4623_v43 = vld [vmem:[%s21650_s7] sm:$0xff] }
 0x10e   : > { %15721 = vmatmul.mubr.msk.f32.gmra.mrb[34].mxu1 %vm710_vm3, %v4259_v58  ;;  %v3404_v58 = vld [vmem:[#allocation2 + $0x31] sm:$0xff] }
 0x10f   : > { %15568 = vmatmul.mubr.msk.f32.vlgmr.msra.gmra.mrb[0].mxu0 %vm710_vm3, %v18034_v36  ;;  %15723 = vmatprep.mubr.msk.f32.mxu1 %vm710_vm3, %v4260_v49  ;;  %v4263_v36 = vld [vmem:[%s21649_s6 + $0x38] sm:$0xff]  ;;  %v21904_v49 = vld [vmem:[#allocation22_spill] sm:$0xff] }
 0x110   : > { %15616 = vmatpush3.msk.msra.mxu0 %vm905_vm2, %v18455_v3  ;;  %15570 = vmatprep.mubr.msk.f32.mxu0 %vm710_vm3, %v18040_v38  ;;  %v4264_v38 = vld [vmem:[%s21649_s6 + $0x40] sm:$0xff]  ;;  %v3045_v3 = vld [vmem:[#allocation2 + $0x198] sm:$0xff] }
 0x111   : > { %15665 = vmatprep.subr.msk.mxu0 %vm905_vm2, %v18664_v63 }
 0x112   : > { %15724 = vmatmul.mubr.msk.f32.gmra.mrb[36].mxu1 %vm710_vm3, %v4261_v34  ;;  %v4625_v34 = vld [vmem:[%s21650_s7 + $0x10] sm:$0xff] }
 0x113   : > { %15571 = vmatmul.mubr.msk.f32.gmra.mrb[2].mxu0 %vm710_vm3, %v18052_v40  ;;  %15726 = vmatprep.mubr.msk.f32.mxu1 %vm710_vm3, %v4262_v5  ;;  %v4265_v40 = vld [vmem:[%s21649_s6 + $0x48] sm:$0xff]  ;;  %v3405_v5 = vld [vmem:[#allocation2 + $0x39] sm:$0xff] }
 0x114   : > { %15573 = vmatprep.mubr.msk.f32.mxu0 %vm710_vm3, %v18056_v42  ;;  %v4266_v42 = vld [vmem:[%s21649_s6 + $0x50] sm:$0xff] }
 0x116   : > { %15727 = vmatmul.mubr.msk.f32.gmra.mrb[38].mxu1 %vm710_vm3, %v4263_v36  ;;  %v4626_v36 = vld [vmem:[%s21650_s7 + $0x18] sm:$0xff] }
 0x117   : > { %15574 = vmatmul.mubr.msk.f32.gmra.mrb[4].mxu0 %vm710_vm3, %v18068_v44  ;;  %15729 = vmatprep.mubr.msk.f32.mxu1 %vm710_vm3, %v4264_v38  ;;  %v4267_v44 = vld [vmem:[%s21649_s6 + $0x58] sm:$0xff]  ;;  %v3406_v38 = vld [vmem:[#allocation2 + $0x49] sm:$0xff] }
 0x118   : > { %15576 = vmatprep.mubr.msk.f32.mxu0 %vm710_vm3, %v18072_v46  ;;  %v4268_v46 = vld [vmem:[%s21649_s6 + $0x60] sm:$0xff] }
 0x11a   : > { %15730 = vmatmul.mubr.msk.f32.gmra.mrb[40].mxu1 %vm710_vm3, %v4265_v40  ;;  %v4627_v40 = vld [vmem:[%s21650_s7 + $0x20] sm:$0xff] }
 0x11b   : > { %15577 = vmatmul.mubr.msk.f32.gmra.mrb[6].mxu0 %vm710_vm3, %v18080_v48  ;;  %15732 = vmatprep.mubr.msk.f32.mxu1 %vm710_vm3, %v4266_v42  ;;  %v4269_v48 = vld [vmem:[%s21649_s6 + $0x68] sm:$0xff]  ;;  %v3407_v42 = vld [vmem:[#allocation2 + $0x51] sm:$0xff] }
 0x11c   : > { %15579 = vmatprep.mubr.msk.f32.mxu0 %vm710_vm3, %v18088_v50  ;;  %v4270_v50 = vld [vmem:[%s21649_s6 + $0x70] sm:$0xff] }
 0x11e   : > { %15733 = vmatmul.mubr.msk.f32.gmra.mrb[42].mxu1 %vm710_vm3, %v4267_v44  ;;  %v4628_v44 = vld [vmem:[%s21650_s7 + $0x28] sm:$0xff] }
 0x11f   : > { %15580 = vmatmul.mubr.msk.f32.gmra.mrb[8].mxu0 %vm710_vm3, %v18118_v61  ;;  %15735 = vmatprep.mubr.msk.f32.mxu1 %vm710_vm3, %v4268_v46  ;;  %v4271_v61 = vld [vmem:[%s21649_s6 + $0x78] sm:$0xff]  ;;  %v3408_v46 = vld [vmem:[#allocation2 + $0x61] sm:$0xff] }
 0x120   : > { %15582 = vmatprep.mubr.msk.f32.mxu0 %vm710_vm3, %v18129_v1  ;;  %v4272_v1 = vld [vmem:[%s21649_s6 + $0x80] sm:$0xff] }
 0x122   : > { %15736 = vmatmul.mubr.msk.f32.gmra.mrb[44].mxu1 %vm710_vm3, %v4269_v48  ;;  %v4629_v48 = vld [vmem:[%s21650_s7 + $0x30] sm:$0xff] }
 0x123   : > { %15583 = vmatmul.mubr.msk.f32.gmra.mrb[10].mxu0 %vm710_vm3, %v18151_v4  ;;  %15738 = vmatprep.mubr.msk.f32.mxu1 %vm710_vm3, %v4270_v50  ;;  %v4273_v4 = vld [vmem:[%s21649_s6 + $0x88] sm:$0xff]  ;;  %v4630_v50 = vld [vmem:[%s21650_s7 + $0x38] sm:$0xff] }
 0x124   : > { %15585 = vmatprep.mubr.msk.f32.mxu0 %vm710_vm3, %v18155_v6  ;;  %v4274_v6 = vld [vmem:[%s21649_s6 + $0x90] sm:$0xff] }
 0x126   : > { %15739 = vmatmul.mubr.msk.f32.gmra.mrb[46].mxu1 %vm710_vm3, %v4271_v61  ;;  %v3410_v61 = vld [vmem:[#allocation2 + $0x79] sm:$0xff] }
 0x127   : > { %15586 = vmatmul.mubr.msk.f32.gmra.mrb[12].mxu0 %vm710_vm3, %v18169_v8  ;;  %15741 = vmatprep.mubr.msk.f32.mxu1 %vm710_vm3, %v4272_v1  ;;  %v4275_v8 = vld [vmem:[%s21649_s6 + $0x98] sm:$0xff]  ;;  %v4631_v1 = vld [vmem:[%s21650_s7 + $0x40] sm:$0xff] }
 0x128   : > { %15588 = vmatprep.mubr.msk.f32.mxu0 %vm710_vm3, %v18173_v10  ;;  %v4276_v10 = vld [vmem:[%s21649_s6 + $0xa0] sm:$0xff] }
 0x12a   : > { %15742 = vmatmul.mubr.msk.f32.gmra.mrb[48].mxu1 %vm710_vm3, %v4273_v4  ;;  %v3411_v4 = vld [vmem:[#allocation2 + $0x81] sm:$0xff] }
 0x12b   : > { %15589 = vmatmul.mubr.msk.f32.gmra.mrb[14].mxu0 %vm710_vm3, %v18185_v12  ;;  %15744 = vmatprep.mubr.msk.f32.mxu1 %vm710_vm3, %v4274_v6  ;;  %v4277_v12 = vld [vmem:[%s21649_s6 + $0xa8] sm:$0xff] }
 0x12c   : > { %15591 = vmatprep.mubr.msk.f32.mxu0 %vm710_vm3, %v18189_v14  ;;  %v4278_v14 = vld [vmem:[%s21649_s6 + $0xb0] sm:$0xff]  ;;  %v4632_v6 = vld [vmem:[%s21650_s7 + $0x48] sm:$0xff] }
 0x12e   : > { %15745 = vmatmul.mubr.msk.f32.gmra.mrb[50].mxu1 %vm710_vm3, %v4275_v8  ;;  %v3412_v8 = vld [vmem:[#allocation2 + $0x91] sm:$0xff] }
 0x12f   : > { %15592 = vmatmul.mubr.msk.f32.gmra.mrb[16].mxu0 %vm710_vm3, %v18201_v16  ;;  %15747 = vmatprep.mubr.msk.f32.mxu1 %vm710_vm3, %v4276_v10  ;;  %v4279_v16 = vld [vmem:[%s21649_s6 + $0xb8] sm:$0xff]  ;;  %v4633_v10 = vld [vmem:[%s21650_s7 + $0x50] sm:$0xff] }
 0x130   : > { %15594 = vmatprep.mubr.msk.f32.mxu0 %vm710_vm3, %v18205_v18  ;;  %v4280_v18 = vld [vmem:[%s21649_s6 + $0xc0] sm:$0xff] }
 0x132   : > { %15748 = vmatmul.mubr.msk.f32.gmra.mrb[52].mxu1 %vm710_vm3, %v4277_v12  ;;  %v3413_v12 = vld [vmem:[#allocation2 + $0x99] sm:$0xff] }
 0x133   : > { %15595 = vmatmul.mubr.msk.f32.gmra.mrb[18].mxu0 %vm710_vm3, %v18217_v20  ;;  %15750 = vmatprep.mubr.msk.f32.mxu1 %vm710_vm3, %v4278_v14  ;;  %v4281_v20 = vld [vmem:[%s21649_s6 + $0xc8] sm:$0xff]  ;;  %v4634_v14 = vld [vmem:[%s21650_s7 + $0x58] sm:$0xff] }
 0x134   : > { %15597 = vmatprep.mubr.msk.f32.mxu0 %vm710_vm3, %v18221_v22  ;;  %v4282_v22 = vld [vmem:[%s21649_s6 + $0xd0] sm:$0xff] }
 0x136   : > { %15751 = vmatmul.mubr.msk.f32.gmra.mrb[54].mxu1 %vm710_vm3, %v4279_v16  ;;  %v3414_v16 = vld [vmem:[#allocation2 + $0xa9] sm:$0xff] }
 0x137   : > { %15598 = vmatmul.mubr.msk.f32.gmra.mrb[20].mxu0 %vm710_vm3, %v18233_v24  ;;  %15753 = vmatprep.mubr.msk.f32.mxu1 %vm710_vm3, %v4280_v18  ;;  %v4283_v24 = vld [vmem:[%s21649_s6 + $0xd8] sm:$0xff]  ;;  %v4635_v18 = vld [vmem:[%s21650_s7 + $0x60] sm:$0xff] }
 0x138   : > { %15600 = vmatprep.mubr.msk.f32.mxu0 %vm710_vm3, %v18237_v26  ;;  %v4284_v26 = vld [vmem:[%s21649_s6 + $0xe0] sm:$0xff] }
 0x13a   : > { %15754 = vmatmul.mubr.msk.f32.gmra.mrb[56].mxu1 %vm710_vm3, %v4281_v20  ;;  %v3415_v20 = vld [vmem:[#allocation2 + $0xb1] sm:$0xff] }
 0x13b   : > { %15601 = vmatmul.mubr.msk.f32.gmra.mrb[22].mxu0 %vm710_vm3, %v18249_v30  ;;  %15756 = vmatprep.mubr.msk.f32.mxu1 %vm710_vm3, %v4282_v22  ;;  %v4285_v30 = vld [vmem:[%s21649_s6 + $0xe8] sm:$0xff] }
 0x13c   : > { %15603 = vmatprep.mubr.msk.f32.mxu0 %vm710_vm3, %v18253_v52  ;;  %v4286_v52 = vld [vmem:[%s21649_s6 + $0xf0] sm:$0xff]  ;;  %v4636_v22 = vld [vmem:[%s21650_s7 + $0x68] sm:$0xff] }
 0x13e   : > { %15757 = vmatmul.mubr.msk.f32.gmra.mrb[58].mxu1 %vm710_vm3, %v4283_v24  ;;  %v3416_v24 = vld [vmem:[#allocation2 + $0xc1] sm:$0xff] }
 0x13f   : > { %15604 = vmatmul.mubr.msk.f32.gmra.mrb[24].mxu0 %vm710_vm3, %v21894_v31  ;;  %15759 = vmatprep.mubr.msk.f32.mxu1 %vm710_vm3, %v4284_v26  ;;  %v21903_v31 = vld [vmem:[#allocation21_spill] sm:$0xff]  ;;  %v4637_v26 = vld [vmem:[%s21650_s7 + $0x70] sm:$0xff] }
 0x140   : > { %15606 = vmatprep.mubr.msk.f32.mxu0 %vm710_vm3, %v21896_v33  ;;  %v4287_v33 = vld [vmem:[%s21649_s6 + $0xf8] sm:$0xff] }
 0x142   : > { %15760 = vmatmul.mubr.msk.f32.gmra.mrb[60].mxu1 %vm710_vm3, %v4285_v30  ;;  %v3417_v30 = vld [vmem:[#allocation2 + $0xc9] sm:$0xff] }
 0x143   : > { %15607 = vmatmul.mubr.msk.f32.gmra.mrb[26].mxu0 %vm710_vm3, %v21898_v41  ;;  %15762 = vmatprep.mubr.msk.f32.mxu1 %vm710_vm3, %v4286_v52  ;;  %v3046_v41 = vld [vmem:[#allocation2 + $0x1a0] sm:$0xff]  ;;  %v4638_v52 = vld [vmem:[%s21650_s7 + $0x78] sm:$0xff] }
 0x144   : > { %15609 = vmatprep.mubr.msk.f32.mxu0 %vm710_vm3, %v21903_v31  ;;  %v3418_v31 = vld [vmem:[#allocation2 + $0xd9] sm:$0xff] }
 0x146   : > { %15763 = vmatmul.mubr.msk.f32.gmra.mrb[62].mxu1 %vm710_vm3, %v4287_v33  ;;  %v4639_v33 = vld [vmem:[%s21650_s7 + $0x80] sm:$0xff] }
 0x147   : > { %15610 = vmatmul.mubr.msk.f32.gmra.mrb[28].mxu0 %vm710_vm3, %v21904_v49  ;;  %15769 = vmatprep.mubr.msk.f32.mxu1 %vm4667_vm4, %v4623_v43  ;;  %v4640_v43 = vld [vmem:[%s21650_s7 + $0x88] sm:$0xff]  ;;  %v3420_v49 = vld [vmem:[#allocation2 + $0xf1] sm:$0xff] }
 0x148   : > { %15612 = vmatprep.mubr.msk.f32.mxu0 %vm710_vm3, %v3045_v3  ;;  %v3419_v3 = vld [vmem:[#allocation2 + $0xe1] sm:$0xff] }
 0x14a   : > { %15770 = vmatmul.mubr.msk.f32.vlgmr.msra.gmra.mrb[32].mxu1 %vm4667_vm4, %v4624_v2  ;;  %v3421_v2 = vld [vmem:[#allocation2 + $0xf9] sm:$0xff] }
 0x14b   : > { %15613 = vmatmul.mubr.msk.f32.gmra.mrb[30].mxu0 %vm710_vm3, %v3046_v41  ;;  %15772 = vmatprep.mubr.msk.f32.mxu1 %vm4667_vm4, %v4625_v34  ;;  %v4641_v41 = vld [vmem:[%s21650_s7 + $0x90] sm:$0xff] }
 0x14c   : > { %15617 = vmatprep.mubr.msk.f32.mxu0 %vm710_vm3, %v3404_v58  ;;  %v4642_v58 = vld [vmem:[%s21650_s7 + $0x98] sm:$0xff]  ;;  %v3422_v34 = vld [vmem:[#allocation2 + $0x109] sm:$0xff] }
 0x14e   : > { %15773 = vmatmul.mubr.msk.f32.gmra.mrb[34].mxu1 %vm4667_vm4, %v4626_v36  ;;  %v3423_v36 = vld [vmem:[#allocation2 + $0x111] sm:$0xff] }
 0x14f   : > { %15618 = vmatmul.mubr.msk.f32.vlgmr.msra.gmra.mrb[0].mxu0 %vm710_vm3, %v3405_v5  ;;  %15775 = vmatprep.mubr.msk.f32.mxu1 %vm4667_vm4, %v4627_v40  ;;  %v4643_v5 = vld [vmem:[%s21650_s7 + $0xa0] sm:$0xff] }
 0x150   : > { %15666 = vmatpush3.msk.msra.mxu0 %vm905_vm2, %v18664_v63  ;;  %15620 = vmatprep.mubr.msk.f32.mxu0 %vm710_vm3, %v3406_v38  ;;  %v3409_v63 = vld [vmem:[#allocation2 + $0x69] sm:$0xff]  ;;  %v3424_v40 = vld [vmem:[#allocation2 + $0x121] sm:$0xff] }
 0x151   : > { %v4644_v38 = vld [vmem:[%s21650_s7 + $0xa8] sm:$0xff] }
 0x152   : > { %15776 = vmatmul.mubr.msk.f32.gmra.mrb[36].mxu1 %vm4667_vm4, %v4628_v44  ;;  %v3425_v44 = vld [vmem:[#allocation2 + $0x129] sm:$0xff] }
 0x153   : > { %15621 = vmatmul.mubr.msk.f32.gmra.mrb[2].mxu0 %vm710_vm3, %v3407_v42  ;;  %15778 = vmatprep.mubr.msk.f32.mxu1 %vm4667_vm4, %v4629_v48  ;;  %v4645_v42 = vld [vmem:[%s21650_s7 + $0xb0] sm:$0xff]  ;;  %v3426_v48 = vld [vmem:[#allocation2 + $0x139] sm:$0xff] }
 0x154   : > { %15623 = vmatprep.mubr.msk.f32.mxu0 %vm710_vm3, %v3408_v46  ;;  %v4646_v46 = vld [vmem:[%s21650_s7 + $0xb8] sm:$0xff] }
 0x156   : > { %15779 = vmatmul.mubr.msk.f32.gmra.mrb[38].mxu1 %vm4667_vm4, %v4630_v50  ;;  %v3427_v50 = vld [vmem:[#allocation2 + $0x141] sm:$0xff] }
 0x157   : > { %15624 = vmatmul.mubr.msk.f32.gmra.mrb[4].mxu0 %vm710_vm3, %v3409_v63  ;;  %15781 = vmatprep.mubr.msk.f32.mxu1 %vm4667_vm4, %v4631_v1  ;;  %v4647_v63 = vld [vmem:[%s21650_s7 + $0xc0] sm:$0xff]  ;;  %v3428_v1 = vld [vmem:[#allocation2 + $0x151] sm:$0xff] }
 0x158   : > { %15626 = vmatprep.mubr.msk.f32.mxu0 %vm710_vm3, %v3410_v61  ;;  %v4648_v61 = vld [vmem:[%s21650_s7 + $0xc8] sm:$0xff] }
 0x15a   : > { %15782 = vmatmul.mubr.msk.f32.gmra.mrb[40].mxu1 %vm4667_vm4, %v4632_v6  ;;  %v3429_v6 = vld [vmem:[#allocation2 + $0x159] sm:$0xff] }
 0x15b   : > { %15627 = vmatmul.mubr.msk.f32.gmra.mrb[6].mxu0 %vm710_vm3, %v3411_v4  ;;  %15784 = vmatprep.mubr.msk.f32.mxu1 %vm4667_vm4, %v4633_v10  ;;  %v4649_v4 = vld [vmem:[%s21650_s7 + $0xd0] sm:$0xff] }
 0x15c   : > { %15629 = vmatprep.mubr.msk.f32.mxu0 %vm710_vm3, %v3412_v8  ;;  %v4650_v8 = vld [vmem:[%s21650_s7 + $0xd8] sm:$0xff]  ;;  %v3430_v10 = vld [vmem:[#allocation2 + $0x169] sm:$0xff] }
 0x15e   : > { %15785 = vmatmul.mubr.msk.f32.gmra.mrb[42].mxu1 %vm4667_vm4, %v4634_v14  ;;  %v3431_v14 = vld [vmem:[#allocation2 + $0x171] sm:$0xff] }
 0x15f   : > { %15630 = vmatmul.mubr.msk.f32.gmra.mrb[8].mxu0 %vm710_vm3, %v3413_v12  ;;  %15787 = vmatprep.mubr.msk.f32.mxu1 %vm4667_vm4, %v4635_v18  ;;  %v4651_v12 = vld [vmem:[%s21650_s7 + $0xe0] sm:$0xff]  ;;  %v4653_v18 = vld [vmem:[%s21650_s7 + $0xf0] sm:$0xff] }
 0x160   : > { %15632 = vmatprep.mubr.msk.f32.mxu0 %vm710_vm3, %v3414_v16  ;;  %v4652_v16 = vld [vmem:[%s21650_s7 + $0xe8] sm:$0xff] }
 0x162   : > { %15788 = vmatmul.mubr.msk.f32.gmra.mrb[44].mxu1 %vm4667_vm4, %v4636_v22  ;;  %v3434_v22 = vld [vmem:[#allocation2 + $0x199] sm:$0xff] }
 0x163   : > { %15633 = vmatmul.mubr.msk.f32.gmra.mrb[10].mxu0 %vm710_vm3, %v3415_v20  ;;  %15790 = vmatprep.mubr.msk.f32.mxu1 %vm4667_vm4, %v4637_v26  ;;  %v4654_v20 = vld [vmem:[%s21650_s7 + $0xf8] sm:$0xff] }
 0x164   : > { %15635 = vmatprep.mubr.msk.f32.mxu0 %vm710_vm3, %v3416_v24  ;;  %v3435_v24 = vld [vmem:[#allocation2 + $0x1a1] sm:$0xff] }
 0x166   : > { %15791 = vmatmul.mubr.msk.f32.gmra.mrb[46].mxu1 %vm4667_vm4, %v4638_v52 }
 0x167   : > { %15636 = vmatmul.mubr.msk.f32.gmra.mrb[12].mxu0 %vm710_vm3, %v3417_v30  ;;  %15793 = vmatprep.mubr.msk.f32.mxu1 %vm4667_vm4, %v4639_v33 }
 0x168   : > { %15638 = vmatprep.mubr.msk.f32.mxu0 %vm710_vm3, %v3418_v31 }
 0x16a   : > { %15794 = vmatmul.mubr.msk.f32.gmra.mrb[48].mxu1 %vm4667_vm4, %v4640_v43 }
 0x16b   : > { %15639 = vmatmul.mubr.msk.f32.gmra.mrb[14].mxu0 %vm710_vm3, %v3419_v3  ;;  %15796 = vmatprep.mubr.msk.f32.mxu1 %vm4667_vm4, %v4641_v41 }
 0x16c   : > { %15641 = vmatprep.mubr.msk.f32.mxu0 %vm710_vm3, %v3420_v49 }
 0x16e   : > { %15797 = vmatmul.mubr.msk.f32.gmra.mrb[50].mxu1 %vm4667_vm4, %v4642_v58  ;;  %v5150_v58 = vld [vmem:[#allocation2 + $0x1] sm:$0xff] }
 0x16f   : > { %15642 = vmatmul.mubr.msk.f32.gmra.mrb[16].mxu0 %vm710_vm3, %v3421_v2  ;;  %15799 = vmatprep.mubr.msk.f32.mxu1 %vm4667_vm4, %v4643_v5  ;;  %v5182_v2 = vld [vmem:[%s21652_s9 + $0x4] sm:$0xf]  ;;  %v8902_v5 = vld [vmem:[%s21653_s10] sm:$0xf] }
 0x170   : > { %15644 = vmatprep.mubr.msk.f32.mxu0 %vm710_vm3, %v3422_v34  ;;  %15817 = vmatprep.subr.msk.mxu1 %vm905_vm2, %v5182_v2  ;;  %v5151_v34 = vld [vmem:[#allocation2 + $0x9] sm:$0xff] }
 0x171   : > { %15818 = vmatpush3.msk.msra.mxu1 %vm905_vm2, %v5182_v2 }
 0x172   : > { %15800 = vmatmul.mubr.msk.f32.gmra.mrb[52].mxu1 %vm4667_vm4, %v4644_v38 }
 0x173   : > { %15645 = vmatmul.mubr.msk.f32.gmra.mrb[18].mxu0 %vm710_vm3, %v3423_v36  ;;  %15802 = vmatprep.mubr.msk.f32.mxu1 %vm4667_vm4, %v4645_v42 }
 0x174   : > { %15647 = vmatprep.mubr.msk.f32.mxu0 %vm710_vm3, %v3424_v40 }
 0x176   : > { %15803 = vmatmul.mubr.msk.f32.gmra.mrb[54].mxu1 %vm4667_vm4, %v4646_v46 }
 0x177   : > { %15648 = vmatmul.mubr.msk.f32.gmra.mrb[20].mxu0 %vm710_vm3, %v3425_v44  ;;  %15805 = vmatprep.mubr.msk.f32.mxu1 %vm4667_vm4, %v4647_v63 }
 0x178   : > { %15650 = vmatprep.mubr.msk.f32.mxu0 %vm710_vm3, %v3426_v48 }
 0x17a   : > { %15806 = vmatmul.mubr.msk.f32.gmra.mrb[56].mxu1 %vm4667_vm4, %v4648_v61 }
 0x17b   : > { %15651 = vmatmul.mubr.msk.f32.gmra.mrb[22].mxu0 %vm710_vm3, %v3427_v50  ;;  %15808 = vmatprep.mubr.msk.f32.mxu1 %vm4667_vm4, %v4649_v4 }
 0x17c   : > { %15653 = vmatprep.mubr.msk.f32.mxu0 %vm710_vm3, %v3428_v1  ;;  %v5149_v1 = vld [vmem:[%s21652_s9] sm:$0xf] }
 0x17d   : > { %15867 = vmatprep.subr.msk.mxu1 %vm905_vm2, %v5149_v1 }
 0x17e   : > { %15809 = vmatmul.mubr.msk.f32.gmra.mrb[58].mxu1 %vm4667_vm4, %v4650_v8 }
 0x17f   : > { %15654 = vmatmul.mubr.msk.f32.gmra.mrb[24].mxu0 %vm710_vm3, %v3429_v6  ;;  %15811 = vmatprep.mubr.msk.f32.mxu1 %vm4667_vm4, %v4651_v12  ;;  %v9616_v12 = vld [vmem:[%s21653_s10 + $0x8] sm:$0xf] }
 0x180   : > { %15656 = vmatprep.mubr.msk.f32.mxu0 %vm710_vm3, %v3430_v10 }
 0x182   : > { %15812 = vmatmul.mubr.msk.f32.gmra.mrb[60].mxu1 %vm4667_vm4, %v4652_v16 }
 0x183   : > { %15657 = vmatmul.mubr.msk.f32.gmra.mrb[26].mxu0 %vm710_vm3, %v3431_v14  ;;  %15814 = vmatprep.mubr.msk.f32.mxu1 %vm4667_vm4, %v4653_v18 }
 0x184   : > { %15659 = vmatprep.mubr.msk.f32.mxu0 %vm710_vm3, %v18430_v39 }
 0x186   : > { %15815 = vmatmul.mubr.msk.f32.gmra.mrb[62].mxu1 %vm4667_vm4, %v4654_v20 }
 0x187   : > { %15660 = vmatmul.mubr.msk.f32.gmra.mrb[28].mxu0 %vm710_vm3, %v18439_v47  ;;  %15819 = vmatprep.mubr.msk.f32.mxu1 %vm710_vm3, %v5150_v58 }
 0x188   : > { %15662 = vmatprep.mubr.msk.f32.mxu0 %vm710_vm3, %v3434_v22 }
 0x18a   : > { %15820 = vmatmul.mubr.msk.f32.vlgmr.msra.gmra.mrb[64].mxu1 %vm710_vm3, %v5151_v34 }
 0x18b   : > { %15663 = vmatmul.mubr.msk.f32.gmra.mrb[30].mxu0 %vm710_vm3, %v3435_v24  ;;  %15868 = vmatpush3.msk.msra.mxu1 %vm905_vm2, %v5149_v1 }
 0x18c   : > { %15667 = vmatprep.mubr.msk.f32.mxu0 %vm710_vm3, %v18447_v0 }
 0x18f   : > { %15668 = vmatmul.mubr.msk.f32.vlgmr.msra.gmra.mrb[0].mxu0 %vm710_vm3, %v18465_v7 }
 0x190   : > { %15670 = vmatprep.mubr.msk.f32.mxu0 %vm710_vm3, %v18469_v9 }
 0x193   : > { %15671 = vmatmul.mubr.msk.f32.gmra.mrb[2].mxu0 %vm710_vm3, %v18482_v11 }
 0x194   : > { %15673 = vmatprep.mubr.msk.f32.mxu0 %vm710_vm3, %v18484_v13 }
 0x197   : > { %15674 = vmatmul.mubr.msk.f32.gmra.mrb[4].mxu0 %vm710_vm3, %v18494_v15 }
 0x198   : > { %15676 = vmatprep.mubr.msk.f32.mxu0 %vm710_vm3, %v18496_v17 }
 0x19b   : > { %15677 = vmatmul.mubr.msk.f32.gmra.mrb[6].mxu0 %vm710_vm3, %v18506_v19 }
 0x19c   : > { %15679 = vmatprep.mubr.msk.f32.mxu0 %vm710_vm3, %v18508_v21  ;;  %v8935_v21 = vld [vmem:[%s21653_s10 + $0x4] sm:$0xf] }
 0x19d   : > { %v19022_v39 = vpop.f32.mrb[0].mxu1  ;;  %16267 = vmatprep.subr.msk.mxu0 %vm905_vm2, %v8935_v21 }
 0x19e   : > { %v19024_v47 = vpop.f32.mrb[1].mxu1  ;;  %16268 = vmatpush3.msk.msra.mxu0 %vm905_vm2, %v8935_v21 }
 0x19f   : > { %15680 = vmatmul.mubr.msk.f32.gmra.mrb[8].mxu0 %vm710_vm3, %v18518_v23  ;;  %16317 = vmatprep.subr.msk.mxu0 %vm905_vm2, %v8902_v5 }
 0x1a0   : > { %15682 = vmatprep.mubr.msk.f32.mxu0 %vm710_vm3, %v18520_v25 }
 0x1a1   : > { %v19030_v0 = vpop.f32.mrb[2].mxu1 }
 0x1a2   : > { %v19032_v7 = vpop.f32.mrb[3].mxu1 }
 0x1a3   : > { %15683 = vmatmul.mubr.msk.f32.gmra.mrb[10].mxu0 %vm710_vm3, %v18530_v27 }
 0x1a4   : > { %15685 = vmatprep.mubr.msk.f32.mxu0 %vm710_vm3, %v18532_v51 }
 0x1a5   : > { %v19038_v9 = vpop.f32.mrb[4].mxu1 }
 0x1a6   : > { %v19040_v11 = vpop.f32.mrb[5].mxu1 }
 0x1a7   : > { %15686 = vmatmul.mubr.msk.f32.gmra.mrb[12].mxu0 %vm710_vm3, %v18542_v54 }
 0x1a8   : > { %15688 = vmatprep.mubr.msk.f32.mxu0 %vm710_vm3, %v18544_v56 }
 0x1a9   : > { %v19046_v13 = vpop.f32.mrb[6].mxu1 }
 0x1aa   : > { %v19048_v15 = vpop.f32.mrb[7].mxu1 }
 0x1ab   : > { %15689 = vmatmul.mubr.msk.f32.gmra.mrb[14].mxu0 %vm710_vm3, %v18554_v57 }
 0x1ac   : > { %15691 = vmatprep.mubr.msk.f32.mxu0 %vm710_vm3, %v18556_v59 }
 0x1ad   : > { %v19054_v17 = vpop.f32.mrb[8].mxu1 }
 0x1ae   : > { %v19056_v19 = vpop.f32.mrb[9].mxu1 }
 0x1af   : > { %15692 = vmatmul.mubr.msk.f32.gmra.mrb[16].mxu0 %vm710_vm3, %v18566_v62  ;;  %v21905_v62 = vld [vmem:[#allocation14_spill] sm:$0xff] }
 0x1b0   : > { %15694 = vmatprep.mubr.msk.f32.mxu0 %vm710_vm3, %v18568_v60 }
 0x1b1   : > { %v19067_v23 = vpop.f32.mrb[10].mxu1 }
 0x1b2   : > { %v19069_v25 = vpop.f32.mrb[11].mxu1 }
 0x1b3   : > { %15695 = vmatmul.mubr.msk.f32.gmra.mrb[18].mxu0 %vm710_vm3, %v18578_v53 }
 0x1b4   : > { %15697 = vmatprep.mubr.msk.f32.mxu0 %vm710_vm3, %v18580_v55  ;;  %v21906_v55 = vld [vmem:[#allocation16_spill] sm:$0xff] }
 0x1b5   : > { %v19075_v27 = vpop.f32.mrb[12].mxu1 }
 0x1b6   : > { %v19077_v51 = vpop.f32.mrb[13].mxu1 }
 0x1b7   : > { %15698 = vmatmul.mubr.msk.f32.gmra.mrb[20].mxu0 %vm710_vm3, %v18590_v28  ;;  %v3823_v28 = vld [vmem:[#allocation2 + $0x19a] sm:$0xff] }
 0x1b8   : > { %15700 = vmatprep.mubr.msk.f32.mxu0 %vm710_vm3, %v18592_v29 }
 0x1b9   : > { %v19083_v54 = vpop.f32.mrb[14].mxu1 }
 0x1ba   : > { %v19085_v56 = vpop.f32.mrb[15].mxu1 }
 0x1bb   : > { %15701 = vmatmul.mubr.msk.f32.gmra.mrb[22].mxu0 %vm710_vm3, %v18602_v32 }
 0x1bc   : > { %15703 = vmatprep.mubr.msk.f32.mxu0 %vm710_vm3, %v18604_v35  ;;  %v21907_v35 = vld [vmem:[#allocation15_spill] sm:$0xff] }
 0x1bd   : > { %v19091_v57 = vpop.f32.mrb[16].mxu1 }
 0x1be   : > { %v19093_v59 = vpop.f32.mrb[17].mxu1 }
 0x1bf   : > { %15704 = vmatmul.mubr.msk.f32.gmra.mrb[24].mxu0 %vm710_vm3, %v18614_v37  ;;  %v3824_v37 = vld [vmem:[#allocation2 + $0x1a2] sm:$0xff] }
 0x1c0   : > { %15706 = vmatprep.mubr.msk.f32.mxu0 %vm710_vm3, %v21905_v62 }
 0x1c1   : > { %v19099_v60 = vpop.f32.mrb[18].mxu1 }
 0x1c2   : > { %v19101_v53 = vpop.f32.mrb[19].mxu1 }
 0x1c3   : > { %15707 = vmatmul.mubr.msk.f32.gmra.mrb[26].mxu0 %vm710_vm3, %v18626_v45 }
 0x1c4   : > { %15709 = vmatprep.mubr.msk.f32.mxu0 %vm710_vm3, %v21906_v55 }
 0x1c5   : > { %v19107_v29 = vpop.f32.mrb[20].mxu1 }
 0x1c6   : > { %v19109_v32 = vpop.f32.mrb[21].mxu1 }
 0x1c7   : > { %15710 = vmatmul.mubr.msk.f32.gmra.mrb[28].mxu0 %vm710_vm3, %v21907_v35 }
 0x1c8   : > { %15712 = vmatprep.mubr.msk.f32.mxu0 %vm710_vm3, %v3823_v28 }
 0x1c9   : > { %v19114_v26 = vpop.f32.mrb[22].mxu1 }
 0x1ca   : > { %v19116_v30 = vpop.f32.mrb[23].mxu1 }
 0x1cb   : > { %15713 = vmatmul.mubr.msk.f32.gmra.mrb[30].mxu0 %vm710_vm3, %v3824_v37 }
 0x1cc   : > { %16269 = vmatprep.mubr.msk.f32.mxu0 %vm710_vm3, %v5150_v58 }
 0x1cd   : > { %v19119_v45 = vpop.f32.mrb[24].mxu1 }
 0x1ce   : > { %v19121_v52 = vpop.f32.mrb[25].mxu1 }
 0x1cf   : > { %21908 = vst [vmem:[#allocation18_spill] sm:$0xff] %v19121_v52  ;;  %16270 = vmatmul.mubr.msk.f32.vlgmr.msra.gmra.mrb[32].mxu0 %vm710_vm3, %v5151_v34  ;;  %v19245_v52 = vld [vmem:[%s17883_s23 + $0x8] sm:$0xff] }
 0x1d0   : > { %16318 = vmatpush3.msk.msra.mxu0 %vm905_vm2, %v8902_v5 }
 0x1d1   : > { %v19123_v31 = vpop.f32.mrb[26].mxu1  ;;  %16367 = vmatprep.subr.msk.mxu0 %vm905_vm2, %v9616_v12 }
 0x1d2   : > { %21909 = vst [vmem:[#allocation17_spill] sm:$0xff] %v19123_v31  ;;  %v19125_v33 = vpop.f32.mrb[27].mxu1 }
 0x1d3   : > { %21910 = vst [vmem:[#allocation20_spill] sm:$0xff] %v19125_v33 }
 0x1d5   : > { %v19127_v3 = vpop.f32.mrb[28].mxu1 }
 0x1d6   : > { %21911 = vst [vmem:[#allocation19_spill] sm:$0xff] %v19127_v3  ;;  %v19129_v43 = vpop.f32.mrb[29].mxu1 }
 0x1d7   : > { %21912 = vst [vmem:[#allocation21_spill] sm:$0xff] %v19129_v43 }
 0x1d9   : > { %v19131_v49 = vpop.f32.mrb[30].mxu1 }
 0x1da   : > { %21913 = vst [vmem:[#allocation22_spill] sm:$0xff] %v19131_v49  ;;  %v19133_v41 = vpop.f32.mrb[31].mxu1  ;;  %v19221_v49 = vld [vmem:[%s21655_s12] ss:$0 sm:$0xff] }
 0x1db   : > { %21914 = vst [vmem:[#allocation14_spill] sm:$0xff] %v19133_v41 }
 0x21d   : > { %v15771_v36 = vpop.f32.mrb[32].mxu1 }
 0x21e   : > { %v4830_v38 = vpop.f32.mrb[33].mxu1 }
 0x221   : > { %v19149_v40 = vpop.f32.mrb[34].mxu1 }
 0x222   : > { %v19151_v42 = vpop.f32.mrb[35].mxu1 }
 0x225   : > { %v19153_v44 = vpop.f32.mrb[36].mxu1 }
 0x226   : > { %v19155_v46 = vpop.f32.mrb[37].mxu1 }
 0x229   : > { %v19157_v48 = vpop.f32.mrb[38].mxu1 }
 0x22a   : > { %v19159_v63 = vpop.f32.mrb[39].mxu1 }
 0x22d   : > { %v19161_v50 = vpop.f32.mrb[40].mxu1 }
 0x22e   : > { %v19163_v61 = vpop.f32.mrb[41].mxu1 }
 0x231   : > { %v19169_v4 = vpop.f32.mrb[42].mxu1 }
 0x232   : > { %v19172_v6 = vpop.f32.mrb[43].mxu1 }
 0x235   : > { %v19174_v8 = vpop.f32.mrb[44].mxu1 }
 0x236   : > { %v19176_v10 = vpop.f32.mrb[45].mxu1 }
 0x239   : > { %v19181_v14 = vpop.f32.mrb[46].mxu1 }
 0x23a   : > { %v19184_v16 = vpop.f32.mrb[47].mxu1 }
 0x23d   : > { %v19186_v18 = vpop.f32.mrb[48].mxu1 }
 0x23e   : > { %v19188_v20 = vpop.f32.mrb[49].mxu1 }
 0x241   : > { %v19190_v22 = vpop.f32.mrb[50].mxu1 }
 0x242   : > { %v19192_v24 = vpop.f32.mrb[51].mxu1 }
 0x245   : > { %v19194_v21 = vpop.f32.mrb[52].mxu1 }
 0x246   : > { %v19196_v62 = vpop.f32.mrb[53].mxu1 }
 0x249   : > { %v19198_v55 = vpop.f32.mrb[54].mxu1 }
 0x24a   : > { %21915 = vst [vmem:[#allocation16_spill] sm:$0xff] %v19198_v55  ;;  %v19200_v28 = vpop.f32.mrb[55].mxu1 }
 0x24b   : > { %21916 = vst [vmem:[#allocation15_spill] sm:$0xff] %v19200_v28 }
 0x24d   : > { %v19202_v35 = vpop.f32.mrb[56].mxu1 }
 0x24e   : > { %21917 = vst [vmem:[#allocation23_spill] sm:$0xff] %v19202_v35  ;;  %v19204_v37 = vpop.f32.mrb[57].mxu1 }
 0x24f   : > { %21918 = vst [vmem:[#allocation24_spill] sm:$0xff] %v19204_v37 }
 0x251   : > { %v19206_v2 = vpop.f32.mrb[58].mxu1 }
 0x252   : > { %21919 = vst [vmem:[#allocation25_spill] sm:$0xff] %v19206_v2  ;;  %v19208_v58 = vpop.f32.mrb[59].mxu1 }
 0x253   : > { %21920 = vst [vmem:[#allocation26_spill] sm:$0xff] %v19208_v58 }
 0x255   : > { %v19210_v34 = vpop.f32.mrb[60].mxu1 }
 0x256   : > { %21921 = vst [vmem:[#allocation27_spill] sm:$0xff] %v19210_v34  ;;  %v19212_v5 = vpop.f32.mrb[61].mxu1  ;;  %v19227_v34 = vld [vmem:[%s21655_s12 + $0x1] ss:$0 sm:$0xff] }
 0x257   : > { %21922 = vst [vmem:[#allocation28_spill] sm:$0xff] %v19212_v5 }
 0x259   : > { %v19214_v1 = vpop.f32.mrb[62].mxu1 }
 0x25a   : > { %21923 = vst [vmem:[#allocation29_spill] sm:$0xff] %v19214_v1  ;;  %v19216_v12 = vpop.f32.mrb[63].mxu1 }
 0x25b   : > { %21924 = vst [vmem:[#allocation30_spill] sm:$0xff] %v19216_v12 }
 0x262   : > { %v15669_v41 = vpop.f32.mrb[0].mxu0 }
 0x263   : > { %v16771_v43 = vadd.f32 %v15669_v41, %v19022_v39  ;;  %v3991_v3 = vpop.f32.mrb[1].mxu0 }
 0x264   : > { %v16772_v1 = vadd.f32 %v3991_v3, %v19024_v47 }
 0x265   : > { %v4188_v12 = vmul.f32 %v16771_v43, %v19221_v49  ;;  %v19239_v43 = vld [vmem:[%s17883_s23] sm:$0xff] }
 0x266   : > { %v4187_v5 = vmul.f32 %v16772_v1, %v19221_v49  ;;  %v15672_v58 = vpop.f32.mrb[2].mxu0  ;;  %v13914_v1 = vld [vmem:[%s17888_s17] ss:$0 sm:$0xff] }
 0x267   : > { %v4225_v2 = vadd.f32 %v19227_v34, %v4188_v12  ;;  %v16773_v39 = vadd.f32 %v15672_v58, %v19030_v0  ;;  %v4001_v41 = vpop.f32.mrb[3].mxu0 }
 0x268   : > { %v4224_v37 = vadd.f32 %v19227_v34, %v4187_v5  ;;  %v16774_v35 = vadd.f32 %v4001_v41, %v19032_v7 }
 0x269   : > { %v16803_v33 = vadd.f32 %v15771_v36, %v4225_v2  ;;  %v4190_v31 = vmul.f32 %v16773_v39, %v19221_v49  ;;  %v13915_v39 = vld [vmem:[%s17888_s17 + $0x1] ss:$0 sm:$0xff] }
 0x26a   : > { %v16804_v28 = vadd.f32 %v4830_v38, %v4224_v37  ;;  %v4189_v47 = vmul.f32 %v16774_v35, %v19221_v49  ;;  %v15675_v3 = vpop.f32.mrb[4].mxu0  ;;  %v8775_v37 = vadd.f32 %v13914_v1, %v19245_v52 }
 0x26b   : > { %v5054_v55 = vmax.f32 %v16803_v33, 0.0  ;;  %v4227_v12 = vadd.f32 %v19227_v34, %v4190_v31  ;;  %v16775_v0 = vadd.f32 %v15675_v3, %v19038_v9  ;;  %v4011_v58 = vpop.f32.mrb[5].mxu0  ;;  %v8774_v33 = vadd.f32 %v13914_v1, %v19239_v43 }
 0x26c   : > { %v5053_v5 = vmax.f32 %v16804_v28, 0.0  ;;  %v4226_v7 = vadd.f32 %v19227_v34, %v4189_v47  ;;  %v16776_v36 = vadd.f32 %v4011_v58, %v19040_v11 }
 0x26d   : > { %5086 = vst.msk [vmem:[#allocation2 + $0x21] sm:$0xff] %vm710_vm3, %v5054_v55  ;;  %v16805_v38 = vadd.f32 %v19149_v40, %v4227_v12  ;;  %v4192_v35 = vmul.f32 %v16775_v0, %v19221_v49 }
 0x26e   : > { %5085 = vst.msk [vmem:[#allocation2 + $0x19] sm:$0xff] %vm710_vm3, %v5053_v5  ;;  %v16806_v9 = vadd.f32 %v19151_v42, %v4226_v7  ;;  %v4191_v31 = vmul.f32 %v16776_v36, %v19221_v49  ;;  %v15678_v28 = vpop.f32.mrb[6].mxu0  ;;  %v19265_v42 = vld [vmem:[%s21652_s9 + $0x8] sm:$0xf]  ;;  %v13916_v5 = vld [vmem:[%s17888_s17 + $0x2] ss:$0 sm:$0xff]  ;;  %v19277_v7 = vadd.f32 %v13915_v39, %v19239_v43 }
 0x26f   : > { %v5056_v2 = vmax.f32 %v16805_v38, 0.0  ;;  %v4229_v11 = vadd.f32 %v19227_v34, %v4192_v35  ;;  %v16777_v55 = vadd.f32 %v15678_v28, %v19046_v13  ;;  %v4021_v40 = vpop.f32.mrb[7].mxu0  ;;  %v8806_v13 = vmax.f32 %v8774_v33, 0.0  ;;  %15917 = vmatprep.subr.msk.mxu1 %vm905_vm2, %v19265_v42 }
 0x270   : > { %v5055_v41 = vmax.f32 %v16806_v9, 0.0  ;;  %v4228_v47 = vadd.f32 %v19227_v34, %v4191_v31  ;;  %v16778_v3 = vadd.f32 %v4021_v40, %v19048_v15  ;;  %v8807_v36 = vmax.f32 %v8775_v37, 0.0 }
 0x271   : > { %5088 = vst.msk [vmem:[#allocation2 + $0x39] sm:$0xff] %vm710_vm3, %v5056_v2  ;;  %v16807_v1 = vadd.f32 %v19153_v44, %v4229_v11  ;;  %v4194_v12 = vmul.f32 %v16777_v55, %v19221_v49  ;;  %v8777_v9 = vadd.f32 %v13915_v39, %v19245_v52 }
 0x272   : > { %5087 = vst.msk [vmem:[#allocation2 + $0x31] sm:$0xff] %vm710_vm3, %v5055_v41  ;;  %v16808_v0 = vadd.f32 %v19155_v46, %v4228_v47  ;;  %v4193_v15 = vmul.f32 %v16778_v3, %v19221_v49  ;;  %v15681_v58 = vpop.f32.mrb[8].mxu0 }
 0x273   : > { %v5058_v38 = vmax.f32 %v16807_v1, 0.0  ;;  %v4231_v44 = vadd.f32 %v19227_v34, %v4194_v12  ;;  %v16779_v35 = vadd.f32 %v15681_v58, %v19054_v17  ;;  %v4031_v33 = vpop.f32.mrb[9].mxu0  ;;  %v19294_v17 = vadd.f32 %v13916_v5, %v19239_v43 }
 0x274   : > { %v5057_v31 = vmax.f32 %v16808_v0, 0.0  ;;  %v4230_v28 = vadd.f32 %v19227_v34, %v4193_v15  ;;  %v16780_v46 = vadd.f32 %v4031_v33, %v19056_v19  ;;  %v19305_v3 = vld [vmem:[#allocation2 + $0x22] sm:$0xff]  ;;  %v8808_v1 = vmax.f32 %v19277_v7, 0.0 }
 0x275   : > { %5090 = vst.msk [vmem:[#allocation2 + $0x51] sm:$0xff] %vm710_vm3, %v5058_v38  ;;  %v16809_v2 = vadd.f32 %v19157_v48, %v4231_v44  ;;  %v4196_v11 = vmul.f32 %v16779_v35, %v19221_v49  ;;  %v19287_v37 = vld [vmem:[#allocation2 + $0x18] sm:$0xff]  ;;  %v19291_v40 = vld [vmem:[#allocation2 + $0x20] sm:$0xff]  ;;  %v19309_v12 = vadd.f32 %v13916_v5, %v19245_v52  ;;  %v8809_v44 = vmax.f32 %v8777_v9, 0.0 }
 0x276   : > { %v19289_v55 = vld [vmem:[#allocation2 + $0x19] sm:$0xff]  ;;  %5089 = vst.msk [vmem:[#allocation2 + $0x49] sm:$0xff] %vm710_vm3, %v5057_v31  ;;  %v16810_v19 = vadd.f32 %v19159_v63, %v4230_v28  ;;  %v4195_v39 = vmul.f32 %v16780_v46, %v19221_v49  ;;  %v15684_v41 = vpop.f32.mrb[10].mxu0  ;;  %v19301_v48 = vld [vmem:[#allocation2 + $0x21] sm:$0xff] }
 0x277   : > { %21925 = vst [vmem:[#allocation31_spill] sm:$0xff] %v19289_v55  ;;  %15822 = vmatprep.mubr.msk.f32.mxu1 %vm710_vm3, %v19289_v55  ;;  %21926 = vst [vmem:[#allocation32_spill] sm:$0xff] %v19301_v48  ;;  %v19303_v47 = vld [vmem:[#allocation2 + $0x1a] sm:$0xff]  ;;  %v5060_v0 = vmax.f32 %v16809_v2, 0.0  ;;  %v4233_v63 = vadd.f32 %v19227_v34, %v4196_v11  ;;  %v16781_v15 = vadd.f32 %v15684_v41, %v19067_v23  ;;  %v4041_v58 = vpop.f32.mrb[11].mxu0 }
 0x278   : > { %15823 = vmatmul.mubr.msk.f32.gmra.mrb[66].mxu1 %vm710_vm3, %v19301_v48  ;;  %v13917_v38 = vld [vmem:[%s17888_s17 + $0x3] ss:$0 sm:$0xff]  ;;  %8838 = vst.msk [vmem:[#allocation2 + $0x19] sm:$0xff] %vm710_vm3, %v8806_v13  ;;  %8839 = vst.msk [vmem:[#allocation2 + $0x21] sm:$0xff] %vm710_vm3, %v8807_v36  ;;  %v5059_v35 = vmax.f32 %v16810_v19, 0.0  ;;  %v4232_v7 = vadd.f32 %v19227_v34, %v4195_v39  ;;  %v16782_v5 = vadd.f32 %v4041_v58, %v19069_v25  ;;  %v8810_v36 = vmax.f32 %v19294_v17, 0.0 }
 0x279   : > { %v13918_v33 = vld [vmem:[%s17888_s17 + $0x4] ss:$0 sm:$0xff]  ;;  %5092 = vst.msk [vmem:[#allocation2 + $0x69] sm:$0xff] %vm710_vm3, %v5060_v0  ;;  %v16811_v23 = vadd.f32 %v19161_v50, %v4233_v63  ;;  %v4198_v31 = vmul.f32 %v16781_v15, %v19221_v49  ;;  %v19324_v28 = vld [vmem:[#allocation2 + $0x30] sm:$0xff]  ;;  %v19328_v13 = vld [vmem:[#allocation2 + $0x38] sm:$0xff]  ;;  %v19343_v39 = vadd.f32 %v13917_v38, %v19239_v43  ;;  %v8811_v17 = vmax.f32 %v19309_v12, 0.0 }
 0x27a   : > { %v19326_v46 = vld [vmem:[#allocation2 + $0x31] sm:$0xff]  ;;  %5091 = vst.msk [vmem:[#allocation2 + $0x61] sm:$0xff] %vm710_vm3, %v5059_v35  ;;  %v16812_v9 = vadd.f32 %v19163_v61, %v4232_v7  ;;  %v4197_v25 = vmul.f32 %v16782_v5, %v19221_v49  ;;  %v15687_v2 = vpop.f32.mrb[12].mxu0  ;;  %v19336_v50 = vld [vmem:[#allocation2 + $0x39] sm:$0xff]  ;;  %v19352_v15 = vadd.f32 %v13917_v38, %v19245_v52 }
 0x27b   : > { %21927 = vst [vmem:[#allocation33_spill] sm:$0xff] %v19326_v46  ;;  %15825 = vmatprep.mubr.msk.f32.mxu1 %vm710_vm3, %v19326_v46  ;;  %21928 = vst [vmem:[#allocation34_spill] sm:$0xff] %v19336_v50  ;;  %v19338_v11 = vld [vmem:[#allocation2 + $0x32] sm:$0xff]  ;;  %v19340_v19 = vld [vmem:[#allocation2 + $0x3a] sm:$0xff]  ;;  %v5062_v41 = vmax.f32 %v16811_v23, 0.0  ;;  %v4235_v61 = vadd.f32 %v19227_v34, %v4198_v31  ;;  %v16783_v0 = vadd.f32 %v15687_v2, %v19075_v27  ;;  %v4051_v63 = vpop.f32.mrb[13].mxu0 }
 0x27c   : > { %15826 = vmatmul.mubr.msk.f32.gmra.mrb[68].mxu1 %vm710_vm3, %v19336_v50  ;;  %8840 = vst.msk [vmem:[#allocation2 + $0x31] sm:$0xff] %vm710_vm3, %v8808_v1  ;;  %8841 = vst.msk [vmem:[#allocation2 + $0x39] sm:$0xff] %vm710_vm3, %v8809_v44  ;;  %v5061_v58 = vmax.f32 %v16812_v9, 0.0  ;;  %v4234_v35 = vadd.f32 %v19227_v34, %v4197_v25  ;;  %v16784_v12 = vadd.f32 %v4051_v63, %v19077_v51  ;;  %v19357_v7 = vld [vmem:[#allocation2 + $0x51] sm:$0xff] }
 0x27d   : > { %21929 = vst [vmem:[#allocation35_spill] sm:$0xff] %v19357_v7  ;;  %v19359_v5 = vld [vmem:[#allocation2 + $0x52] sm:$0xff]  ;;  %5094 = vst.msk [vmem:[#allocation2 + $0x81] sm:$0xff] %vm710_vm3, %v5062_v41  ;;  %v16813_v27 = vadd.f32 %v19169_v4, %v4235_v61  ;;  %v4200_v1 = vmul.f32 %v16783_v0, %v19221_v49  ;;  %v19364_v23 = vld [vmem:[#allocation2 + $0x48] sm:$0xff]  ;;  %v19369_v44 = vadd.f32 %v13918_v33, %v19239_v43  ;;  %v8812_v4 = vmax.f32 %v19343_v39, 0.0 }
 0x27e   : > { %v19366_v38 = vld [vmem:[#allocation2 + $0x49] sm:$0xff]  ;;  %5093 = vst.msk [vmem:[#allocation2 + $0x79] sm:$0xff] %vm710_vm3, %v5061_v58  ;;  %v16814_v51 = vadd.f32 %v19172_v6, %v4234_v35  ;;  %v4199_v9 = vmul.f32 %v16784_v12, %v19221_v49  ;;  %v15690_v25 = vpop.f32.mrb[14].mxu0  ;;  %v19382_v61 = vadd.f32 %v13918_v33, %v19245_v52  ;;  %v13919_v35 = vld [vmem:[%s17888_s17 + $0x5] ss:$0 sm:$0xff]  ;;  %v8813_v39 = vmax.f32 %v19352_v15, 0.0 }
 0x27f   : > { %21930 = vst [vmem:[#allocation36_spill] sm:$0xff] %v19366_v38  ;;  %v19371_v31 = vld [vmem:[#allocation2 + $0x50] sm:$0xff]  ;;  %15828 = vmatprep.mubr.msk.f32.mxu1 %vm710_vm3, %v19366_v38  ;;  %v8905_v2 = vld [vmem:[#allocation2 + $0x19] sm:$0xff]  ;;  %v8906_v0 = vld [vmem:[#allocation2 + $0x21] sm:$0xff]  ;;  %v5064_v63 = vmax.f32 %v16813_v27, 0.0  ;;  %v4237_v58 = vadd.f32 %v19227_v34, %v4200_v1  ;;  %v16785_v6 = vadd.f32 %v15690_v25, %v19083_v54  ;;  %v4061_v12 = vpop.f32.mrb[15].mxu0 }
 0x280   : > { %v19379_v41 = vld [vmem:[#allocation2 + $0x4a] sm:$0xff]  ;;  %16272 = vmatprep.mubr.msk.f32.mxu0 %vm710_vm3, %v8905_v2  ;;  %15829 = vmatmul.mubr.msk.f32.gmra.mrb[70].mxu1 %vm710_vm3, %v19357_v7  ;;  %v5063_v33 = vmax.f32 %v16814_v51, 0.0  ;;  %v4236_v27 = vadd.f32 %v19227_v34, %v4199_v9  ;;  %v13920_v38 = vld [vmem:[%s17888_s17 + $0x6] ss:$0 sm:$0xff]  ;;  %v16786_v1 = vadd.f32 %v4061_v12, %v19085_v56 }
 0x281   : > { %8842 = vst.msk [vmem:[#allocation2 + $0x49] sm:$0xff] %vm710_vm3, %v8810_v36  ;;  %8843 = vst.msk [vmem:[#allocation2 + $0x51] sm:$0xff] %vm710_vm3, %v8811_v17  ;;  %16273 = vmatmul.mubr.msk.f32.gmra.mrb[34].mxu0 %vm710_vm3, %v8906_v0  ;;  %v19397_v54 = vld [vmem:[#allocation2 + $0x69] sm:$0xff]  ;;  %v16815_v36 = vadd.f32 %v19174_v8, %v4237_v58  ;;  %v4202_v15 = vmul.f32 %v16785_v6, %v19221_v49  ;;  %v8814_v17 = vmax.f32 %v19369_v44, 0.0  ;;  %v19405_v51 = vld [vmem:[#allocation2 + $0x60] sm:$0xff]  ;;  %v8815_v8 = vmax.f32 %v19382_v61, 0.0 }
 0x282   : > { %21931 = vst [vmem:[#allocation37_spill] sm:$0xff] %v19397_v54  ;;  %v19399_v25 = vld [vmem:[#allocation2 + $0x6a] sm:$0xff]  ;;  %5096 = vst.msk [vmem:[#allocation2 + $0x99] sm:$0xff] %vm710_vm3, %v5064_v63  ;;  %v19407_v9 = vld [vmem:[#allocation2 + $0x61] sm:$0xff]  ;;  %v16816_v56 = vadd.f32 %v19176_v10, %v4236_v27  ;;  %v19414_v0 = vadd.f32 %v13919_v35, %v19239_v43  ;;  %v4201_v63 = vmul.f32 %v16786_v1, %v19221_v49  ;;  %v15693_v58 = vpop.f32.mrb[16].mxu0 }
 0x283   : > { %21932 = vst [vmem:[#allocation38_spill] sm:$0xff] %v19407_v9  ;;  %v19409_v2 = vld [vmem:[#allocation2 + $0x68] sm:$0xff]  ;;  %5095 = vst.msk [vmem:[#allocation2 + $0x91] sm:$0xff] %vm710_vm3, %v5063_v33  ;;  %15831 = vmatprep.mubr.msk.f32.mxu1 %vm710_vm3, %v19407_v9  ;;  %v8907_v44 = vld [vmem:[#allocation2 + $0x31] sm:$0xff]  ;;  %v5066_v7 = vmax.f32 %v16815_v36, 0.0  ;;  %v4239_v33 = vadd.f32 %v19227_v34, %v4202_v15  ;;  %v19424_v10 = vadd.f32 %v13919_v35, %v19245_v52  ;;  %v4071_v61 = vpop.f32.mrb[17].mxu0 }
 0x284   : > { %v19420_v6 = vld [vmem:[#allocation2 + $0x62] sm:$0xff]  ;;  %v8908_v12 = vld [vmem:[#allocation2 + $0x39] sm:$0xff]  ;;  %v16787_v27 = vadd.f32 %v15693_v58, %v19091_v57  ;;  %16275 = vmatprep.mubr.msk.f32.mxu0 %vm710_vm3, %v8907_v44  ;;  %15832 = vmatmul.mubr.msk.f32.gmra.mrb[72].mxu1 %vm710_vm3, %v19397_v54  ;;  %v5065_v1 = vmax.f32 %v16816_v56, 0.0  ;;  %v4238_v36 = vadd.f32 %v19227_v34, %v4201_v63  ;;  %v16788_v15 = vadd.f32 %v4071_v61, %v19093_v59 }
 0x285   : > { %8844 = vst.msk [vmem:[#allocation2 + $0x61] sm:$0xff] %vm710_vm3, %v8812_v4  ;;  %8845 = vst.msk [vmem:[#allocation2 + $0x69] sm:$0xff] %vm710_vm3, %v8813_v39  ;;  %v13921_v9 = vld [vmem:[%s17888_s17 + $0x7] ss:$0 sm:$0xff]  ;;  %16276 = vmatmul.mubr.msk.f32.gmra.mrb[36].mxu0 %vm710_vm3, %v8908_v12  ;;  %v16817_v58 = vadd.f32 %v19181_v14, %v4239_v33  ;;  %v19443_v4 = vadd.f32 %v13920_v38, %v19239_v43  ;;  %v19446_v56 = vld [vmem:[#allocation2 + $0x78] sm:$0xff]  ;;  %v8816_v44 = vmax.f32 %v19414_v0, 0.0 }
 0x286   : > { %v19436_v35 = vld [vmem:[#allocation2 + $0x81] sm:$0xff]  ;;  %5098 = vst.msk [vmem:[#allocation2 + $0xb1] sm:$0xff] %vm710_vm3, %v5066_v7  ;;  %v4204_v39 = vmul.f32 %v16787_v27, %v19221_v49  ;;  %v19448_v63 = vld [vmem:[#allocation2 + $0x79] sm:$0xff]  ;;  %5097 = vst.msk [vmem:[#allocation2 + $0xa9] sm:$0xff] %vm710_vm3, %v5065_v1  ;;  %v16818_v12 = vadd.f32 %v19184_v16, %v4238_v36  ;;  %v19456_v7 = vadd.f32 %v13920_v38, %v19245_v52  ;;  %v15696_v33 = vpop.f32.mrb[18].mxu0  ;;  %v8817_v1 = vmax.f32 %v19424_v10, 0.0 }
 0x287   : > { %21933 = vst [vmem:[#allocation39_spill] sm:$0xff] %v19436_v35  ;;  %v19438_v57 = vld [vmem:[#allocation2 + $0x82] sm:$0xff]  ;;  %21935 = vst [vmem:[#allocation41_spill] sm:$0xff] %v19448_v63  ;;  %v4203_v14 = vmul.f32 %v16788_v15, %v19221_v49  ;;  %15834 = vmatprep.mubr.msk.f32.mxu1 %vm710_vm3, %v19448_v63  ;;  %v19461_v61 = vld [vmem:[#allocation2 + $0x7a] sm:$0xff]  ;;  %v5068_v50 = vmax.f32 %v16817_v58, 0.0  ;;  %v16789_v16 = vadd.f32 %v15696_v33, %v19099_v60  ;;  %v4081_v38 = vpop.f32.mrb[19].mxu0 }
 0x288   : > { %21934 = vst [vmem:[#allocation40_spill] sm:$0xff] %v19438_v57  ;;  %v19450_v59 = vld [vmem:[#allocation2 + $0x80] sm:$0xff]  ;;  %v8909_v27 = vld [vmem:[#allocation2 + $0x49] sm:$0xff]  ;;  %21936 = vst [vmem:[#allocation42_spill] sm:$0xff] %v19461_v61  ;;  %v4241_v0 = vadd.f32 %v19227_v34, %v4204_v39  ;;  %15835 = vmatmul.mubr.msk.f32.gmra.mrb[74].mxu1 %vm710_vm3, %v19436_v35  ;;  %v5067_v15 = vmax.f32 %v16818_v12, 0.0  ;;  %v16790_v10 = vadd.f32 %v4081_v38, %v19101_v53 }
 0x289   : > { %v8910_v54 = vld [vmem:[#allocation2 + $0x51] sm:$0xff]  ;;  %16278 = vmatprep.mubr.msk.f32.mxu0 %vm710_vm3, %v8909_v27  ;;  %8846 = vst.msk [vmem:[#allocation2 + $0x79] sm:$0xff] %vm710_vm3, %v8814_v17  ;;  %8847 = vst.msk [vmem:[#allocation2 + $0x81] sm:$0xff] %vm710_vm3, %v8815_v8  ;;  %v13922_v36 = vld [vmem:[%s17888_s17 + $0x8] ss:$0 sm:$0xff]  ;;  %v4240_v58 = vadd.f32 %v19227_v34, %v4203_v14  ;;  %v19481_v33 = vadd.f32 %v13921_v9, %v19239_v43  ;;  %v4206_v8 = vmul.f32 %v16789_v16, %v19221_v49 }
 0x28a   : > { %16279 = vmatmul.mubr.msk.f32.gmra.mrb[38].mxu0 %vm710_vm3, %v8910_v54  ;;  %v19475_v39 = vld [vmem:[#allocation2 + $0x99] sm:$0xff]  ;;  %5100 = vst.msk [vmem:[#allocation2 + $0xc9] sm:$0xff] %vm710_vm3, %v5068_v50  ;;  %v16819_v17 = vadd.f32 %v19186_v18, %v4241_v0  ;;  %v19485_v12 = vld [vmem:[#allocation2 + $0x90] sm:$0xff]  ;;  %v8818_v54 = vmax.f32 %v19443_v4, 0.0  ;;  %5099 = vst.msk [vmem:[#allocation2 + $0xc1] sm:$0xff] %vm710_vm3, %v5067_v15  ;;  %v19494_v27 = vadd.f32 %v13921_v9, %v19245_v52  ;;  %v15699_v0 = vpop.f32.mrb[20].mxu0 }
 0x28b   : > { %21937 = vst [vmem:[#allocation43_spill] sm:$0xff] %v19475_v39  ;;  %v19477_v60 = vld [vmem:[#allocation2 + $0x9a] sm:$0xff]  ;;  %v19487_v14 = vld [vmem:[#allocation2 + $0x91] sm:$0xff]  ;;  %v16820_v50 = vadd.f32 %v19188_v20, %v4240_v58  ;;  %v4205_v18 = vmul.f32 %v16790_v10, %v19221_v49  ;;  %v8819_v4 = vmax.f32 %v19456_v7, 0.0  ;;  %v4243_v15 = vadd.f32 %v19227_v34, %v4206_v8  ;;  %v4091_v20 = vpop.f32.mrb[21].mxu0 }
 0x28c   : > { %21938 = vst [vmem:[#allocation44_spill] sm:$0xff] %v19477_v60  ;;  %21939 = vst [vmem:[#allocation45_spill] sm:$0xff] %v19487_v14  ;;  %v19489_v53 = vld [vmem:[#allocation2 + $0x98] sm:$0xff]  ;;  %15837 = vmatprep.mubr.msk.f32.mxu1 %vm710_vm3, %v19487_v14  ;;  %v8911_v16 = vld [vmem:[#allocation2 + $0x61] sm:$0xff]  ;;  %v5070_v63 = vmax.f32 %v16819_v17, 0.0  ;;  %v16791_v9 = vadd.f32 %v15699_v0, %v19107_v29  ;;  %v16792_v7 = vadd.f32 %v4091_v20, %v19109_v32 }
 0x28d   : > { %v19500_v38 = vld [vmem:[#allocation2 + $0x92] sm:$0xff]  ;;  %v8912_v35 = vld [vmem:[#allocation2 + $0x69] sm:$0xff]  ;;  %16281 = vmatprep.mubr.msk.f32.mxu0 %vm710_vm3, %v8911_v16  ;;  %15838 = vmatmul.mubr.msk.f32.gmra.mrb[76].mxu1 %vm710_vm3, %v19475_v39  ;;  %v5069_v10 = vmax.f32 %v16820_v50, 0.0  ;;  %v4242_v14 = vadd.f32 %v19227_v34, %v4205_v18  ;;  %v19519_v8 = vadd.f32 %v13922_v36, %v19239_v43  ;;  %v19532_v0 = vadd.f32 %v13922_v36, %v19245_v52 }
 0x28e   : > { %21940 = vst [vmem:[#allocation46_spill] sm:$0xff] %v19500_v38  ;;  %8848 = vst.msk [vmem:[#allocation2 + $0x91] sm:$0xff] %vm710_vm3, %v8816_v44  ;;  %v13923_v58 = vld [vmem:[%s17888_s17 + $0x9] ss:$0 sm:$0xff]  ;;  %16282 = vmatmul.mubr.msk.f32.gmra.mrb[40].mxu0 %vm710_vm3, %v8912_v35  ;;  %v19514_v17 = vld [vmem:[#allocation2 + $0xb1] sm:$0xff]  ;;  %v16821_v44 = vadd.f32 %v19190_v22, %v4243_v15  ;;  %v8820_v35 = vmax.f32 %v19481_v33, 0.0  ;;  %v4207_v22 = vmul.f32 %v16792_v7, %v19221_v49 }
 0x28f   : > { %8849 = vst.msk [vmem:[#allocation2 + $0x99] sm:$0xff] %vm710_vm3, %v8817_v1  ;;  %21941 = vst [vmem:[#allocation47_spill] sm:$0xff] %v19514_v17  ;;  %v19516_v29 = vld [vmem:[#allocation2 + $0xb2] sm:$0xff]  ;;  %v4208_v1 = vmul.f32 %v16791_v9, %v19221_v49  ;;  %v19524_v50 = vld [vmem:[#allocation2 + $0xa8] sm:$0xff]  ;;  %v16822_v16 = vadd.f32 %v19192_v24, %v4242_v14  ;;  %v8821_v33 = vmax.f32 %v19494_v27, 0.0 }
 0x290   : > { %21942 = vst [vmem:[#allocation48_spill] sm:$0xff] %v19516_v29  ;;  %5102 = vst.msk [vmem:[#allocation2 + $0xe1] sm:$0xff] %vm710_vm3, %v5070_v63  ;;  %v19526_v18 = vld [vmem:[#allocation2 + $0xa9] sm:$0xff]  ;;  %v15702_v63 = vpop.f32.mrb[22].mxu0  ;;  %v8913_v15 = vld [vmem:[#allocation2 + $0x79] sm:$0xff]  ;;  %v5072_v39 = vmax.f32 %v16821_v44, 0.0 }
 0x291   : > { %21943 = vst [vmem:[#allocation49_spill] sm:$0xff] %v19526_v18  ;;  %v19528_v32 = vld [vmem:[#allocation2 + $0xb0] sm:$0xff]  ;;  %5101 = vst.msk [vmem:[#allocation2 + $0xd9] sm:$0xff] %vm710_vm3, %v5069_v10  ;;  %15840 = vmatprep.mubr.msk.f32.mxu1 %vm710_vm3, %v19526_v18  ;;  %v8914_v20 = vld [vmem:[#allocation2 + $0x81] sm:$0xff]  ;;  %v4245_v36 = vadd.f32 %v19227_v34, %v4208_v1  ;;  %v16793_v10 = vadd.f32 %v15702_v63, %v19114_v26  ;;  %16284 = vmatprep.mubr.msk.f32.mxu0 %vm710_vm3, %v8913_v15  ;;  %v4101_v24 = vpop.f32.mrb[23].mxu0  ;;  %v5071_v7 = vmax.f32 %v16822_v16, 0.0 }
 0x292   : > { %v19539_v9 = vld [vmem:[#allocation2 + $0xaa] sm:$0xff]  ;;  %15841 = vmatmul.mubr.msk.f32.gmra.mrb[78].mxu1 %vm710_vm3, %v19514_v17  ;;  %v4244_v18 = vadd.f32 %v19227_v34, %v4207_v22  ;;  %v16794_v27 = vadd.f32 %v4101_v24, %v19116_v30  ;;  %16285 = vmatmul.mubr.msk.f32.gmra.mrb[42].mxu0 %vm710_vm3, %v8914_v20  ;;  %v19558_v1 = vadd.f32 %v13923_v58, %v19239_v43  ;;  %v19563_v16 = vld [vmem:[#allocation2 + $0xc0] sm:$0xff]  ;;  %v8822_v63 = vmax.f32 %v19519_v8, 0.0 }
 0x293   : > { %21944 = vst [vmem:[#allocation50_spill] sm:$0xff] %v19539_v9  ;;  %8850 = vst.msk [vmem:[#allocation2 + $0xa9] sm:$0xff] %vm710_vm3, %v8818_v54  ;;  %v13924_v14 = vld [vmem:[%s17888_s17 + $0xa] ss:$0 sm:$0xff]  ;;  %v16823_v54 = vadd.f32 %v19194_v21, %v4245_v36  ;;  %v19565_v22 = vld [vmem:[#allocation2 + $0xc1] sm:$0xff]  ;;  %v19571_v15 = vadd.f32 %v13923_v58, %v19245_v52  ;;  %v8823_v8 = vmax.f32 %v19532_v0, 0.0 }
 0x294   : > { %8851 = vst.msk [vmem:[#allocation2 + $0xb1] sm:$0xff] %vm710_vm3, %v8819_v4  ;;  %v19553_v44 = vld [vmem:[#allocation2 + $0xc9] sm:$0xff]  ;;  %5104 = vst.msk [vmem:[#allocation2 + $0xf9] sm:$0xff] %vm710_vm3, %v5072_v39  ;;  %v4210_v4 = vmul.f32 %v16793_v10, %v19221_v49  ;;  %v16824_v20 = vadd.f32 %v19196_v62, %v4244_v18  ;;  %v4209_v21 = vmul.f32 %v16794_v27, %v19221_v49  ;;  %v15705_v39 = vpop.f32.mrb[24].mxu0  ;;  %15843 = vmatprep.mubr.msk.f32.mxu1 %vm710_vm3, %v19565_v22 }
 0x295   : > { %21945 = vst [vmem:[#allocation51_spill] sm:$0xff] %v19553_v44  ;;  %v19555_v26 = vld [vmem:[#allocation2 + $0xca] sm:$0xff]  ;;  %21947 = vst [vmem:[#allocation53_spill] sm:$0xff] %v19563_v16  ;;  %v19578_v10 = vld [vmem:[#allocation2 + $0xc2] sm:$0xff]  ;;  %v5074_v17 = vmax.f32 %v16823_v54, 0.0  ;;  %v4111_v62 = vpop.f32.mrb[25].mxu0 }
 0x296   : > { %21946 = vst [vmem:[#allocation52_spill] sm:$0xff] %v19555_v26  ;;  %21948 = vst [vmem:[#allocation54_spill] sm:$0xff] %v19565_v22  ;;  %v19567_v30 = vld [vmem:[#allocation2 + $0xc8] sm:$0xff]  ;;  %v8915_v36 = vld [vmem:[#allocation2 + $0x91] sm:$0xff]  ;;  %v4247_v58 = vadd.f32 %v19227_v34, %v4210_v4  ;;  %15844 = vmatmul.mubr.msk.f32.gmra.mrb[80].mxu1 %vm710_vm3, %v19553_v44  ;;  %v5073_v27 = vmax.f32 %v16824_v20, 0.0  ;;  %v4246_v22 = vadd.f32 %v19227_v34, %v4209_v21 }
 0x297   : > { %5103 = vst.msk [vmem:[#allocation2 + $0xf1] sm:$0xff] %vm710_vm3, %v5071_v7  ;;  %21949 = vst [vmem:[#allocation55_spill] sm:$0xff] %v19578_v10  ;;  %v8916_v24 = vld [vmem:[#allocation2 + $0x99] sm:$0xff]  ;;  %v16795_v7 = vadd.f32 %v15705_v39, %v19119_v45  ;;  %16287 = vmatprep.mubr.msk.f32.mxu0 %vm710_vm3, %v8915_v36  ;;  %v13925_v18 = vld [vmem:[%s17888_s17 + $0xb] ss:$0 sm:$0xff]  ;;  %v19597_v39 = vadd.f32 %v13924_v14, %v19239_v43 }
 0x298   : > { %8852 = vst.msk [vmem:[#allocation2 + $0xc1] sm:$0xff] %vm710_vm3, %v8820_v35  ;;  %8853 = vst.msk [vmem:[#allocation2 + $0xc9] sm:$0xff] %vm710_vm3, %v8821_v33  ;;  %v21950_v0 = vld [vmem:[#allocation18_spill] sm:$0xff]  ;;  %16288 = vmatmul.mubr.msk.f32.gmra.mrb[44].mxu0 %vm710_vm3, %v8916_v24  ;;  %v19592_v4 = vld [vmem:[#allocation2 + $0xe1] sm:$0xff]  ;;  %v8824_v24 = vmax.f32 %v19558_v1, 0.0  ;;  %v8825_v1 = vmax.f32 %v19571_v15, 0.0 }
 0x299   : > { %v16796_v54 = vadd.f32 %v4111_v62, %v21950_v0  ;;  %21951 = vst [vmem:[#allocation18_spill] sm:$0xff] %v19592_v4  ;;  %v19594_v45 = vld [vmem:[#allocation2 + $0xe2] sm:$0xff]  ;;  %5106 = vst.msk [vmem:[#allocation2 + $0x111] sm:$0xff] %vm710_vm3, %v5074_v17  ;;  %v4212_v33 = vmul.f32 %v16795_v7, %v19221_v49  ;;  %v19602_v20 = vld [vmem:[#allocation2 + $0xd8] sm:$0xff]  ;;  %v19610_v0 = vadd.f32 %v13924_v14, %v19245_v52 }
 0x29a   : > { %21952 = vst [vmem:[#allocation56_spill] sm:$0xff] %v19594_v45  ;;  %v21953_v35 = vld [vmem:[#allocation16_spill] sm:$0xff]  ;;  %5105 = vst.msk [vmem:[#allocation2 + $0x109] sm:$0xff] %vm710_vm3, %v5073_v27  ;;  %v21956_v44 = vld [vmem:[#allocation15_spill] sm:$0xff] }
 0x29b   : > { %v16825_v36 = vadd.f32 %v21953_v35, %v4247_v58  ;;  %21954 = vst [vmem:[#allocation16_spill] sm:$0xff] %v19602_v20  ;;  %v19604_v21 = vld [vmem:[#allocation2 + $0xd9] sm:$0xff]  ;;  %v16826_v46 = vadd.f32 %v21956_v44, %v4246_v22  ;;  %v4211_v17 = vmul.f32 %v16796_v54, %v19221_v49  ;;  %v15708_v58 = vpop.f32.mrb[26].mxu0  ;;  %v8917_v7 = vld [vmem:[#allocation2 + $0xa9] sm:$0xff]  ;;  %v8918_v48 = vld [vmem:[#allocation2 + $0xb1] sm:$0xff]  ;;  %v4249_v14 = vadd.f32 %v19227_v34, %v4212_v33 }
 0x29c   : > { %21955 = vst [vmem:[#allocation57_spill] sm:$0xff] %v19604_v21  ;;  %v19606_v62 = vld [vmem:[#allocation2 + $0xe0] sm:$0xff]  ;;  %15846 = vmatprep.mubr.msk.f32.mxu1 %vm710_vm3, %v19604_v21  ;;  %v21958_v45 = vld [vmem:[#allocation17_spill] sm:$0xff]  ;;  %16290 = vmatprep.mubr.msk.f32.mxu0 %vm710_vm3, %v8917_v7  ;;  %v4121_v44 = vpop.f32.mrb[27].mxu0  ;;  %v8827_v26 = vmax.f32 %v19610_v0, 0.0  ;;  %v21968_v10 = vld [vmem:[#allocation19_spill] sm:$0xff] }
 0x29d   : > { %v19617_v35 = vld [vmem:[#allocation2 + $0xda] sm:$0xff]  ;;  %v5076_v55 = vmax.f32 %v16825_v36, 0.0  ;;  %v16797_v27 = vadd.f32 %v15708_v58, %v21958_v45  ;;  %15847 = vmatmul.mubr.msk.f32.gmra.mrb[82].mxu1 %vm710_vm3, %v19592_v4  ;;  %v13926_v22 = vld [vmem:[%s17888_s17 + $0xc] ss:$0 sm:$0xff]  ;;  %v5075_v54 = vmax.f32 %v16826_v46, 0.0  ;;  %v4248_v21 = vadd.f32 %v19227_v34, %v4211_v17  ;;  %16291 = vmatmul.mubr.msk.f32.gmra.mrb[46].mxu0 %vm710_vm3, %v8918_v48 }
 0x29e   : > { %21957 = vst [vmem:[#allocation15_spill] sm:$0xff] %v19617_v35  ;;  %8854 = vst.msk [vmem:[#allocation2 + $0xd9] sm:$0xff] %vm710_vm3, %v8822_v63  ;;  %v21959_v15 = vld [vmem:[#allocation20_spill] sm:$0xff]  ;;  %v19636_v58 = vadd.f32 %v13925_v18, %v19239_v43  ;;  %v21962_v63 = vld [vmem:[#allocation23_spill] sm:$0xff]  ;;  %v8826_v48 = vmax.f32 %v19597_v39, 0.0 }
 0x29f   : > { %8855 = vst.msk [vmem:[#allocation2 + $0xe1] sm:$0xff] %vm710_vm3, %v8823_v8  ;;  %v16798_v36 = vadd.f32 %v4121_v44, %v21959_v15  ;;  %v19631_v33 = vld [vmem:[#allocation2 + $0xf9] sm:$0xff]  ;;  %5108 = vst.msk [vmem:[#allocation2 + $0x129] sm:$0xff] %vm710_vm3, %v5076_v55  ;;  %v16827_v7 = vadd.f32 %v21962_v63, %v4249_v14  ;;  %v4214_v8 = vmul.f32 %v16797_v27, %v19221_v49  ;;  %v19641_v46 = vld [vmem:[#allocation2 + $0xf0] sm:$0xff]  ;;  %v15711_v14 = vpop.f32.mrb[28].mxu0 }
 0x2a0   : > { %21960 = vst [vmem:[#allocation17_spill] sm:$0xff] %v19631_v33  ;;  %v19633_v45 = vld [vmem:[#allocation2 + $0xfa] sm:$0xff]  ;;  %21963 = vst [vmem:[#allocation23_spill] sm:$0xff] %v19641_v46  ;;  %v19643_v17 = vld [vmem:[#allocation2 + $0xf1] sm:$0xff]  ;;  %v19649_v15 = vadd.f32 %v13925_v18, %v19245_v52  ;;  %v16799_v29 = vadd.f32 %v15711_v14, %v21968_v10 }
 0x2a1   : > { %21961 = vst [vmem:[#allocation20_spill] sm:$0xff] %v19633_v45  ;;  %21964 = vst [vmem:[#allocation58_spill] sm:$0xff] %v19643_v17  ;;  %v19645_v44 = vld [vmem:[#allocation2 + $0xf8] sm:$0xff]  ;;  %v21966_v4 = vld [vmem:[#allocation24_spill] sm:$0xff]  ;;  %v4213_v55 = vmul.f32 %v16798_v36, %v19221_v49  ;;  %15849 = vmatprep.mubr.msk.f32.mxu1 %vm710_vm3, %v19643_v17  ;;  %v5078_v39 = vmax.f32 %v16827_v7, 0.0  ;;  %v4251_v18 = vadd.f32 %v19227_v34, %v4214_v8 }
 0x2a2   : > { %21965 = vst [vmem:[#allocation59_spill] sm:$0xff] %v19645_v44  ;;  %5107 = vst.msk [vmem:[#allocation2 + $0x121] sm:$0xff] %vm710_vm3, %v5075_v54  ;;  %v16828_v45 = vadd.f32 %v21966_v4, %v4248_v21  ;;  %v8919_v27 = vld [vmem:[#allocation2 + $0xc1] sm:$0xff]  ;;  %v19656_v63 = vld [vmem:[#allocation2 + $0xf2] sm:$0xff]  ;;  %v4131_v4 = vpop.f32.mrb[29].mxu0  ;;  %15850 = vmatmul.mubr.msk.f32.gmra.mrb[84].mxu1 %vm710_vm3, %v19631_v33  ;;  %v19674_v8 = vadd.f32 %v13926_v22, %v19239_v43 }
 0x2a3   : > { %21967 = vst [vmem:[#allocation24_spill] sm:$0xff] %v19656_v63  ;;  %v8920_v35 = vld [vmem:[#allocation2 + $0xc9] sm:$0xff]  ;;  %16293 = vmatprep.mubr.msk.f32.mxu0 %vm710_vm3, %v8919_v27  ;;  %8856 = vst.msk [vmem:[#allocation2 + $0xf1] sm:$0xff] %vm710_vm3, %v8824_v24  ;;  %v4250_v54 = vadd.f32 %v19227_v34, %v4213_v55  ;;  %v19669_v7 = vld [vmem:[#allocation2 + $0x111] sm:$0xff] }
 0x2a4   : > { %8857 = vst.msk [vmem:[#allocation2 + $0xf9] sm:$0xff] %vm710_vm3, %v8825_v1  ;;  %v5077_v21 = vmax.f32 %v16828_v45, 0.0  ;;  %v21969_v36 = vld [vmem:[#allocation21_spill] sm:$0xff]  ;;  %16294 = vmatmul.mubr.msk.f32.gmra.mrb[48].mxu0 %vm710_vm3, %v8920_v35  ;;  %21970 = vst [vmem:[#allocation19_spill] sm:$0xff] %v19669_v7  ;;  %v19671_v10 = vld [vmem:[#allocation2 + $0x112] sm:$0xff]  ;;  %v4216_v1 = vmul.f32 %v16799_v29, %v19221_v49  ;;  %v8828_v35 = vmax.f32 %v19636_v58, 0.0 }
 0x2a5   : > { %v16800_v0 = vadd.f32 %v4131_v4, %v21969_v36  ;;  %21971 = vst [vmem:[#allocation21_spill] sm:$0xff] %v19671_v10  ;;  %5110 = vst.msk [vmem:[#allocation2 + $0x141] sm:$0xff] %vm710_vm3, %v5078_v39  ;;  %v21972_v14 = vld [vmem:[#allocation25_spill] sm:$0xff]  ;;  %v19683_v27 = vld [vmem:[#allocation2 + $0x110] sm:$0xff]  ;;  %v19687_v4 = vadd.f32 %v13926_v22, %v19245_v52  ;;  %v8829_v58 = vmax.f32 %v19649_v15, 0.0 }
 0x2a6   : > { %v16829_v24 = vadd.f32 %v21972_v14, %v4251_v18  ;;  %v19679_v45 = vld [vmem:[#allocation2 + $0x108] sm:$0xff]  ;;  %21975 = vst [vmem:[#allocation61_spill] sm:$0xff] %v19683_v27  ;;  %5109 = vst.msk [vmem:[#allocation2 + $0x139] sm:$0xff] %vm710_vm3, %v5077_v21  ;;  %v21976_v36 = vld [vmem:[#allocation26_spill] sm:$0xff]  ;;  %v15714_v18 = vpop.f32.mrb[30].mxu0  ;;  %v4253_v63 = vadd.f32 %v19227_v34, %v4216_v1 }
 0x2a7   : > { %21973 = vst [vmem:[#allocation25_spill] sm:$0xff] %v19679_v45  ;;  %v19681_v55 = vld [vmem:[#allocation2 + $0x109] sm:$0xff]  ;;  %v16830_v39 = vadd.f32 %v21976_v36, %v4250_v54  ;;  %v4215_v33 = vmul.f32 %v16800_v0, %v19221_v49  ;;  %v8921_v29 = vld [vmem:[#allocation2 + $0xd9] sm:$0xff]  ;;  %v19696_v17 = vld [vmem:[#allocation2 + $0xe1] sm:$0xff]  ;;  %v4141_v54 = vpop.f32.mrb[31].mxu0 }
 0x2a8   : > { %21974 = vst [vmem:[#allocation60_spill] sm:$0xff] %v19681_v55  ;;  %15852 = vmatprep.mubr.msk.f32.mxu1 %vm710_vm3, %v19681_v55  ;;  %v19694_v14 = vld [vmem:[#allocation2 + $0x10a] sm:$0xff]  ;;  %21978 = vst [vmem:[#allocation62_spill] sm:$0xff] %v19696_v17  ;;  %v5080_v22 = vmax.f32 %v16829_v24, 0.0  ;;  %16296 = vmatprep.mubr.msk.f32.mxu0 %vm710_vm3, %v8921_v29 }
 0x2a9   : > { %21977 = vst [vmem:[#allocation26_spill] sm:$0xff] %v19694_v14  ;;  %v13927_v10 = vld [vmem:[%s17888_s17 + $0xd] ss:$0 sm:$0xff]  ;;  %v21979_v21 = vld [vmem:[#allocation22_spill] sm:$0xff]  ;;  %15853 = vmatmul.mubr.msk.f32.gmra.mrb[86].mxu1 %vm710_vm3, %v19669_v7  ;;  %8858 = vst.msk [vmem:[#allocation2 + $0x109] sm:$0xff] %vm710_vm3, %v8826_v48  ;;  %v5079_v0 = vmax.f32 %v16830_v39, 0.0  ;;  %v4252_v36 = vadd.f32 %v19227_v34, %v4215_v33  ;;  %16297 = vmatmul.mubr.msk.f32.gmra.mrb[50].mxu0 %vm710_vm3, %v19696_v17 }
 0x2aa   : > { %v16801_v9 = vadd.f32 %v15714_v18, %v21979_v21  ;;  %8859 = vst.msk [vmem:[#allocation2 + $0x111] sm:$0xff] %vm710_vm3, %v8827_v26  ;;  %v21980_v55 = vld [vmem:[#allocation14_spill] sm:$0xff]  ;;  %5112 = vst.msk [vmem:[#allocation2 + $0x159] sm:$0xff] %vm710_vm3, %v5080_v22  ;;  %v21983_v18 = vld [vmem:[#allocation27_spill] sm:$0xff]  ;;  %v8830_v21 = vmax.f32 %v19674_v8, 0.0  ;;  %v8831_v8 = vmax.f32 %v19687_v4, 0.0 }
 0x2ab   : > { %v16802_v15 = vadd.f32 %v4141_v54, %v21980_v55  ;;  %v19711_v24 = vld [vmem:[#allocation2 + $0x129] sm:$0xff]  ;;  %v16831_v29 = vadd.f32 %v21983_v18, %v4253_v63  ;;  %v19718_v26 = vld [vmem:[#allocation2 + $0x120] sm:$0xff]  ;;  %v8800_v55 = vadd.f32 %v13927_v10, %v19239_v43  ;;  %5111 = vst.msk [vmem:[#allocation2 + $0x151] sm:$0xff] %vm710_vm3, %v5079_v0 }
 0x2ac   : > { %21981 = vst [vmem:[#allocation22_spill] sm:$0xff] %v19711_v24  ;;  %v19713_v1 = vld [vmem:[#allocation2 + $0x12a] sm:$0xff]  ;;  %v4218_v48 = vmul.f32 %v16801_v9, %v19221_v49  ;;  %21984 = vst [vmem:[#allocation27_spill] sm:$0xff] %v19718_v26  ;;  %v19720_v39 = vld [vmem:[#allocation2 + $0x121] sm:$0xff] }
 0x2ad   : > { %21982 = vst [vmem:[#allocation14_spill] sm:$0xff] %v19713_v1  ;;  %21985 = vst [vmem:[#allocation63_spill] sm:$0xff] %v19720_v39  ;;  %v19722_v33 = vld [vmem:[#allocation2 + $0x128] sm:$0xff]  ;;  %v21987_v54 = vld [vmem:[#allocation28_spill] sm:$0xff]  ;;  %v4217_v22 = vmul.f32 %v16802_v15, %v19221_v49  ;;  %15855 = vmatprep.mubr.msk.f32.mxu1 %vm710_vm3, %v19720_v39  ;;  %v8801_v1 = vadd.f32 %v13927_v10, %v19245_v52  ;;  %v5082_v14 = vmax.f32 %v16831_v29, 0.0 }
 0x2ae   : > { %21986 = vst [vmem:[#allocation64_spill] sm:$0xff] %v19722_v33  ;;  %v16832_v17 = vadd.f32 %v21987_v54, %v4252_v36  ;;  %v19731_v9 = vld [vmem:[#allocation2 + $0xf1] sm:$0xff]  ;;  %v19733_v63 = vld [vmem:[#allocation2 + $0x122] sm:$0xff]  ;;  %v19735_v18 = vld [vmem:[#allocation2 + $0xf9] sm:$0xff]  ;;  %v4255_v0 = vadd.f32 %v19227_v34, %v4218_v48  ;;  %15856 = vmatmul.mubr.msk.f32.gmra.mrb[88].mxu1 %vm710_vm3, %v19711_v24 }
 0x2af   : > { %21988 = vst [vmem:[#allocation28_spill] sm:$0xff] %v19731_v9  ;;  %21989 = vst [vmem:[#allocation65_spill] sm:$0xff] %v19733_v63  ;;  %v13928_v7 = vld [vmem:[%s17888_s17 + $0xe] ss:$0 sm:$0xff]  ;;  %16299 = vmatprep.mubr.msk.f32.mxu0 %vm710_vm3, %v19731_v9  ;;  %v4254_v36 = vadd.f32 %v19227_v34, %v4217_v22  ;;  %v19750_v10 = vld [vmem:[#allocation2 + $0x141] sm:$0xff]  ;;  %v8833_v24 = vmax.f32 %v8801_v1, 0.0 }
 0x2b0   : > { %21990 = vst [vmem:[#allocation66_spill] sm:$0xff] %v19735_v18  ;;  %8860 = vst.msk [vmem:[#allocation2 + $0x121] sm:$0xff] %vm710_vm3, %v8828_v35  ;;  %v5081_v49 = vmax.f32 %v16832_v17, 0.0  ;;  %16300 = vmatmul.mubr.msk.f32.gmra.mrb[52].mxu0 %vm710_vm3, %v19735_v18  ;;  %v19752_v4 = vld [vmem:[#allocation2 + $0x142] sm:$0xff]  ;;  %v19756_v48 = vld [vmem:[#allocation2 + $0x138] sm:$0xff]  ;;  %v8802_v17 = vadd.f32 %v13928_v7, %v19239_v43  ;;  %v8803_v18 = vadd.f32 %v13928_v7, %v19245_v52 }
 0x2b1   : > { %8861 = vst.msk [vmem:[#allocation2 + $0x129] sm:$0xff] %vm710_vm3, %v8829_v58  ;;  %21991 = vst [vmem:[#allocation67_spill] sm:$0xff] %v19750_v10  ;;  %v21992_v15 = vld [vmem:[#allocation29_spill] sm:$0xff]  ;;  %v19758_v54 = vld [vmem:[#allocation2 + $0x139] sm:$0xff] }
 0x2b2   : > { %5114 = vst.msk [vmem:[#allocation2 + $0x171] sm:$0xff] %vm710_vm3, %v5082_v14  ;;  %v16833_v29 = vadd.f32 %v21992_v15, %v4255_v0  ;;  %21993 = vst [vmem:[#allocation29_spill] sm:$0xff] %v19756_v48  ;;  %v19760_v35 = vld [vmem:[#allocation2 + $0x140] sm:$0xff]  ;;  %v21996_v34 = vld [vmem:[#allocation30_spill] sm:$0xff]  ;;  %15858 = vmatprep.mubr.msk.f32.mxu1 %vm710_vm3, %v19758_v54  ;;  %v8832_v15 = vmax.f32 %v8800_v55, 0.0 }
 0x2b3   : > { %21994 = vst [vmem:[#allocation68_spill] sm:$0xff] %v19758_v54  ;;  %21995 = vst [vmem:[#allocation69_spill] sm:$0xff] %v19760_v35  ;;  %v16834_v58 = vadd.f32 %v21996_v34, %v4254_v36  ;;  %v19767_v22 = vld [vmem:[#allocation2 + $0x109] sm:$0xff]  ;;  %v19769_v14 = vld [vmem:[#allocation2 + $0x13a] sm:$0xff]  ;;  %15859 = vmatmul.mubr.msk.f32.gmra.mrb[90].mxu1 %vm710_vm3, %v19750_v10  ;;  %v8835_v34 = vmax.f32 %v8803_v18, 0.0 }
 0x2b4   : > { %5113 = vst.msk [vmem:[#allocation2 + $0x169] sm:$0xff] %vm710_vm3, %v5081_v49  ;;  %21997 = vst [vmem:[#allocation30_spill] sm:$0xff] %v19767_v22  ;;  %v19771_v0 = vld [vmem:[#allocation2 + $0x111] sm:$0xff]  ;;  %v5084_v9 = vmax.f32 %v16833_v29, 0.0  ;;  %16302 = vmatprep.mubr.msk.f32.mxu0 %vm710_vm3, %v19767_v22  ;;  %v19782_v49 = vld [vmem:[#allocation2 + $0x159] sm:$0xff]  ;;  %v8834_v29 = vmax.f32 %v8802_v17, 0.0 }
 0x2b5   : > { %21998 = vst [vmem:[#allocation70_spill] sm:$0xff] %v19769_v14  ;;  %21999 = vst [vmem:[#allocation71_spill] sm:$0xff] %v19771_v0  ;;  %v5083_v43 = vmax.f32 %v16834_v58, 0.0  ;;  %16303 = vmatmul.mubr.msk.f32.gmra.mrb[54].mxu0 %vm710_vm3, %v19771_v0  ;;  %v19784_v55 = vld [vmem:[#allocation2 + $0x15a] sm:$0xff]  ;;  %v19787_v52 = vld [vmem:[#allocation2 + $0x150] sm:$0xff] }
 0x2b6   : > { %8862 = vst.msk [vmem:[#allocation2 + $0x139] sm:$0xff] %vm710_vm3, %v8830_v21  ;;  %8863 = vst.msk [vmem:[#allocation2 + $0x141] sm:$0xff] %vm710_vm3, %v8831_v8  ;;  %v19789_v7 = vld [vmem:[#allocation2 + $0x151] sm:$0xff]  ;;  %v19938_v10 = vld [vmem:[#allocation2 + $0x80] sm:$0xff] }
 0x2b7   : > { %22000 = vst [vmem:[#allocation72_spill] sm:$0xff] %v19782_v49  ;;  %5116 = vst.msk [vmem:[#allocation2 + $0x189] sm:$0xff] %vm710_vm3, %v5084_v9  ;;  %v19791_v1 = vld [vmem:[#allocation2 + $0x158] sm:$0xff]  ;;  %15861 = vmatprep.mubr.msk.f32.mxu1 %vm710_vm3, %v19789_v7  ;;  %v19796_v21 = vld [vmem:[#allocation2 + $0x121] sm:$0xff] }
 0x2b8   : > { %22001 = vst [vmem:[#allocation73_spill] sm:$0xff] %v19787_v52  ;;  %22002 = vst [vmem:[#allocation74_spill] sm:$0xff] %v19789_v7  ;;  %v19798_v8 = vld [vmem:[#allocation2 + $0x152] sm:$0xff]  ;;  %v19800_v36 = vld [vmem:[#allocation2 + $0x129] sm:$0xff]  ;;  %16305 = vmatprep.mubr.msk.f32.mxu0 %vm710_vm3, %v19796_v21  ;;  %15862 = vmatmul.mubr.msk.f32.gmra.mrb[92].mxu1 %vm710_vm3, %v19782_v49 }
 0x2b9   : > { %22003 = vst [vmem:[#allocation75_spill] sm:$0xff] %v19791_v1  ;;  %5115 = vst.msk [vmem:[#allocation2 + $0x181] sm:$0xff] %vm710_vm3, %v5083_v43  ;;  %16306 = vmatmul.mubr.msk.f32.gmra.mrb[56].mxu0 %vm710_vm3, %v19800_v36  ;;  %v19810_v9 = vld [vmem:[#allocation2 + $0x171] sm:$0xff]  ;;  %v5117_v43 = vld [vmem:[#allocation2] sm:$0xff] }
 0x2ba   : > { %22004 = vst [vmem:[#allocation76_spill] sm:$0xff] %v19796_v21  ;;  %22005 = vst [vmem:[#allocation77_spill] sm:$0xff] %v19798_v8  ;;  %v19812_v58 = vld [vmem:[#allocation2 + $0x172] sm:$0xff]  ;;  %v19952_v39 = vld [vmem:[#allocation2 + $0xa8] sm:$0xff] }
 0x2bb   : > { %22006 = vst [vmem:[#allocation78_spill] sm:$0xff] %v19800_v36  ;;  %8864 = vst.msk [vmem:[#allocation2 + $0x151] sm:$0xff] %vm710_vm3, %v8832_v15  ;;  %v19814_v17 = vld [vmem:[#allocation2 + $0x168] sm:$0xff]  ;;  %v19818_v21 = vld [vmem:[#allocation2 + $0x170] sm:$0xff] }
 0x2bc   : > { %8865 = vst.msk [vmem:[#allocation2 + $0x159] sm:$0xff] %vm710_vm3, %v8833_v24  ;;  %22007 = vst [vmem:[#allocation79_spill] sm:$0xff] %v19810_v9  ;;  %v19816_v18 = vld [vmem:[#allocation2 + $0x169] sm:$0xff]  ;;  %v19928_v0 = vld [vmem:[#allocation2 + $0x78] sm:$0xff] }
 0x2bd   : > { %22008 = vst [vmem:[#allocation80_spill] sm:$0xff] %v19812_v58  ;;  %22009 = vst [vmem:[#allocation81_spill] sm:$0xff] %v19814_v17  ;;  %15864 = vmatprep.mubr.msk.f32.mxu1 %vm710_vm3, %v19816_v18  ;;  %v19822_v15 = vld [vmem:[#allocation2 + $0x139] sm:$0xff]  ;;  %v19824_v24 = vld [vmem:[#allocation2 + $0x16a] sm:$0xff] }
 0x2be   : > { %22010 = vst [vmem:[#allocation82_spill] sm:$0xff] %v19816_v18  ;;  %22011 = vst [vmem:[#allocation83_spill] sm:$0xff] %v19818_v21  ;;  %v19826_v49 = vld [vmem:[#allocation2 + $0x141] sm:$0xff]  ;;  %16308 = vmatprep.mubr.msk.f32.mxu0 %vm710_vm3, %v19822_v15  ;;  %15865 = vmatmul.mubr.msk.f32.gmra.mrb[94].mxu1 %vm710_vm3, %v19810_v9  ;;  %v19940_v22 = vld [vmem:[#allocation2 + $0x90] sm:$0xff] }
 0x2bf   : > { %22012 = vst [vmem:[#allocation84_spill] sm:$0xff] %v19822_v15  ;;  %22013 = vst [vmem:[#allocation85_spill] sm:$0xff] %v19824_v24  ;;  %16309 = vmatmul.mubr.msk.f32.gmra.mrb[58].mxu0 %vm710_vm3, %v19826_v49  ;;  %15869 = vmatprep.mubr.msk.f32.mxu1 %vm710_vm3, %v5117_v43  ;;  %v5118_v18 = vld [vmem:[#allocation2 + $0x8] sm:$0xff]  ;;  %v19916_v9 = vld [vmem:[#allocation2 + $0x60] sm:$0xff] }
 0x2c0   : > { %22014 = vst [vmem:[#allocation86_spill] sm:$0xff] %v19826_v49  ;;  %8866 = vst.msk [vmem:[#allocation2 + $0x169] sm:$0xff] %vm710_vm3, %v8834_v29  ;;  %v19847_v29 = vld [vmem:[%s21652_s9 + $0xc] sm:$0xf]  ;;  %v19950_v54 = vld [vmem:[#allocation2 + $0x98] sm:$0xff] }
 0x2c1   : > { %8867 = vst.msk [vmem:[#allocation2 + $0x171] sm:$0xff] %vm710_vm3, %v8835_v34  ;;  %v19926_v15 = vld [vmem:[#allocation2 + $0x68] sm:$0xff]  ;;  %22019 = vst [vmem:[#allocation91_spill] sm:$0xff] %v19938_v10 }
 0x2c2   : > { %v19837_v36 = vld [vmem:[#allocation2 + $0x151] sm:$0xff]  ;;  %15870 = vmatmul.mubr.msk.f32.vlgmr.msra.gmra.mrb[64].mxu1 %vm710_vm3, %v5118_v18  ;;  %22020 = vst [vmem:[#allocation92_spill] sm:$0xff] %v19950_v54 }
 0x2c3   : > { %22015 = vst [vmem:[#allocation87_spill] sm:$0xff] %v19837_v36  ;;  %v19839_v7 = vld [vmem:[#allocation2 + $0x159] sm:$0xff]  ;;  %16311 = vmatprep.mubr.msk.f32.mxu0 %vm710_vm3, %v19837_v36  ;;  %15872 = vmatprep.mubr.msk.f32.mxu1 %vm710_vm3, %v19287_v37  ;;  %v19914_v36 = vld [vmem:[#allocation2 + $0x50] sm:$0xff] }
 0x2c4   : > { %22016 = vst [vmem:[#allocation88_spill] sm:$0xff] %v19839_v7  ;;  %16312 = vmatmul.mubr.msk.f32.gmra.mrb[60].mxu0 %vm710_vm3, %v19839_v7  ;;  %15918 = vmatpush3.msk.msra.mxu1 %vm905_vm2, %v19265_v42  ;;  %v19870_v42 = vld [vmem:[#allocation2 + $0x18] sm:$0xff]  ;;  %v19890_v7 = vld [vmem:[#allocation2 + $0x30] sm:$0xff] }
 0x2c5   : > { %15967 = vmatprep.subr.msk.mxu1 %vm905_vm2, %v19847_v29 }
 0x2c6   : > { %15873 = vmatmul.mubr.msk.f32.gmra.mrb[66].mxu1 %vm710_vm3, %v19291_v40 }
 0x2c7   : > { %v19855_v34 = vld [vmem:[#allocation2 + $0x169] sm:$0xff]  ;;  %15875 = vmatprep.mubr.msk.f32.mxu1 %vm710_vm3, %v19324_v28 }
 0x2c8   : > { %22017 = vst [vmem:[#allocation89_spill] sm:$0xff] %v19855_v34  ;;  %v19857_v49 = vld [vmem:[#allocation2 + $0x171] sm:$0xff]  ;;  %16314 = vmatprep.mubr.msk.f32.mxu0 %vm710_vm3, %v19855_v34  ;;  %v19877_v34 = vld [vmem:[%s21653_s10 + $0xc] sm:$0xf] }
 0x2c9   : > { %22018 = vst [vmem:[#allocation90_spill] sm:$0xff] %v19857_v49  ;;  %16315 = vmatmul.mubr.msk.f32.gmra.mrb[62].mxu0 %vm710_vm3, %v19857_v49  ;;  %v17649_v49 = vld [vmem:[%s21653_s10 + $0x8] sm:$0xf] }
 0x2ca   : > { %16319 = vmatprep.mubr.msk.f32.mxu0 %vm710_vm3, %v5117_v43  ;;  %15876 = vmatmul.mubr.msk.f32.gmra.mrb[68].mxu1 %vm710_vm3, %v19328_v13  ;;  %v19888_v43 = vld [vmem:[#allocation2 + $0x20] sm:$0xff] }
 0x2cb   : > { %15878 = vmatprep.mubr.msk.f32.mxu1 %vm710_vm3, %v19364_v23 }
 0x2cd   : > { %16320 = vmatmul.mubr.msk.f32.vlgmr.msra.gmra.mrb[32].mxu0 %vm710_vm3, %v5118_v18  ;;  %v19904_v18 = vld [vmem:[#allocation2 + $0x48] sm:$0xff] }
 0x2ce   : > { %16368 = vmatpush3.msk.msra.mxu0 %vm905_vm2, %v17649_v49  ;;  %16322 = vmatprep.mubr.msk.f32.mxu0 %vm710_vm3, %v19870_v42  ;;  %v19902_v49 = vld [vmem:[#allocation2 + $0x38] sm:$0xff] }
 0x2cf   : > { %16417 = vmatprep.subr.msk.mxu0 %vm905_vm2, %v19877_v34  ;;  %15879 = vmatmul.mubr.msk.f32.gmra.mrb[70].mxu1 %vm710_vm3, %v19371_v31 }
 0x2d0   : > { %15881 = vmatprep.mubr.msk.f32.mxu1 %vm710_vm3, %v19405_v51 }
 0x2d1   : > { %16323 = vmatmul.mubr.msk.f32.gmra.mrb[34].mxu0 %vm710_vm3, %v19888_v43 }
 0x2d2   : > { %16325 = vmatprep.mubr.msk.f32.mxu0 %vm710_vm3, %v19890_v7 }
 0x2d3   : > { %15882 = vmatmul.mubr.msk.f32.gmra.mrb[72].mxu1 %vm710_vm3, %v19409_v2 }
 0x2d4   : > { %15884 = vmatprep.mubr.msk.f32.mxu1 %vm710_vm3, %v19446_v56 }
 0x2d5   : > { %16326 = vmatmul.mubr.msk.f32.gmra.mrb[36].mxu0 %vm710_vm3, %v19902_v49 }
 0x2d6   : > { %16328 = vmatprep.mubr.msk.f32.mxu0 %vm710_vm3, %v19904_v18 }
 0x2d7   : > { %15885 = vmatmul.mubr.msk.f32.gmra.mrb[74].mxu1 %vm710_vm3, %v19450_v59 }
 0x2d8   : > { %15887 = vmatprep.mubr.msk.f32.mxu1 %vm710_vm3, %v19485_v12 }
 0x2d9   : > { %16329 = vmatmul.mubr.msk.f32.gmra.mrb[38].mxu0 %vm710_vm3, %v19914_v36 }
 0x2da   : > { %16331 = vmatprep.mubr.msk.f32.mxu0 %vm710_vm3, %v19916_v9 }
 0x2db   : > { %15888 = vmatmul.mubr.msk.f32.gmra.mrb[76].mxu1 %vm710_vm3, %v19489_v53 }
 0x2dc   : > { %15890 = vmatprep.mubr.msk.f32.mxu1 %vm710_vm3, %v19524_v50 }
 0x2dd   : > { %16332 = vmatmul.mubr.msk.f32.gmra.mrb[40].mxu0 %vm710_vm3, %v19926_v15 }
 0x2de   : > { %16334 = vmatprep.mubr.msk.f32.mxu0 %vm710_vm3, %v19928_v0 }
 0x2df   : > { %15891 = vmatmul.mubr.msk.f32.gmra.mrb[78].mxu1 %vm710_vm3, %v19528_v32 }
 0x2e0   : > { %15893 = vmatprep.mubr.msk.f32.mxu1 %vm710_vm3, %v19563_v16  ;;  %v19962_v16 = vld [vmem:[#allocation2 + $0xb0] sm:$0xff] }
 0x2e1   : > { %16335 = vmatmul.mubr.msk.f32.gmra.mrb[42].mxu0 %vm710_vm3, %v19938_v10  ;;  %22021 = vst [vmem:[#allocation93_spill] sm:$0xff] %v19962_v16  ;;  %v19964_v10 = vld [vmem:[#allocation2 + $0xc0] sm:$0xff] }
 0x2e2   : > { %16337 = vmatprep.mubr.msk.f32.mxu0 %vm710_vm3, %v19940_v22 }
 0x2e3   : > { %15894 = vmatmul.mubr.msk.f32.gmra.mrb[80].mxu1 %vm710_vm3, %v19567_v30 }
 0x2e4   : > { %15896 = vmatprep.mubr.msk.f32.mxu1 %vm710_vm3, %v19602_v20  ;;  %v19974_v20 = vld [vmem:[#allocation2 + $0xc8] sm:$0xff] }
 0x2e5   : > { %16338 = vmatmul.mubr.msk.f32.gmra.mrb[44].mxu0 %vm710_vm3, %v19950_v54  ;;  %22022 = vst [vmem:[#allocation94_spill] sm:$0xff] %v19974_v20  ;;  %v19976_v54 = vld [vmem:[#allocation2 + $0xd8] sm:$0xff] }
 0x2e6   : > { %16340 = vmatprep.mubr.msk.f32.mxu0 %vm710_vm3, %v19952_v39  ;;  %22023 = vst [vmem:[#allocation95_spill] sm:$0xff] %v19976_v54 }
 0x2e7   : > { %15897 = vmatmul.mubr.msk.f32.gmra.mrb[82].mxu1 %vm710_vm3, %v19606_v62 }
 0x2e8   : > { %15899 = vmatprep.mubr.msk.f32.mxu1 %vm710_vm3, %v19641_v46  ;;  %v19986_v46 = vld [vmem:[#allocation2 + $0xe0] sm:$0xff] }
 0x2e9   : > { %16341 = vmatmul.mubr.msk.f32.gmra.mrb[46].mxu0 %vm710_vm3, %v19962_v16  ;;  %22024 = vst [vmem:[#allocation96_spill] sm:$0xff] %v19986_v46  ;;  %v19988_v16 = vld [vmem:[#allocation2 + $0xf0] sm:$0xff] }
 0x2ea   : > { %16343 = vmatprep.mubr.msk.f32.mxu0 %vm710_vm3, %v19964_v10  ;;  %22025 = vst [vmem:[#allocation97_spill] sm:$0xff] %v19988_v16 }
 0x2eb   : > { %15900 = vmatmul.mubr.msk.f32.gmra.mrb[84].mxu1 %vm710_vm3, %v19645_v44  ;;  %v20062_v44 = vld [vmem:[#allocation2 + $0x18a] sm:$0xff] }
 0x2ec   : > { %15902 = vmatprep.mubr.msk.f32.mxu1 %vm710_vm3, %v19679_v45  ;;  %v19998_v45 = vld [vmem:[#allocation2 + $0xf8] sm:$0xff]  ;;  %22034 = vst [vmem:[#allocation106_spill] sm:$0xff] %v20062_v44 }
 0x2ed   : > { %16344 = vmatmul.mubr.msk.f32.gmra.mrb[48].mxu0 %vm710_vm3, %v19974_v20  ;;  %22026 = vst [vmem:[#allocation98_spill] sm:$0xff] %v19998_v45  ;;  %v20000_v20 = vld [vmem:[#allocation2 + $0x108] sm:$0xff]  ;;  %v20133_v44 = vld [vmem:[#allocation2 + $0x52] sm:$0xff] }
 0x2ee   : > { %16346 = vmatprep.mubr.msk.f32.mxu0 %vm710_vm3, %v19976_v54  ;;  %22027 = vst [vmem:[#allocation99_spill] sm:$0xff] %v20000_v20  ;;  %v20054_v54 = vld [vmem:[#allocation2 + $0x188] sm:$0xff]  ;;  %22036 = vst [vmem:[#allocation108_spill] sm:$0xff] %v20133_v44 }
 0x2ef   : > { %15903 = vmatmul.mubr.msk.f32.gmra.mrb[86].mxu1 %vm710_vm3, %v19683_v27 }
 0x2f0   : > { %15905 = vmatprep.mubr.msk.f32.mxu1 %vm710_vm3, %v19718_v26  ;;  %v20010_v26 = vld [vmem:[#allocation2 + $0x110] sm:$0xff] }
 0x2f1   : > { %16347 = vmatmul.mubr.msk.f32.gmra.mrb[50].mxu0 %vm710_vm3, %v19986_v46  ;;  %22028 = vst [vmem:[#allocation100_spill] sm:$0xff] %v20010_v26 }
 0x2f2   : > { %16349 = vmatprep.mubr.msk.f32.mxu0 %vm710_vm3, %v19988_v16  ;;  %v20012_v16 = vld [vmem:[#allocation2 + $0x120] sm:$0xff] }
 0x2f3   : > { %15906 = vmatmul.mubr.msk.f32.gmra.mrb[88].mxu1 %vm710_vm3, %v19722_v33  ;;  %22029 = vst [vmem:[#allocation101_spill] sm:$0xff] %v20012_v16 }
 0x2f4   : > { %15908 = vmatprep.mubr.msk.f32.mxu1 %vm710_vm3, %v19756_v48  ;;  %v20022_v48 = vld [vmem:[#allocation2 + $0x128] sm:$0xff] }
 0x2f5   : > { %16350 = vmatmul.mubr.msk.f32.gmra.mrb[52].mxu0 %vm710_vm3, %v19998_v45  ;;  %22030 = vst [vmem:[#allocation102_spill] sm:$0xff] %v20022_v48  ;;  %v17650_v45 = vld [vmem:[%s17883_s23] sm:$0xff] }
 0x2f6   : > { %16352 = vmatprep.mubr.msk.f32.mxu0 %vm710_vm3, %v20000_v20  ;;  %v20024_v20 = vld [vmem:[#allocation2 + $0x138] sm:$0xff] }
 0x2f7   : > { %15909 = vmatmul.mubr.msk.f32.gmra.mrb[90].mxu1 %vm710_vm3, %v19760_v35  ;;  %22031 = vst [vmem:[#allocation103_spill] sm:$0xff] %v20024_v20  ;;  %v20037_v35 = vld [vmem:[#allocation2 + $0x150] sm:$0xff] }
 0x2f8   : > { %15911 = vmatprep.mubr.msk.f32.mxu1 %vm710_vm3, %v19787_v52  ;;  %v20034_v52 = vld [vmem:[#allocation2 + $0x140] sm:$0xff] }
 0x2f9   : > { %16353 = vmatmul.mubr.msk.f32.gmra.mrb[54].mxu0 %vm710_vm3, %v20010_v26  ;;  %22032 = vst [vmem:[#allocation104_spill] sm:$0xff] %v20034_v52  ;;  %v5831_v26 = vld [vmem:[#allocation2 + $0x2] sm:$0xff] }
 0x2fa   : > { %16355 = vmatprep.mubr.msk.f32.mxu0 %vm710_vm3, %v20012_v16  ;;  %v13929_v16 = vld [vmem:[%s17888_s17 + $0xf] ss:$0 sm:$0xff]  ;;  %s17719_s17 = smov [#allocation3]  }
 0x2fb   : > { %15912 = vmatmul.mubr.msk.f32.gmra.mrb[92].mxu1 %vm710_vm3, %v19791_v1  ;;  %v8804_v33 = vadd.f32 %v17650_v45, %v13929_v16  ;;  %v17651_v1 = vld [vmem:[%s17883_s23 + $0x8] sm:$0xff]  ;;  %v20052_v45 = vld [vmem:[#allocation2 + $0x158] sm:$0xff]  ;;  %s17652_s23 = scalar_lea.vmem %s21594_s27, 4096 }
 0x2fc   : > { %15914 = vmatprep.mubr.msk.f32.mxu1 %vm710_vm3, %v19814_v17  ;;  %v8805_v46 = vadd.f32 %v17651_v1, %v13929_v16  ;;  %v5832_v17 = vld [vmem:[#allocation2 + $0xa] sm:$0xff]  ;;  %p17653_p12 = scmp.ne.s32.totalorder %s21594_s27, %s17652_s23 }
 0x2fd   : > { %16356 = vmatmul.mubr.msk.f32.gmra.mrb[56].mxu0 %vm710_vm3, %v20022_v48  ;;  %v20048_v48 = vld [vmem:[#allocation2 + $0x181] sm:$0xff]  ;;  %v8836_v27 = vmax.f32 %v8804_v33, 0.0  ;;  %v20069_v33 = vld [vmem:[%s21652_s9 + $0x10] sm:$0xf] }
 0x2fe   : > { %16358 = vmatprep.mubr.msk.f32.mxu0 %vm710_vm3, %v20024_v20  ;;  %v20046_v20 = vld [vmem:[#allocation2 + $0x180] sm:$0xff]  ;;  %v8837_v16 = vmax.f32 %v8805_v46, 0.0  ;;  %v20058_v1 = vld [vmem:[#allocation2 + $0x168] sm:$0xff]  ;;  %v20078_v46 = vld [vmem:[#allocation2 + $0x170] sm:$0xff]  ;;  %p17654_p13 = pnand %p17653_p12, %p17845_p5 }
 0x2ff   : > { %15915 = vmatmul.mubr.msk.f32.gmra.mrb[94].mxu1 %vm710_vm3, %v19818_v21  ;;  %v20056_v21 = vld [vmem:[#allocation2 + $0x182] sm:$0xff] }
 0x300   : > { %15919 = vmatprep.mubr.msk.f32.mxu1 %vm710_vm3, %v5831_v26  ;;  %22033 = vst [vmem:[#allocation105_spill] sm:$0xff] %v20056_v21  ;;  %8868 = vst.msk [vmem:[#allocation2 + $0x181] sm:$0xff] %vm710_vm3, %v8836_v27  ;;  %v20091_v27 = vld [vmem:[#allocation2 + $0x1a] sm:$0xff]  ;;  %v20135_v21 = vld [vmem:[#allocation2 + $0x62] sm:$0xff]  ;;  %p17655_p0 = pneg %p17654_p13 }
 0x301   : > { %16359 = vmatmul.mubr.msk.f32.gmra.mrb[58].mxu0 %vm710_vm3, %v20034_v52  ;;  %v20060_v52 = vld [vmem:[#allocation2 + $0x189] sm:$0xff]  ;;  %22037 = vst [vmem:[#allocation109_spill] sm:$0xff] %v20135_v21 }
 0x302   : > { %16361 = vmatprep.mubr.msk.f32.mxu0 %vm710_vm3, %v20037_v35  ;;  %8869 = vst.msk [vmem:[#allocation2 + $0x189] sm:$0xff] %vm710_vm3, %v8837_v16  ;;  %v20109_v16 = vld [vmem:[#allocation2 + $0x32] sm:$0xff] }
 0x303   : > { %15920 = vmatmul.mubr.msk.f32.vlgmr.msra.gmra.mrb[64].mxu1 %vm710_vm3, %v5832_v17 }
 0x304   : > { %15922 = vmatprep.mubr.msk.f32.mxu1 %vm710_vm3, %v19303_v47  ;;  %15968 = vmatpush3.msk.msra.mxu1 %vm905_vm2, %v19847_v29  ;;  %v20098_v29 = vld [vmem:[%s21653_s10 + $0x10] sm:$0xf] }
 0x305   : > { %16362 = vmatmul.mubr.msk.f32.gmra.mrb[60].mxu0 %vm710_vm3, %v20052_v45  ;;  %16017 = vmatprep.subr.msk.mxu1 %vm905_vm2, %v20069_v33 }
 0x306   : > { %16364 = vmatprep.mubr.msk.f32.mxu0 %vm710_vm3, %v20058_v1 }
 0x307   : > { %15923 = vmatmul.mubr.msk.f32.gmra.mrb[66].mxu1 %vm710_vm3, %v19305_v3 }
 0x308   : > { %15925 = vmatprep.mubr.msk.f32.mxu1 %vm710_vm3, %v19338_v11 }
 0x309   : > { %16365 = vmatmul.mubr.msk.f32.gmra.mrb[62].mxu0 %vm710_vm3, %v20078_v46 }
 0x30a   : > { %16369 = vmatprep.mubr.msk.f32.mxu0 %vm710_vm3, %v5831_v26  ;;  %v20107_v26 = vld [vmem:[#allocation2 + $0x22] sm:$0xff] }
 0x30b   : > { %15926 = vmatmul.mubr.msk.f32.gmra.mrb[68].mxu1 %vm710_vm3, %v19340_v19 }
 0x30c   : > { %15928 = vmatprep.mubr.msk.f32.mxu1 %vm710_vm3, %v19379_v41 }
 0x30d   : > { %16370 = vmatmul.mubr.msk.f32.vlgmr.msra.gmra.mrb[32].mxu0 %vm710_vm3, %v5832_v17  ;;  %v20121_v17 = vld [vmem:[#allocation2 + $0x3a] sm:$0xff] }
 0x30e   : > { %16418 = vmatpush3.msk.msra.mxu0 %vm905_vm2, %v19877_v34  ;;  %16372 = vmatprep.mubr.msk.f32.mxu0 %vm710_vm3, %v20091_v27  ;;  %22035 = vst [vmem:[#allocation107_spill] sm:$0xff] %v20121_v17  ;;  %v20123_v34 = vld [vmem:[#allocation2 + $0x4a] sm:$0xff] }
 0x30f   : > { %16467 = vmatprep.subr.msk.mxu0 %vm905_vm2, %v20098_v29  ;;  %15929 = vmatmul.mubr.msk.f32.gmra.mrb[70].mxu1 %vm710_vm3, %v19359_v5 }
 0x310   : > { %15931 = vmatprep.mubr.msk.f32.mxu1 %vm710_vm3, %v19420_v6 }
 0x311   : > { %16373 = vmatmul.mubr.msk.f32.gmra.mrb[34].mxu0 %vm710_vm3, %v20107_v26 }
 0x312   : > { %16375 = vmatprep.mubr.msk.f32.mxu0 %vm710_vm3, %v20109_v16 }
 0x313   : > { %15932 = vmatmul.mubr.msk.f32.gmra.mrb[72].mxu1 %vm710_vm3, %v19399_v25 }
 0x314   : > { %15934 = vmatprep.mubr.msk.f32.mxu1 %vm710_vm3, %v19461_v61  ;;  %v20145_v61 = vld [vmem:[#allocation2 + $0x6a] sm:$0xff] }
 0x315   : > { %16376 = vmatmul.mubr.msk.f32.gmra.mrb[36].mxu0 %vm710_vm3, %v20121_v17  ;;  %22038 = vst [vmem:[#allocation110_spill] sm:$0xff] %v20145_v61  ;;  %v20147_v17 = vld [vmem:[#allocation2 + $0x7a] sm:$0xff] }
 0x316   : > { %16378 = vmatprep.mubr.msk.f32.mxu0 %vm710_vm3, %v20123_v34  ;;  %22039 = vst [vmem:[#allocation111_spill] sm:$0xff] %v20147_v17 }
 0x317   : > { %15935 = vmatmul.mubr.msk.f32.gmra.mrb[74].mxu1 %vm710_vm3, %v19438_v57  ;;  %v22040_v57 = vld [vmem:[#allocation50_spill] sm:$0xff] }
 0x318   : > { %15937 = vmatprep.mubr.msk.f32.mxu1 %vm710_vm3, %v19500_v38  ;;  %v20157_v38 = vld [vmem:[#allocation2 + $0x82] sm:$0xff] }
 0x319   : > { %16379 = vmatmul.mubr.msk.f32.gmra.mrb[38].mxu0 %vm710_vm3, %v20133_v44  ;;  %22041 = vst [vmem:[#allocation112_spill] sm:$0xff] %v20157_v38  ;;  %v20159_v44 = vld [vmem:[#allocation2 + $0x92] sm:$0xff] }
 0x31a   : > { %16381 = vmatprep.mubr.msk.f32.mxu0 %vm710_vm3, %v20135_v21  ;;  %22042 = vst [vmem:[#allocation113_spill] sm:$0xff] %v20159_v44  ;;  %v22043_v21 = vld [vmem:[#allocation48_spill] sm:$0xff] }
 0x31b   : > { %15938 = vmatmul.mubr.msk.f32.gmra.mrb[76].mxu1 %vm710_vm3, %v19477_v60  ;;  %v22044_v60 = vld [vmem:[#allocation55_spill] sm:$0xff] }
 0x31c   : > { %15940 = vmatprep.mubr.msk.f32.mxu1 %vm710_vm3, %v22040_v57  ;;  %v20169_v57 = vld [vmem:[#allocation2 + $0x9a] sm:$0xff] }
 0x31d   : > { %16382 = vmatmul.mubr.msk.f32.gmra.mrb[40].mxu0 %vm710_vm3, %v20145_v61  ;;  %22045 = vst [vmem:[#allocation114_spill] sm:$0xff] %v20169_v57  ;;  %v20171_v61 = vld [vmem:[#allocation2 + $0xaa] sm:$0xff] }
 0x31e   : > { %16384 = vmatprep.mubr.msk.f32.mxu0 %vm710_vm3, %v20147_v17  ;;  %22046 = vst [vmem:[#allocation115_spill] sm:$0xff] %v20171_v61  ;;  %v22047_v17 = vld [vmem:[#allocation52_spill] sm:$0xff] }
 0x31f   : > { %15941 = vmatmul.mubr.msk.f32.gmra.mrb[78].mxu1 %vm710_vm3, %v22043_v21  ;;  %v22048_v21 = vld [vmem:[#allocation15_spill] sm:$0xff] }
 0x320   : > { %15943 = vmatprep.mubr.msk.f32.mxu1 %vm710_vm3, %v22044_v60  ;;  %v20181_v60 = vld [vmem:[#allocation2 + $0xb2] sm:$0xff] }
 0x321   : > { %16385 = vmatmul.mubr.msk.f32.gmra.mrb[42].mxu0 %vm710_vm3, %v20157_v38  ;;  %22049 = vst [vmem:[#allocation116_spill] sm:$0xff] %v20181_v60  ;;  %v20183_v38 = vld [vmem:[#allocation2 + $0xc2] sm:$0xff] }
 0x322   : > { %16387 = vmatprep.mubr.msk.f32.mxu0 %vm710_vm3, %v20159_v44  ;;  %22050 = vst [vmem:[#allocation117_spill] sm:$0xff] %v20183_v38  ;;  %v22051_v44 = vld [vmem:[#allocation56_spill] sm:$0xff] }
 0x323   : > { %15944 = vmatmul.mubr.msk.f32.gmra.mrb[80].mxu1 %vm710_vm3, %v22047_v17  ;;  %v22052_v17 = vld [vmem:[#allocation24_spill] sm:$0xff] }
 0x324   : > { %15946 = vmatprep.mubr.msk.f32.mxu1 %vm710_vm3, %v22048_v21  ;;  %v20193_v21 = vld [vmem:[#allocation2 + $0xca] sm:$0xff] }
 0x325   : > { %16388 = vmatmul.mubr.msk.f32.gmra.mrb[44].mxu0 %vm710_vm3, %v20169_v57  ;;  %22053 = vst [vmem:[#allocation118_spill] sm:$0xff] %v20193_v21  ;;  %v20195_v57 = vld [vmem:[#allocation2 + $0xda] sm:$0xff] }
 0x326   : > { %16390 = vmatprep.mubr.msk.f32.mxu0 %vm710_vm3, %v20171_v61  ;;  %22054 = vst [vmem:[#allocation119_spill] sm:$0xff] %v20195_v57  ;;  %v22055_v61 = vld [vmem:[#allocation20_spill] sm:$0xff] }
 0x327   : > { %15947 = vmatmul.mubr.msk.f32.gmra.mrb[82].mxu1 %vm710_vm3, %v22051_v44  ;;  %v22056_v44 = vld [vmem:[#allocation26_spill] sm:$0xff] }
 0x328   : > { %15949 = vmatprep.mubr.msk.f32.mxu1 %vm710_vm3, %v22052_v17  ;;  %v20205_v17 = vld [vmem:[#allocation2 + $0xe2] sm:$0xff] }
 0x329   : > { %16391 = vmatmul.mubr.msk.f32.gmra.mrb[46].mxu0 %vm710_vm3, %v20181_v60  ;;  %22057 = vst [vmem:[#allocation20_spill] sm:$0xff] %v20205_v17  ;;  %v20207_v60 = vld [vmem:[#allocation2 + $0xf2] sm:$0xff] }
 0x32a   : > { %16393 = vmatprep.mubr.msk.f32.mxu0 %vm710_vm3, %v20183_v38  ;;  %v22058_v38 = vld [vmem:[#allocation21_spill] sm:$0xff] }
 0x32b   : > { %15950 = vmatmul.mubr.msk.f32.gmra.mrb[84].mxu1 %vm710_vm3, %v22055_v61 }
 0x32c   : > { %15952 = vmatprep.mubr.msk.f32.mxu1 %vm710_vm3, %v22056_v44  ;;  %v20217_v44 = vld [vmem:[#allocation2 + $0xfa] sm:$0xff] }
 0x32d   : > { %16394 = vmatmul.mubr.msk.f32.gmra.mrb[48].mxu0 %vm710_vm3, %v20193_v21  ;;  %22059 = vst [vmem:[#allocation21_spill] sm:$0xff] %v20217_v44  ;;  %v20219_v21 = vld [vmem:[#allocation2 + $0x10a] sm:$0xff] }
 0x32e   : > { %16396 = vmatprep.mubr.msk.f32.mxu0 %vm710_vm3, %v20195_v57  ;;  %v22060_v57 = vld [vmem:[#allocation14_spill] sm:$0xff] }
 0x32f   : > { %15953 = vmatmul.mubr.msk.f32.gmra.mrb[86].mxu1 %vm710_vm3, %v22058_v38 }
 0x330   : > { %15955 = vmatprep.mubr.msk.f32.mxu1 %vm710_vm3, %v19733_v63  ;;  %v20229_v63 = vld [vmem:[#allocation2 + $0x112] sm:$0xff] }
 0x331   : > { %16397 = vmatmul.mubr.msk.f32.gmra.mrb[50].mxu0 %vm710_vm3, %v20205_v17  ;;  %22061 = vst [vmem:[#allocation14_spill] sm:$0xff] %v20229_v63  ;;  %v20231_v17 = vld [vmem:[#allocation2 + $0x122] sm:$0xff] }
 0x332   : > { %16399 = vmatprep.mubr.msk.f32.mxu0 %vm710_vm3, %v20207_v60 }
 0x333   : > { %15956 = vmatmul.mubr.msk.f32.gmra.mrb[88].mxu1 %vm710_vm3, %v22060_v57 }
 0x334   : > { %15958 = vmatprep.mubr.msk.f32.mxu1 %vm710_vm3, %v19769_v14  ;;  %v20241_v14 = vld [vmem:[#allocation2 + $0x12a] sm:$0xff] }
 0x335   : > { %16400 = vmatmul.mubr.msk.f32.gmra.mrb[52].mxu0 %vm710_vm3, %v20217_v44  ;;  %22062 = vst [vmem:[#allocation120_spill] sm:$0xff] %v20241_v14  ;;  %v20243_v44 = vld [vmem:[#allocation2 + $0x13a] sm:$0xff] }
 0x336   : > { %16402 = vmatprep.mubr.msk.f32.mxu0 %vm710_vm3, %v20219_v21 }
 0x337   : > { %15959 = vmatmul.mubr.msk.f32.gmra.mrb[90].mxu1 %vm710_vm3, %v19752_v4 }
 0x338   : > { %15961 = vmatprep.mubr.msk.f32.mxu1 %vm710_vm3, %v19798_v8  ;;  %v20253_v8 = vld [vmem:[#allocation2 + $0x142] sm:$0xff] }
 0x339   : > { %16403 = vmatmul.mubr.msk.f32.gmra.mrb[54].mxu0 %vm710_vm3, %v20229_v63  ;;  %v20255_v63 = vld [vmem:[#allocation2 + $0x152] sm:$0xff] }
 0x33a   : > { %16405 = vmatprep.mubr.msk.f32.mxu0 %vm710_vm3, %v20231_v17 }
 0x33b   : > { %15962 = vmatmul.mubr.msk.f32.gmra.mrb[92].mxu1 %vm710_vm3, %v19784_v55 }
 0x33c   : > { %15964 = vmatprep.mubr.msk.f32.mxu1 %vm710_vm3, %v19824_v24  ;;  %v20265_v24 = vld [vmem:[#allocation2 + $0x15a] sm:$0xff] }
 0x33d   : > { %16406 = vmatmul.mubr.msk.f32.gmra.mrb[56].mxu0 %vm710_vm3, %v20241_v14  ;;  %v20267_v14 = vld [vmem:[#allocation2 + $0x16a] sm:$0xff] }
 0x33e   : > { %16408 = vmatprep.mubr.msk.f32.mxu0 %vm710_vm3, %v20243_v44 }
 0x33f   : > { %15965 = vmatmul.mubr.msk.f32.gmra.mrb[94].mxu1 %vm710_vm3, %v19812_v58  ;;  %v20274_v58 = vld [vmem:[%s21652_s9 + $0x14] sm:$0xf] }
 0x340   : > { %15969 = vmatprep.mubr.msk.f32.mxu1 %vm710_vm3, %v19287_v37  ;;  %v20282_v37 = vld [vmem:[#allocation2 + $0x172] sm:$0xff] }
 0x341   : > { %16409 = vmatmul.mubr.msk.f32.gmra.mrb[58].mxu0 %vm710_vm3, %v20253_v8 }
 0x342   : > { %16411 = vmatprep.mubr.msk.f32.mxu0 %vm710_vm3, %v20255_v63 }
 0x343   : > { %15970 = vmatmul.mubr.msk.f32.vlgmr.msra.gmra.mrb[64].mxu1 %vm710_vm3, %v19291_v40  ;;  %v20301_v40 = vld [vmem:[%s21653_s10 + $0x14] sm:$0xf] }
 0x344   : > { %15972 = vmatprep.mubr.msk.f32.mxu1 %vm710_vm3, %v19324_v28  ;;  %16018 = vmatpush3.msk.msra.mxu1 %vm905_vm2, %v20069_v33  ;;  %v22074_v33 = vld [vmem:[#allocation96_spill] sm:$0xff] }
 0x345   : > { %16412 = vmatmul.mubr.msk.f32.gmra.mrb[60].mxu0 %vm710_vm3, %v20265_v24  ;;  %16067 = vmatprep.subr.msk.mxu1 %vm905_vm2, %v20274_v58 }
 0x346   : > { %16414 = vmatprep.mubr.msk.f32.mxu0 %vm710_vm3, %v20267_v14 }
 0x347   : > { %15973 = vmatmul.mubr.msk.f32.gmra.mrb[66].mxu1 %vm710_vm3, %v19328_v13 }
 0x348   : > { %15975 = vmatprep.mubr.msk.f32.mxu1 %vm710_vm3, %v19364_v23 }
 0x349   : > { %16415 = vmatmul.mubr.msk.f32.gmra.mrb[62].mxu0 %vm710_vm3, %v20282_v37 }
 0x34a   : > { %16419 = vmatprep.mubr.msk.f32.mxu0 %vm710_vm3, %v19870_v42  ;;  %v22068_v42 = vld [vmem:[#allocation23_spill] sm:$0xff] }
 0x34b   : > { %15976 = vmatmul.mubr.msk.f32.gmra.mrb[68].mxu1 %vm710_vm3, %v19371_v31 }
 0x34c   : > { %15978 = vmatprep.mubr.msk.f32.mxu1 %vm710_vm3, %v19405_v51 }
 0x34d   : > { %16420 = vmatmul.mubr.msk.f32.vlgmr.msra.gmra.mrb[32].mxu0 %vm710_vm3, %v19888_v43  ;;  %v22070_v43 = vld [vmem:[#allocation94_spill] sm:$0xff] }
 0x34e   : > { %16468 = vmatpush3.msk.msra.mxu0 %vm905_vm2, %v20098_v29  ;;  %16422 = vmatprep.mubr.msk.f32.mxu0 %vm710_vm3, %v19890_v7  ;;  %v22063_v7 = vld [vmem:[#allocation91_spill] sm:$0xff] }
 0x34f   : > { %16517 = vmatprep.subr.msk.mxu0 %vm905_vm2, %v20301_v40  ;;  %15979 = vmatmul.mubr.msk.f32.gmra.mrb[70].mxu1 %vm710_vm3, %v19409_v2  ;;  %v22075_v29 = vld [vmem:[#allocation27_spill] sm:$0xff] }
 0x350   : > { %15981 = vmatprep.mubr.msk.f32.mxu1 %vm710_vm3, %v19446_v56 }
 0x351   : > { %16423 = vmatmul.mubr.msk.f32.gmra.mrb[34].mxu0 %vm710_vm3, %v19902_v49  ;;  %v22071_v49 = vld [vmem:[#allocation25_spill] sm:$0xff] }
 0x352   : > { %16425 = vmatprep.mubr.msk.f32.mxu0 %vm710_vm3, %v19904_v18  ;;  %v22073_v18 = vld [vmem:[#allocation61_spill] sm:$0xff] }
 0x353   : > { %15982 = vmatmul.mubr.msk.f32.gmra.mrb[72].mxu1 %vm710_vm3, %v19450_v59 }
 0x354   : > { %15984 = vmatprep.mubr.msk.f32.mxu1 %vm710_vm3, %v19485_v12 }
 0x355   : > { %16426 = vmatmul.mubr.msk.f32.gmra.mrb[36].mxu0 %vm710_vm3, %v19914_v36  ;;  %v22064_v36 = vld [vmem:[#allocation53_spill] sm:$0xff] }
 0x356   : > { %16428 = vmatprep.mubr.msk.f32.mxu0 %vm710_vm3, %v19916_v9  ;;  %v22065_v9 = vld [vmem:[#allocation92_spill] sm:$0xff] }
 0x357   : > { %15985 = vmatmul.mubr.msk.f32.gmra.mrb[74].mxu1 %vm710_vm3, %v19489_v53 }
 0x358   : > { %15987 = vmatprep.mubr.msk.f32.mxu1 %vm710_vm3, %v19524_v50 }
 0x359   : > { %16429 = vmatmul.mubr.msk.f32.gmra.mrb[38].mxu0 %vm710_vm3, %v19926_v15  ;;  %v22066_v15 = vld [vmem:[#allocation16_spill] sm:$0xff] }
 0x35a   : > { %16431 = vmatprep.mubr.msk.f32.mxu0 %vm710_vm3, %v19928_v0  ;;  %v22067_v0 = vld [vmem:[#allocation93_spill] sm:$0xff] }
 0x35b   : > { %15988 = vmatmul.mubr.msk.f32.gmra.mrb[76].mxu1 %vm710_vm3, %v19528_v32 }
 0x35c   : > { %15990 = vmatprep.mubr.msk.f32.mxu1 %vm710_vm3, %v22064_v36 }
 0x35d   : > { %16432 = vmatmul.mubr.msk.f32.gmra.mrb[40].mxu0 %vm710_vm3, %v22063_v7  ;;  %v22077_v7 = vld [vmem:[#allocation64_spill] sm:$0xff] }
 0x35e   : > { %16434 = vmatprep.mubr.msk.f32.mxu0 %vm710_vm3, %v19940_v22  ;;  %v22069_v22 = vld [vmem:[#allocation59_spill] sm:$0xff] }
 0x35f   : > { %15991 = vmatmul.mubr.msk.f32.gmra.mrb[78].mxu1 %vm710_vm3, %v19567_v30 }
 0x360   : > { %15993 = vmatprep.mubr.msk.f32.mxu1 %vm710_vm3, %v22066_v15 }
 0x361   : > { %16435 = vmatmul.mubr.msk.f32.gmra.mrb[42].mxu0 %vm710_vm3, %v22065_v9  ;;  %v22078_v9 = vld [vmem:[#allocation98_spill] sm:$0xff] }
 0x362   : > { %16437 = vmatprep.mubr.msk.f32.mxu0 %vm710_vm3, %v19952_v39  ;;  %v22072_v39 = vld [vmem:[#allocation95_spill] sm:$0xff] }
 0x363   : > { %15994 = vmatmul.mubr.msk.f32.gmra.mrb[80].mxu1 %vm710_vm3, %v19606_v62 }
 0x364   : > { %15996 = vmatprep.mubr.msk.f32.mxu1 %vm710_vm3, %v22068_v42 }
 0x365   : > { %16438 = vmatmul.mubr.msk.f32.gmra.mrb[44].mxu0 %vm710_vm3, %v22067_v0  ;;  %v22079_v0 = vld [vmem:[#allocation29_spill] sm:$0xff] }
 0x366   : > { %16440 = vmatprep.mubr.msk.f32.mxu0 %vm710_vm3, %v19964_v10  ;;  %v22076_v10 = vld [vmem:[#allocation97_spill] sm:$0xff] }
 0x367   : > { %15997 = vmatmul.mubr.msk.f32.gmra.mrb[82].mxu1 %vm710_vm3, %v22069_v22 }
 0x368   : > { %15999 = vmatprep.mubr.msk.f32.mxu1 %vm710_vm3, %v22071_v49 }
 0x369   : > { %16441 = vmatmul.mubr.msk.f32.gmra.mrb[46].mxu0 %vm710_vm3, %v22070_v43  ;;  %v22080_v43 = vld [vmem:[#allocation99_spill] sm:$0xff] }
 0x36a   : > { %16443 = vmatprep.mubr.msk.f32.mxu0 %vm710_vm3, %v22072_v39  ;;  %v22081_v39 = vld [vmem:[#allocation69_spill] sm:$0xff] }
 0x36b   : > { %16000 = vmatmul.mubr.msk.f32.gmra.mrb[84].mxu1 %vm710_vm3, %v22073_v18 }
 0x36c   : > { %16002 = vmatprep.mubr.msk.f32.mxu1 %vm710_vm3, %v22075_v29  ;;  %v22083_v29 = vld [vmem:[#allocation73_spill] sm:$0xff] }
 0x36d   : > { %16444 = vmatmul.mubr.msk.f32.gmra.mrb[48].mxu0 %vm710_vm3, %v22074_v33  ;;  %v22082_v33 = vld [vmem:[#allocation100_spill] sm:$0xff] }
 0x36e   : > { %16446 = vmatprep.mubr.msk.f32.mxu0 %vm710_vm3, %v22076_v10  ;;  %v22084_v10 = vld [vmem:[#allocation101_spill] sm:$0xff] }
 0x36f   : > { %16003 = vmatmul.mubr.msk.f32.gmra.mrb[86].mxu1 %vm710_vm3, %v22077_v7  ;;  %v22085_v7 = vld [vmem:[#allocation75_spill] sm:$0xff] }
 0x370   : > { %16005 = vmatprep.mubr.msk.f32.mxu1 %vm710_vm3, %v22079_v0  ;;  %v22087_v0 = vld [vmem:[#allocation81_spill] sm:$0xff] }
 0x371   : > { %16447 = vmatmul.mubr.msk.f32.gmra.mrb[50].mxu0 %vm710_vm3, %v22078_v9  ;;  %v22086_v9 = vld [vmem:[#allocation102_spill] sm:$0xff] }
 0x372   : > { %16449 = vmatprep.mubr.msk.f32.mxu0 %vm710_vm3, %v22080_v43  ;;  %v22088_v43 = vld [vmem:[#allocation103_spill] sm:$0xff] }
 0x373   : > { %16006 = vmatmul.mubr.msk.f32.gmra.mrb[88].mxu1 %vm710_vm3, %v22081_v39  ;;  %v22089_v39 = vld [vmem:[#allocation83_spill] sm:$0xff] }
 0x374   : > { %16008 = vmatprep.mubr.msk.f32.mxu1 %vm710_vm3, %v22083_v29 }
 0x375   : > { %16450 = vmatmul.mubr.msk.f32.gmra.mrb[52].mxu0 %vm710_vm3, %v22082_v33  ;;  %v22090_v33 = vld [vmem:[#allocation104_spill] sm:$0xff] }
 0x376   : > { %16452 = vmatprep.mubr.msk.f32.mxu0 %vm710_vm3, %v22084_v10  ;;  %v22091_v10 = vld [vmem:[#allocation31_spill] sm:$0xff] }
 0x377   : > { %16009 = vmatmul.mubr.msk.f32.gmra.mrb[90].mxu1 %vm710_vm3, %v22085_v7 }
 0x378   : > { %16011 = vmatprep.mubr.msk.f32.mxu1 %vm710_vm3, %v22087_v0 }
 0x379   : > { %16453 = vmatmul.mubr.msk.f32.gmra.mrb[54].mxu0 %vm710_vm3, %v22086_v9  ;;  %v20417_v9 = vld [vmem:[#allocation2 + $0x180] sm:$0xff] }
 0x37a   : > { %16455 = vmatprep.mubr.msk.f32.mxu0 %vm710_vm3, %v22088_v43  ;;  %22092 = vst [vmem:[#allocation91_spill] sm:$0xff] %v20417_v9  ;;  %v22093_v43 = vld [vmem:[#allocation32_spill] sm:$0xff] }
 0x37b   : > { %16012 = vmatmul.mubr.msk.f32.gmra.mrb[92].mxu1 %vm710_vm3, %v22089_v39 }
 0x37c   : > { %16014 = vmatprep.mubr.msk.f32.mxu1 %vm710_vm3, %v20046_v20 }
 0x37d   : > { %16456 = vmatmul.mubr.msk.f32.gmra.mrb[56].mxu0 %vm710_vm3, %v22090_v33  ;;  %v10362_v33 = vld [vmem:[#allocation2 + $0x19] sm:$0xff] }
 0x37e   : > { %16458 = vmatprep.mubr.msk.f32.mxu0 %vm710_vm3, %v20037_v35  ;;  %v20424_v35 = vld [vmem:[%s21652_s9 + $0x18] sm:$0xf] }
 0x37f   : > { %16015 = vmatmul.mubr.msk.f32.gmra.mrb[94].mxu1 %vm710_vm3, %v20054_v54 }
 0x380   : > { %16019 = vmatprep.mubr.msk.f32.mxu1 %vm710_vm3, %v22091_v10  ;;  %v22096_v10 = vld [vmem:[#allocation34_spill] sm:$0xff] }
 0x381   : > { %16459 = vmatmul.mubr.msk.f32.gmra.mrb[58].mxu0 %vm710_vm3, %v20052_v45  ;;  %v22094_v45 = vld [vmem:[#allocation33_spill] sm:$0xff] }
 0x382   : > { %16461 = vmatprep.mubr.msk.f32.mxu0 %vm710_vm3, %v20058_v1  ;;  %v20432_v1 = vld [vmem:[#allocation2 + $0x188] sm:$0xff] }
 0x383   : > { %16020 = vmatmul.mubr.msk.f32.vlgmr.msra.gmra.mrb[64].mxu1 %vm710_vm3, %v22093_v43  ;;  %22095 = vst [vmem:[#allocation53_spill] sm:$0xff] %v20432_v1  ;;  %v10363_v43 = vld [vmem:[#allocation2 + $0x21] sm:$0xff] }
 0x384   : > { %16022 = vmatprep.mubr.msk.f32.mxu1 %vm710_vm3, %v22094_v45  ;;  %16068 = vmatpush3.msk.msra.mxu1 %vm905_vm2, %v20274_v58  ;;  %v22099_v45 = vld [vmem:[#allocation35_spill] sm:$0xff] }
 0x385   : > { %16462 = vmatmul.mubr.msk.f32.gmra.mrb[60].mxu0 %vm710_vm3, %v20078_v46  ;;  %16117 = vmatprep.subr.msk.mxu1 %vm905_vm2, %v20424_v35  ;;  %v22097_v46 = vld [vmem:[#allocation36_spill] sm:$0xff]  ;;  %v20452_v58 = vld [vmem:[%s21653_s10 + $0x18] sm:$0xf] }
 0x386   : > { %16464 = vmatprep.mubr.msk.f32.mxu0 %vm710_vm3, %v20417_v9  ;;  %v20445_v9 = vld [vmem:[#allocation2 + $0x31] sm:$0xff] }
 0x387   : > { %16023 = vmatmul.mubr.msk.f32.gmra.mrb[66].mxu1 %vm710_vm3, %v22096_v10  ;;  %22098 = vst [vmem:[#allocation92_spill] sm:$0xff] %v20445_v9  ;;  %v22100_v10 = vld [vmem:[#allocation38_spill] sm:$0xff] }
 0x388   : > { %16025 = vmatprep.mubr.msk.f32.mxu1 %vm710_vm3, %v22097_v46  ;;  %v20463_v46 = vld [vmem:[#allocation2 + $0x49] sm:$0xff] }
 0x389   : > { %16465 = vmatmul.mubr.msk.f32.gmra.mrb[62].mxu0 %vm710_vm3, %v20432_v1  ;;  %22102 = vst [vmem:[#allocation93_spill] sm:$0xff] %v20463_v46  ;;  %v22132_v1 = vld [vmem:[#allocation28_spill] sm:$0xff] }
 0x38a   : > { %16469 = vmatprep.mubr.msk.f32.mxu0 %vm710_vm3, %v10362_v33  ;;  %v20461_v33 = vld [vmem:[#allocation2 + $0x39] sm:$0xff] }
 0x38b   : > { %16026 = vmatmul.mubr.msk.f32.gmra.mrb[68].mxu1 %vm710_vm3, %v22099_v45  ;;  %22101 = vst [vmem:[#allocation16_spill] sm:$0xff] %v20461_v33  ;;  %v22103_v45 = vld [vmem:[#allocation37_spill] sm:$0xff] }
 0x38c   : > { %16028 = vmatprep.mubr.msk.f32.mxu1 %vm710_vm3, %v22100_v10  ;;  %v22107_v10 = vld [vmem:[#allocation39_spill] sm:$0xff] }
 0x38d   : > { %16470 = vmatmul.mubr.msk.f32.vlgmr.msra.gmra.mrb[32].mxu0 %vm710_vm3, %v10363_v43  ;;  %v22104_v43 = vld [vmem:[#allocation41_spill] sm:$0xff] }
 0x38e   : > { %16518 = vmatpush3.msk.msra.mxu0 %vm905_vm2, %v20301_v40  ;;  %16472 = vmatprep.mubr.msk.f32.mxu0 %vm710_vm3, %v20445_v9  ;;  %v20475_v40 = vld [vmem:[#allocation2 + $0x51] sm:$0xff]  ;;  %v20477_v9 = vld [vmem:[#allocation2 + $0x61] sm:$0xff] }
 0x38f   : > { %16567 = vmatprep.subr.msk.mxu0 %vm905_vm2, %v20452_v58  ;;  %16029 = vmatmul.mubr.msk.f32.gmra.mrb[70].mxu1 %vm710_vm3, %v22103_v45  ;;  %22105 = vst [vmem:[#allocation23_spill] sm:$0xff] %v20475_v40  ;;  %22106 = vst [vmem:[#allocation59_spill] sm:$0xff] %v20477_v9  ;;  %v22108_v45 = vld [vmem:[#allocation45_spill] sm:$0xff] }
 0x390   : > { %16031 = vmatprep.mubr.msk.f32.mxu1 %vm710_vm3, %v22104_v43  ;;  %v20487_v43 = vld [vmem:[#allocation2 + $0x69] sm:$0xff] }
 0x391   : > { %16473 = vmatmul.mubr.msk.f32.gmra.mrb[34].mxu0 %vm710_vm3, %v20461_v33  ;;  %22109 = vst [vmem:[#allocation94_spill] sm:$0xff] %v20487_v43  ;;  %v20489_v33 = vld [vmem:[#allocation2 + $0x79] sm:$0xff] }
 0x392   : > { %16475 = vmatprep.mubr.msk.f32.mxu0 %vm710_vm3, %v20463_v46  ;;  %22110 = vst [vmem:[#allocation25_spill] sm:$0xff] %v20489_v33  ;;  %v22111_v46 = vld [vmem:[#allocation43_spill] sm:$0xff] }
 0x393   : > { %16032 = vmatmul.mubr.msk.f32.gmra.mrb[72].mxu1 %vm710_vm3, %v22107_v10  ;;  %v22112_v10 = vld [vmem:[#allocation49_spill] sm:$0xff] }
 0x394   : > { %16034 = vmatprep.mubr.msk.f32.mxu1 %vm710_vm3, %v22108_v45  ;;  %v20499_v45 = vld [vmem:[#allocation2 + $0x81] sm:$0xff] }
 0x395   : > { %16476 = vmatmul.mubr.msk.f32.gmra.mrb[36].mxu0 %vm710_vm3, %v20475_v40  ;;  %22113 = vst [vmem:[#allocation95_spill] sm:$0xff] %v20499_v45  ;;  %v20501_v40 = vld [vmem:[#allocation2 + $0x91] sm:$0xff] }
 0x396   : > { %16478 = vmatprep.mubr.msk.f32.mxu0 %vm710_vm3, %v20477_v9  ;;  %22114 = vst [vmem:[#allocation61_spill] sm:$0xff] %v20501_v40  ;;  %v22115_v9 = vld [vmem:[#allocation47_spill] sm:$0xff] }
 0x397   : > { %16035 = vmatmul.mubr.msk.f32.gmra.mrb[74].mxu1 %vm710_vm3, %v22111_v46  ;;  %v22116_v46 = vld [vmem:[#allocation54_spill] sm:$0xff] }
 0x398   : > { %16037 = vmatprep.mubr.msk.f32.mxu1 %vm710_vm3, %v22112_v10  ;;  %v20511_v10 = vld [vmem:[#allocation2 + $0x99] sm:$0xff] }
 0x399   : > { %16479 = vmatmul.mubr.msk.f32.gmra.mrb[38].mxu0 %vm710_vm3, %v20487_v43  ;;  %22117 = vst [vmem:[#allocation96_spill] sm:$0xff] %v20511_v10  ;;  %v20513_v43 = vld [vmem:[#allocation2 + $0xa9] sm:$0xff] }
 0x39a   : > { %16481 = vmatprep.mubr.msk.f32.mxu0 %vm710_vm3, %v20489_v33  ;;  %22118 = vst [vmem:[#allocation97_spill] sm:$0xff] %v20513_v43  ;;  %v22119_v33 = vld [vmem:[#allocation51_spill] sm:$0xff] }
 0x39b   : > { %16038 = vmatmul.mubr.msk.f32.gmra.mrb[76].mxu1 %vm710_vm3, %v22115_v9  ;;  %v22120_v9 = vld [vmem:[#allocation57_spill] sm:$0xff] }
 0x39c   : > { %16040 = vmatprep.mubr.msk.f32.mxu1 %vm710_vm3, %v22116_v46  ;;  %v20523_v46 = vld [vmem:[#allocation2 + $0xb1] sm:$0xff] }
 0x39d   : > { %16482 = vmatmul.mubr.msk.f32.gmra.mrb[40].mxu0 %vm710_vm3, %v20499_v45  ;;  %22121 = vst [vmem:[#allocation98_spill] sm:$0xff] %v20523_v46  ;;  %v20525_v45 = vld [vmem:[#allocation2 + $0xc1] sm:$0xff] }
 0x39e   : > { %16484 = vmatprep.mubr.msk.f32.mxu0 %vm710_vm3, %v20501_v40  ;;  %22122 = vst [vmem:[#allocation99_spill] sm:$0xff] %v20525_v45  ;;  %v22123_v40 = vld [vmem:[#allocation18_spill] sm:$0xff] }
 0x39f   : > { %16041 = vmatmul.mubr.msk.f32.gmra.mrb[78].mxu1 %vm710_vm3, %v22119_v33  ;;  %v22124_v33 = vld [vmem:[#allocation58_spill] sm:$0xff] }
 0x3a0   : > { %16043 = vmatprep.mubr.msk.f32.mxu1 %vm710_vm3, %v22120_v9  ;;  %v20535_v9 = vld [vmem:[#allocation2 + $0xc9] sm:$0xff] }
 0x3a1   : > { %16485 = vmatmul.mubr.msk.f32.gmra.mrb[42].mxu0 %vm710_vm3, %v20511_v10  ;;  %22125 = vst [vmem:[#allocation100_spill] sm:$0xff] %v20535_v9  ;;  %v20537_v10 = vld [vmem:[#allocation2 + $0xd9] sm:$0xff] }
 0x3a2   : > { %16487 = vmatprep.mubr.msk.f32.mxu0 %vm710_vm3, %v20513_v43  ;;  %22126 = vst [vmem:[#allocation73_spill] sm:$0xff] %v20537_v10  ;;  %v22127_v43 = vld [vmem:[#allocation17_spill] sm:$0xff] }
 0x3a3   : > { %16044 = vmatmul.mubr.msk.f32.gmra.mrb[80].mxu1 %vm710_vm3, %v22123_v40  ;;  %v22128_v40 = vld [vmem:[#allocation60_spill] sm:$0xff] }
 0x3a4   : > { %16046 = vmatprep.mubr.msk.f32.mxu1 %vm710_vm3, %v22124_v33  ;;  %v22129_v33 = vld [vmem:[#allocation19_spill] sm:$0xff] }
 0x3a5   : > { %16488 = vmatmul.mubr.msk.f32.gmra.mrb[44].mxu0 %vm710_vm3, %v20523_v46  ;;  %v22131_v46 = vld [vmem:[#allocation63_spill] sm:$0xff] }
 0x3a6   : > { %16490 = vmatprep.mubr.msk.f32.mxu0 %vm710_vm3, %v20525_v45  ;;  %v22130_v45 = vld [vmem:[#allocation62_spill] sm:$0xff] }
 0x3a7   : > { %16047 = vmatmul.mubr.msk.f32.gmra.mrb[82].mxu1 %vm710_vm3, %v22127_v43  ;;  %v22133_v43 = vld [vmem:[#allocation22_spill] sm:$0xff] }
 0x3a8   : > { %16049 = vmatprep.mubr.msk.f32.mxu1 %vm710_vm3, %v22128_v40  ;;  %v22135_v40 = vld [vmem:[#allocation68_spill] sm:$0xff] }
 0x3a9   : > { %16491 = vmatmul.mubr.msk.f32.gmra.mrb[46].mxu0 %vm710_vm3, %v20535_v9  ;;  %v22134_v9 = vld [vmem:[#allocation66_spill] sm:$0xff] }
 0x3aa   : > { %16493 = vmatprep.mubr.msk.f32.mxu0 %vm710_vm3, %v20537_v10  ;;  %v22136_v10 = vld [vmem:[#allocation30_spill] sm:$0xff] }
 0x3ab   : > { %16050 = vmatmul.mubr.msk.f32.gmra.mrb[84].mxu1 %vm710_vm3, %v22129_v33  ;;  %v22137_v33 = vld [vmem:[#allocation67_spill] sm:$0xff] }
 0x3ac   : > { %16052 = vmatprep.mubr.msk.f32.mxu1 %vm710_vm3, %v22131_v46  ;;  %v22139_v46 = vld [vmem:[#allocation74_spill] sm:$0xff] }
 0x3ad   : > { %16494 = vmatmul.mubr.msk.f32.gmra.mrb[48].mxu0 %vm710_vm3, %v22130_v45  ;;  %v22138_v45 = vld [vmem:[#allocation71_spill] sm:$0xff] }
 0x3ae   : > { %16496 = vmatprep.mubr.msk.f32.mxu0 %vm710_vm3, %v22132_v1  ;;  %v22140_v1 = vld [vmem:[#allocation76_spill] sm:$0xff] }
 0x3af   : > { %16053 = vmatmul.mubr.msk.f32.gmra.mrb[86].mxu1 %vm710_vm3, %v22133_v43  ;;  %v22141_v43 = vld [vmem:[#allocation72_spill] sm:$0xff] }
 0x3b0   : > { %16055 = vmatprep.mubr.msk.f32.mxu1 %vm710_vm3, %v22135_v40  ;;  %v22143_v40 = vld [vmem:[#allocation82_spill] sm:$0xff] }
 0x3b1   : > { %16497 = vmatmul.mubr.msk.f32.gmra.mrb[50].mxu0 %vm710_vm3, %v22134_v9  ;;  %v22142_v9 = vld [vmem:[#allocation78_spill] sm:$0xff] }
 0x3b2   : > { %16499 = vmatprep.mubr.msk.f32.mxu0 %vm710_vm3, %v22136_v10  ;;  %v22144_v10 = vld [vmem:[#allocation84_spill] sm:$0xff] }
 0x3b3   : > { %16056 = vmatmul.mubr.msk.f32.gmra.mrb[88].mxu1 %vm710_vm3, %v22137_v33  ;;  %v22145_v33 = vld [vmem:[#allocation79_spill] sm:$0xff] }
 0x3b4   : > { %16058 = vmatprep.mubr.msk.f32.mxu1 %vm710_vm3, %v22139_v46 }
 0x3b5   : > { %16500 = vmatmul.mubr.msk.f32.gmra.mrb[52].mxu0 %vm710_vm3, %v22138_v45  ;;  %v22146_v45 = vld [vmem:[#allocation86_spill] sm:$0xff] }
 0x3b6   : > { %16502 = vmatprep.mubr.msk.f32.mxu0 %vm710_vm3, %v22140_v1  ;;  %v22147_v1 = vld [vmem:[#allocation87_spill] sm:$0xff] }
 0x3b7   : > { %16059 = vmatmul.mubr.msk.f32.gmra.mrb[90].mxu1 %vm710_vm3, %v22141_v43 }
 0x3b8   : > { %16061 = vmatprep.mubr.msk.f32.mxu1 %vm710_vm3, %v22143_v40 }
 0x3b9   : > { %16503 = vmatmul.mubr.msk.f32.gmra.mrb[54].mxu0 %vm710_vm3, %v22142_v9  ;;  %v22148_v9 = vld [vmem:[#allocation88_spill] sm:$0xff] }
 0x3ba   : > { %16505 = vmatprep.mubr.msk.f32.mxu0 %vm710_vm3, %v22144_v10  ;;  %v22149_v10 = vld [vmem:[#allocation89_spill] sm:$0xff] }
 0x3bb   : > { %16062 = vmatmul.mubr.msk.f32.gmra.mrb[92].mxu1 %vm710_vm3, %v22145_v33  ;;  %v20595_v33 = vld [vmem:[#allocation2 + $0x181] sm:$0xff] }
 0x3bc   : > { %16064 = vmatprep.mubr.msk.f32.mxu1 %vm710_vm3, %v20048_v48 }
 0x3bd   : > { %16506 = vmatmul.mubr.msk.f32.gmra.mrb[56].mxu0 %vm710_vm3, %v22146_v45  ;;  %v20602_v45 = vld [vmem:[%s21652_s9 + $0x1c] sm:$0xf] }
 0x3be   : > { %16508 = vmatprep.mubr.msk.f32.mxu0 %vm710_vm3, %v22147_v1  ;;  %v22150_v1 = vld [vmem:[#allocation90_spill] sm:$0xff] }
 0x3bf   : > { %16065 = vmatmul.mubr.msk.f32.gmra.mrb[94].mxu1 %vm710_vm3, %v20060_v52 }
 0x3c0   : > { %16069 = vmatprep.mubr.msk.f32.mxu1 %vm710_vm3, %v19303_v47  ;;  %v20610_v47 = vld [vmem:[#allocation2 + $0x189] sm:$0xff] }
 0x3c1   : > { %16509 = vmatmul.mubr.msk.f32.gmra.mrb[58].mxu0 %vm710_vm3, %v22148_v9  ;;  %v22156_v9 = vld [vmem:[#allocation109_spill] sm:$0xff] }
 0x3c2   : > { %16511 = vmatprep.mubr.msk.f32.mxu0 %vm710_vm3, %v22149_v10  ;;  %v22157_v10 = vld [vmem:[#allocation44_spill] sm:$0xff] }
 0x3c3   : > { %16070 = vmatmul.mubr.msk.f32.vlgmr.msra.gmra.mrb[64].mxu1 %vm710_vm3, %v19305_v3  ;;  %v20629_v3 = vld [vmem:[%s21653_s10 + $0x1c] sm:$0xf] }
 0x3c4   : > { %16072 = vmatprep.mubr.msk.f32.mxu1 %vm710_vm3, %v19338_v11  ;;  %16118 = vmatpush3.msk.msra.mxu1 %vm905_vm2, %v20424_v35  ;;  %v22152_v35 = vld [vmem:[#allocation42_spill] sm:$0xff] }
 0x3c5   : > { %16512 = vmatmul.mubr.msk.f32.gmra.mrb[60].mxu0 %vm710_vm3, %v22150_v1  ;;  %16167 = vmatprep.subr.msk.mxu1 %vm905_vm2, %v20602_v45  ;;  %v22158_v1 = vld [vmem:[#allocation110_spill] sm:$0xff] }
 0x3c6   : > { %16514 = vmatprep.mubr.msk.f32.mxu0 %vm710_vm3, %v20595_v33 }
 0x3c7   : > { %16073 = vmatmul.mubr.msk.f32.gmra.mrb[66].mxu1 %vm710_vm3, %v19340_v19 }
 0x3c8   : > { %16075 = vmatprep.mubr.msk.f32.mxu1 %vm710_vm3, %v19379_v41 }
 0x3c9   : > { %16515 = vmatmul.mubr.msk.f32.gmra.mrb[62].mxu0 %vm710_vm3, %v20610_v47 }
 0x3ca   : > { %16519 = vmatprep.mubr.msk.f32.mxu0 %vm710_vm3, %v20091_v27  ;;  %v22151_v27 = vld [vmem:[#allocation107_spill] sm:$0xff] }
 0x3cb   : > { %16076 = vmatmul.mubr.msk.f32.gmra.mrb[68].mxu1 %vm710_vm3, %v19359_v5 }
 0x3cc   : > { %16078 = vmatprep.mubr.msk.f32.mxu1 %vm710_vm3, %v19420_v6 }
 0x3cd   : > { %16520 = vmatmul.mubr.msk.f32.vlgmr.msra.gmra.mrb[32].mxu0 %vm710_vm3, %v20107_v26  ;;  %v22153_v26 = vld [vmem:[#allocation40_spill] sm:$0xff] }
 0x3ce   : > { %16568 = vmatpush3.msk.msra.mxu0 %vm905_vm2, %v20452_v58  ;;  %16522 = vmatprep.mubr.msk.f32.mxu0 %vm710_vm3, %v20109_v16  ;;  %v22154_v58 = vld [vmem:[#allocation108_spill] sm:$0xff]  ;;  %v22155_v16 = vld [vmem:[#allocation46_spill] sm:$0xff] }
 0x3cf   : > { %16617 = vmatprep.subr.msk.mxu0 %vm905_vm2, %v20629_v3  ;;  %16079 = vmatmul.mubr.msk.f32.gmra.mrb[70].mxu1 %vm710_vm3, %v19399_v25 }
 0x3d0   : > { %16081 = vmatprep.mubr.msk.f32.mxu1 %vm710_vm3, %v22152_v35 }
 0x3d1   : > { %16523 = vmatmul.mubr.msk.f32.gmra.mrb[34].mxu0 %vm710_vm3, %v22151_v27  ;;  %v22159_v27 = vld [vmem:[#allocation50_spill] sm:$0xff] }
 0x3d2   : > { %16525 = vmatprep.mubr.msk.f32.mxu0 %vm710_vm3, %v20123_v34  ;;  %v22160_v34 = vld [vmem:[#allocation111_spill] sm:$0xff] }
 0x3d3   : > { %16082 = vmatmul.mubr.msk.f32.gmra.mrb[72].mxu1 %vm710_vm3, %v22153_v26  ;;  %v22161_v26 = vld [vmem:[#allocation48_spill] sm:$0xff] }
 0x3d4   : > { %16084 = vmatprep.mubr.msk.f32.mxu1 %vm710_vm3, %v22155_v16  ;;  %v22163_v16 = vld [vmem:[#allocation55_spill] sm:$0xff] }
 0x3d5   : > { %16526 = vmatmul.mubr.msk.f32.gmra.mrb[36].mxu0 %vm710_vm3, %v22154_v58  ;;  %v22162_v58 = vld [vmem:[#allocation112_spill] sm:$0xff] }
 0x3d6   : > { %16528 = vmatprep.mubr.msk.f32.mxu0 %vm710_vm3, %v22156_v9  ;;  %v22164_v9 = vld [vmem:[#allocation113_spill] sm:$0xff] }
 0x3d7   : > { %16085 = vmatmul.mubr.msk.f32.gmra.mrb[74].mxu1 %vm710_vm3, %v22157_v10  ;;  %v22165_v10 = vld [vmem:[#allocation52_spill] sm:$0xff] }
 0x3d8   : > { %16087 = vmatprep.mubr.msk.f32.mxu1 %vm710_vm3, %v22159_v27  ;;  %v22167_v27 = vld [vmem:[#allocation15_spill] sm:$0xff] }
 0x3d9   : > { %16529 = vmatmul.mubr.msk.f32.gmra.mrb[38].mxu0 %vm710_vm3, %v22158_v1  ;;  %v22166_v1 = vld [vmem:[#allocation114_spill] sm:$0xff] }
 0x3da   : > { %16531 = vmatprep.mubr.msk.f32.mxu0 %vm710_vm3, %v22160_v34  ;;  %v22168_v34 = vld [vmem:[#allocation115_spill] sm:$0xff] }
 0x3db   : > { %16088 = vmatmul.mubr.msk.f32.gmra.mrb[76].mxu1 %vm710_vm3, %v22161_v26  ;;  %v22169_v26 = vld [vmem:[#allocation56_spill] sm:$0xff] }
 0x3dc   : > { %16090 = vmatprep.mubr.msk.f32.mxu1 %vm710_vm3, %v22163_v16  ;;  %v22171_v16 = vld [vmem:[#allocation24_spill] sm:$0xff] }
 0x3dd   : > { %16532 = vmatmul.mubr.msk.f32.gmra.mrb[40].mxu0 %vm710_vm3, %v22162_v58  ;;  %v22170_v58 = vld [vmem:[#allocation116_spill] sm:$0xff] }
 0x3de   : > { %16534 = vmatprep.mubr.msk.f32.mxu0 %vm710_vm3, %v22164_v9  ;;  %v22172_v9 = vld [vmem:[#allocation117_spill] sm:$0xff] }
 0x3df   : > { %16091 = vmatmul.mubr.msk.f32.gmra.mrb[78].mxu1 %vm710_vm3, %v22165_v10 }
 0x3e0   : > { %16093 = vmatprep.mubr.msk.f32.mxu1 %vm710_vm3, %v22167_v27  ;;  %v22174_v27 = vld [vmem:[#allocation26_spill] sm:$0xff] }
 0x3e1   : > { %16535 = vmatmul.mubr.msk.f32.gmra.mrb[42].mxu0 %vm710_vm3, %v22166_v1  ;;  %v22173_v1 = vld [vmem:[#allocation118_spill] sm:$0xff] }
 0x3e2   : > { %16537 = vmatprep.mubr.msk.f32.mxu0 %vm710_vm3, %v22168_v34  ;;  %v22175_v34 = vld [vmem:[#allocation119_spill] sm:$0xff] }
 0x3e3   : > { %16094 = vmatmul.mubr.msk.f32.gmra.mrb[80].mxu1 %vm710_vm3, %v22169_v26 }
 0x3e4   : > { %16096 = vmatprep.mubr.msk.f32.mxu1 %vm710_vm3, %v22171_v16  ;;  %v22177_v16 = vld [vmem:[#allocation65_spill] sm:$0xff] }
 0x3e5   : > { %16538 = vmatmul.mubr.msk.f32.gmra.mrb[44].mxu0 %vm710_vm3, %v22170_v58  ;;  %v22176_v58 = vld [vmem:[#allocation20_spill] sm:$0xff] }
 0x3e6   : > { %16540 = vmatprep.mubr.msk.f32.mxu0 %vm710_vm3, %v22172_v9  ;;  %v22178_v9 = vld [vmem:[#allocation21_spill] sm:$0xff] }
 0x3e7   : > { %16097 = vmatmul.mubr.msk.f32.gmra.mrb[82].mxu1 %vm710_vm3, %v22055_v61 }
 0x3e8   : > { %16099 = vmatprep.mubr.msk.f32.mxu1 %vm710_vm3, %v22174_v27 }
 0x3e9   : > { %16541 = vmatmul.mubr.msk.f32.gmra.mrb[46].mxu0 %vm710_vm3, %v22173_v1  ;;  %v22179_v1 = vld [vmem:[#allocation70_spill] sm:$0xff] }
 0x3ea   : > { %16543 = vmatprep.mubr.msk.f32.mxu0 %vm710_vm3, %v22175_v34  ;;  %v22180_v34 = vld [vmem:[#allocation14_spill] sm:$0xff] }
 0x3eb   : > { %16100 = vmatmul.mubr.msk.f32.gmra.mrb[84].mxu1 %vm710_vm3, %v22058_v38 }
 0x3ec   : > { %16102 = vmatprep.mubr.msk.f32.mxu1 %vm710_vm3, %v22177_v16 }
 0x3ed   : > { %16544 = vmatmul.mubr.msk.f32.gmra.mrb[48].mxu0 %vm710_vm3, %v22176_v58  ;;  %v22181_v58 = vld [vmem:[#allocation77_spill] sm:$0xff] }
 0x3ee   : > { %16546 = vmatprep.mubr.msk.f32.mxu0 %vm710_vm3, %v20207_v60  ;;  %v22182_v60 = vld [vmem:[#allocation120_spill] sm:$0xff] }
 0x3ef   : > { %16103 = vmatmul.mubr.msk.f32.gmra.mrb[86].mxu1 %vm710_vm3, %v22060_v57 }
 0x3f0   : > { %16105 = vmatprep.mubr.msk.f32.mxu1 %vm710_vm3, %v22179_v1 }
 0x3f1   : > { %16547 = vmatmul.mubr.msk.f32.gmra.mrb[50].mxu0 %vm710_vm3, %v22178_v9  ;;  %v22183_v9 = vld [vmem:[#allocation85_spill] sm:$0xff] }
 0x3f2   : > { %16549 = vmatprep.mubr.msk.f32.mxu0 %vm710_vm3, %v20219_v21  ;;  %v22184_v21 = vld [vmem:[#allocation80_spill] sm:$0xff] }
 0x3f3   : > { %16106 = vmatmul.mubr.msk.f32.gmra.mrb[88].mxu1 %vm710_vm3, %v19752_v4 }
 0x3f4   : > { %16108 = vmatprep.mubr.msk.f32.mxu1 %vm710_vm3, %v22181_v58 }
 0x3f5   : > { %16550 = vmatmul.mubr.msk.f32.gmra.mrb[52].mxu0 %vm710_vm3, %v22180_v34  ;;  %v22185_v34 = vld [vmem:[#allocation105_spill] sm:$0xff] }
 0x3f6   : > { %16552 = vmatprep.mubr.msk.f32.mxu0 %vm710_vm3, %v20231_v17  ;;  %v22186_v17 = vld [vmem:[#allocation106_spill] sm:$0xff] }
 0x3f7   : > { %16109 = vmatmul.mubr.msk.f32.gmra.mrb[90].mxu1 %vm710_vm3, %v19784_v55 }
 0x3f8   : > { %16111 = vmatprep.mubr.msk.f32.mxu1 %vm710_vm3, %v22183_v9 }
 0x3f9   : > { %16553 = vmatmul.mubr.msk.f32.gmra.mrb[54].mxu0 %vm710_vm3, %v22182_v60  ;;  %v22190_v60 = vld [vmem:[#allocation69_spill] sm:$0xff] }
 0x3fa   : > { %16555 = vmatprep.mubr.msk.f32.mxu0 %vm710_vm3, %v20243_v44  ;;  %v20745_v44 = vld [vmem:[#allocation2 + $0x182] sm:$0xff] }
 0x3fb   : > { %16112 = vmatmul.mubr.msk.f32.gmra.mrb[92].mxu1 %vm710_vm3, %v22184_v21 }
 0x3fc   : > { %16114 = vmatprep.mubr.msk.f32.mxu1 %vm710_vm3, %v22185_v34 }
 0x3fd   : > { %16556 = vmatmul.mubr.msk.f32.gmra.mrb[56].mxu0 %vm710_vm3, %v20253_v8  ;;  %v20778_v8 = vld [vmem:[%s21653_s10 + $0x20] sm:$0xf] }
 0x3fe   : > { %16558 = vmatprep.mubr.msk.f32.mxu0 %vm710_vm3, %v20255_v63  ;;  %v20752_v63 = vld [vmem:[%s21652_s9 + $0x20] sm:$0xf] }
 0x3ff   : > { %16115 = vmatmul.mubr.msk.f32.gmra.mrb[94].mxu1 %vm710_vm3, %v22186_v17 }
 0x400   : > { %16119 = vmatprep.mubr.msk.f32.mxu1 %vm710_vm3, %v19324_v28  ;;  %v20760_v28 = vld [vmem:[#allocation2 + $0x18a] sm:$0xff] }
 0x401   : > { %16559 = vmatmul.mubr.msk.f32.gmra.mrb[58].mxu0 %vm710_vm3, %v20265_v24  ;;  %v11148_v24 = vld [vmem:[#allocation2 + $0x90] sm:$0xff] }
 0x402   : > { %16561 = vmatprep.mubr.msk.f32.mxu0 %vm710_vm3, %v20267_v14  ;;  %v11142_v14 = vld [vmem:[#allocation2 + $0x48] sm:$0xff] }
 0x403   : > { %16120 = vmatmul.mubr.msk.f32.vlgmr.msra.gmra.mrb[64].mxu1 %vm710_vm3, %v19328_v13  ;;  %v11140_v13 = vld [vmem:[#allocation2 + $0x30] sm:$0xff] }
 0x404   : > { %16122 = vmatprep.mubr.msk.f32.mxu1 %vm710_vm3, %v19364_v23  ;;  %16168 = vmatpush3.msk.msra.mxu1 %vm905_vm2, %v20602_v45  ;;  %v11141_v23 = vld [vmem:[#allocation2 + $0x38] sm:$0xff]  ;;  %v22188_v45 = vld [vmem:[#allocation64_spill] sm:$0xff] }
 0x405   : > { %16562 = vmatmul.mubr.msk.f32.gmra.mrb[60].mxu0 %vm710_vm3, %v20282_v37  ;;  %16217 = vmatprep.subr.msk.mxu1 %vm905_vm2, %v20752_v63  ;;  %v11154_v37 = vld [vmem:[#allocation2 + $0xd8] sm:$0xff] }
 0x406   : > { %16564 = vmatprep.mubr.msk.f32.mxu0 %vm710_vm3, %v20745_v44 }
 0x407   : > { %16123 = vmatmul.mubr.msk.f32.gmra.mrb[66].mxu1 %vm710_vm3, %v19371_v31  ;;  %v11143_v31 = vld [vmem:[#allocation2 + $0x50] sm:$0xff] }
 0x408   : > { %16125 = vmatprep.mubr.msk.f32.mxu1 %vm710_vm3, %v19405_v51  ;;  %v11144_v51 = vld [vmem:[#allocation2 + $0x60] sm:$0xff] }
 0x409   : > { %16565 = vmatmul.mubr.msk.f32.gmra.mrb[62].mxu0 %vm710_vm3, %v20760_v28 }
 0x40a   : > { %16569 = vmatprep.mubr.msk.f32.mxu0 %vm710_vm3, %v11140_v13  ;;  %v11161_v13 = vld [vmem:[#allocation2 + $0x128] sm:$0xff] }
 0x40b   : > { %16126 = vmatmul.mubr.msk.f32.gmra.mrb[68].mxu1 %vm710_vm3, %v19409_v2  ;;  %v11145_v2 = vld [vmem:[#allocation2 + $0x68] sm:$0xff] }
 0x40c   : > { %16128 = vmatprep.mubr.msk.f32.mxu1 %vm710_vm3, %v19446_v56  ;;  %v11146_v56 = vld [vmem:[#allocation2 + $0x78] sm:$0xff] }
 0x40d   : > { %16570 = vmatmul.mubr.msk.f32.vlgmr.msra.gmra.mrb[32].mxu0 %vm710_vm3, %v11141_v23  ;;  %v11162_v23 = vld [vmem:[#allocation2 + $0x138] sm:$0xff] }
 0x40e   : > { %16618 = vmatpush3.msk.msra.mxu0 %vm905_vm2, %v20629_v3  ;;  %16572 = vmatprep.mubr.msk.f32.mxu0 %vm710_vm3, %v11142_v14  ;;  %v11160_v3 = vld [vmem:[#allocation2 + $0x120] sm:$0xff] }
 0x40f   : > { %16667 = vmatprep.subr.msk.mxu0 %vm905_vm2, %v20778_v8  ;;  %16129 = vmatmul.mubr.msk.f32.gmra.mrb[70].mxu1 %vm710_vm3, %v19450_v59  ;;  %v11147_v59 = vld [vmem:[#allocation2 + $0x80] sm:$0xff] }
 0x410   : > { %16131 = vmatprep.mubr.msk.f32.mxu1 %vm710_vm3, %v19485_v12  ;;  %v11149_v12 = vld [vmem:[#allocation2 + $0x98] sm:$0xff]  ;;  %v11163_v14 = vld [vmem:[#allocation2 + $0x140] sm:$0xff] }
 0x411   : > { %16573 = vmatmul.mubr.msk.f32.gmra.mrb[34].mxu0 %vm710_vm3, %v11143_v31  ;;  %v11164_v31 = vld [vmem:[#allocation2 + $0x150] sm:$0xff] }
 0x412   : > { %16575 = vmatprep.mubr.msk.f32.mxu0 %vm710_vm3, %v11144_v51  ;;  %v11166_v51 = vld [vmem:[#allocation2 + $0x168] sm:$0xff] }
 0x413   : > { %16132 = vmatmul.mubr.msk.f32.gmra.mrb[72].mxu1 %vm710_vm3, %v19489_v53  ;;  %v11150_v53 = vld [vmem:[#allocation2 + $0xa8] sm:$0xff] }
 0x414   : > { %16134 = vmatprep.mubr.msk.f32.mxu1 %vm710_vm3, %v19524_v50  ;;  %v11151_v50 = vld [vmem:[#allocation2 + $0xb0] sm:$0xff] }
 0x415   : > { %16576 = vmatmul.mubr.msk.f32.gmra.mrb[36].mxu0 %vm710_vm3, %v11145_v2  ;;  %v22192_v2 = vld [vmem:[#allocation91_spill] sm:$0xff] }
 0x416   : > { %16578 = vmatprep.mubr.msk.f32.mxu0 %vm710_vm3, %v11146_v56  ;;  %v22193_v56 = vld [vmem:[#allocation34_spill] sm:$0xff] }
 0x417   : > { %16135 = vmatmul.mubr.msk.f32.gmra.mrb[74].mxu1 %vm710_vm3, %v19528_v32  ;;  %v11152_v32 = vld [vmem:[#allocation2 + $0xc0] sm:$0xff] }
 0x418   : > { %16137 = vmatprep.mubr.msk.f32.mxu1 %vm710_vm3, %v22064_v36  ;;  %v11156_v36 = vld [vmem:[#allocation2 + $0xf0] sm:$0xff] }
 0x419   : > { %16579 = vmatmul.mubr.msk.f32.gmra.mrb[38].mxu0 %vm710_vm3, %v11147_v59  ;;  %v22195_v59 = vld [vmem:[#allocation36_spill] sm:$0xff] }
 0x41a   : > { %16581 = vmatprep.mubr.msk.f32.mxu0 %vm710_vm3, %v11148_v24  ;;  %v22196_v24 = vld [vmem:[#allocation35_spill] sm:$0xff] }
 0x41b   : > { %16138 = vmatmul.mubr.msk.f32.gmra.mrb[76].mxu1 %vm710_vm3, %v19567_v30  ;;  %v11153_v30 = vld [vmem:[#allocation2 + $0xc8] sm:$0xff] }
 0x41c   : > { %16140 = vmatprep.mubr.msk.f32.mxu1 %vm710_vm3, %v22066_v15  ;;  %v22187_v15 = vld [vmem:[#allocation27_spill] sm:$0xff] }
 0x41d   : > { %16582 = vmatmul.mubr.msk.f32.gmra.mrb[40].mxu0 %vm710_vm3, %v11149_v12  ;;  %v22197_v12 = vld [vmem:[#allocation38_spill] sm:$0xff] }
 0x41e   : > { %16584 = vmatprep.mubr.msk.f32.mxu0 %vm710_vm3, %v11150_v53  ;;  %v22198_v53 = vld [vmem:[#allocation92_spill] sm:$0xff] }
 0x41f   : > { %16141 = vmatmul.mubr.msk.f32.gmra.mrb[78].mxu1 %vm710_vm3, %v19606_v62  ;;  %v11155_v62 = vld [vmem:[#allocation2 + $0xe0] sm:$0xff] }
 0x420   : > { %16143 = vmatprep.mubr.msk.f32.mxu1 %vm710_vm3, %v22068_v42  ;;  %v11157_v42 = vld [vmem:[#allocation2 + $0xf8] sm:$0xff] }
 0x421   : > { %16585 = vmatmul.mubr.msk.f32.gmra.mrb[42].mxu0 %vm710_vm3, %v11151_v50  ;;  %v22199_v50 = vld [vmem:[#allocation37_spill] sm:$0xff] }
 0x422   : > { %16587 = vmatprep.mubr.msk.f32.mxu0 %vm710_vm3, %v11152_v32  ;;  %v22200_v32 = vld [vmem:[#allocation16_spill] sm:$0xff] }
 0x423   : > { %16144 = vmatmul.mubr.msk.f32.gmra.mrb[80].mxu1 %vm710_vm3, %v22069_v22  ;;  %v11158_v22 = vld [vmem:[#allocation2 + $0x108] sm:$0xff] }
 0x424   : > { %16146 = vmatprep.mubr.msk.f32.mxu1 %vm710_vm3, %v22071_v49  ;;  %v22189_v49 = vld [vmem:[#allocation29_spill] sm:$0xff] }
 0x425   : > { %16588 = vmatmul.mubr.msk.f32.gmra.mrb[44].mxu0 %vm710_vm3, %v11153_v30  ;;  %v22201_v30 = vld [vmem:[#allocation41_spill] sm:$0xff] }
 0x426   : > { %16590 = vmatprep.mubr.msk.f32.mxu0 %vm710_vm3, %v11154_v37  ;;  %v22203_v37 = vld [vmem:[#allocation39_spill] sm:$0xff] }
 0x427   : > { %16147 = vmatmul.mubr.msk.f32.gmra.mrb[82].mxu1 %vm710_vm3, %v22073_v18  ;;  %v11159_v18 = vld [vmem:[#allocation2 + $0x110] sm:$0xff] }
 0x428   : > { %16149 = vmatprep.mubr.msk.f32.mxu1 %vm710_vm3, %v22187_v15  ;;  %v22206_v15 = vld [vmem:[#allocation59_spill] sm:$0xff] }
 0x429   : > { %16591 = vmatmul.mubr.msk.f32.gmra.mrb[46].mxu0 %vm710_vm3, %v11155_v62  ;;  %v22204_v62 = vld [vmem:[#allocation23_spill] sm:$0xff] }
 0x42a   : > { %16593 = vmatprep.mubr.msk.f32.mxu0 %vm710_vm3, %v11156_v36  ;;  %v22205_v36 = vld [vmem:[#allocation45_spill] sm:$0xff] }
 0x42b   : > { %16150 = vmatmul.mubr.msk.f32.gmra.mrb[84].mxu1 %vm710_vm3, %v22188_v45  ;;  %v22210_v45 = vld [vmem:[#allocation25_spill] sm:$0xff] }
 0x42c   : > { %16152 = vmatprep.mubr.msk.f32.mxu1 %vm710_vm3, %v22189_v49  ;;  %v22211_v49 = vld [vmem:[#allocation47_spill] sm:$0xff] }
 0x42d   : > { %16594 = vmatmul.mubr.msk.f32.gmra.mrb[48].mxu0 %vm710_vm3, %v11157_v42  ;;  %v22207_v42 = vld [vmem:[#allocation43_spill] sm:$0xff] }
 0x42e   : > { %16596 = vmatprep.mubr.msk.f32.mxu0 %vm710_vm3, %v11158_v22  ;;  %v22208_v22 = vld [vmem:[#allocation94_spill] sm:$0xff] }
 0x42f   : > { %16153 = vmatmul.mubr.msk.f32.gmra.mrb[86].mxu1 %vm710_vm3, %v22190_v60  ;;  %v22214_v60 = vld [vmem:[#allocation61_spill] sm:$0xff] }
 0x430   : > { %16155 = vmatprep.mubr.msk.f32.mxu1 %vm710_vm3, %v22083_v29  ;;  %v11165_v29 = vld [vmem:[#allocation2 + $0x158] sm:$0xff] }
 0x431   : > { %16597 = vmatmul.mubr.msk.f32.gmra.mrb[50].mxu0 %vm710_vm3, %v11159_v18  ;;  %v22212_v18 = vld [vmem:[#allocation95_spill] sm:$0xff] }
 0x432   : > { %16599 = vmatprep.mubr.msk.f32.mxu0 %vm710_vm3, %v11160_v3  ;;  %v22213_v3 = vld [vmem:[#allocation54_spill] sm:$0xff] }
 0x433   : > { %16156 = vmatmul.mubr.msk.f32.gmra.mrb[88].mxu1 %vm710_vm3, %v22085_v7  ;;  %v7417_v7 = vld [vmem:[#allocation2 + $0x198] sm:$0xff] }
 0x434   : > { %16158 = vmatprep.mubr.msk.f32.mxu1 %vm710_vm3, %v22087_v0  ;;  %v7418_v0 = vld [vmem:[#allocation2 + $0x1a0] sm:$0xff] }
 0x435   : > { %16600 = vmatmul.mubr.msk.f32.gmra.mrb[52].mxu0 %vm710_vm3, %v11161_v13  ;;  %v22215_v13 = vld [vmem:[#allocation51_spill] sm:$0xff] }
 0x436   : > { %16602 = vmatprep.mubr.msk.f32.mxu0 %vm710_vm3, %v11162_v23  ;;  %v22216_v23 = vld [vmem:[#allocation96_spill] sm:$0xff] }
 0x437   : > { %16159 = vmatmul.mubr.msk.f32.gmra.mrb[90].mxu1 %vm710_vm3, %v22089_v39  ;;  %v11167_v39 = vld [vmem:[#allocation2 + $0x170] sm:$0xff] }
 0x438   : > { %16161 = vmatprep.mubr.msk.f32.mxu1 %vm710_vm3, %v20046_v20  ;;  %v22191_v20 = vld [vmem:[#allocation33_spill] sm:$0xff] }
 0x439   : > { %16603 = vmatmul.mubr.msk.f32.gmra.mrb[54].mxu0 %vm710_vm3, %v11163_v14  ;;  %v22217_v14 = vld [vmem:[#allocation57_spill] sm:$0xff] }
 0x43a   : > { %16605 = vmatprep.mubr.msk.f32.mxu0 %vm710_vm3, %v11164_v31  ;;  %v22218_v31 = vld [vmem:[#allocation97_spill] sm:$0xff] }
 0x43b   : > { %16162 = vmatmul.mubr.msk.f32.gmra.mrb[92].mxu1 %vm710_vm3, %v20054_v54  ;;  %v22194_v54 = vld [vmem:[#allocation53_spill] sm:$0xff] }
 0x43c   : > { %16164 = vmatprep.mubr.msk.f32.mxu1 %vm710_vm3, %v7417_v7 }
 0x43d   : > { %16606 = vmatmul.mubr.msk.f32.gmra.mrb[56].mxu0 %vm710_vm3, %v11165_v29  ;;  %v22219_v29 = vld [vmem:[#allocation18_spill] sm:$0xff] }
 0x43e   : > { %16608 = vmatprep.mubr.msk.f32.mxu0 %vm710_vm3, %v11166_v51  ;;  %v22221_v51 = vld [vmem:[#allocation58_spill] sm:$0xff] }
 0x43f   : > { %16165 = vmatmul.mubr.msk.f32.gmra.mrb[94].mxu1 %vm710_vm3, %v7418_v0 }
 0x440   : > { %16169 = vmatprep.mubr.msk.f32.mxu1 %vm710_vm3, %v22191_v20  ;;  %v22224_v20 = vld [vmem:[#allocation100_spill] sm:$0xff] }
 0x441   : > { %16609 = vmatmul.mubr.msk.f32.gmra.mrb[58].mxu0 %vm710_vm3, %v11167_v39  ;;  %v22223_v39 = vld [vmem:[#allocation17_spill] sm:$0xff] }
 0x442   : > { %16611 = vmatprep.mubr.msk.f32.mxu0 %vm710_vm3, %v22192_v2  ;;  %v22225_v2 = vld [vmem:[#allocation60_spill] sm:$0xff] }
 0x443   : > { %16170 = vmatmul.mubr.msk.f32.vlgmr.msra.gmra.mrb[64].mxu1 %vm710_vm3, %v22193_v56  ;;  %v22226_v56 = vld [vmem:[#allocation73_spill] sm:$0xff] }
 0x444   : > { %16172 = vmatprep.mubr.msk.f32.mxu1 %vm710_vm3, %v22195_v59  ;;  %16218 = vmatpush3.msk.msra.mxu1 %vm905_vm2, %v20752_v63  ;;  %v22202_v63 = vld [vmem:[#allocation93_spill] sm:$0xff]  ;;  %v11545_v59 = vld [vmem:[#allocation2 + $0xf1] sm:$0xff] }
 0x445   : > { %16612 = vmatmul.mubr.msk.f32.gmra.mrb[60].mxu0 %vm710_vm3, %v22194_v54  ;;  %v11544_v54 = vld [vmem:[#allocation2 + $0xe1] sm:$0xff] }
 0x446   : > { %16614 = vmatprep.mubr.msk.f32.mxu0 %vm710_vm3, %v7417_v7  ;;  %v22220_v7 = vld [vmem:[#allocation98_spill] sm:$0xff] }
 0x447   : > { %16173 = vmatmul.mubr.msk.f32.gmra.mrb[66].mxu1 %vm710_vm3, %v22196_v24  ;;  %v22227_v24 = vld [vmem:[#allocation19_spill] sm:$0xff] }
 0x448   : > { %16175 = vmatprep.mubr.msk.f32.mxu1 %vm710_vm3, %v22197_v12  ;;  %v22228_v12 = vld [vmem:[#allocation63_spill] sm:$0xff] }
 0x449   : > { %16615 = vmatmul.mubr.msk.f32.gmra.mrb[62].mxu0 %vm710_vm3, %v7418_v0  ;;  %v22222_v0 = vld [vmem:[#allocation99_spill] sm:$0xff] }
 0x44a   : > { %16619 = vmatprep.mubr.msk.f32.mxu0 %vm710_vm3, %v22198_v53  ;;  %v11546_v53 = vld [vmem:[#allocation2 + $0xf9] sm:$0xff] }
 0x44b   : > { %16176 = vmatmul.mubr.msk.f32.gmra.mrb[68].mxu1 %vm710_vm3, %v22199_v50  ;;  %v11547_v50 = vld [vmem:[#allocation2 + $0x109] sm:$0xff] }
 0x44c   : > { %16178 = vmatprep.mubr.msk.f32.mxu1 %vm710_vm3, %v22201_v30  ;;  %v22230_v30 = vld [vmem:[#allocation68_spill] sm:$0xff] }
 0x44d   : > { %16620 = vmatmul.mubr.msk.f32.vlgmr.msra.gmra.mrb[32].mxu0 %vm710_vm3, %v22200_v32  ;;  %v22229_v32 = vld [vmem:[#allocation22_spill] sm:$0xff] }
 0x44e   : > { %16668 = vmatpush3.msk.msra.mxu0 %vm905_vm2, %v20778_v8  ;;  %16622 = vmatprep.mubr.msk.f32.mxu0 %vm710_vm3, %v22202_v63  ;;  %v22209_v8 = vld [vmem:[#allocation49_spill] sm:$0xff]  ;;  %v11548_v63 = vld [vmem:[#allocation2 + $0x111] sm:$0xff] }
 0x44f   : > { %16179 = vmatmul.mubr.msk.f32.gmra.mrb[70].mxu1 %vm710_vm3, %v22203_v37  ;;  %v11549_v37 = vld [vmem:[#allocation2 + $0x121] sm:$0xff] }
 0x450   : > { %16181 = vmatprep.mubr.msk.f32.mxu1 %vm710_vm3, %v22205_v36  ;;  %v11550_v36 = vld [vmem:[#allocation2 + $0x129] sm:$0xff] }
 0x451   : > { %16623 = vmatmul.mubr.msk.f32.gmra.mrb[34].mxu0 %vm710_vm3, %v22204_v62  ;;  %v22231_v62 = vld [vmem:[#allocation67_spill] sm:$0xff] }
 0x452   : > { %16625 = vmatprep.mubr.msk.f32.mxu0 %vm710_vm3, %v22206_v15  ;;  %v11551_v15 = vld [vmem:[#allocation2 + $0x139] sm:$0xff] }
 0x453   : > { %16182 = vmatmul.mubr.msk.f32.gmra.mrb[72].mxu1 %vm710_vm3, %v22207_v42  ;;  %v11552_v42 = vld [vmem:[#allocation2 + $0x141] sm:$0xff] }
 0x454   : > { %16184 = vmatprep.mubr.msk.f32.mxu1 %vm710_vm3, %v22209_v8  ;;  %v22232_v8 = vld [vmem:[#allocation79_spill] sm:$0xff] }
 0x455   : > { %16626 = vmatmul.mubr.msk.f32.gmra.mrb[36].mxu0 %vm710_vm3, %v22208_v22  ;;  %v11553_v22 = vld [vmem:[#allocation2 + $0x151] sm:$0xff] }
 0x456   : > { %16628 = vmatprep.mubr.msk.f32.mxu0 %vm710_vm3, %v22210_v45  ;;  %v11555_v45 = vld [vmem:[#allocation2 + $0x169] sm:$0xff] }
 0x457   : > { %16185 = vmatmul.mubr.msk.f32.gmra.mrb[74].mxu1 %vm710_vm3, %v22211_v49  ;;  %v11556_v49 = vld [vmem:[#allocation2 + $0x171] sm:$0xff] }
 0x458   : > { %16187 = vmatprep.mubr.msk.f32.mxu1 %vm710_vm3, %v22213_v3  ;;  %v11926_v3 = vld [vmem:[#allocation2 + $0x92] sm:$0xff] }
 0x459   : > { %16629 = vmatmul.mubr.msk.f32.gmra.mrb[38].mxu0 %vm710_vm3, %v22212_v18  ;;  %v11925_v18 = vld [vmem:[#allocation2 + $0x82] sm:$0xff] }
 0x45a   : > { %16631 = vmatprep.mubr.msk.f32.mxu0 %vm710_vm3, %v22214_v60  ;;  %v22237_v60 = vld [vmem:[#allocation48_spill] sm:$0xff] }
 0x45b   : > { %16188 = vmatmul.mubr.msk.f32.gmra.mrb[76].mxu1 %vm710_vm3, %v22215_v13  ;;  %v22238_v13 = vld [vmem:[#allocation55_spill] sm:$0xff] }
 0x45c   : > { %16190 = vmatprep.mubr.msk.f32.mxu1 %vm710_vm3, %v22217_v14  ;;  %v11928_v14 = vld [vmem:[#allocation2 + $0xaa] sm:$0xff] }
 0x45d   : > { %16632 = vmatmul.mubr.msk.f32.gmra.mrb[40].mxu0 %vm710_vm3, %v22216_v23  ;;  %v11927_v23 = vld [vmem:[#allocation2 + $0x9a] sm:$0xff] }
 0x45e   : > { %16634 = vmatprep.mubr.msk.f32.mxu0 %vm710_vm3, %v22218_v31  ;;  %v22239_v31 = vld [vmem:[#allocation15_spill] sm:$0xff] }
 0x45f   : > { %16191 = vmatmul.mubr.msk.f32.gmra.mrb[78].mxu1 %vm710_vm3, %v22219_v29  ;;  %v11929_v29 = vld [vmem:[#allocation2 + $0xb2] sm:$0xff] }
 0x460   : > { %16193 = vmatprep.mubr.msk.f32.mxu1 %vm710_vm3, %v22221_v51  ;;  %v22240_v51 = vld [vmem:[#allocation24_spill] sm:$0xff] }
 0x461   : > { %16635 = vmatmul.mubr.msk.f32.gmra.mrb[42].mxu0 %vm710_vm3, %v22220_v7  ;;  %v11930_v7 = vld [vmem:[#allocation2 + $0xc2] sm:$0xff] }
 0x462   : > { %16637 = vmatprep.mubr.msk.f32.mxu0 %vm710_vm3, %v22222_v0  ;;  %v11932_v0 = vld [vmem:[#allocation2 + $0xda] sm:$0xff] }
 0x463   : > { %16194 = vmatmul.mubr.msk.f32.gmra.mrb[80].mxu1 %vm710_vm3, %v22223_v39  ;;  %v11934_v39 = vld [vmem:[#allocation2 + $0xf2] sm:$0xff] }
 0x464   : > { %16196 = vmatprep.mubr.msk.f32.mxu1 %vm710_vm3, %v22225_v2  ;;  %v11944_v2 = vld [vmem:[#allocation2 + $0x16a] sm:$0xff] }
 0x465   : > { %16638 = vmatmul.mubr.msk.f32.gmra.mrb[44].mxu0 %vm710_vm3, %v22224_v20  ;;  %v11936_v20 = vld [vmem:[#allocation2 + $0x10a] sm:$0xff] }
 0x466   : > { %16640 = vmatprep.mubr.msk.f32.mxu0 %vm710_vm3, %v22226_v56 }
 0x467   : > { %16197 = vmatmul.mubr.msk.f32.gmra.mrb[82].mxu1 %vm710_vm3, %v22227_v24 }
 0x468   : > { %16199 = vmatprep.mubr.msk.f32.mxu1 %vm710_vm3, %v22228_v12 }
 0x469   : > { %16641 = vmatmul.mubr.msk.f32.gmra.mrb[46].mxu0 %vm710_vm3, %v11544_v54 }
 0x46a   : > { %16643 = vmatprep.mubr.msk.f32.mxu0 %vm710_vm3, %v11545_v59 }
 0x46b   : > { %16200 = vmatmul.mubr.msk.f32.gmra.mrb[84].mxu1 %vm710_vm3, %v22229_v32 }
 0x46c   : > { %16202 = vmatprep.mubr.msk.f32.mxu1 %vm710_vm3, %v22230_v30 }
 0x46d   : > { %16644 = vmatmul.mubr.msk.f32.gmra.mrb[48].mxu0 %vm710_vm3, %v11546_v53  ;;  %v21101_v53 = vld [vmem:[%s22242_s30 + $0x1] ss:$0 sm:$0xff] }
 0x46e   : > { %16646 = vmatprep.mubr.msk.f32.mxu0 %vm710_vm3, %v11547_v50 }
 0x46f   : > { %16203 = vmatmul.mubr.msk.f32.gmra.mrb[86].mxu1 %vm710_vm3, %v22231_v62 }
 0x470   : > { %16205 = vmatprep.mubr.msk.f32.mxu1 %vm710_vm3, %v22139_v46  ;;  %v11554_v46 = vld [vmem:[#allocation2 + $0x159] sm:$0xff] }
 0x471   : > { %16647 = vmatmul.mubr.msk.f32.gmra.mrb[50].mxu0 %vm710_vm3, %v11548_v63 }
 0x472   : > { %16649 = vmatprep.mubr.msk.f32.mxu0 %vm710_vm3, %v11549_v37 }
 0x473   : > { %16206 = vmatmul.mubr.msk.f32.gmra.mrb[88].mxu1 %vm710_vm3, %v22141_v43  ;;  %v7806_v43 = vld [vmem:[#allocation2 + $0x199] sm:$0xff] }
 0x474   : > { %16208 = vmatprep.mubr.msk.f32.mxu1 %vm710_vm3, %v22143_v40  ;;  %v7807_v40 = vld [vmem:[#allocation2 + $0x1a1] sm:$0xff] }
 0x475   : > { %16650 = vmatmul.mubr.msk.f32.gmra.mrb[52].mxu0 %vm710_vm3, %v11550_v36 }
 0x476   : > { %16652 = vmatprep.mubr.msk.f32.mxu0 %vm710_vm3, %v11551_v15 }
 0x477   : > { %16209 = vmatmul.mubr.msk.f32.gmra.mrb[90].mxu1 %vm710_vm3, %v22232_v8 }
 0x478   : > { %16211 = vmatprep.mubr.msk.f32.mxu1 %vm710_vm3, %v20048_v48  ;;  %v11918_v48 = vld [vmem:[#allocation2 + $0x32] sm:$0xff] }
 0x479   : > { %16653 = vmatmul.mubr.msk.f32.gmra.mrb[54].mxu0 %vm710_vm3, %v11552_v42 }
 0x47a   : > { %16655 = vmatprep.mubr.msk.f32.mxu0 %vm710_vm3, %v11553_v22 }
 0x47b   : > { %16212 = vmatmul.mubr.msk.f32.gmra.mrb[92].mxu1 %vm710_vm3, %v20060_v52  ;;  %v22233_v52 = vld [vmem:[#allocation40_spill] sm:$0xff] }
 0x47c   : > { %16214 = vmatprep.mubr.msk.f32.mxu1 %vm710_vm3, %v7806_v43 }
 0x47d   : > { %16656 = vmatmul.mubr.msk.f32.gmra.mrb[56].mxu0 %vm710_vm3, %v11554_v46 }
 0x47e   : > { %16658 = vmatprep.mubr.msk.f32.mxu0 %vm710_vm3, %v11555_v45 }
 0x47f   : > { %16215 = vmatmul.mubr.msk.f32.gmra.mrb[94].mxu1 %vm710_vm3, %v7807_v40 }
 0x480   : > { %16219 = vmatprep.mubr.msk.f32.mxu1 %vm710_vm3, %v19338_v11  ;;  %v11919_v11 = vld [vmem:[#allocation2 + $0x3a] sm:$0xff] }
 0x481   : > { %16659 = vmatmul.mubr.msk.f32.gmra.mrb[58].mxu0 %vm710_vm3, %v11556_v49 }
 0x482   : > { %16661 = vmatprep.mubr.msk.f32.mxu0 %vm710_vm3, %v20595_v33  ;;  %v11924_v33 = vld [vmem:[#allocation2 + $0x7a] sm:$0xff] }
 0x483   : > { %16220 = vmatmul.mubr.msk.f32.vlgmr.msra.gmra.mrb[64].mxu1 %vm710_vm3, %v19340_v19  ;;  %v11920_v19 = vld [vmem:[#allocation2 + $0x4a] sm:$0xff] }
 0x484   : > { %16222 = vmatprep.mubr.msk.f32.mxu1 %vm710_vm3, %v19379_v41  ;;  %v11922_v41 = vld [vmem:[#allocation2 + $0x62] sm:$0xff] }
 0x485   : > { %16662 = vmatmul.mubr.msk.f32.gmra.mrb[60].mxu0 %vm710_vm3, %v20610_v47  ;;  %v22235_v47 = vld [vmem:[#allocation44_spill] sm:$0xff] }
 0x486   : > { %16664 = vmatprep.mubr.msk.f32.mxu0 %vm710_vm3, %v7806_v43 }
 0x487   : > { %16223 = vmatmul.mubr.msk.f32.gmra.mrb[66].mxu1 %vm710_vm3, %v19359_v5  ;;  %v11921_v5 = vld [vmem:[#allocation2 + $0x52] sm:$0xff] }
 0x488   : > { %16225 = vmatprep.mubr.msk.f32.mxu1 %vm710_vm3, %v19420_v6  ;;  %v22234_v6 = vld [vmem:[#allocation46_spill] sm:$0xff] }
 0x489   : > { %16665 = vmatmul.mubr.msk.f32.gmra.mrb[62].mxu0 %vm710_vm3, %v7807_v40 }
 0x48a   : > { %16669 = vmatprep.mubr.msk.f32.mxu0 %vm710_vm3, %v11918_v48 }
 0x48b   : > { %16226 = vmatmul.mubr.msk.f32.gmra.mrb[68].mxu1 %vm710_vm3, %v19399_v25  ;;  %v11923_v25 = vld [vmem:[#allocation2 + $0x6a] sm:$0xff] }
 0x48c   : > { %16228 = vmatprep.mubr.msk.f32.mxu1 %vm710_vm3, %v22152_v35  ;;  %v22236_v35 = vld [vmem:[#allocation50_spill] sm:$0xff] }
 0x48d   : > { %16670 = vmatmul.mubr.msk.f32.vlgmr.msra.gmra.mrb[32].mxu0 %vm710_vm3, %v11919_v11 }
 0x48e   : > { %16672 = vmatprep.mubr.msk.f32.mxu0 %vm710_vm3, %v11920_v19 }
 0x48f   : > { %16229 = vmatmul.mubr.msk.f32.gmra.mrb[70].mxu1 %vm710_vm3, %v22233_v52 }
 0x490   : > { %16231 = vmatprep.mubr.msk.f32.mxu1 %vm710_vm3, %v22234_v6 }
 0x491   : > { %16673 = vmatmul.mubr.msk.f32.gmra.mrb[34].mxu0 %vm710_vm3, %v11921_v5 }
 0x492   : > { %16675 = vmatprep.mubr.msk.f32.mxu0 %vm710_vm3, %v11922_v41 }
 0x493   : > { %16232 = vmatmul.mubr.msk.f32.gmra.mrb[72].mxu1 %vm710_vm3, %v22235_v47 }
 0x494   : > { %16234 = vmatprep.mubr.msk.f32.mxu1 %vm710_vm3, %v22236_v35 }
 0x495   : > { %16676 = vmatmul.mubr.msk.f32.gmra.mrb[36].mxu0 %vm710_vm3, %v11923_v25 }
 0x496   : > { %16678 = vmatprep.mubr.msk.f32.mxu0 %vm710_vm3, %v11924_v33 }
 0x497   : > { %16235 = vmatmul.mubr.msk.f32.gmra.mrb[74].mxu1 %vm710_vm3, %v22237_v60 }
 0x498   : > { %16237 = vmatprep.mubr.msk.f32.mxu1 %vm710_vm3, %v22238_v13 }
 0x499   : > { %16679 = vmatmul.mubr.msk.f32.gmra.mrb[38].mxu0 %vm710_vm3, %v11925_v18 }
 0x49a   : > { %16681 = vmatprep.mubr.msk.f32.mxu0 %vm710_vm3, %v11926_v3 }
 0x49b   : > { %16238 = vmatmul.mubr.msk.f32.gmra.mrb[76].mxu1 %vm710_vm3, %v22165_v10  ;;  %v11931_v10 = vld [vmem:[#allocation2 + $0xca] sm:$0xff] }
 0x49c   : > { %16240 = vmatprep.mubr.msk.f32.mxu1 %vm710_vm3, %v22239_v31 }
 0x49d   : > { %16682 = vmatmul.mubr.msk.f32.gmra.mrb[40].mxu0 %vm710_vm3, %v11927_v23 }
 0x49e   : > { %16684 = vmatprep.mubr.msk.f32.mxu0 %vm710_vm3, %v11928_v14 }
 0x49f   : > { %16241 = vmatmul.mubr.msk.f32.gmra.mrb[78].mxu1 %vm710_vm3, %v22169_v26  ;;  %v11933_v26 = vld [vmem:[#allocation2 + $0xe2] sm:$0xff] }
 0x4a0   : > { %16243 = vmatprep.mubr.msk.f32.mxu1 %vm710_vm3, %v22240_v51 }
 0x4a1   : > { %16685 = vmatmul.mubr.msk.f32.gmra.mrb[42].mxu0 %vm710_vm3, %v11929_v29 }
 0x4a2   : > { %16687 = vmatprep.mubr.msk.f32.mxu0 %vm710_vm3, %v11930_v7 }
 0x4a3   : > { %16244 = vmatmul.mubr.msk.f32.gmra.mrb[80].mxu1 %vm710_vm3, %v22055_v61  ;;  %v11935_v61 = vld [vmem:[#allocation2 + $0xfa] sm:$0xff] }
 0x4a4   : > { %16246 = vmatprep.mubr.msk.f32.mxu1 %vm710_vm3, %v22174_v27  ;;  %v11938_v27 = vld [vmem:[#allocation2 + $0x122] sm:$0xff] }
 0x4a5   : > { %16688 = vmatmul.mubr.msk.f32.gmra.mrb[44].mxu0 %vm710_vm3, %v11931_v10 }
 0x4a6   : > { %16690 = vmatprep.mubr.msk.f32.mxu0 %vm710_vm3, %v11932_v0 }
 0x4a7   : > { %16247 = vmatmul.mubr.msk.f32.gmra.mrb[82].mxu1 %vm710_vm3, %v22058_v38  ;;  %v11937_v38 = vld [vmem:[#allocation2 + $0x112] sm:$0xff] }
 0x4a8   : > { %16249 = vmatprep.mubr.msk.f32.mxu1 %vm710_vm3, %v22177_v16  ;;  %v11940_v16 = vld [vmem:[#allocation2 + $0x13a] sm:$0xff] }
 0x4a9   : > { %16691 = vmatmul.mubr.msk.f32.gmra.mrb[46].mxu0 %vm710_vm3, %v11933_v26 }
 0x4aa   : > { %16693 = vmatprep.mubr.msk.f32.mxu0 %vm710_vm3, %v11934_v39 }
 0x4ab   : > { %16250 = vmatmul.mubr.msk.f32.gmra.mrb[84].mxu1 %vm710_vm3, %v22060_v57  ;;  %v11939_v57 = vld [vmem:[#allocation2 + $0x12a] sm:$0xff] }
 0x4ac   : > { %16252 = vmatprep.mubr.msk.f32.mxu1 %vm710_vm3, %v22179_v1  ;;  %v11942_v1 = vld [vmem:[#allocation2 + $0x152] sm:$0xff] }
 0x4ad   : > { %16694 = vmatmul.mubr.msk.f32.gmra.mrb[48].mxu0 %vm710_vm3, %v11935_v61 }
 0x4ae   : > { %16696 = vmatprep.mubr.msk.f32.mxu0 %vm710_vm3, %v11936_v20 }
 0x4af   : > { %16253 = vmatmul.mubr.msk.f32.gmra.mrb[86].mxu1 %vm710_vm3, %v19752_v4  ;;  %v11941_v4 = vld [vmem:[#allocation2 + $0x142] sm:$0xff] }
 0x4b0   : > { %16255 = vmatprep.mubr.msk.f32.mxu1 %vm710_vm3, %v22181_v58  ;;  %v8195_v58 = vld [vmem:[#allocation2 + $0x19a] sm:$0xff] }
 0x4b1   : > { %16697 = vmatmul.mubr.msk.f32.gmra.mrb[50].mxu0 %vm710_vm3, %v11937_v38 }
 0x4b2   : > { %16699 = vmatprep.mubr.msk.f32.mxu0 %vm710_vm3, %v11938_v27 }
 0x4b3   : > { %16256 = vmatmul.mubr.msk.f32.gmra.mrb[88].mxu1 %vm710_vm3, %v19784_v55  ;;  %v11943_v55 = vld [vmem:[#allocation2 + $0x15a] sm:$0xff] }
 0x4b4   : > { %16258 = vmatprep.mubr.msk.f32.mxu1 %vm710_vm3, %v22183_v9  ;;  %v8196_v9 = vld [vmem:[#allocation2 + $0x1a2] sm:$0xff] }
 0x4b5   : > { %16700 = vmatmul.mubr.msk.f32.gmra.mrb[52].mxu0 %vm710_vm3, %v11939_v57 }
 0x4b6   : > { %16702 = vmatprep.mubr.msk.f32.mxu0 %vm710_vm3, %v11940_v16 }
 0x4b7   : > { %16259 = vmatmul.mubr.msk.f32.gmra.mrb[90].mxu1 %vm710_vm3, %v22184_v21  ;;  %v11945_v21 = vld [vmem:[#allocation2 + $0x172] sm:$0xff] }
 0x4b8   : > { %16261 = vmatprep.mubr.msk.f32.mxu1 %vm710_vm3, %v22185_v34  ;;  %v12573_v34 = vld [vmem:[%s22241_s19] sm:$0xff] }
 0x4b9   : > { %16703 = vmatmul.mubr.msk.f32.gmra.mrb[54].mxu0 %vm710_vm3, %v11941_v4  ;;  %16717 = vmatprep.subr.mxu1 %v12573_v34 }
 0x4ba   : > { %16705 = vmatprep.mubr.msk.f32.mxu0 %vm710_vm3, %v11942_v1  ;;  %16718 = vmatpush3.msra.mxu1 %v12573_v34 }
 0x4bb   : > { %16262 = vmatmul.mubr.msk.f32.gmra.mrb[92].mxu1 %vm710_vm3, %v22186_v17 }
 0x4bc   : > { %16264 = vmatprep.mubr.msk.f32.mxu1 %vm710_vm3, %v8195_v58 }
 0x4bd   : > { %16706 = vmatmul.mubr.msk.f32.gmra.mrb[56].mxu0 %vm710_vm3, %v11943_v55 }
 0x4be   : > { %16708 = vmatprep.mubr.msk.f32.mxu0 %vm710_vm3, %v11944_v2 }
 0x4bf   : > { %16265 = vmatmul.mubr.msk.f32.gmra.mrb[94].mxu1 %vm710_vm3, %v8196_v9 }
 0x4c1   : > { %16709 = vmatmul.mubr.msk.f32.gmra.mrb[58].mxu0 %vm710_vm3, %v11945_v21 }
 0x4c2   : > { %16711 = vmatprep.mubr.msk.f32.mxu0 %vm710_vm3, %v20745_v44 }
 0x4c5   : > { %16712 = vmatmul.mubr.msk.f32.gmra.mrb[60].mxu0 %vm710_vm3, %v20760_v28  ;;  %v21094_v28 = vld [vmem:[%s22242_s30] ss:$0 sm:$0xff] }
 0x4c6   : > { %16714 = vmatprep.mubr.msk.f32.mxu0 %vm710_vm3, %v8195_v58 }
 0x4c9   : > { %16715 = vmatmul.mubr.msk.f32.gmra.mrb[62].mxu0 %vm710_vm3, %v8196_v9 }
 0x556   : > { %v21081_v17 = vpop.f32.mrb[64].mxu1 }
 0x557   : > { %v21083_v56 = vpop.f32.mrb[65].mxu1 }
 0x55a   : > { %v21085_v54 = vpop.f32.mrb[66].mxu1 }
 0x55b   : > { %v21087_v44 = vpop.f32.mrb[67].mxu1 }
 0x55e   : > { %v21089_v59 = vpop.f32.mrb[68].mxu1 }
 0x55f   : > { %v21096_v12 = vpop.f32.mrb[69].mxu1 }
 0x560   : > { %v16671_v24 = vpop.f32.mrb[32].mxu0 }
 0x561   : > { %v12116_v50 = vpop.f32.mrb[33].mxu0  ;;  %v12313_v32 = vmul.f32 %v16671_v24, %v21094_v28 }
 0x562   : > { %v12312_v30 = vmul.f32 %v21094_v28, %v12116_v50  ;;  %v21105_v63 = vpop.f32.mrb[70].mxu1 }
 0x563   : > { %v21107_v62 = vpop.f32.mrb[71].mxu1  ;;  %v12350_v42 = vadd.f32 %v21101_v53, %v12313_v32 }
 0x564   : > { %v16674_v37 = vpop.f32.mrb[34].mxu0  ;;  %v12349_v36 = vadd.f32 %v21101_v53, %v12312_v30 }
 0x565   : > { %v12126_v15 = vpop.f32.mrb[35].mxu0  ;;  %v12315_v22 = vmul.f32 %v16674_v37, %v21094_v28  ;;  %v12382_v19 = vmax.f32 %v12350_v42, 0.0 }
 0x566   : > { %v12314_v8 = vmul.f32 %v21094_v28, %v12126_v15  ;;  %v12381_v46 = vmax.f32 %v12349_v36, 0.0  ;;  %v21113_v43 = vpop.f32.mrb[72].mxu1 }
 0x567   : > { %v21116_v40 = vpop.f32.mrb[73].mxu1  ;;  %v12352_v5 = vadd.f32 %v21101_v53, %v12315_v22 }
 0x568   : > { %12445 = vrot.lane.b32.xlu0 %v12381_v46, %s17718_s21  ;;  %v16677_v45 = vpop.f32.mrb[36].mxu0  ;;  %v12351_v49 = vadd.f32 %v21101_v53, %v12314_v8 }
 0x569   : > { %v12317_v48 = vmul.f32 %v16677_v45, %v21094_v28  ;;  %v12136_v11 = vpop.f32.mrb[37].mxu0  ;;  %v12384_v3 = vmax.f32 %v12352_v5, 0.0 }
 0x56a   : > { %v12316_v41 = vmul.f32 %v21094_v28, %v12136_v11  ;;  %v12383_v52 = vmax.f32 %v12351_v49, 0.0  ;;  %v21122_v6 = vpop.f32.mrb[74].mxu1 }
 0x56b   : > { %v21127_v47 = vpop.f32.mrb[75].mxu1  ;;  %v12354_v35 = vadd.f32 %v21101_v53, %v12317_v48 }
 0x56c   : > { %v12353_v25 = vadd.f32 %v21101_v53, %v12316_v41  ;;  %12447 = vrot.lane.b32.xlu0 %v12382_v19, %s17718_s21  ;;  %12449 = vrot.lane.b32.xlu1 %v12383_v52, %s17718_s21  ;;  %v16680_v33 = vpop.f32.mrb[38].mxu0 }
 0x56d   : > { %v12146_v18 = vpop.f32.mrb[39].mxu0  ;;  %v12319_v13 = vmul.f32 %v16680_v33, %v21094_v28  ;;  %v12386_v51 = vmax.f32 %v12354_v35, 0.0 }
 0x56e   : > { %v12385_v60 = vmax.f32 %v12353_v25, 0.0  ;;  %v12318_v23 = vmul.f32 %v21094_v28, %v12146_v18  ;;  %v21132_v14 = vpop.f32.mrb[76].mxu1 }
 0x56f   : > { %v21137_v7 = vpop.f32.mrb[77].mxu1  ;;  %v12356_v0 = vadd.f32 %v21101_v53, %v12319_v13 }
 0x570   : > { %v12355_v31 = vadd.f32 %v21101_v53, %v12318_v23  ;;  %12451 = vrot.lane.b32.xlu1 %v12384_v3, %s17718_s21  ;;  %12453 = vrot.lane.b32.xlu0 %v12385_v60, %s17718_s21  ;;  %v16683_v29 = vpop.f32.mrb[40].mxu0 }
 0x571   : > { %v12156_v10 = vpop.f32.mrb[41].mxu0  ;;  %v12321_v39 = vmul.f32 %v16683_v29, %v21094_v28  ;;  %v12388_v1 = vmax.f32 %v12356_v0, 0.0 }
 0x572   : > { %v12387_v26 = vmax.f32 %v12355_v31, 0.0  ;;  %v12320_v61 = vmul.f32 %v21094_v28, %v12156_v10  ;;  %v21142_v20 = vpop.f32.mrb[78].mxu1 }
 0x573   : > { %v21147_v57 = vpop.f32.mrb[79].mxu1  ;;  %v12358_v55 = vadd.f32 %v21101_v53, %v12321_v39 }
 0x574   : > { %v12357_v38 = vadd.f32 %v21101_v53, %v12320_v61  ;;  %12455 = vrot.lane.b32.xlu1 %v12386_v51, %s17718_s21  ;;  %12457 = vrot.lane.b32.xlu0 %v12387_v26, %s17718_s21  ;;  %v16686_v27 = vpop.f32.mrb[42].mxu0 }
 0x575   : > { %v12323_v16 = vmul.f32 %v16686_v27, %v21094_v28  ;;  %v12166_v4 = vpop.f32.mrb[43].mxu0  ;;  %v12390_v30 = vmax.f32 %v12358_v55, 0.0 }
 0x576   : > { %v12389_v58 = vmax.f32 %v12357_v38, 0.0  ;;  %v12322_v2 = vmul.f32 %v21094_v28, %v12166_v4  ;;  %v21152_v9 = vpop.f32.mrb[80].mxu1 }
 0x577   : > { %v21157_v24 = vpop.f32.mrb[81].mxu1  ;;  %v12360_v50 = vadd.f32 %v21101_v53, %v12323_v16 }
 0x578   : > { %v12359_v21 = vadd.f32 %v21101_v53, %v12322_v2  ;;  %12459 = vrot.lane.b32.xlu1 %v12388_v1, %s17718_s21  ;;  %12461 = vrot.lane.b32.xlu0 %v12389_v58, %s17718_s21  ;;  %v16689_v34 = vpop.f32.mrb[44].mxu0 }
 0x579   : > { %v12176_v32 = vpop.f32.mrb[45].mxu0  ;;  %v12325_v36 = vmul.f32 %v16689_v34, %v21094_v28  ;;  %v12392_v45 = vmax.f32 %v12360_v50, 0.0 }
 0x57a   : > { %v12391_v37 = vmax.f32 %v12359_v21, 0.0  ;;  %v12324_v15 = vmul.f32 %v21094_v28, %v12176_v32  ;;  %v21162_v42 = vpop.f32.mrb[82].mxu1 }
 0x57b   : > { %v21167_v46 = vpop.f32.mrb[83].mxu1  ;;  %v12362_v48 = vadd.f32 %v21101_v53, %v12325_v36 }
 0x57c   : > { %v12361_v22 = vadd.f32 %v21101_v53, %v12324_v15  ;;  %12463 = vrot.lane.b32.xlu1 %v12390_v30, %s17718_s21  ;;  %12465 = vrot.lane.b32.xlu0 %v12391_v37, %s17718_s21  ;;  %v16692_v8 = vpop.f32.mrb[46].mxu0 }
 0x57d   : > { %v12186_v49 = vpop.f32.mrb[47].mxu0  ;;  %v12327_v19 = vmul.f32 %v16692_v8, %v21094_v28  ;;  %v12394_v3 = vmax.f32 %v12362_v48, 0.0 }
 0x57e   : > { %v12393_v11 = vmax.f32 %v12361_v22, 0.0  ;;  %v12326_v5 = vmul.f32 %v21094_v28, %v12186_v49  ;;  %v21172_v41 = vpop.f32.mrb[84].mxu1 }
 0x57f   : > { %v21177_v33 = vpop.f32.mrb[85].mxu1  ;;  %v12364_v60 = vadd.f32 %v21101_v53, %v12327_v19 }
 0x580   : > { %v12363_v52 = vadd.f32 %v21101_v53, %v12326_v5  ;;  %12467 = vrot.lane.b32.xlu1 %v12392_v45, %s17718_s21  ;;  %12469 = vrot.lane.b32.xlu0 %v12393_v11, %s17718_s21  ;;  %v16695_v25 = vpop.f32.mrb[48].mxu0 }
 0x581   : > { %v12329_v35 = vmul.f32 %v16695_v25, %v21094_v28  ;;  %v12196_v18 = vpop.f32.mrb[49].mxu0  ;;  %v12396_v39 = vmax.f32 %v12364_v60, 0.0 }
 0x582   : > { %v12395_v13 = vmax.f32 %v12363_v52, 0.0  ;;  %v12328_v23 = vmul.f32 %v21094_v28, %v12196_v18  ;;  %v21182_v31 = vpop.f32.mrb[86].mxu1 }
 0x583   : > { %v21187_v10 = vpop.f32.mrb[87].mxu1  ;;  %v12366_v0 = vadd.f32 %v21101_v53, %v12329_v35 }
 0x584   : > { %v12365_v29 = vadd.f32 %v21101_v53, %v12328_v23  ;;  %12471 = vrot.lane.b32.xlu1 %v12394_v3, %s17718_s21  ;;  %12473 = vrot.lane.b32.xlu0 %v12395_v13, %s17718_s21  ;;  %v16698_v51 = vpop.f32.mrb[50].mxu0 }
 0x585   : > { %v12206_v26 = vpop.f32.mrb[51].mxu0  ;;  %v12331_v38 = vmul.f32 %v16698_v51, %v21094_v28  ;;  %v12398_v58 = vmax.f32 %v12366_v0, 0.0 }
 0x586   : > { %v12397_v61 = vmax.f32 %v12365_v29, 0.0  ;;  %v12330_v27 = vmul.f32 %v21094_v28, %v12206_v26  ;;  %v21192_v16 = vpop.f32.mrb[88].mxu1  ;;  %v21225_v29 = vld [vmem:[%s22243_s15] ss:$0 sm:$0xff] }
 0x587   : > { %v21197_v55 = vpop.f32.mrb[89].mxu1  ;;  %v12368_v21 = vadd.f32 %v21101_v53, %v12331_v38  ;;  %v21236_v38 = vld [vmem:[%s22243_s15 + $0x1] ss:$0 sm:$0xff] }
 0x588   : > { %v12367_v4 = vadd.f32 %v21101_v53, %v12330_v27  ;;  %12475 = vrot.lane.b32.xlu1 %v12396_v39, %s17718_s21  ;;  %12477 = vrot.lane.b32.xlu0 %v12397_v61, %s17718_s21  ;;  %v16701_v1 = vpop.f32.mrb[52].mxu0 }
 0x589   : > { %v12216_v2 = vpop.f32.mrb[53].mxu0  ;;  %v12333_v50 = vmul.f32 %v16701_v1, %v21094_v28  ;;  %v12400_v45 = vmax.f32 %v12368_v21, 0.0 }
 0x58a   : > { %v12399_v34 = vmax.f32 %v12367_v4, 0.0  ;;  %v12332_v32 = vmul.f32 %v21094_v28, %v12216_v2  ;;  %v21202_v30 = vpop.f32.mrb[90].mxu1 }
 0x58b   : > { %v21207_v15 = vpop.f32.mrb[91].mxu1  ;;  %v12370_v49 = vadd.f32 %v21101_v53, %v12333_v50 }
 0x58c   : > { %v12369_v37 = vadd.f32 %v21101_v53, %v12332_v32  ;;  %12479 = vrot.lane.b32.xlu1 %v12398_v58, %s17718_s21  ;;  %12481 = vrot.lane.b32.xlu0 %v12399_v34, %s17718_s21  ;;  %v16704_v36 = vpop.f32.mrb[54].mxu0 }
 0x58d   : > { %v12335_v22 = vmul.f32 %v16704_v36, %v21094_v28  ;;  %v12226_v8 = vpop.f32.mrb[55].mxu0  ;;  %v12402_v60 = vmax.f32 %v12370_v49, 0.0 }
 0x58e   : > { %v12401_v48 = vmax.f32 %v12369_v37, 0.0  ;;  %v12334_v11 = vmul.f32 %v21094_v28, %v12226_v8  ;;  %v21212_v19 = vpop.f32.mrb[92].mxu1 }
 0x58f   : > { %v21217_v25 = vpop.f32.mrb[93].mxu1  ;;  %v12372_v35 = vadd.f32 %v21101_v53, %v12335_v22 }
 0x590   : > { %v12371_v5 = vadd.f32 %v21101_v53, %v12334_v11  ;;  %12483 = vrot.lane.b32.xlu1 %v12400_v45, %s17718_s21  ;;  %12485 = vrot.lane.b32.xlu0 %v12401_v48, %s17718_s21  ;;  %v16707_v52 = vpop.f32.mrb[56].mxu0 }
 0x591   : > { %v12337_v18 = vmul.f32 %v16707_v52, %v21094_v28  ;;  %v12236_v3 = vpop.f32.mrb[57].mxu0  ;;  %v12404_v27 = vmax.f32 %v12372_v35, 0.0 }
 0x592   : > { %v12403_v13 = vmax.f32 %v12371_v5, 0.0  ;;  %v12336_v23 = vmul.f32 %v21094_v28, %v12236_v3  ;;  %v16266_v51 = vpop.f32.mrb[94].mxu1 }
 0x593   : > { %v8590_v26 = vmul.f32 %v16266_v51, %v21225_v29  ;;  %v21231_v61 = vpop.f32.mrb[95].mxu1  ;;  %v12374_v4 = vadd.f32 %v21101_v53, %v12337_v18 }
 0x594   : > { %v12373_v0 = vadd.f32 %v21101_v53, %v12336_v23  ;;  %12487 = vrot.lane.b32.xlu1 %v12402_v60, %s17718_s21  ;;  %12489 = vrot.lane.b32.xlu0 %v12403_v13, %s17718_s21  ;;  %v16710_v39 = vpop.f32.mrb[58].mxu0 }
 0x595   : > { %v12246_v1 = vpop.f32.mrb[59].mxu0  ;;  %v21240_v2 = vadd.f32 %v21236_v38, %v8590_v26  ;;  %v12339_v21 = vmul.f32 %v16710_v39, %v21094_v28  ;;  %v12406_v37 = vmax.f32 %v12374_v4, 0.0  ;;  %v8560_v39 = vmul.f32 %v21081_v17, %v21225_v29 }
 0x596   : > { %v12405_v58 = vmax.f32 %v12373_v0, 0.0  ;;  %v12338_v34 = vmul.f32 %v21094_v28, %v12246_v1  ;;  %v8562_v1 = vmul.f32 %v21085_v54, %v21225_v29 }
 0x597   : > { %v12376_v22 = vadd.f32 %v21101_v53, %v12339_v21  ;;  %v8597_v4 = vadd.f32 %v21236_v38, %v8560_v39 }
 0x598   : > { %v12375_v50 = vadd.f32 %v21101_v53, %v12338_v34  ;;  %12491 = vrot.lane.b32.xlu1 %v12404_v27, %s17718_s21  ;;  %12493 = vrot.lane.b32.xlu0 %v12405_v58, %s17718_s21  ;;  %v16713_v32 = vpop.f32.mrb[60].mxu0  ;;  %v8561_v27 = vmul.f32 %v21225_v29, %v21087_v44  ;;  %v8563_v34 = vmul.f32 %v21225_v29, %v21096_v12 }
 0x599   : > { %v12256_v36 = vpop.f32.mrb[61].mxu0  ;;  %v12341_v45 = vmul.f32 %v16713_v32, %v21094_v28  ;;  %v12408_v35 = vmax.f32 %v12376_v22, 0.0  ;;  %v8599_v32 = vadd.f32 %v21236_v38, %v8562_v1 }
 0x59a   : > { %v12407_v8 = vmax.f32 %v12375_v50, 0.0  ;;  %v12340_v49 = vmul.f32 %v21094_v28, %v12256_v36  ;;  %v8598_v21 = vadd.f32 %v21236_v38, %v8561_v27  ;;  %v8629_v50 = vmax.f32 %v8597_v4, 0.0 }
 0x59b   : > { %v12378_v18 = vadd.f32 %v21101_v53, %v12341_v45  ;;  %v8600_v54 = vadd.f32 %v21236_v38, %v8563_v34  ;;  %v8565_v36 = vmul.f32 %v21225_v29, %v21107_v62  ;;  %v8567_v62 = vmul.f32 %v21225_v29, %v21116_v40 }
 0x59c   : > { %v12377_v48 = vadd.f32 %v21101_v53, %v12340_v49  ;;  %12495 = vrot.lane.b32.xlu1 %v12406_v37, %s17718_s21  ;;  %12497 = vrot.lane.b32.xlu0 %v12407_v8, %s17718_s21  ;;  %v16716_v11 = vpop.f32.mrb[62].mxu0  ;;  %v8630_v44 = vmax.f32 %v8598_v21, 0.0  ;;  %v8564_v37 = vmul.f32 %v21089_v59, %v21225_v29  ;;  %v8631_v49 = vmax.f32 %v8599_v32, 0.0 }
 0x59d   : > { %v12343_v5 = vmul.f32 %v16716_v11, %v21094_v28  ;;  %v12266_v52 = vpop.f32.mrb[63].mxu0  ;;  %v12410_v51 = vmax.f32 %v12378_v18, 0.0  ;;  %v8632_v59 = vmax.f32 %v8600_v54, 0.0  ;;  %v8569_v40 = vmul.f32 %v21225_v29, %v21127_v47 }
 0x59e   : > { %v12409_v3 = vmax.f32 %v12377_v48, 0.0  ;;  %v12342_v60 = vmul.f32 %v21094_v28, %v12266_v52  ;;  %v8559_v28 = vmul.f32 %v21225_v29, %v21083_v56  ;;  %v8566_v48 = vmul.f32 %v21105_v63, %v21225_v29 }
 0x59f   : > { %v12380_v13 = vadd.f32 %v21101_v53, %v12343_v5  ;;  %v8601_v11 = vadd.f32 %v21236_v38, %v8564_v37  ;;  %v8602_v5 = vadd.f32 %v21236_v38, %v8565_v36  ;;  %v8570_v4 = vmul.f32 %v21122_v6, %v21225_v29 }
 0x5a0   : > { %v12379_v23 = vadd.f32 %v21101_v53, %v12342_v60  ;;  %12499 = vrot.lane.b32.xlu1 %v12408_v35, %s17718_s21  ;;  %12501 = vrot.lane.b32.xlu0 %v12409_v3, %s17718_s21  ;;  %v8596_v53 = vadd.f32 %v21236_v38, %v8559_v28  ;;  %v8603_v63 = vadd.f32 %v21236_v38, %v8566_v48 }
 0x5a1   : > { %v12412_v26 = vmax.f32 %v12380_v13, 0.0  ;;  %v8568_v60 = vmul.f32 %v21113_v43, %v21225_v29  ;;  %v8633_v13 = vmax.f32 %v8601_v11, 0.0  ;;  %v8606_v1 = vadd.f32 %v21236_v38, %v8569_v40 }
 0x5a2   : > { %v12411_v0 = vmax.f32 %v12379_v23, 0.0  ;;  %v8628_v58 = vmax.f32 %v8596_v53, 0.0  ;;  %v8634_v23 = vmax.f32 %v8602_v5, 0.0  ;;  %v8635_v53 = vmax.f32 %v8603_v63, 0.0 }
 0x5a3   : > { %v8605_v43 = vadd.f32 %v21236_v38, %v8568_v60  ;;  %v8571_v47 = vmul.f32 %v21225_v29, %v21137_v7  ;;  %v8607_v6 = vadd.f32 %v21236_v38, %v8570_v4  ;;  %v8638_v32 = vmax.f32 %v8606_v1, 0.0 }
 0x5a4   : > { %12503 = vrot.lane.b32.xlu1 %v12410_v51, %s17718_s21  ;;  %12505 = vrot.lane.b32.xlu0 %v12411_v0, %s17718_s21  ;;  %v8604_v51 = vadd.f32 %v21236_v38, %v8567_v62  ;;  %v8573_v7 = vmul.f32 %v21225_v29, %v21147_v57  ;;  %v8575_v57 = vmul.f32 %v21225_v29, %v21157_v24 }
 0x5a5   : > { %v8577_v24 = vmul.f32 %v21225_v29, %v21167_v46  ;;  %v8579_v46 = vmul.f32 %v21225_v29, %v21177_v33  ;;  %v8581_v33 = vmul.f32 %v21225_v29, %v21187_v10  ;;  %v8583_v10 = vmul.f32 %v21225_v29, %v21197_v55 }
 0x5a6   : > { %v8636_v27 = vmax.f32 %v8604_v51, 0.0  ;;  %v8578_v51 = vmul.f32 %v21162_v42, %v21225_v29  ;;  %v8585_v55 = vmul.f32 %v21225_v29, %v21207_v15  ;;  %v8587_v15 = vmul.f32 %v21225_v29, %v21217_v25 }
 0x5a7   : > { %v8616_v1 = vadd.f32 %v21236_v38, %v8579_v46  ;;  %v8589_v25 = vmul.f32 %v21225_v29, %v21231_v61 }
 0x5a8   : > { %12507 = vrot.lane.b32.xlu1 %v12412_v26, %s17718_s21  ;;  %v8615_v42 = vadd.f32 %v21236_v38, %v8578_v51 }
 0x5da   : > { %v12446_v56 = vpop.permute.xlu0 %12445 }
 0x5db   : > { %v12541_v17 = vsel %vm710_vm3, %v8628_v58, %v12446_v56 }
 0x5dc   : > { %16719 = vmatprep.mubr.msk.f32.mxu1 %vm12574_vm5, %v12541_v17  ;;  %v8637_v17 = vmax.f32 %v8605_v43, 0.0  ;;  %v8580_v43 = vmul.f32 %v21172_v41, %v21225_v29 }
 0x5de   : > { %v12448_v22 = vpop.permute.xlu0 %12447  ;;  %v12450_v12 = vpop.permute.xlu1 %12449  ;;  %v8617_v41 = vadd.f32 %v21236_v38, %v8580_v43  ;;  %v8659_v43 = vmax.f32 %v21240_v2, 0.0 }
 0x5df   : > { %v12542_v8 = vsel %vm710_vm3, %v8629_v50, %v12448_v22  ;;  %v12543_v45 = vsel %vm710_vm3, %v8630_v44, %v12450_v12  ;;  %v8572_v50 = vmul.f32 %v21132_v14, %v21225_v29  ;;  %v8608_v44 = vadd.f32 %v21236_v38, %v8571_v47 }
 0x5e0   : > { %16720 = vmatmul.mubr.msk.f32.vlgmr.msra.gmra.mrb[96].mxu1 %vm12574_vm5, %v12542_v8  ;;  %v8574_v12 = vmul.f32 %v21142_v20, %v21225_v29  ;;  %v8639_v8 = vmax.f32 %v8607_v6, 0.0  ;;  %v8618_v6 = vadd.f32 %v21236_v38, %v8581_v33 }
 0x5e1   : > { %16722 = vmatprep.mubr.msk.f32.mxu1 %vm12574_vm5, %v12543_v45  ;;  %v8609_v14 = vadd.f32 %v21236_v38, %v8572_v50  ;;  %v8640_v45 = vmax.f32 %v8608_v44, 0.0  ;;  %v8582_v50 = vmul.f32 %v21182_v31, %v21225_v29 }
 0x5e2   : > { %v12452_v52 = vpop.permute.xlu1 %12451  ;;  %v12454_v35 = vpop.permute.xlu0 %12453  ;;  %v8611_v20 = vadd.f32 %v21236_v38, %v8574_v12 }
 0x5e3   : > { %v12544_v18 = vsel %vm710_vm3, %v8631_v49, %v12452_v52  ;;  %v12545_v3 = vsel %vm710_vm3, %v8632_v59, %v12454_v35  ;;  %v8610_v49 = vadd.f32 %v21236_v38, %v8573_v7  ;;  %v8641_v62 = vmax.f32 %v8609_v14, 0.0 }
 0x5e4   : > { %16723 = vmatmul.mubr.msk.f32.gmra.mrb[98].mxu1 %vm12574_vm5, %v12544_v18  ;;  %v8576_v35 = vmul.f32 %v21152_v9, %v21225_v29  ;;  %v8612_v18 = vadd.f32 %v21236_v38, %v8575_v57  ;;  %v8619_v31 = vadd.f32 %v21236_v38, %v8582_v50  ;;  %v8620_v14 = vadd.f32 %v21236_v38, %v8583_v10 }
 0x5e5   : > { %16725 = vmatprep.mubr.msk.f32.mxu1 %vm12574_vm5, %v12545_v3  ;;  %v8642_v52 = vmax.f32 %v8610_v49, 0.0  ;;  %v8586_v57 = vmul.f32 %v21202_v30, %v21225_v29 }
 0x5e6   : > { %v12456_v0 = vpop.permute.xlu1 %12455  ;;  %v12458_v26 = vpop.permute.xlu0 %12457  ;;  %v8613_v9 = vadd.f32 %v21236_v38, %v8576_v35  ;;  %v8644_v40 = vmax.f32 %v8612_v18, 0.0 }
 0x5e7   : > { %v12546_v28 = vsel %vm710_vm3, %v8633_v13, %v12456_v0  ;;  %v12547_v39 = vsel %vm710_vm3, %v8634_v23, %v12458_v26  ;;  %v8643_v23 = vmax.f32 %v8611_v20, 0.0  ;;  %v8614_v0 = vadd.f32 %v21236_v38, %v8577_v24 }
 0x5e8   : > { %16726 = vmatmul.mubr.msk.f32.gmra.mrb[100].mxu1 %vm12574_vm5, %v12546_v28  ;;  %v8623_v30 = vadd.f32 %v21236_v38, %v8586_v57  ;;  %v8588_v24 = vmul.f32 %v21212_v19, %v21225_v29  ;;  %v8626_v19 = vadd.f32 %v21236_v38, %v8589_v25 }
 0x5e9   : > { %16728 = vmatprep.mubr.msk.f32.mxu1 %vm12574_vm5, %v12547_v39  ;;  %v8646_v4 = vmax.f32 %v8614_v0, 0.0 }
 0x5ea   : > { %v12460_v58 = vpop.permute.xlu1 %12459  ;;  %v12462_v21 = vpop.permute.xlu0 %12461  ;;  %v8655_v51 = vmax.f32 %v8623_v30, 0.0 }
 0x5eb   : > { %v12548_v34 = vsel %vm710_vm3, %v8635_v53, %v12460_v58  ;;  %v12549_v56 = vsel %vm710_vm3, %v8636_v27, %v12462_v21  ;;  %v8645_v27 = vmax.f32 %v8613_v9, 0.0  ;;  %v8625_v9 = vadd.f32 %v21236_v38, %v8588_v24 }
 0x5ec   : > { %16729 = vmatmul.mubr.msk.f32.gmra.mrb[102].mxu1 %vm12574_vm5, %v12548_v34 }
 0x5ed   : > { %16731 = vmatprep.mubr.msk.f32.mxu1 %vm12574_vm5, %v12549_v56  ;;  %v8647_v56 = vmax.f32 %v8615_v42, 0.0 }
 0x5ee   : > { %v12464_v37 = vpop.permute.xlu1 %12463  ;;  %v12466_v54 = vpop.permute.xlu0 %12465 }
 0x5ef   : > { %v12550_v36 = vsel %vm710_vm3, %v8637_v17, %v12464_v37  ;;  %v12551_v22 = vsel %vm710_vm3, %v8638_v32, %v12466_v54  ;;  %v8648_v17 = vmax.f32 %v8616_v1, 0.0  ;;  %v8649_v54 = vmax.f32 %v8617_v41, 0.0  ;;  %v21424_v1 = vld [vmem:[%s22244_s22] ss:$0 sm:$0xff]  ;;  %s17656_s22 = sshll.u32 %s17719_s17, 4  ;;  %s17657_s22 = int_to_ptr.vmem [resolvable:$false] %s17656_s22 }
 0x5f0   : > { %16732 = vmatmul.mubr.msk.f32.gmra.mrb[104].mxu1 %vm12574_vm5, %v12550_v36  ;;  %v8584_v36 = vmul.f32 %v21192_v16, %v21225_v29  ;;  %v12970_v41 = vld [vmem:[%s17873_s13] sm:$0xff]  ;;  %s17658_s18 = scalar_lea.vmem %s17657_s22, 8192  ;;  %p17659_p1 = scmp.lt.s32.totalorder %s21594_s27, %s17657_s22 }
 0x5f1   : > { %16734 = vmatprep.mubr.msk.f32.mxu1 %vm12574_vm5, %v12551_v22  ;;  %v8650_v22 = vmax.f32 %v8618_v6, 0.0  ;;  %p17660_p2 = scmp.lt.s32.totalorder %s17658_s18, %s17652_s23 }
 0x5f2   : > { %v12468_v48 = vpop.permute.xlu1 %12467  ;;  %v12470_v11 = vpop.permute.xlu0 %12469  ;;  %v8621_v16 = vadd.f32 %v21236_v38, %v8584_v36 }
 0x5f3   : > { %v12552_v59 = vsel %vm710_vm3, %v8639_v8, %v12468_v48  ;;  %v12553_v5 = vsel %vm710_vm3, %v8640_v45, %v12470_v11  ;;  %v8651_v48 = vmax.f32 %v8619_v31, 0.0  ;;  %v8652_v11 = vmax.f32 %v8620_v14, 0.0  ;;  %v12972_v31 = vld [vmem:[%s17873_s13 + $0x10] sm:$0xff]  ;;  %p17661_p3 = por %p17660_p2, %p17659_p1 }
 0x5f4   : > { %16735 = vmatmul.mubr.msk.f32.gmra.mrb[106].mxu1 %vm12574_vm5, %v12552_v59  ;;  %v8622_v59 = vadd.f32 %v21236_v38, %v8585_v55  ;;  %v8653_v35 = vmax.f32 %v8621_v16, 0.0  ;;  %v12975_v16 = vld [vmem:[%s17873_s13 + $0x28] sm:$0xff] }
 0x5f5   : > { %16737 = vmatprep.mubr.msk.f32.mxu1 %vm12574_vm5, %v12553_v5  ;;  %p17662_p4 = pnand %p17661_p3, %p17655_p0 }
 0x5f6   : > { %v12472_v3 = vpop.permute.xlu1 %12471  ;;  %v12474_v63 = vpop.permute.xlu0 %12473  ;;  %v8654_v18 = vmax.f32 %v8622_v59, 0.0  ;;  %v12974_v59 = vld [vmem:[%s17873_s13 + $0x20] sm:$0xff] }
 0x5f7   : > { %v12554_v60 = vsel %vm710_vm3, %v8641_v62, %v12472_v3  ;;  %v12555_v13 = vsel %vm710_vm3, %v8642_v52, %v12474_v63  ;;  %v8624_v3 = vadd.f32 %v21236_v38, %v8587_v15 }
 0x5f8   : > { %16738 = vmatmul.mubr.msk.f32.gmra.mrb[108].mxu1 %vm12574_vm5, %v12554_v60 }
 0x5f9   : > { %16740 = vmatprep.mubr.msk.f32.mxu1 %vm12574_vm5, %v12555_v13 }
 0x5fa   : > { %v12476_v26 = vpop.permute.xlu1 %12475  ;;  %v12478_v28 = vpop.permute.xlu0 %12477 }
 0x5fb   : > { %v12556_v39 = vsel %vm710_vm3, %v8643_v23, %v12476_v26  ;;  %v12557_v53 = vsel %vm710_vm3, %v8644_v40, %v12478_v28  ;;  %v8656_v40 = vmax.f32 %v8624_v3, 0.0  ;;  %v8657_v26 = vmax.f32 %v8625_v9, 0.0 }
 0x5fc   : > { %16741 = vmatmul.mubr.msk.f32.gmra.mrb[110].mxu1 %vm12574_vm5, %v12556_v39  ;;  %v8658_v28 = vmax.f32 %v8626_v19, 0.0 }
 0x5fd   : > { %16743 = vmatprep.mubr.msk.f32.mxu1 %vm12574_vm5, %v12557_v53 }
 0x5fe   : > { %v12480_v47 = vpop.permute.xlu1 %12479  ;;  %v12482_v58 = vpop.permute.xlu0 %12481 }
 0x5ff   : > { %v12558_v21 = vsel %vm710_vm3, %v8645_v27, %v12480_v47  ;;  %v12559_v34 = vsel %vm710_vm3, %v8646_v4, %v12482_v58  ;;  %v21429_v47 = vld [vmem:[%s22245_s0 + $0x1] ss:$0 sm:$0xff] }
 0x600   : > { %16744 = vmatmul.mubr.msk.f32.gmra.mrb[112].mxu1 %vm12574_vm5, %v12558_v21  ;;  %v12971_v21 = vld [vmem:[%s17873_s13 + $0x8] sm:$0xff] }
 0x601   : > { %16746 = vmatprep.mubr.msk.f32.mxu1 %vm12574_vm5, %v12559_v34 }
 0x602   : > { %v12484_v32 = vpop.permute.xlu1 %12483  ;;  %v12486_v44 = vpop.permute.xlu0 %12485 }
 0x603   : > { %v12560_v7 = vsel %vm710_vm3, %v8647_v56, %v12484_v32  ;;  %v12561_v37 = vsel %vm710_vm3, %v8648_v17, %v12486_v44 }
 0x604   : > { %16747 = vmatmul.mubr.msk.f32.gmra.mrb[114].mxu1 %vm12574_vm5, %v12560_v7  ;;  %v12973_v7 = vld [vmem:[%s17873_s13 + $0x18] sm:$0xff] }
 0x605   : > { %16749 = vmatprep.mubr.msk.f32.mxu1 %vm12574_vm5, %v12561_v37 }
 0x606   : > { %v12488_v12 = vpop.permute.xlu1 %12487  ;;  %v12490_v8 = vpop.permute.xlu0 %12489 }
 0x607   : > { %v12562_v45 = vsel %vm710_vm3, %v8649_v54, %v12488_v12  ;;  %v12563_v49 = vsel %vm710_vm3, %v8650_v22, %v12490_v8 }
 0x608   : > { %16750 = vmatmul.mubr.msk.f32.gmra.mrb[116].mxu1 %vm12574_vm5, %v12562_v45 }
 0x609   : > { %16752 = vmatprep.mubr.msk.f32.mxu1 %vm12574_vm5, %v12563_v49 }
 0x60a   : > { %v12492_v5 = vpop.permute.xlu1 %12491  ;;  %v12494_v62 = vpop.permute.xlu0 %12493 }
 0x60b   : > { %v12564_v20 = vsel %vm710_vm3, %v8651_v48, %v12492_v5  ;;  %v12565_v52 = vsel %vm710_vm3, %v8652_v11, %v12494_v62 }
 0x60c   : > { %16753 = vmatmul.mubr.msk.f32.gmra.mrb[118].mxu1 %vm12574_vm5, %v12564_v20 }
 0x60d   : > { %16755 = vmatprep.mubr.msk.f32.mxu1 %vm12574_vm5, %v12565_v52 }
 0x60e   : > { %v12496_v63 = vpop.permute.xlu1 %12495  ;;  %v12498_v60 = vpop.permute.xlu0 %12497 }
 0x60f   : > { %v12566_v13 = vsel %vm710_vm3, %v8653_v35, %v12496_v63  ;;  %v12567_v23 = vsel %vm710_vm3, %v8654_v18, %v12498_v60  ;;  %v12977_v18 = vld [vmem:[%s17873_s13 + $0x38] sm:$0xff]  ;;  %v12976_v63 = vld [vmem:[%s17873_s13 + $0x30] sm:$0xff] }
 0x610   : > { %16756 = vmatmul.mubr.msk.f32.gmra.mrb[120].mxu1 %vm12574_vm5, %v12566_v13 }
 0x611   : > { %16758 = vmatprep.mubr.msk.f32.mxu1 %vm12574_vm5, %v12567_v23 }
 0x612   : > { %v12500_v0 = vpop.permute.xlu1 %12499  ;;  %v12502_v29 = vpop.permute.xlu0 %12501 }
 0x613   : > { %v12568_v61 = vsel %vm710_vm3, %v8655_v51, %v12500_v0  ;;  %v12569_v46 = vsel %vm710_vm3, %v8656_v40, %v12502_v29  ;;  %v12979_v0 = vld [vmem:[%s17873_s13 + $0x48] sm:$0xff] }
 0x614   : > { %16759 = vmatmul.mubr.msk.f32.gmra.mrb[122].mxu1 %vm12574_vm5, %v12568_v61 }
 0x615   : > { %16761 = vmatprep.mubr.msk.f32.mxu1 %vm12574_vm5, %v12569_v46 }
 0x616   : > { %v12504_v39 = vpop.permute.xlu1 %12503  ;;  %v12506_v53 = vpop.permute.xlu0 %12505 }
 0x617   : > { %v12570_v42 = vsel %vm710_vm3, %v8657_v26, %v12504_v39  ;;  %v12571_v38 = vsel %vm710_vm3, %v8658_v28, %v12506_v53  ;;  %v12978_v26 = vld [vmem:[%s17873_s13 + $0x40] sm:$0xff] }
 0x618   : > { %16762 = vmatmul.mubr.msk.f32.gmra.mrb[124].mxu1 %vm12574_vm5, %v12570_v42 }
 0x619   : > { %16764 = vmatprep.mubr.msk.f32.mxu1 %vm12574_vm5, %v12571_v38 }
 0x61a   : > { %v12508_v27 = vpop.permute.xlu1 %12507 }
 0x61b   : > { %v12572_v4 = vsel %vm710_vm3, %v8659_v43, %v12508_v27 }
 0x61c   : > { %16765 = vmatmul.mubr.msk.f32.gmra.mrb[126].mxu1 %vm12574_vm5, %v12572_v4  ;;  %v12981_v4 = vld [vmem:[%s17873_s13 + $0x58] sm:$0xff] }
 0x6b3   : > { %v16721_v33 = vpop.f32.mrb[96].mxu1 }
 0x6b4   : > { %v12902_v2 = vmul.f32 %v16721_v33, %v21424_v1  ;;  %v12737_v58 = vpop.f32.mrb[97].mxu1 }
 0x6b5   : > { %v12901_v34 = vmul.f32 %v21424_v1, %v12737_v58 }
 0x6b6   : > { %v12939_v56 = vadd.f32 %v21429_v47, %v12902_v2 }
 0x6b7   : > { %v12938_v17 = vadd.f32 %v21429_v47, %v12901_v34  ;;  %v16724_v50 = vpop.f32.mrb[98].mxu1 }
 0x6b8   : > { %v13003_v6 = vadd.f32 %v12971_v21, %v12939_v56  ;;  %v12904_v10 = vmul.f32 %v16724_v50, %v21424_v1  ;;  %v12747_v32 = vpop.f32.mrb[99].mxu1  ;;  %v12980_v21 = vld [vmem:[%s17873_s13 + $0x50] sm:$0xff] }
 0x6b9   : > { %v13002_v44 = vadd.f32 %v12970_v41, %v12938_v17  ;;  %v12903_v37 = vmul.f32 %v21424_v1, %v12747_v32  ;;  %v12983_v32 = vld [vmem:[%s17873_s13 + $0x68] sm:$0xff] }
 0x6ba   : > { %v13035_v54 = vmax.f32 %v13003_v6, 0.0  ;;  %v12941_v36 = vadd.f32 %v21429_v47, %v12904_v10 }
 0x6bb   : > { %v13034_v22 = vmax.f32 %v13002_v44, 0.0  ;;  %v12940_v14 = vadd.f32 %v21429_v47, %v12903_v37  ;;  %v16727_v55 = vpop.f32.mrb[100].mxu1 }
 0x6bc   : > { %13067 = vst.msk [vmem:[%s17890_s20 + $0x8] sm:$0xff] %vm4667_vm4, %v13035_v54  ;;  %v13005_v12 = vadd.f32 %v12973_v7, %v12941_v36  ;;  %v12906_v8 = vmul.f32 %v16727_v55, %v21424_v1  ;;  %v12757_v45 = vpop.f32.mrb[101].mxu1  ;;  %v12982_v54 = vld [vmem:[%s17873_s13 + $0x60] sm:$0xff] }
 0x6bd   : > { %13066 = vst.msk [vmem:[%s17890_s20] sm:$0xff] %vm4667_vm4, %v13034_v22  ;;  %v13004_v49 = vadd.f32 %v12972_v31, %v12940_v14  ;;  %v12905_v57 = vmul.f32 %v21424_v1, %v12757_v45  ;;  %v12985_v45 = vld [vmem:[%s17873_s13 + $0x78] sm:$0xff] }
 0x6be   : > { %v13037_v48 = vmax.f32 %v13005_v12, 0.0  ;;  %v12943_v11 = vadd.f32 %v21429_v47, %v12906_v8 }
 0x6bf   : > { %v13036_v15 = vmax.f32 %v13004_v49, 0.0  ;;  %v12942_v5 = vadd.f32 %v21429_v47, %v12905_v57  ;;  %v16730_v62 = vpop.f32.mrb[102].mxu1 }
 0x6c0   : > { %13069 = vst.msk [vmem:[%s17890_s20 + $0x18] sm:$0xff] %vm4667_vm4, %v13037_v48  ;;  %v13007_v20 = vadd.f32 %v12975_v16, %v12943_v11  ;;  %v12908_v52 = vmul.f32 %v16730_v62, %v21424_v1  ;;  %v12767_v35 = vpop.f32.mrb[103].mxu1  ;;  %v12984_v48 = vld [vmem:[%s17873_s13 + $0x70] sm:$0xff] }
 0x6c1   : > { %13068 = vst.msk [vmem:[%s17890_s20 + $0x10] sm:$0xff] %vm4667_vm4, %v13036_v15  ;;  %v13006_v30 = vadd.f32 %v12974_v59, %v12942_v5  ;;  %v12907_v24 = vmul.f32 %v21424_v1, %v12767_v35  ;;  %v12987_v35 = vld [vmem:[%s17873_s13 + $0x88] sm:$0xff] }
 0x6c2   : > { %v13039_v3 = vmax.f32 %v13007_v20, 0.0  ;;  %v12945_v25 = vadd.f32 %v21429_v47, %v12908_v52 }
 0x6c3   : > { %v13038_v60 = vmax.f32 %v13006_v30, 0.0  ;;  %v12944_v13 = vadd.f32 %v21429_v47, %v12907_v24  ;;  %v16733_v23 = vpop.f32.mrb[104].mxu1 }
 0x6c4   : > { %13071 = vst.msk [vmem:[%s17890_s20 + $0x28] sm:$0xff] %vm4667_vm4, %v13039_v3  ;;  %v13009_v51 = vadd.f32 %v12977_v18, %v12945_v25  ;;  %v12910_v9 = vmul.f32 %v16733_v23, %v21424_v1  ;;  %v12777_v40 = vpop.f32.mrb[105].mxu1  ;;  %v12986_v3 = vld [vmem:[%s17873_s13 + $0x80] sm:$0xff] }
 0x6c5   : > { %13070 = vst.msk [vmem:[%s17890_s20 + $0x20] sm:$0xff] %vm4667_vm4, %v13038_v60  ;;  %v13008_v19 = vadd.f32 %v12976_v63, %v12944_v13  ;;  %v12909_v29 = vmul.f32 %v21424_v1, %v12777_v40  ;;  %v12989_v40 = vld [vmem:[%s17873_s13 + $0x98] sm:$0xff] }
 0x6c6   : > { %v13041_v61 = vmax.f32 %v13009_v51, 0.0  ;;  %v12947_v46 = vadd.f32 %v21429_v47, %v12910_v9 }
 0x6c7   : > { %v13040_v28 = vmax.f32 %v13008_v19, 0.0  ;;  %v12946_v39 = vadd.f32 %v21429_v47, %v12909_v29  ;;  %v16736_v53 = vpop.f32.mrb[106].mxu1 }
 0x6c8   : > { %13073 = vst.msk [vmem:[%s17890_s20 + $0x38] sm:$0xff] %vm4667_vm4, %v13041_v61  ;;  %v13011_v42 = vadd.f32 %v12979_v0, %v12947_v46  ;;  %v12912_v38 = vmul.f32 %v16736_v53, %v21424_v1  ;;  %v12787_v43 = vpop.f32.mrb[107].mxu1  ;;  %v12988_v61 = vld [vmem:[%s17873_s13 + $0x90] sm:$0xff] }
 0x6c9   : > { %13072 = vst.msk [vmem:[%s17890_s20 + $0x30] sm:$0xff] %vm4667_vm4, %v13040_v28  ;;  %v13010_v27 = vadd.f32 %v12978_v26, %v12946_v39  ;;  %v12911_v33 = vmul.f32 %v21424_v1, %v12787_v43  ;;  %v12991_v43 = vld [vmem:[%s17873_s13 + $0xa8] sm:$0xff] }
 0x6ca   : > { %v13043_v2 = vmax.f32 %v13011_v42, 0.0  ;;  %v12949_v58 = vadd.f32 %v21429_v47, %v12912_v38 }
 0x6cb   : > { %v13042_v34 = vmax.f32 %v13010_v27, 0.0  ;;  %v12948_v56 = vadd.f32 %v21429_v47, %v12911_v33  ;;  %v16739_v41 = vpop.f32.mrb[108].mxu1 }
 0x6cc   : > { %13075 = vst.msk [vmem:[%s17890_s20 + $0x48] sm:$0xff] %vm4667_vm4, %v13043_v2  ;;  %v13013_v17 = vadd.f32 %v12981_v4, %v12949_v58  ;;  %v12914_v50 = vmul.f32 %v16739_v41, %v21424_v1  ;;  %v12797_v6 = vpop.f32.mrb[109].mxu1  ;;  %v12990_v2 = vld [vmem:[%s17873_s13 + $0xa0] sm:$0xff] }
 0x6cd   : > { %13074 = vst.msk [vmem:[%s17890_s20 + $0x40] sm:$0xff] %vm4667_vm4, %v13042_v34  ;;  %v13012_v10 = vadd.f32 %v12980_v21, %v12948_v56  ;;  %v12913_v44 = vmul.f32 %v21424_v1, %v12797_v6  ;;  %v12993_v6 = vld [vmem:[%s17873_s13 + $0xb8] sm:$0xff] }
 0x6ce   : > { %v13045_v7 = vmax.f32 %v13013_v17, 0.0  ;;  %v12951_v37 = vadd.f32 %v21429_v47, %v12914_v50 }
 0x6cf   : > { %v13044_v36 = vmax.f32 %v13012_v10, 0.0  ;;  %v12950_v31 = vadd.f32 %v21429_v47, %v12913_v44  ;;  %v16742_v22 = vpop.f32.mrb[110].mxu1 }
 0x6d0   : > { %13077 = vst.msk [vmem:[%s17890_s20 + $0x58] sm:$0xff] %vm4667_vm4, %v13045_v7  ;;  %v13015_v14 = vadd.f32 %v12983_v32, %v12951_v37  ;;  %v12916_v55 = vmul.f32 %v16742_v22, %v21424_v1  ;;  %v12807_v12 = vpop.f32.mrb[111].mxu1  ;;  %v12992_v7 = vld [vmem:[%s17873_s13 + $0xb0] sm:$0xff] }
 0x6d1   : > { %13076 = vst.msk [vmem:[%s17890_s20 + $0x50] sm:$0xff] %vm4667_vm4, %v13044_v36  ;;  %v13014_v8 = vadd.f32 %v12982_v54, %v12950_v31  ;;  %v12915_v49 = vmul.f32 %v21424_v1, %v12807_v12  ;;  %v12995_v12 = vld [vmem:[%s17873_s13 + $0xc8] sm:$0xff] }
 0x6d2   : > { %v13047_v16 = vmax.f32 %v13015_v14, 0.0  ;;  %v12953_v57 = vadd.f32 %v21429_v47, %v12916_v55 }
 0x6d3   : > { %v13046_v11 = vmax.f32 %v13014_v8, 0.0  ;;  %v12952_v59 = vadd.f32 %v21429_v47, %v12915_v49  ;;  %v16745_v15 = vpop.f32.mrb[112].mxu1 }
 0x6d4   : > { %13079 = vst.msk [vmem:[%s17890_s20 + $0x68] sm:$0xff] %vm4667_vm4, %v13047_v16  ;;  %v13017_v5 = vadd.f32 %v12985_v45, %v12953_v57  ;;  %v12918_v62 = vmul.f32 %v16745_v15, %v21424_v1  ;;  %v12817_v20 = vpop.f32.mrb[113].mxu1  ;;  %v12994_v16 = vld [vmem:[%s17873_s13 + $0xc0] sm:$0xff] }
 0x6d5   : > { %13078 = vst.msk [vmem:[%s17890_s20 + $0x60] sm:$0xff] %vm4667_vm4, %v13046_v11  ;;  %v13016_v52 = vadd.f32 %v12984_v48, %v12952_v59  ;;  %v12917_v30 = vmul.f32 %v21424_v1, %v12817_v20  ;;  %v12997_v20 = vld [vmem:[%s17873_s13 + $0xd8] sm:$0xff] }
 0x6d6   : > { %v13049_v18 = vmax.f32 %v13017_v5, 0.0  ;;  %v12955_v24 = vadd.f32 %v21429_v47, %v12918_v62 }
 0x6d7   : > { %v13048_v25 = vmax.f32 %v13016_v52, 0.0  ;;  %v12954_v63 = vadd.f32 %v21429_v47, %v12917_v30  ;;  %v16748_v60 = vpop.f32.mrb[114].mxu1 }
 0x6d8   : > { %13081 = vst.msk [vmem:[%s17890_s20 + $0x78] sm:$0xff] %vm4667_vm4, %v13049_v18  ;;  %v13019_v13 = vadd.f32 %v12987_v35, %v12955_v24  ;;  %v12920_v23 = vmul.f32 %v16748_v60, %v21424_v1  ;;  %v12827_v51 = vpop.f32.mrb[115].mxu1  ;;  %v12996_v18 = vld [vmem:[%s17873_s13 + $0xd0] sm:$0xff] }
 0x6d9   : > { %13080 = vst.msk [vmem:[%s17890_s20 + $0x70] sm:$0xff] %vm4667_vm4, %v13048_v25  ;;  %v13018_v9 = vadd.f32 %v12986_v3, %v12954_v63  ;;  %v12919_v19 = vmul.f32 %v21424_v1, %v12827_v51  ;;  %v12999_v51 = vld [vmem:[%s17873_s13 + $0xe8] sm:$0xff] }
 0x6da   : > { %v13051_v0 = vmax.f32 %v13019_v13, 0.0  ;;  %v12957_v29 = vadd.f32 %v21429_v47, %v12920_v23 }
 0x6db   : > { %v13050_v46 = vmax.f32 %v13018_v9, 0.0  ;;  %v12956_v26 = vadd.f32 %v21429_v47, %v12919_v19  ;;  %v16751_v28 = vpop.f32.mrb[116].mxu1 }
 0x6dc   : > { %13083 = vst.msk [vmem:[%s17890_s20 + $0x88] sm:$0xff] %vm4667_vm4, %v13051_v0  ;;  %v13021_v39 = vadd.f32 %v12989_v40, %v12957_v29  ;;  %v12922_v53 = vmul.f32 %v16751_v28, %v21424_v1  ;;  %v12837_v42 = vpop.f32.mrb[117].mxu1  ;;  %v12998_v0 = vld [vmem:[%s17873_s13 + $0xe0] sm:$0xff] }
 0x6dd   : > { %13082 = vst.msk [vmem:[%s17890_s20 + $0x80] sm:$0xff] %vm4667_vm4, %v13050_v46  ;;  %v13020_v38 = vadd.f32 %v12988_v61, %v12956_v26  ;;  %v12921_v27 = vmul.f32 %v21424_v1, %v12837_v42  ;;  %v13001_v42 = vld [vmem:[%s17873_s13 + $0xf8] sm:$0xff] }
 0x6de   : > { %v13053_v4 = vmax.f32 %v13021_v39, 0.0  ;;  %v12959_v33 = vadd.f32 %v21429_v47, %v12922_v53 }
 0x6df   : > { %v13052_v58 = vmax.f32 %v13020_v38, 0.0  ;;  %v12958_v21 = vadd.f32 %v21429_v47, %v12921_v27  ;;  %v16754_v34 = vpop.f32.mrb[118].mxu1 }
 0x6e0   : > { %13085 = vst.msk [vmem:[%s17890_s20 + $0x98] sm:$0xff] %vm4667_vm4, %v13053_v4  ;;  %v13023_v56 = vadd.f32 %v12991_v43, %v12959_v33  ;;  %v12924_v41 = vmul.f32 %v16754_v34, %v21424_v1  ;;  %v12847_v17 = vpop.f32.mrb[119].mxu1  ;;  %v13000_v4 = vld [vmem:[%s17873_s13 + $0xf0] sm:$0xff]  ;;  %s22250_s13 = sand.u32 1, %s22246_s26  }
 0x6e1   : > { %13084 = vst.msk [vmem:[%s17890_s20 + $0x90] sm:$0xff] %vm4667_vm4, %v13052_v58  ;;  %v13022_v50 = vadd.f32 %v12990_v2, %v12958_v21  ;;  %v12923_v10 = vmul.f32 %v21424_v1, %v12847_v17  ;;  %s21602_s25 = scalar_lea.sflag [#allocation4], %s22250_s13 }
 0x6e2   : > { %v13055_v32 = vmax.f32 %v13023_v56, 0.0  ;;  %v12961_v44 = vadd.f32 %v21429_v47, %v12924_v41 }
 0x6e3   : > { %v13054_v37 = vmax.f32 %v13022_v50, 0.0  ;;  %v12960_v54 = vadd.f32 %v21429_v47, %v12923_v10  ;;  %v16757_v36 = vpop.f32.mrb[120].mxu1 }
 0x6e4   : > { %13087 = vst.msk [vmem:[%s17890_s20 + $0xa8] sm:$0xff] %vm4667_vm4, %v13055_v32  ;;  %v13025_v31 = vadd.f32 %v12993_v6, %v12961_v44  ;;  %v12926_v22 = vmul.f32 %v16757_v36, %v21424_v1  ;;  %v12857_v14 = vpop.f32.mrb[121].mxu1 }
 0x6e5   : > { %13086 = vst.msk [vmem:[%s17890_s20 + $0xa0] sm:$0xff] %vm4667_vm4, %v13054_v37  ;;  %v13024_v55 = vadd.f32 %v12992_v7, %v12960_v54  ;;  %v12925_v8 = vmul.f32 %v21424_v1, %v12857_v14 }
 0x6e6   : > { %v13057_v45 = vmax.f32 %v13025_v31, 0.0  ;;  %v12963_v49 = vadd.f32 %v21429_v47, %v12926_v22 }
 0x6e7   : > { %v13056_v57 = vmax.f32 %v13024_v55, 0.0  ;;  %v12962_v48 = vadd.f32 %v21429_v47, %v12925_v8  ;;  %v16760_v11 = vpop.f32.mrb[122].mxu1 }
 0x6e8   : > { %13089 = vst.msk [vmem:[%s17890_s20 + $0xb8] sm:$0xff] %vm4667_vm4, %v13057_v45  ;;  %v13027_v59 = vadd.f32 %v12995_v12, %v12963_v49  ;;  %v12928_v15 = vmul.f32 %v16760_v11, %v21424_v1  ;;  %v12867_v5 = vpop.f32.mrb[123].mxu1 }
 0x6e9   : > { %13088 = vst.msk [vmem:[%s17890_s20 + $0xb0] sm:$0xff] %vm4667_vm4, %v13056_v57  ;;  %v13026_v62 = vadd.f32 %v12994_v16, %v12962_v48  ;;  %v12927_v52 = vmul.f32 %v21424_v1, %v12867_v5 }
 0x6ea   : > { %v13059_v35 = vmax.f32 %v13027_v59, 0.0  ;;  %v12965_v30 = vadd.f32 %v21429_v47, %v12928_v15 }
 0x6eb   : > { %v13058_v24 = vmax.f32 %v13026_v62, 0.0  ;;  %v12964_v3 = vadd.f32 %v21429_v47, %v12927_v52  ;;  %v16763_v25 = vpop.f32.mrb[124].mxu1 }
 0x6ec   : > { %13091 = vst.msk [vmem:[%s17890_s20 + $0xc8] sm:$0xff] %vm4667_vm4, %v13059_v35  ;;  %v13029_v63 = vadd.f32 %v12997_v20, %v12965_v30  ;;  %v12930_v60 = vmul.f32 %v16763_v25, %v21424_v1  ;;  %v12877_v13 = vpop.f32.mrb[125].mxu1 }
 0x6ed   : > { %13090 = vst.msk [vmem:[%s17890_s20 + $0xc0] sm:$0xff] %vm4667_vm4, %v13058_v24  ;;  %v13028_v23 = vadd.f32 %v12996_v18, %v12964_v3  ;;  %v12929_v9 = vmul.f32 %v21424_v1, %v12877_v13 }
 0x6ee   : > { %v13061_v40 = vmax.f32 %v13029_v63, 0.0  ;;  %v12967_v19 = vadd.f32 %v21429_v47, %v12930_v60 }
 0x6ef   : > { %v13060_v29 = vmax.f32 %v13028_v23, 0.0  ;;  %v12966_v61 = vadd.f32 %v21429_v47, %v12929_v9  ;;  %v16766_v46 = vpop.f32.mrb[126].mxu1 }
 0x6f0   : > { %13093 = vst.msk [vmem:[%s17890_s20 + $0xd8] sm:$0xff] %vm4667_vm4, %v13061_v40  ;;  %v13031_v26 = vadd.f32 %v12999_v51, %v12967_v19  ;;  %v12932_v28 = vmul.f32 %v16766_v46, %v21424_v1  ;;  %v12887_v39 = vpop.f32.mrb[127].mxu1 }
 0x6f1   : > { %13092 = vst.msk [vmem:[%s17890_s20 + $0xd0] sm:$0xff] %vm4667_vm4, %v13060_v29  ;;  %v13030_v53 = vadd.f32 %v12998_v0, %v12966_v61  ;;  %v12931_v38 = vmul.f32 %v21424_v1, %v12887_v39 }
 0x6f2   : > { %v13063_v43 = vmax.f32 %v13031_v26, 0.0  ;;  %v12969_v27 = vadd.f32 %v21429_v47, %v12932_v28 }
 0x6f3   : > { %v13062_v33 = vmax.f32 %v13030_v53, 0.0  ;;  %v12968_v2 = vadd.f32 %v21429_v47, %v12931_v38 }
 0x6f4   : > { %13095 = vst.msk [vmem:[%s17890_s20 + $0xe8] sm:$0xff] %vm4667_vm4, %v13063_v43  ;;  %v13033_v58 = vadd.f32 %v13001_v42, %v12969_v27 }
 0x6f5   : > { %13094 = vst.msk [vmem:[%s17890_s20 + $0xe0] sm:$0xff] %vm4667_vm4, %v13062_v33  ;;  %v13032_v21 = vadd.f32 %v13000_v4, %v12968_v2 }
 0x6f6   : > { %v13065_v1 = vmax.f32 %v13033_v58, 0.0 }
 0x6f7   : > { %v13064_v47 = vmax.f32 %v13032_v21, 0.0 }
 0x6f8   : > { %13097 = vst.msk [vmem:[%s17890_s20 + $0xf8] sm:$0xff] %vm4667_vm4, %v13065_v1 }
 0x6f9   : > { %13096 = vst.msk [vmem:[%s17890_s20 + $0xf0] sm:$0xff] %vm4667_vm4, %v13064_v47 }
 0x6fa   : > { %17665 = shalt.err (!%p17662_p4)
}
 0x6fb   : > { %s17666_s20 = scalar_lea.hbm %s21592_s16, 4096  ;;  %s17670_s29 = scalar_lea.hbm %s22249_s14, 8192 }
 0x6fc   : > { %p17667_p7 = scmp.ne.s32.totalorder %s21592_s16, %s17666_s20  ;;  %p17671_p10 = scmp.lt.u32.totalorder %s21592_s16, %s22249_s14 }
 0x6fd   : > { %p17672_p11 = scmp.lt.u32.totalorder %s17670_s29, %s17666_s20  ;;  %p17674_p13 = scmp.lt.u32.totalorder %s17666_s20, %s21592_s16 }
 0x6fe   : > { %p17668_p8 = pnand %p17667_p7, %p17845_p5 }
 0x6ff   : > { %p17673_p12 = por %p17672_p11, %p17671_p10 }
 0x700   : > { %p17669_p9 = pneg %p17668_p8 }
 0x701   : > { %p17675_p0 = por %p17674_p13, %p17673_p12 }
 0x703   : > { %p17676_p1 = pnand %p17675_p0, %p17669_p9 }
 0x705   : > { %17679 = shalt.err (!%p17676_p1)
}
 0x706   : > { %s17720_s24 = smov 128   ;;  %s17721_s13 = smov 8  }
 0x707   : > { %17603 = dma.vmem_to_hbm [thread:$0]  (%p17845_p5), %s21594_s27, 4096, %s21592_s16, %s21602_s25, %s17720_s24, %s17720_s24, %s17721_s13  }
 0x708 PF: > { %s22251_s23 = sld [smem:[#allocation9_spill]]  ;;  %s22252_s17 = sld [smem:[#allocation6_spill]] }
 0x70e   : > { %p17609_p2 = scmp.ge.s32.totalorder %s22251_s23, 2  ;;  %s13127_s18 = sand.u32 1, %s22252_s17  }
 0x70f   : > { %s13128_s20 = scalar_lea.sflag [#allocation4], %s13127_s18 }
 0x710   : > { %p17606_p3 = pnand %p17609_p2, %p17849_p6 }
 0x712   : > { %17697 = dma.done.wait (!%p17606_p3), %s13128_s20, 4096  }
 0x713   : > { %17699 = vsyncadd (!%p17606_p3), %s13128_s20, 4294963200  ;;  %s22254_s24 = sld [smem:[#allocation10_spill]]  ;;  %s22255_s21 = sld [smem:[#allocation7_spill]] }
 0x714   : > { %s22256_s22 = sld [smem:[#allocation8_spill]]  ;;  %s22257_s23 = sld [smem:[#allocation11_spill]] }
 0x719   : > { %p26_p4 = scmp.ge.s32.totalorder %s22254_s24, 4  }
 0x71b   :  { %28 = sbr.rel (!%p26_p4) target bundleno = 10 (0xa), region = 140 }
 0x722   :  { %13133 = vsyncpa [#allocation4], 1 }
 0x723   :  { %13135 = vsyncpa [#allocation4 + $0x1], 1 }

</bundles_post_ra>
